<compile_context>
chip_gen: v6e
topology: v6e:2x2x1
jax: 0.10.0
libtpu: 0.0.40
codegen_flags: <defaults>
</compile_context>

<pallas_src>
import numpy as np

import jax
import jax.numpy as jnp
from jax.experimental import pallas as pl
from jax.experimental.pallas import tpu as pltpu

_EPS = 1e-5
_NEG = -1e30


# --------------------- trace-time constant gather matrices -------------------

def _conv_gather(n, h, w, stride):
    """3x3 / pad 1 conv: per-tap row-selection matrices (zero rows = padding)."""
    ho = (h + 2 - 3) // stride + 1
    wo = (w + 2 - 3) // stride + 1
    m_out, m_in = n * ho * wo, n * h * w
    mats, taps = [], []
    for ki in range(3):
        for kj in range(3):
            g = np.zeros((m_out, m_in), np.float32)
            valid = False
            for ni in range(n):
                for oh in range(ho):
                    for ow in range(wo):
                        hi = oh * stride - 1 + ki
                        wi = ow * stride - 1 + kj
                        if 0 <= hi < h and 0 <= wi < w:
                            g[ni * ho * wo + oh * wo + ow,
                              ni * h * w + hi * w + wi] = 1.0
                            valid = True
            if valid:                       # statically skip all-padding taps
                mats.append(g)
                taps.append(ki * 3 + kj)
    return np.stack(mats), tuple(taps), (ho, wo)


def _pool_gather(n, h, w):
    """MaxPool 3x3 / s2 / p1: per-tap selection + (-inf) bias for padded taps."""
    ho = (h + 2 - 3) // 2 + 1
    wo = (w + 2 - 3) // 2 + 1
    m_out, m_in = n * ho * wo, n * h * w
    sel = np.zeros((9, m_out, m_in), np.float32)
    bias = np.full((9, m_out, 1), _NEG, np.float32)
    for t, (ki, kj) in enumerate([(i, j) for i in range(3) for j in range(3)]):
        for ni in range(n):
            for oh in range(ho):
                for ow in range(wo):
                    hi = oh * 2 - 1 + ki
                    wi = ow * 2 - 1 + kj
                    if 0 <= hi < h and 0 <= wi < w:
                        sel[t, ni * ho * wo + oh * wo + ow,
                            ni * h * w + hi * w + wi] = 1.0
                        bias[t, ni * ho * wo + oh * wo + ow, 0] = 0.0
    return sel, bias, (ho, wo)


def _sub_gather(n, h, w):
    """1x1 conv stride-2 (no pad) input subsampling as a selection matrix."""
    ho = (h - 1) // 2 + 1
    wo = (w - 1) // 2 + 1
    g = np.zeros((n * ho * wo, n * h * w), np.float32)
    for ni in range(n):
        for oh in range(ho):
            for ow in range(wo):
                g[ni * ho * wo + oh * wo + ow,
                  ni * h * w + (2 * oh) * w + (2 * ow)] = 1.0
    return g, (ho, wo)


def _gap_matrix(n, hw):
    """AdaptiveAvgPool2d(1) as (N, N*H*W) matrix with 1/(H*W) folded in."""
    p = np.zeros((n, n * hw), np.float32)
    for ni in range(n):
        p[ni, ni * hw:(ni + 1) * hw] = 1.0 / hw
    return p


def _im2col(x, kh, kw, stride, pad):
    """Plain-JAX im2col — used ONLY for the stem conv on the raw input."""
    n, h, w, c = x.shape
    xp = jnp.pad(x, ((0, 0), (pad, pad), (pad, pad), (0, 0)))
    ho = (h + 2 * pad - kh) // stride + 1
    wo = (w + 2 * pad - kw) // stride + 1
    cols = [xp[:, i:i + stride * ho:stride, j:j + stride * wo:stride, :]
            for i in range(kh) for j in range(kw)]
    patches = jnp.stack(cols, axis=3)                 # (N, Ho, Wo, KH*KW, C)
    return patches.reshape(n * ho * wo, kh * kw * c), (n, ho, wo)


# ---------------------------- fused mega-kernel ------------------------------

def _bn(y, bn):
    """Training-mode BatchNorm over rows, one-pass stats, f32 epilogue."""
    gamma, beta = bn[0:1, :], bn[1:2, :]
    m = y.shape[0]
    mean = jnp.sum(y, axis=0, keepdims=True) * (1.0 / m)
    var = jnp.sum(y * y, axis=0, keepdims=True) * (1.0 / m) - mean * mean
    return (y - mean) * jax.lax.rsqrt(jnp.maximum(var, 0.0) + _EPS) * gamma + beta


def _conv3x3(x_f32, g_ref, taps, w_ref):
    """3x3 conv (pad=1) as per-active-tap selection matmuls, f32 accumulation."""
    xb = x_f32.astype(jnp.bfloat16)
    acc = None
    for a, t in enumerate(taps):
        tap = jnp.dot(g_ref[a], xb, preferred_element_type=jnp.float32)
        y = jnp.dot(tap.astype(jnp.bfloat16), w_ref[t],
                    preferred_element_type=jnp.float32)
        acc = y if acc is None else acc + y
    return acc


def _make_kernel(block_plan, n_pool_taps):
    def kernel(*refs):
        it = iter(refs)
        nxt = lambda: next(it)

        # ---- stem Conv7x7/s2/p3 as one matmul on pre-built im2col columns ----
        cols_ref, wstem_ref = nxt(), nxt()
        y = jnp.dot(cols_ref[...], wstem_ref[...],
                    preferred_element_type=jnp.float32)            # (128, 64) f32

        # ---- MaxPool3x3/s2/p1 + BN + ReLU (fused, f32 conv outputs) ----
        psel_ref, pbias_ref, bn0_ref = nxt(), nxt(), nxt()
        m = None
        for t in range(n_pool_taps):
            v = jnp.dot(psel_ref[t], y,
                        preferred_element_type=jnp.float32) + pbias_ref[t]
            m = v if m is None else jnp.maximum(m, v)
        x = jnp.maximum(_bn(m, bn0_ref[...]), 0.0)                 # (32, 64) f32

        # ---- residual blocks (all activations stay in VMEM / vregs) ----
        for blk in block_plan:
            g1_ref, w1_ref, bn1_ref = nxt(), nxt(), nxt()
            g2_ref, w2_ref, bn2_ref = nxt(), nxt(), nxt()
            if blk['downsample']:
                ssub_ref, wsc_ref, bnsc_ref = nxt(), nxt(), nxt()
                xb = x.astype(jnp.bfloat16)
                sub = jnp.dot(ssub_ref[...], xb,
                              preferred_element_type=jnp.float32)
                sc = _bn(jnp.dot(sub.astype(jnp.bfloat16), wsc_ref[...],
                                 preferred_element_type=jnp.float32),
                         bnsc_ref[...])
            else:
                sc = x
            y1 = jnp.maximum(_bn(_conv3x3(x, g1_ref, blk['taps1'], w1_ref),
                                 bn1_ref[...]), 0.0)
            y2 = jnp.maximum(_bn(_conv3x3(y1, g2_ref, blk['taps2'], w2_ref),
                                 bn2_ref[...]), 0.0)
            x = jnp.maximum(y2 + sc, 0.0)

        # ---- GAP (1/(H*W) folded into pool matrix) + FC, f32, lane-dense ----
        pool_ref, wfc_ref, bfc_ref = nxt(), nxt(), nxt()
        out_ref = nxt()
        gap = jnp.dot(pool_ref[...], x, preferred_element_type=jnp.float32)
        out_ref[...] = (jnp.dot(gap, wfc_ref[...],
                                preferred_element_type=jnp.float32)
                        + bfc_ref[...])
    return kernel


# ------------------------------- forward pass --------------------------------

def resnet_forward(params, x_nchw, num_classes):
    n = x_nchw.shape[0]
    x = jnp.transpose(x_nchw, (0, 2, 3, 1)).astype(jnp.bfloat16)   # NHWC

    # stem im2col (thin one-time XLA glue on the raw input only)
    cols, (_, ho, wo) = _im2col(x, 7, 7, 2, 3)
    inputs = [cols, params['stem_w']]

    psel, pbias, (hp, wp) = _pool_gather(n, ho, wo)
    inputs += [jnp.asarray(psel), jnp.asarray(pbias), params['stem_bn']]

    block_plan = []
    cur_h, cur_w = hp, wp
    for blk in params['blocks']:
        downsample = 'wsc' in blk
        stride = 2 if downsample else 1
        g1, taps1, (oh, ow) = _conv_gather(n, cur_h, cur_w, stride)
        g2, taps2, _ = _conv_gather(n, oh, ow, 1)
        inputs += [jnp.asarray(g1, jnp.bfloat16), blk['w1'], blk['bn1'],
                   jnp.asarray(g2, jnp.bfloat16), blk['w2'], blk['bn2']]
        if downsample:
            ssub, _ = _sub_gather(n, cur_h, cur_w)
            inputs += [jnp.asarray(ssub, jnp.bfloat16), blk['wsc'], blk['bnsc']]
        block_plan.append({'downsample': downsample,
                           'taps1': taps1, 'taps2': taps2})
        cur_h, cur_w = oh, ow

    pool = _gap_matrix(n, cur_h * cur_w)
    wfc, bfc = params['fc']
    inputs += [jnp.asarray(pool), wfc, bfc]

    kernel = _make_kernel(tuple(block_plan), psel.shape[0])
    vmem = pl.BlockSpec(memory_space=pltpu.MemorySpace.VMEM)
    out = pl.pallas_call(
        kernel,
        out_shape=jax.ShapeDtypeStruct((n, wfc.shape[1]), jnp.float32),
        in_specs=[vmem] * len(inputs),
        out_specs=vmem,
        compiler_params=pltpu.CompilerParams(
            vmem_limit_bytes=32 * 1024 * 1024),   # fits v7x's 64 MiB physical VMEM
    )(*inputs)
    return out[:, :num_classes]


# --------------------------- parameter construction --------------------------

def _conv_w_taps(key, k, cin, cout):
    # conv bias intentionally omitted: batch-stats BN cancels it exactly.
    fan = k * k * cin
    w = jax.random.normal(key, (k * k, cin, cout), jnp.float32) / jnp.sqrt(
        jnp.float32(fan))
    return w.astype(jnp.bfloat16)                  # (KH*KW, Cin, Cout)


def _bn_param(c):
    return jnp.concatenate([jnp.ones((1, c), jnp.float32),
                            jnp.zeros((1, c), jnp.float32)], axis=0)  # (2, C)


def _resblock_params(key, cin, cout, downsample):
    k1, k2, k3 = jax.random.split(key, 3)
    p = {'w1': _conv_w_taps(k1, 3, cin, cout), 'bn1': _bn_param(cout),
         'w2': _conv_w_taps(k2, 3, cout, cout), 'bn2': _bn_param(cout)}
    if downsample:
        w = jax.random.normal(k3, (cin, cout), jnp.float32) / jnp.sqrt(
            jnp.float32(cin))
        p['wsc'] = w.astype(jnp.bfloat16)
        p['bnsc'] = _bn_param(cout)
    return p


def init_resnet_params(key, in_channels, repeat, outputs):
    filters = [64, 64, 128, 256, 512]              # useBottleneck=False
    key, k_stem, k_fc = jax.random.split(key, 3)
    params = {}
    ws = jax.random.normal(k_stem, (49, in_channels, 64), jnp.float32) / jnp.sqrt(
        jnp.float32(49 * in_channels))
    params['stem_w'] = ws.reshape(49 * in_channels, 64).astype(jnp.bfloat16)
    params['stem_bn'] = _bn_param(64)

    blocks = []
    stage_cfg = [
        (filters[0], filters[1], False, repeat[0]),
        (filters[1], filters[2], True, repeat[1]),
        (filters[2], filters[3], True, repeat[2]),
        (filters[3], filters[4], True, repeat[3]),
    ]
    for cin, cout, down_first, rep in stage_cfg:
        key, kb = jax.random.split(key)
        blocks.append(_resblock_params(kb, cin, cout, down_first))
        for _ in range(1, rep):
            key, kb = jax.random.split(key)
            blocks.append(_resblock_params(kb, cout, cout, False))
    params['blocks'] = blocks

    kfw, kfb = jax.random.split(k_fc)
    wfc = jax.random.normal(kfw, (filters[4], outputs), jnp.float32) / jnp.sqrt(
        jnp.float32(filters[4]))
    bfc = jax.random.normal(kfb, (outputs,), jnp.float32) * 0.01
    co_pad = max(128, ((outputs + 127) // 128) * 128)    # lane-dense FC output
    w_pad = jnp.zeros((filters[4], co_pad), jnp.float32).at[:, :outputs].set(wfc)
    b_pad = jnp.zeros((1, co_pad), jnp.float32).at[:, :outputs].set(bfc)
    params['fc'] = (w_pad, b_pad)
    return params


# ------------------------------------ main -----------------------------------

if __name__ == "__main__":
    key = jax.random.PRNGKey(0)
    k_params, k_input = jax.random.split(key)

    in_channels = 4
    repeat = [1, 1, 1, 1]        # small ResNet: one block per stage
    outputs = 10

    params = init_resnet_params(k_params, in_channels, repeat, outputs)
    x = jax.random.normal(k_input, (2, in_channels, 16, 16), jnp.float32)  # NCHW

    fwd = jax.jit(resnet_forward, static_argnums=2)
    out = jax.block_until_ready(fwd(params, x, outputs))
    assert out.shape == (2, outputs), out.shape
    assert bool(jnp.all(jnp.isfinite(out)))
    print("KERNEL_OK")
</pallas_src>

<mosaic_0001>
module attributes {stable_mosaic.version = 11 : i64} {
  func.func @kernel(%arg0: memref<128x196xbf16, #tpu.memory_space<vmem>>, %arg1: memref<196x64xbf16, #tpu.memory_space<vmem>>, %arg2: memref<9x32x128xf32, #tpu.memory_space<vmem>>, %arg3: memref<9x32x1xf32, #tpu.memory_space<vmem>>, %arg4: memref<2x64xf32, #tpu.memory_space<vmem>>, %arg5: memref<9x32x32xbf16, #tpu.memory_space<vmem>>, %arg6: memref<9x64x64xbf16, #tpu.memory_space<vmem>>, %arg7: memref<2x64xf32, #tpu.memory_space<vmem>>, %arg8: memref<9x32x32xbf16, #tpu.memory_space<vmem>>, %arg9: memref<9x64x64xbf16, #tpu.memory_space<vmem>>, %arg10: memref<2x64xf32, #tpu.memory_space<vmem>>, %arg11: memref<9x8x32xbf16, #tpu.memory_space<vmem>>, %arg12: memref<9x64x128xbf16, #tpu.memory_space<vmem>>, %arg13: memref<2x128xf32, #tpu.memory_space<vmem>>, %arg14: memref<9x8x8xbf16, #tpu.memory_space<vmem>>, %arg15: memref<9x128x128xbf16, #tpu.memory_space<vmem>>, %arg16: memref<2x128xf32, #tpu.memory_space<vmem>>, %arg17: memref<8x32xbf16, #tpu.memory_space<vmem>>, %arg18: memref<64x128xbf16, #tpu.memory_space<vmem>>, %arg19: memref<2x128xf32, #tpu.memory_space<vmem>>, %arg20: memref<4x2x8xbf16, #tpu.memory_space<vmem>>, %arg21: memref<9x128x256xbf16, #tpu.memory_space<vmem>>, %arg22: memref<2x256xf32, #tpu.memory_space<vmem>>, %arg23: memref<1x2x2xbf16, #tpu.memory_space<vmem>>, %arg24: memref<9x256x256xbf16, #tpu.memory_space<vmem>>, %arg25: memref<2x256xf32, #tpu.memory_space<vmem>>, %arg26: memref<2x8xbf16, #tpu.memory_space<vmem>>, %arg27: memref<128x256xbf16, #tpu.memory_space<vmem>>, %arg28: memref<2x256xf32, #tpu.memory_space<vmem>>, %arg29: memref<1x2x2xbf16, #tpu.memory_space<vmem>>, %arg30: memref<9x256x512xbf16, #tpu.memory_space<vmem>>, %arg31: memref<2x512xf32, #tpu.memory_space<vmem>>, %arg32: memref<1x2x2xbf16, #tpu.memory_space<vmem>>, %arg33: memref<9x512x512xbf16, #tpu.memory_space<vmem>>, %arg34: memref<2x512xf32, #tpu.memory_space<vmem>>, %arg35: memref<2x2xbf16, #tpu.memory_space<vmem>>, %arg36: memref<256x512xbf16, #tpu.memory_space<vmem>>, %arg37: memref<2x512xf32, #tpu.memory_space<vmem>>, %arg38: memref<2x2xf32, #tpu.memory_space<vmem>>, %arg39: memref<512x128xf32, #tpu.memory_space<vmem>>, %arg40: memref<1x128xf32, #tpu.memory_space<vmem>>, %arg41: memref<2x128xf32, #tpu.memory_space<vmem>>) attributes {dimension_semantics = [], scalar_prefetch = 0 : i64, scratch_operands = 0 : i64, tpu.core_type = #tpu.core_type<tc>} {
    %c0 = arith.constant 0 : index
    %c0_0 = arith.constant 0 : index
    %0 = vector.load %arg0[%c0, %c0_0] : memref<128x196xbf16, #tpu.memory_space<vmem>>, vector<128x196xbf16>
    %c0_1 = arith.constant 0 : index
    %c0_2 = arith.constant 0 : index
    %1 = vector.load %arg1[%c0_1, %c0_2] : memref<196x64xbf16, #tpu.memory_space<vmem>>, vector<196x64xbf16>
    %cst = arith.constant dense<0.000000e+00> : vector<128x64xf32>
    %2 = tpu.matmul %0, %1, %cst {dimension_numbers = #tpu.dot_dimension_numbers<[1], [0], [0], [1], [0, 0, 1, 1], [], []>} : vector<128x196xbf16>, vector<196x64xbf16>, vector<128x64xf32> -> vector<128x64xf32>
    %c0_3 = arith.constant 0 : index
    %c0_4 = arith.constant 0 : index
    %c0_5 = arith.constant 0 : index
    %3 = vector.load %arg2[%c0_3, %c0_4, %c0_5] : memref<9x32x128xf32, #tpu.memory_space<vmem>>, vector<1x32x128xf32>
    %4 = vector.shape_cast %3 : vector<1x32x128xf32> to vector<32x128xf32>
    %cst_6 = arith.constant dense<0.000000e+00> : vector<32x64xf32>
    %5 = tpu.matmul %4, %2, %cst_6 {dimension_numbers = #tpu.dot_dimension_numbers<[1], [0], [0], [1], [0, 0, 1, 1], [], []>} : vector<32x128xf32>, vector<128x64xf32>, vector<32x64xf32> -> vector<32x64xf32>
    %c0_7 = arith.constant 0 : index
    %c0_8 = arith.constant 0 : index
    %c0_9 = arith.constant 0 : index
    %6 = vector.load %arg3[%c0_7, %c0_8, %c0_9] : memref<9x32x1xf32, #tpu.memory_space<vmem>>, vector<1x32x1xf32>
    %7 = vector.shape_cast %6 : vector<1x32x1xf32> to vector<32x1xf32>
    %8 = vector.broadcast %7 : vector<32x1xf32> to vector<32x64xf32>
    %9 = arith.addf %5, %8 : vector<32x64xf32>
    %c1 = arith.constant 1 : index
    %c0_10 = arith.constant 0 : index
    %c0_11 = arith.constant 0 : index
    %10 = vector.load %arg2[%c1, %c0_10, %c0_11] : memref<9x32x128xf32, #tpu.memory_space<vmem>>, vector<1x32x128xf32>
    %11 = vector.shape_cast %10 : vector<1x32x128xf32> to vector<32x128xf32>
    %cst_12 = arith.constant dense<0.000000e+00> : vector<32x64xf32>
    %12 = tpu.matmul %11, %2, %cst_12 {dimension_numbers = #tpu.dot_dimension_numbers<[1], [0], [0], [1], [0, 0, 1, 1], [], []>} : vector<32x128xf32>, vector<128x64xf32>, vector<32x64xf32> -> vector<32x64xf32>
    %c1_13 = arith.constant 1 : index
    %c0_14 = arith.constant 0 : index
    %c0_15 = arith.constant 0 : index
    %13 = vector.load %arg3[%c1_13, %c0_14, %c0_15] : memref<9x32x1xf32, #tpu.memory_space<vmem>>, vector<1x32x1xf32>
    %14 = vector.shape_cast %13 : vector<1x32x1xf32> to vector<32x1xf32>
    %15 = vector.broadcast %14 : vector<32x1xf32> to vector<32x64xf32>
    %16 = arith.addf %12, %15 : vector<32x64xf32>
    %17 = arith.maximumf %9, %16 : vector<32x64xf32>
    %c2 = arith.constant 2 : index
    %c0_16 = arith.constant 0 : index
    %c0_17 = arith.constant 0 : index
    %18 = vector.load %arg2[%c2, %c0_16, %c0_17] : memref<9x32x128xf32, #tpu.memory_space<vmem>>, vector<1x32x128xf32>
    %19 = vector.shape_cast %18 : vector<1x32x128xf32> to vector<32x128xf32>
    %cst_18 = arith.constant dense<0.000000e+00> : vector<32x64xf32>
    %20 = tpu.matmul %19, %2, %cst_18 {dimension_numbers = #tpu.dot_dimension_numbers<[1], [0], [0], [1], [0, 0, 1, 1], [], []>} : vector<32x128xf32>, vector<128x64xf32>, vector<32x64xf32> -> vector<32x64xf32>
    %c2_19 = arith.constant 2 : index
    %c0_20 = arith.constant 0 : index
    %c0_21 = arith.constant 0 : index
    %21 = vector.load %arg3[%c2_19, %c0_20, %c0_21] : memref<9x32x1xf32, #tpu.memory_space<vmem>>, vector<1x32x1xf32>
    %22 = vector.shape_cast %21 : vector<1x32x1xf32> to vector<32x1xf32>
    %23 = vector.broadcast %22 : vector<32x1xf32> to vector<32x64xf32>
    %24 = arith.addf %20, %23 : vector<32x64xf32>
    %25 = arith.maximumf %17, %24 : vector<32x64xf32>
    %c3 = arith.constant 3 : index
    %c0_22 = arith.constant 0 : index
    %c0_23 = arith.constant 0 : index
    %26 = vector.load %arg2[%c3, %c0_22, %c0_23] : memref<9x32x128xf32, #tpu.memory_space<vmem>>, vector<1x32x128xf32>
    %27 = vector.shape_cast %26 : vector<1x32x128xf32> to vector<32x128xf32>
    %cst_24 = arith.constant dense<0.000000e+00> : vector<32x64xf32>
    %28 = tpu.matmul %27, %2, %cst_24 {dimension_numbers = #tpu.dot_dimension_numbers<[1], [0], [0], [1], [0, 0, 1, 1], [], []>} : vector<32x128xf32>, vector<128x64xf32>, vector<32x64xf32> -> vector<32x64xf32>
    %c3_25 = arith.constant 3 : index
    %c0_26 = arith.constant 0 : index
    %c0_27 = arith.constant 0 : index
    %29 = vector.load %arg3[%c3_25, %c0_26, %c0_27] : memref<9x32x1xf32, #tpu.memory_space<vmem>>, vector<1x32x1xf32>
    %30 = vector.shape_cast %29 : vector<1x32x1xf32> to vector<32x1xf32>
    %31 = vector.broadcast %30 : vector<32x1xf32> to vector<32x64xf32>
    %32 = arith.addf %28, %31 : vector<32x64xf32>
    %33 = arith.maximumf %25, %32 : vector<32x64xf32>
    %c4 = arith.constant 4 : index
    %c0_28 = arith.constant 0 : index
    %c0_29 = arith.constant 0 : index
    %34 = vector.load %arg2[%c4, %c0_28, %c0_29] : memref<9x32x128xf32, #tpu.memory_space<vmem>>, vector<1x32x128xf32>
    %35 = vector.shape_cast %34 : vector<1x32x128xf32> to vector<32x128xf32>
    %cst_30 = arith.constant dense<0.000000e+00> : vector<32x64xf32>
    %36 = tpu.matmul %35, %2, %cst_30 {dimension_numbers = #tpu.dot_dimension_numbers<[1], [0], [0], [1], [0, 0, 1, 1], [], []>} : vector<32x128xf32>, vector<128x64xf32>, vector<32x64xf32> -> vector<32x64xf32>
    %c4_31 = arith.constant 4 : index
    %c0_32 = arith.constant 0 : index
    %c0_33 = arith.constant 0 : index
    %37 = vector.load %arg3[%c4_31, %c0_32, %c0_33] : memref<9x32x1xf32, #tpu.memory_space<vmem>>, vector<1x32x1xf32>
    %38 = vector.shape_cast %37 : vector<1x32x1xf32> to vector<32x1xf32>
    %39 = vector.broadcast %38 : vector<32x1xf32> to vector<32x64xf32>
    %40 = arith.addf %36, %39 : vector<32x64xf32>
    %41 = arith.maximumf %33, %40 : vector<32x64xf32>
    %c5 = arith.constant 5 : index
    %c0_34 = arith.constant 0 : index
    %c0_35 = arith.constant 0 : index
    %42 = vector.load %arg2[%c5, %c0_34, %c0_35] : memref<9x32x128xf32, #tpu.memory_space<vmem>>, vector<1x32x128xf32>
    %43 = vector.shape_cast %42 : vector<1x32x128xf32> to vector<32x128xf32>
    %cst_36 = arith.constant dense<0.000000e+00> : vector<32x64xf32>
    %44 = tpu.matmul %43, %2, %cst_36 {dimension_numbers = #tpu.dot_dimension_numbers<[1], [0], [0], [1], [0, 0, 1, 1], [], []>} : vector<32x128xf32>, vector<128x64xf32>, vector<32x64xf32> -> vector<32x64xf32>
    %c5_37 = arith.constant 5 : index
    %c0_38 = arith.constant 0 : index
    %c0_39 = arith.constant 0 : index
    %45 = vector.load %arg3[%c5_37, %c0_38, %c0_39] : memref<9x32x1xf32, #tpu.memory_space<vmem>>, vector<1x32x1xf32>
    %46 = vector.shape_cast %45 : vector<1x32x1xf32> to vector<32x1xf32>
    %47 = vector.broadcast %46 : vector<32x1xf32> to vector<32x64xf32>
    %48 = arith.addf %44, %47 : vector<32x64xf32>
    %49 = arith.maximumf %41, %48 : vector<32x64xf32>
    %c6 = arith.constant 6 : index
    %c0_40 = arith.constant 0 : index
    %c0_41 = arith.constant 0 : index
    %50 = vector.load %arg2[%c6, %c0_40, %c0_41] : memref<9x32x128xf32, #tpu.memory_space<vmem>>, vector<1x32x128xf32>
    %51 = vector.shape_cast %50 : vector<1x32x128xf32> to vector<32x128xf32>
    %cst_42 = arith.constant dense<0.000000e+00> : vector<32x64xf32>
    %52 = tpu.matmul %51, %2, %cst_42 {dimension_numbers = #tpu.dot_dimension_numbers<[1], [0], [0], [1], [0, 0, 1, 1], [], []>} : vector<32x128xf32>, vector<128x64xf32>, vector<32x64xf32> -> vector<32x64xf32>
    %c6_43 = arith.constant 6 : index
    %c0_44 = arith.constant 0 : index
    %c0_45 = arith.constant 0 : index
    %53 = vector.load %arg3[%c6_43, %c0_44, %c0_45] : memref<9x32x1xf32, #tpu.memory_space<vmem>>, vector<1x32x1xf32>
    %54 = vector.shape_cast %53 : vector<1x32x1xf32> to vector<32x1xf32>
    %55 = vector.broadcast %54 : vector<32x1xf32> to vector<32x64xf32>
    %56 = arith.addf %52, %55 : vector<32x64xf32>
    %57 = arith.maximumf %49, %56 : vector<32x64xf32>
    %c7 = arith.constant 7 : index
    %c0_46 = arith.constant 0 : index
    %c0_47 = arith.constant 0 : index
    %58 = vector.load %arg2[%c7, %c0_46, %c0_47] : memref<9x32x128xf32, #tpu.memory_space<vmem>>, vector<1x32x128xf32>
    %59 = vector.shape_cast %58 : vector<1x32x128xf32> to vector<32x128xf32>
    %cst_48 = arith.constant dense<0.000000e+00> : vector<32x64xf32>
    %60 = tpu.matmul %59, %2, %cst_48 {dimension_numbers = #tpu.dot_dimension_numbers<[1], [0], [0], [1], [0, 0, 1, 1], [], []>} : vector<32x128xf32>, vector<128x64xf32>, vector<32x64xf32> -> vector<32x64xf32>
    %c7_49 = arith.constant 7 : index
    %c0_50 = arith.constant 0 : index
    %c0_51 = arith.constant 0 : index
    %61 = vector.load %arg3[%c7_49, %c0_50, %c0_51] : memref<9x32x1xf32, #tpu.memory_space<vmem>>, vector<1x32x1xf32>
    %62 = vector.shape_cast %61 : vector<1x32x1xf32> to vector<32x1xf32>
    %63 = vector.broadcast %62 : vector<32x1xf32> to vector<32x64xf32>
    %64 = arith.addf %60, %63 : vector<32x64xf32>
    %65 = arith.maximumf %57, %64 : vector<32x64xf32>
    %c8 = arith.constant 8 : index
    %c0_52 = arith.constant 0 : index
    %c0_53 = arith.constant 0 : index
    %66 = vector.load %arg2[%c8, %c0_52, %c0_53] : memref<9x32x128xf32, #tpu.memory_space<vmem>>, vector<1x32x128xf32>
    %67 = vector.shape_cast %66 : vector<1x32x128xf32> to vector<32x128xf32>
    %cst_54 = arith.constant dense<0.000000e+00> : vector<32x64xf32>
    %68 = tpu.matmul %67, %2, %cst_54 {dimension_numbers = #tpu.dot_dimension_numbers<[1], [0], [0], [1], [0, 0, 1, 1], [], []>} : vector<32x128xf32>, vector<128x64xf32>, vector<32x64xf32> -> vector<32x64xf32>
    %c8_55 = arith.constant 8 : index
    %c0_56 = arith.constant 0 : index
    %c0_57 = arith.constant 0 : index
    %69 = vector.load %arg3[%c8_55, %c0_56, %c0_57] : memref<9x32x1xf32, #tpu.memory_space<vmem>>, vector<1x32x1xf32>
    %70 = vector.shape_cast %69 : vector<1x32x1xf32> to vector<32x1xf32>
    %71 = vector.broadcast %70 : vector<32x1xf32> to vector<32x64xf32>
    %72 = arith.addf %68, %71 : vector<32x64xf32>
    %73 = arith.maximumf %65, %72 : vector<32x64xf32>
    %c0_58 = arith.constant 0 : index
    %c0_59 = arith.constant 0 : index
    %74 = vector.load %arg4[%c0_58, %c0_59] : memref<2x64xf32, #tpu.memory_space<vmem>>, vector<2x64xf32>
    %75 = vector.extract_strided_slice %74 {offsets = [0, 0], sizes = [1, 64], strides = [1, 1]} : vector<2x64xf32> to vector<1x64xf32>
    %76 = vector.extract_strided_slice %74 {offsets = [1, 0], sizes = [1, 64], strides = [1, 1]} : vector<2x64xf32> to vector<1x64xf32>
    %cst_60 = arith.constant dense<0.000000e+00> : vector<64xf32>
    %77 = vector.multi_reduction <add>, %73, %cst_60 [0] : vector<32x64xf32> to vector<64xf32>
    %78 = vector.shape_cast %77 : vector<64xf32> to vector<1x64xf32>
    %cst_61 = arith.constant 3.125000e-02 : f32
    %79 = vector.broadcast %cst_61 : f32 to vector<1x64xf32>
    %80 = arith.mulf %78, %79 : vector<1x64xf32>
    %81 = arith.mulf %73, %73 : vector<32x64xf32>
    %cst_62 = arith.constant dense<0.000000e+00> : vector<64xf32>
    %82 = vector.multi_reduction <add>, %81, %cst_62 [0] : vector<32x64xf32> to vector<64xf32>
    %83 = vector.shape_cast %82 : vector<64xf32> to vector<1x64xf32>
    %cst_63 = arith.constant 3.125000e-02 : f32
    %84 = vector.broadcast %cst_63 : f32 to vector<1x64xf32>
    %85 = arith.mulf %83, %84 : vector<1x64xf32>
    %86 = arith.mulf %80, %80 : vector<1x64xf32>
    %87 = arith.subf %85, %86 : vector<1x64xf32>
    %88 = vector.broadcast %80 : vector<1x64xf32> to vector<32x64xf32>
    %89 = arith.subf %73, %88 : vector<32x64xf32>
    %cst_64 = arith.constant 0.000000e+00 : f32
    %90 = vector.broadcast %cst_64 : f32 to vector<1x64xf32>
    %91 = arith.maximumf %87, %90 : vector<1x64xf32>
    %cst_65 = arith.constant 9.99999974E-6 : f32
    %92 = vector.broadcast %cst_65 : f32 to vector<1x64xf32>
    %93 = arith.addf %91, %92 : vector<1x64xf32>
    %94 = math.rsqrt %93 : vector<1x64xf32>
    %95 = vector.broadcast %94 : vector<1x64xf32> to vector<32x64xf32>
    %96 = arith.mulf %89, %95 : vector<32x64xf32>
    %97 = vector.broadcast %75 : vector<1x64xf32> to vector<32x64xf32>
    %98 = arith.mulf %96, %97 : vector<32x64xf32>
    %99 = vector.broadcast %76 : vector<1x64xf32> to vector<32x64xf32>
    %100 = arith.addf %98, %99 : vector<32x64xf32>
    %cst_66 = arith.constant 0.000000e+00 : f32
    %101 = vector.broadcast %cst_66 : f32 to vector<32x64xf32>
    %102 = arith.maximumf %100, %101 : vector<32x64xf32>
    %103 = arith.truncf %102 : vector<32x64xf32> to vector<32x64xbf16>
    %c0_67 = arith.constant 0 : index
    %c0_68 = arith.constant 0 : index
    %c0_69 = arith.constant 0 : index
    %104 = vector.load %arg5[%c0_67, %c0_68, %c0_69] : memref<9x32x32xbf16, #tpu.memory_space<vmem>>, vector<1x32x32xbf16>
    %105 = vector.shape_cast %104 : vector<1x32x32xbf16> to vector<32x32xbf16>
    %cst_70 = arith.constant dense<0.000000e+00> : vector<32x64xf32>
    %106 = tpu.matmul %105, %103, %cst_70 {dimension_numbers = #tpu.dot_dimension_numbers<[1], [0], [0], [1], [0, 0, 1, 1], [], []>} : vector<32x32xbf16>, vector<32x64xbf16>, vector<32x64xf32> -> vector<32x64xf32>
    %107 = arith.truncf %106 : vector<32x64xf32> to vector<32x64xbf16>
    %c0_71 = arith.constant 0 : index
    %c0_72 = arith.constant 0 : index
    %c0_73 = arith.constant 0 : index
    %108 = vector.load %arg6[%c0_71, %c0_72, %c0_73] : memref<9x64x64xbf16, #tpu.memory_space<vmem>>, vector<1x64x64xbf16>
    %109 = vector.shape_cast %108 : vector<1x64x64xbf16> to vector<64x64xbf16>
    %cst_74 = arith.constant dense<0.000000e+00> : vector<32x64xf32>
    %110 = tpu.matmul %107, %109, %cst_74 {dimension_numbers = #tpu.dot_dimension_numbers<[1], [0], [0], [1], [0, 0, 1, 1], [], []>} : vector<32x64xbf16>, vector<64x64xbf16>, vector<32x64xf32> -> vector<32x64xf32>
    %c1_75 = arith.constant 1 : index
    %c0_76 = arith.constant 0 : index
    %c0_77 = arith.constant 0 : index
    %111 = vector.load %arg5[%c1_75, %c0_76, %c0_77] : memref<9x32x32xbf16, #tpu.memory_space<vmem>>, vector<1x32x32xbf16>
    %112 = vector.shape_cast %111 : vector<1x32x32xbf16> to vector<32x32xbf16>
    %cst_78 = arith.constant dense<0.000000e+00> : vector<32x64xf32>
    %113 = tpu.matmul %112, %103, %cst_78 {dimension_numbers = #tpu.dot_dimension_numbers<[1], [0], [0], [1], [0, 0, 1, 1], [], []>} : vector<32x32xbf16>, vector<32x64xbf16>, vector<32x64xf32> -> vector<32x64xf32>
    %114 = arith.truncf %113 : vector<32x64xf32> to vector<32x64xbf16>
    %c1_79 = arith.constant 1 : index
    %c0_80 = arith.constant 0 : index
    %c0_81 = arith.constant 0 : index
    %115 = vector.load %arg6[%c1_79, %c0_80, %c0_81] : memref<9x64x64xbf16, #tpu.memory_space<vmem>>, vector<1x64x64xbf16>
    %116 = vector.shape_cast %115 : vector<1x64x64xbf16> to vector<64x64xbf16>
    %cst_82 = arith.constant dense<0.000000e+00> : vector<32x64xf32>
    %117 = tpu.matmul %114, %116, %cst_82 {dimension_numbers = #tpu.dot_dimension_numbers<[1], [0], [0], [1], [0, 0, 1, 1], [], []>} : vector<32x64xbf16>, vector<64x64xbf16>, vector<32x64xf32> -> vector<32x64xf32>
    %118 = arith.addf %110, %117 : vector<32x64xf32>
    %c2_83 = arith.constant 2 : index
    %c0_84 = arith.constant 0 : index
    %c0_85 = arith.constant 0 : index
    %119 = vector.load %arg5[%c2_83, %c0_84, %c0_85] : memref<9x32x32xbf16, #tpu.memory_space<vmem>>, vector<1x32x32xbf16>
    %120 = vector.shape_cast %119 : vector<1x32x32xbf16> to vector<32x32xbf16>
    %cst_86 = arith.constant dense<0.000000e+00> : vector<32x64xf32>
    %121 = tpu.matmul %120, %103, %cst_86 {dimension_numbers = #tpu.dot_dimension_numbers<[1], [0], [0], [1], [0, 0, 1, 1], [], []>} : vector<32x32xbf16>, vector<32x64xbf16>, vector<32x64xf32> -> vector<32x64xf32>
    %122 = arith.truncf %121 : vector<32x64xf32> to vector<32x64xbf16>
    %c2_87 = arith.constant 2 : index
    %c0_88 = arith.constant 0 : index
    %c0_89 = arith.constant 0 : index
    %123 = vector.load %arg6[%c2_87, %c0_88, %c0_89] : memref<9x64x64xbf16, #tpu.memory_space<vmem>>, vector<1x64x64xbf16>
    %124 = vector.shape_cast %123 : vector<1x64x64xbf16> to vector<64x64xbf16>
    %cst_90 = arith.constant dense<0.000000e+00> : vector<32x64xf32>
    %125 = tpu.matmul %122, %124, %cst_90 {dimension_numbers = #tpu.dot_dimension_numbers<[1], [0], [0], [1], [0, 0, 1, 1], [], []>} : vector<32x64xbf16>, vector<64x64xbf16>, vector<32x64xf32> -> vector<32x64xf32>
    %126 = arith.addf %118, %125 : vector<32x64xf32>
    %c3_91 = arith.constant 3 : index
    %c0_92 = arith.constant 0 : index
    %c0_93 = arith.constant 0 : index
    %127 = vector.load %arg5[%c3_91, %c0_92, %c0_93] : memref<9x32x32xbf16, #tpu.memory_space<vmem>>, vector<1x32x32xbf16>
    %128 = vector.shape_cast %127 : vector<1x32x32xbf16> to vector<32x32xbf16>
    %cst_94 = arith.constant dense<0.000000e+00> : vector<32x64xf32>
    %129 = tpu.matmul %128, %103, %cst_94 {dimension_numbers = #tpu.dot_dimension_numbers<[1], [0], [0], [1], [0, 0, 1, 1], [], []>} : vector<32x32xbf16>, vector<32x64xbf16>, vector<32x64xf32> -> vector<32x64xf32>
    %130 = arith.truncf %129 : vector<32x64xf32> to vector<32x64xbf16>
    %c3_95 = arith.constant 3 : index
    %c0_96 = arith.constant 0 : index
    %c0_97 = arith.constant 0 : index
    %131 = vector.load %arg6[%c3_95, %c0_96, %c0_97] : memref<9x64x64xbf16, #tpu.memory_space<vmem>>, vector<1x64x64xbf16>
    %132 = vector.shape_cast %131 : vector<1x64x64xbf16> to vector<64x64xbf16>
    %cst_98 = arith.constant dense<0.000000e+00> : vector<32x64xf32>
    %133 = tpu.matmul %130, %132, %cst_98 {dimension_numbers = #tpu.dot_dimension_numbers<[1], [0], [0], [1], [0, 0, 1, 1], [], []>} : vector<32x64xbf16>, vector<64x64xbf16>, vector<32x64xf32> -> vector<32x64xf32>
    %134 = arith.addf %126, %133 : vector<32x64xf32>
    %c4_99 = arith.constant 4 : index
    %c0_100 = arith.constant 0 : index
    %c0_101 = arith.constant 0 : index
    %135 = vector.load %arg5[%c4_99, %c0_100, %c0_101] : memref<9x32x32xbf16, #tpu.memory_space<vmem>>, vector<1x32x32xbf16>
    %136 = vector.shape_cast %135 : vector<1x32x32xbf16> to vector<32x32xbf16>
    %cst_102 = arith.constant dense<0.000000e+00> : vector<32x64xf32>
    %137 = tpu.matmul %136, %103, %cst_102 {dimension_numbers = #tpu.dot_dimension_numbers<[1], [0], [0], [1], [0, 0, 1, 1], [], []>} : vector<32x32xbf16>, vector<32x64xbf16>, vector<32x64xf32> -> vector<32x64xf32>
    %138 = arith.truncf %137 : vector<32x64xf32> to vector<32x64xbf16>
    %c4_103 = arith.constant 4 : index
    %c0_104 = arith.constant 0 : index
    %c0_105 = arith.constant 0 : index
    %139 = vector.load %arg6[%c4_103, %c0_104, %c0_105] : memref<9x64x64xbf16, #tpu.memory_space<vmem>>, vector<1x64x64xbf16>
    %140 = vector.shape_cast %139 : vector<1x64x64xbf16> to vector<64x64xbf16>
    %cst_106 = arith.constant dense<0.000000e+00> : vector<32x64xf32>
    %141 = tpu.matmul %138, %140, %cst_106 {dimension_numbers = #tpu.dot_dimension_numbers<[1], [0], [0], [1], [0, 0, 1, 1], [], []>} : vector<32x64xbf16>, vector<64x64xbf16>, vector<32x64xf32> -> vector<32x64xf32>
    %142 = arith.addf %134, %141 : vector<32x64xf32>
    %c5_107 = arith.constant 5 : index
    %c0_108 = arith.constant 0 : index
    %c0_109 = arith.constant 0 : index
    %143 = vector.load %arg5[%c5_107, %c0_108, %c0_109] : memref<9x32x32xbf16, #tpu.memory_space<vmem>>, vector<1x32x32xbf16>
    %144 = vector.shape_cast %143 : vector<1x32x32xbf16> to vector<32x32xbf16>
    %cst_110 = arith.constant dense<0.000000e+00> : vector<32x64xf32>
    %145 = tpu.matmul %144, %103, %cst_110 {dimension_numbers = #tpu.dot_dimension_numbers<[1], [0], [0], [1], [0, 0, 1, 1], [], []>} : vector<32x32xbf16>, vector<32x64xbf16>, vector<32x64xf32> -> vector<32x64xf32>
    %146 = arith.truncf %145 : vector<32x64xf32> to vector<32x64xbf16>
    %c5_111 = arith.constant 5 : index
    %c0_112 = arith.constant 0 : index
    %c0_113 = arith.constant 0 : index
    %147 = vector.load %arg6[%c5_111, %c0_112, %c0_113] : memref<9x64x64xbf16, #tpu.memory_space<vmem>>, vector<1x64x64xbf16>
    %148 = vector.shape_cast %147 : vector<1x64x64xbf16> to vector<64x64xbf16>
    %cst_114 = arith.constant dense<0.000000e+00> : vector<32x64xf32>
    %149 = tpu.matmul %146, %148, %cst_114 {dimension_numbers = #tpu.dot_dimension_numbers<[1], [0], [0], [1], [0, 0, 1, 1], [], []>} : vector<32x64xbf16>, vector<64x64xbf16>, vector<32x64xf32> -> vector<32x64xf32>
    %150 = arith.addf %142, %149 : vector<32x64xf32>
    %c6_115 = arith.constant 6 : index
    %c0_116 = arith.constant 0 : index
    %c0_117 = arith.constant 0 : index
    %151 = vector.load %arg5[%c6_115, %c0_116, %c0_117] : memref<9x32x32xbf16, #tpu.memory_space<vmem>>, vector<1x32x32xbf16>
    %152 = vector.shape_cast %151 : vector<1x32x32xbf16> to vector<32x32xbf16>
    %cst_118 = arith.constant dense<0.000000e+00> : vector<32x64xf32>
    %153 = tpu.matmul %152, %103, %cst_118 {dimension_numbers = #tpu.dot_dimension_numbers<[1], [0], [0], [1], [0, 0, 1, 1], [], []>} : vector<32x32xbf16>, vector<32x64xbf16>, vector<32x64xf32> -> vector<32x64xf32>
    %154 = arith.truncf %153 : vector<32x64xf32> to vector<32x64xbf16>
    %c6_119 = arith.constant 6 : index
    %c0_120 = arith.constant 0 : index
    %c0_121 = arith.constant 0 : index
    %155 = vector.load %arg6[%c6_119, %c0_120, %c0_121] : memref<9x64x64xbf16, #tpu.memory_space<vmem>>, vector<1x64x64xbf16>
    %156 = vector.shape_cast %155 : vector<1x64x64xbf16> to vector<64x64xbf16>
    %cst_122 = arith.constant dense<0.000000e+00> : vector<32x64xf32>
    %157 = tpu.matmul %154, %156, %cst_122 {dimension_numbers = #tpu.dot_dimension_numbers<[1], [0], [0], [1], [0, 0, 1, 1], [], []>} : vector<32x64xbf16>, vector<64x64xbf16>, vector<32x64xf32> -> vector<32x64xf32>
    %158 = arith.addf %150, %157 : vector<32x64xf32>
    %c7_123 = arith.constant 7 : index
    %c0_124 = arith.constant 0 : index
    %c0_125 = arith.constant 0 : index
    %159 = vector.load %arg5[%c7_123, %c0_124, %c0_125] : memref<9x32x32xbf16, #tpu.memory_space<vmem>>, vector<1x32x32xbf16>
    %160 = vector.shape_cast %159 : vector<1x32x32xbf16> to vector<32x32xbf16>
    %cst_126 = arith.constant dense<0.000000e+00> : vector<32x64xf32>
    %161 = tpu.matmul %160, %103, %cst_126 {dimension_numbers = #tpu.dot_dimension_numbers<[1], [0], [0], [1], [0, 0, 1, 1], [], []>} : vector<32x32xbf16>, vector<32x64xbf16>, vector<32x64xf32> -> vector<32x64xf32>
    %162 = arith.truncf %161 : vector<32x64xf32> to vector<32x64xbf16>
    %c7_127 = arith.constant 7 : index
    %c0_128 = arith.constant 0 : index
    %c0_129 = arith.constant 0 : index
    %163 = vector.load %arg6[%c7_127, %c0_128, %c0_129] : memref<9x64x64xbf16, #tpu.memory_space<vmem>>, vector<1x64x64xbf16>
    %164 = vector.shape_cast %163 : vector<1x64x64xbf16> to vector<64x64xbf16>
    %cst_130 = arith.constant dense<0.000000e+00> : vector<32x64xf32>
    %165 = tpu.matmul %162, %164, %cst_130 {dimension_numbers = #tpu.dot_dimension_numbers<[1], [0], [0], [1], [0, 0, 1, 1], [], []>} : vector<32x64xbf16>, vector<64x64xbf16>, vector<32x64xf32> -> vector<32x64xf32>
    %166 = arith.addf %158, %165 : vector<32x64xf32>
    %c8_131 = arith.constant 8 : index
    %c0_132 = arith.constant 0 : index
    %c0_133 = arith.constant 0 : index
    %167 = vector.load %arg5[%c8_131, %c0_132, %c0_133] : memref<9x32x32xbf16, #tpu.memory_space<vmem>>, vector<1x32x32xbf16>
    %168 = vector.shape_cast %167 : vector<1x32x32xbf16> to vector<32x32xbf16>
    %cst_134 = arith.constant dense<0.000000e+00> : vector<32x64xf32>
    %169 = tpu.matmul %168, %103, %cst_134 {dimension_numbers = #tpu.dot_dimension_numbers<[1], [0], [0], [1], [0, 0, 1, 1], [], []>} : vector<32x32xbf16>, vector<32x64xbf16>, vector<32x64xf32> -> vector<32x64xf32>
    %170 = arith.truncf %169 : vector<32x64xf32> to vector<32x64xbf16>
    %c8_135 = arith.constant 8 : index
    %c0_136 = arith.constant 0 : index
    %c0_137 = arith.constant 0 : index
    %171 = vector.load %arg6[%c8_135, %c0_136, %c0_137] : memref<9x64x64xbf16, #tpu.memory_space<vmem>>, vector<1x64x64xbf16>
    %172 = vector.shape_cast %171 : vector<1x64x64xbf16> to vector<64x64xbf16>
    %cst_138 = arith.constant dense<0.000000e+00> : vector<32x64xf32>
    %173 = tpu.matmul %170, %172, %cst_138 {dimension_numbers = #tpu.dot_dimension_numbers<[1], [0], [0], [1], [0, 0, 1, 1], [], []>} : vector<32x64xbf16>, vector<64x64xbf16>, vector<32x64xf32> -> vector<32x64xf32>
    %174 = arith.addf %166, %173 : vector<32x64xf32>
    %c0_139 = arith.constant 0 : index
    %c0_140 = arith.constant 0 : index
    %175 = vector.load %arg7[%c0_139, %c0_140] : memref<2x64xf32, #tpu.memory_space<vmem>>, vector<2x64xf32>
    %176 = vector.extract_strided_slice %175 {offsets = [0, 0], sizes = [1, 64], strides = [1, 1]} : vector<2x64xf32> to vector<1x64xf32>
    %177 = vector.extract_strided_slice %175 {offsets = [1, 0], sizes = [1, 64], strides = [1, 1]} : vector<2x64xf32> to vector<1x64xf32>
    %cst_141 = arith.constant dense<0.000000e+00> : vector<64xf32>
    %178 = vector.multi_reduction <add>, %174, %cst_141 [0] : vector<32x64xf32> to vector<64xf32>
    %179 = vector.shape_cast %178 : vector<64xf32> to vector<1x64xf32>
    %cst_142 = arith.constant 3.125000e-02 : f32
    %180 = vector.broadcast %cst_142 : f32 to vector<1x64xf32>
    %181 = arith.mulf %179, %180 : vector<1x64xf32>
    %182 = arith.mulf %174, %174 : vector<32x64xf32>
    %cst_143 = arith.constant dense<0.000000e+00> : vector<64xf32>
    %183 = vector.multi_reduction <add>, %182, %cst_143 [0] : vector<32x64xf32> to vector<64xf32>
    %184 = vector.shape_cast %183 : vector<64xf32> to vector<1x64xf32>
    %cst_144 = arith.constant 3.125000e-02 : f32
    %185 = vector.broadcast %cst_144 : f32 to vector<1x64xf32>
    %186 = arith.mulf %184, %185 : vector<1x64xf32>
    %187 = arith.mulf %181, %181 : vector<1x64xf32>
    %188 = arith.subf %186, %187 : vector<1x64xf32>
    %189 = vector.broadcast %181 : vector<1x64xf32> to vector<32x64xf32>
    %190 = arith.subf %174, %189 : vector<32x64xf32>
    %cst_145 = arith.constant 0.000000e+00 : f32
    %191 = vector.broadcast %cst_145 : f32 to vector<1x64xf32>
    %192 = arith.maximumf %188, %191 : vector<1x64xf32>
    %cst_146 = arith.constant 9.99999974E-6 : f32
    %193 = vector.broadcast %cst_146 : f32 to vector<1x64xf32>
    %194 = arith.addf %192, %193 : vector<1x64xf32>
    %195 = math.rsqrt %194 : vector<1x64xf32>
    %196 = vector.broadcast %195 : vector<1x64xf32> to vector<32x64xf32>
    %197 = arith.mulf %190, %196 : vector<32x64xf32>
    %198 = vector.broadcast %176 : vector<1x64xf32> to vector<32x64xf32>
    %199 = arith.mulf %197, %198 : vector<32x64xf32>
    %200 = vector.broadcast %177 : vector<1x64xf32> to vector<32x64xf32>
    %201 = arith.addf %199, %200 : vector<32x64xf32>
    %cst_147 = arith.constant 0.000000e+00 : f32
    %202 = vector.broadcast %cst_147 : f32 to vector<32x64xf32>
    %203 = arith.maximumf %201, %202 : vector<32x64xf32>
    %204 = arith.truncf %203 : vector<32x64xf32> to vector<32x64xbf16>
    %c0_148 = arith.constant 0 : index
    %c0_149 = arith.constant 0 : index
    %c0_150 = arith.constant 0 : index
    %205 = vector.load %arg8[%c0_148, %c0_149, %c0_150] : memref<9x32x32xbf16, #tpu.memory_space<vmem>>, vector<1x32x32xbf16>
    %206 = vector.shape_cast %205 : vector<1x32x32xbf16> to vector<32x32xbf16>
    %cst_151 = arith.constant dense<0.000000e+00> : vector<32x64xf32>
    %207 = tpu.matmul %206, %204, %cst_151 {dimension_numbers = #tpu.dot_dimension_numbers<[1], [0], [0], [1], [0, 0, 1, 1], [], []>} : vector<32x32xbf16>, vector<32x64xbf16>, vector<32x64xf32> -> vector<32x64xf32>
    %208 = arith.truncf %207 : vector<32x64xf32> to vector<32x64xbf16>
    %c0_152 = arith.constant 0 : index
    %c0_153 = arith.constant 0 : index
    %c0_154 = arith.constant 0 : index
    %209 = vector.load %arg9[%c0_152, %c0_153, %c0_154] : memref<9x64x64xbf16, #tpu.memory_space<vmem>>, vector<1x64x64xbf16>
    %210 = vector.shape_cast %209 : vector<1x64x64xbf16> to vector<64x64xbf16>
    %cst_155 = arith.constant dense<0.000000e+00> : vector<32x64xf32>
    %211 = tpu.matmul %208, %210, %cst_155 {dimension_numbers = #tpu.dot_dimension_numbers<[1], [0], [0], [1], [0, 0, 1, 1], [], []>} : vector<32x64xbf16>, vector<64x64xbf16>, vector<32x64xf32> -> vector<32x64xf32>
    %c1_156 = arith.constant 1 : index
    %c0_157 = arith.constant 0 : index
    %c0_158 = arith.constant 0 : index
    %212 = vector.load %arg8[%c1_156, %c0_157, %c0_158] : memref<9x32x32xbf16, #tpu.memory_space<vmem>>, vector<1x32x32xbf16>
    %213 = vector.shape_cast %212 : vector<1x32x32xbf16> to vector<32x32xbf16>
    %cst_159 = arith.constant dense<0.000000e+00> : vector<32x64xf32>
    %214 = tpu.matmul %213, %204, %cst_159 {dimension_numbers = #tpu.dot_dimension_numbers<[1], [0], [0], [1], [0, 0, 1, 1], [], []>} : vector<32x32xbf16>, vector<32x64xbf16>, vector<32x64xf32> -> vector<32x64xf32>
    %215 = arith.truncf %214 : vector<32x64xf32> to vector<32x64xbf16>
    %c1_160 = arith.constant 1 : index
    %c0_161 = arith.constant 0 : index
    %c0_162 = arith.constant 0 : index
    %216 = vector.load %arg9[%c1_160, %c0_161, %c0_162] : memref<9x64x64xbf16, #tpu.memory_space<vmem>>, vector<1x64x64xbf16>
    %217 = vector.shape_cast %216 : vector<1x64x64xbf16> to vector<64x64xbf16>
    %cst_163 = arith.constant dense<0.000000e+00> : vector<32x64xf32>
    %218 = tpu.matmul %215, %217, %cst_163 {dimension_numbers = #tpu.dot_dimension_numbers<[1], [0], [0], [1], [0, 0, 1, 1], [], []>} : vector<32x64xbf16>, vector<64x64xbf16>, vector<32x64xf32> -> vector<32x64xf32>
    %219 = arith.addf %211, %218 : vector<32x64xf32>
    %c2_164 = arith.constant 2 : index
    %c0_165 = arith.constant 0 : index
    %c0_166 = arith.constant 0 : index
    %220 = vector.load %arg8[%c2_164, %c0_165, %c0_166] : memref<9x32x32xbf16, #tpu.memory_space<vmem>>, vector<1x32x32xbf16>
    %221 = vector.shape_cast %220 : vector<1x32x32xbf16> to vector<32x32xbf16>
    %cst_167 = arith.constant dense<0.000000e+00> : vector<32x64xf32>
    %222 = tpu.matmul %221, %204, %cst_167 {dimension_numbers = #tpu.dot_dimension_numbers<[1], [0], [0], [1], [0, 0, 1, 1], [], []>} : vector<32x32xbf16>, vector<32x64xbf16>, vector<32x64xf32> -> vector<32x64xf32>
    %223 = arith.truncf %222 : vector<32x64xf32> to vector<32x64xbf16>
    %c2_168 = arith.constant 2 : index
    %c0_169 = arith.constant 0 : index
    %c0_170 = arith.constant 0 : index
    %224 = vector.load %arg9[%c2_168, %c0_169, %c0_170] : memref<9x64x64xbf16, #tpu.memory_space<vmem>>, vector<1x64x64xbf16>
    %225 = vector.shape_cast %224 : vector<1x64x64xbf16> to vector<64x64xbf16>
    %cst_171 = arith.constant dense<0.000000e+00> : vector<32x64xf32>
    %226 = tpu.matmul %223, %225, %cst_171 {dimension_numbers = #tpu.dot_dimension_numbers<[1], [0], [0], [1], [0, 0, 1, 1], [], []>} : vector<32x64xbf16>, vector<64x64xbf16>, vector<32x64xf32> -> vector<32x64xf32>
    %227 = arith.addf %219, %226 : vector<32x64xf32>
    %c3_172 = arith.constant 3 : index
    %c0_173 = arith.constant 0 : index
    %c0_174 = arith.constant 0 : index
    %228 = vector.load %arg8[%c3_172, %c0_173, %c0_174] : memref<9x32x32xbf16, #tpu.memory_space<vmem>>, vector<1x32x32xbf16>
    %229 = vector.shape_cast %228 : vector<1x32x32xbf16> to vector<32x32xbf16>
    %cst_175 = arith.constant dense<0.000000e+00> : vector<32x64xf32>
    %230 = tpu.matmul %229, %204, %cst_175 {dimension_numbers = #tpu.dot_dimension_numbers<[1], [0], [0], [1], [0, 0, 1, 1], [], []>} : vector<32x32xbf16>, vector<32x64xbf16>, vector<32x64xf32> -> vector<32x64xf32>
    %231 = arith.truncf %230 : vector<32x64xf32> to vector<32x64xbf16>
    %c3_176 = arith.constant 3 : index
    %c0_177 = arith.constant 0 : index
    %c0_178 = arith.constant 0 : index
    %232 = vector.load %arg9[%c3_176, %c0_177, %c0_178] : memref<9x64x64xbf16, #tpu.memory_space<vmem>>, vector<1x64x64xbf16>
    %233 = vector.shape_cast %232 : vector<1x64x64xbf16> to vector<64x64xbf16>
    %cst_179 = arith.constant dense<0.000000e+00> : vector<32x64xf32>
    %234 = tpu.matmul %231, %233, %cst_179 {dimension_numbers = #tpu.dot_dimension_numbers<[1], [0], [0], [1], [0, 0, 1, 1], [], []>} : vector<32x64xbf16>, vector<64x64xbf16>, vector<32x64xf32> -> vector<32x64xf32>
    %235 = arith.addf %227, %234 : vector<32x64xf32>
    %c4_180 = arith.constant 4 : index
    %c0_181 = arith.constant 0 : index
    %c0_182 = arith.constant 0 : index
    %236 = vector.load %arg8[%c4_180, %c0_181, %c0_182] : memref<9x32x32xbf16, #tpu.memory_space<vmem>>, vector<1x32x32xbf16>
    %237 = vector.shape_cast %236 : vector<1x32x32xbf16> to vector<32x32xbf16>
    %cst_183 = arith.constant dense<0.000000e+00> : vector<32x64xf32>
    %238 = tpu.matmul %237, %204, %cst_183 {dimension_numbers = #tpu.dot_dimension_numbers<[1], [0], [0], [1], [0, 0, 1, 1], [], []>} : vector<32x32xbf16>, vector<32x64xbf16>, vector<32x64xf32> -> vector<32x64xf32>
    %239 = arith.truncf %238 : vector<32x64xf32> to vector<32x64xbf16>
    %c4_184 = arith.constant 4 : index
    %c0_185 = arith.constant 0 : index
    %c0_186 = arith.constant 0 : index
    %240 = vector.load %arg9[%c4_184, %c0_185, %c0_186] : memref<9x64x64xbf16, #tpu.memory_space<vmem>>, vector<1x64x64xbf16>
    %241 = vector.shape_cast %240 : vector<1x64x64xbf16> to vector<64x64xbf16>
    %cst_187 = arith.constant dense<0.000000e+00> : vector<32x64xf32>
    %242 = tpu.matmul %239, %241, %cst_187 {dimension_numbers = #tpu.dot_dimension_numbers<[1], [0], [0], [1], [0, 0, 1, 1], [], []>} : vector<32x64xbf16>, vector<64x64xbf16>, vector<32x64xf32> -> vector<32x64xf32>
    %243 = arith.addf %235, %242 : vector<32x64xf32>
    %c5_188 = arith.constant 5 : index
    %c0_189 = arith.constant 0 : index
    %c0_190 = arith.constant 0 : index
    %244 = vector.load %arg8[%c5_188, %c0_189, %c0_190] : memref<9x32x32xbf16, #tpu.memory_space<vmem>>, vector<1x32x32xbf16>
    %245 = vector.shape_cast %244 : vector<1x32x32xbf16> to vector<32x32xbf16>
    %cst_191 = arith.constant dense<0.000000e+00> : vector<32x64xf32>
    %246 = tpu.matmul %245, %204, %cst_191 {dimension_numbers = #tpu.dot_dimension_numbers<[1], [0], [0], [1], [0, 0, 1, 1], [], []>} : vector<32x32xbf16>, vector<32x64xbf16>, vector<32x64xf32> -> vector<32x64xf32>
    %247 = arith.truncf %246 : vector<32x64xf32> to vector<32x64xbf16>
    %c5_192 = arith.constant 5 : index
    %c0_193 = arith.constant 0 : index
    %c0_194 = arith.constant 0 : index
    %248 = vector.load %arg9[%c5_192, %c0_193, %c0_194] : memref<9x64x64xbf16, #tpu.memory_space<vmem>>, vector<1x64x64xbf16>
    %249 = vector.shape_cast %248 : vector<1x64x64xbf16> to vector<64x64xbf16>
    %cst_195 = arith.constant dense<0.000000e+00> : vector<32x64xf32>
    %250 = tpu.matmul %247, %249, %cst_195 {dimension_numbers = #tpu.dot_dimension_numbers<[1], [0], [0], [1], [0, 0, 1, 1], [], []>} : vector<32x64xbf16>, vector<64x64xbf16>, vector<32x64xf32> -> vector<32x64xf32>
    %251 = arith.addf %243, %250 : vector<32x64xf32>
    %c6_196 = arith.constant 6 : index
    %c0_197 = arith.constant 0 : index
    %c0_198 = arith.constant 0 : index
    %252 = vector.load %arg8[%c6_196, %c0_197, %c0_198] : memref<9x32x32xbf16, #tpu.memory_space<vmem>>, vector<1x32x32xbf16>
    %253 = vector.shape_cast %252 : vector<1x32x32xbf16> to vector<32x32xbf16>
    %cst_199 = arith.constant dense<0.000000e+00> : vector<32x64xf32>
    %254 = tpu.matmul %253, %204, %cst_199 {dimension_numbers = #tpu.dot_dimension_numbers<[1], [0], [0], [1], [0, 0, 1, 1], [], []>} : vector<32x32xbf16>, vector<32x64xbf16>, vector<32x64xf32> -> vector<32x64xf32>
    %255 = arith.truncf %254 : vector<32x64xf32> to vector<32x64xbf16>
    %c6_200 = arith.constant 6 : index
    %c0_201 = arith.constant 0 : index
    %c0_202 = arith.constant 0 : index
    %256 = vector.load %arg9[%c6_200, %c0_201, %c0_202] : memref<9x64x64xbf16, #tpu.memory_space<vmem>>, vector<1x64x64xbf16>
    %257 = vector.shape_cast %256 : vector<1x64x64xbf16> to vector<64x64xbf16>
    %cst_203 = arith.constant dense<0.000000e+00> : vector<32x64xf32>
    %258 = tpu.matmul %255, %257, %cst_203 {dimension_numbers = #tpu.dot_dimension_numbers<[1], [0], [0], [1], [0, 0, 1, 1], [], []>} : vector<32x64xbf16>, vector<64x64xbf16>, vector<32x64xf32> -> vector<32x64xf32>
    %259 = arith.addf %251, %258 : vector<32x64xf32>
    %c7_204 = arith.constant 7 : index
    %c0_205 = arith.constant 0 : index
    %c0_206 = arith.constant 0 : index
    %260 = vector.load %arg8[%c7_204, %c0_205, %c0_206] : memref<9x32x32xbf16, #tpu.memory_space<vmem>>, vector<1x32x32xbf16>
    %261 = vector.shape_cast %260 : vector<1x32x32xbf16> to vector<32x32xbf16>
    %cst_207 = arith.constant dense<0.000000e+00> : vector<32x64xf32>
    %262 = tpu.matmul %261, %204, %cst_207 {dimension_numbers = #tpu.dot_dimension_numbers<[1], [0], [0], [1], [0, 0, 1, 1], [], []>} : vector<32x32xbf16>, vector<32x64xbf16>, vector<32x64xf32> -> vector<32x64xf32>
    %263 = arith.truncf %262 : vector<32x64xf32> to vector<32x64xbf16>
    %c7_208 = arith.constant 7 : index
    %c0_209 = arith.constant 0 : index
    %c0_210 = arith.constant 0 : index
    %264 = vector.load %arg9[%c7_208, %c0_209, %c0_210] : memref<9x64x64xbf16, #tpu.memory_space<vmem>>, vector<1x64x64xbf16>
    %265 = vector.shape_cast %264 : vector<1x64x64xbf16> to vector<64x64xbf16>
    %cst_211 = arith.constant dense<0.000000e+00> : vector<32x64xf32>
    %266 = tpu.matmul %263, %265, %cst_211 {dimension_numbers = #tpu.dot_dimension_numbers<[1], [0], [0], [1], [0, 0, 1, 1], [], []>} : vector<32x64xbf16>, vector<64x64xbf16>, vector<32x64xf32> -> vector<32x64xf32>
    %267 = arith.addf %259, %266 : vector<32x64xf32>
    %c8_212 = arith.constant 8 : index
    %c0_213 = arith.constant 0 : index
    %c0_214 = arith.constant 0 : index
    %268 = vector.load %arg8[%c8_212, %c0_213, %c0_214] : memref<9x32x32xbf16, #tpu.memory_space<vmem>>, vector<1x32x32xbf16>
    %269 = vector.shape_cast %268 : vector<1x32x32xbf16> to vector<32x32xbf16>
    %cst_215 = arith.constant dense<0.000000e+00> : vector<32x64xf32>
    %270 = tpu.matmul %269, %204, %cst_215 {dimension_numbers = #tpu.dot_dimension_numbers<[1], [0], [0], [1], [0, 0, 1, 1], [], []>} : vector<32x32xbf16>, vector<32x64xbf16>, vector<32x64xf32> -> vector<32x64xf32>
    %271 = arith.truncf %270 : vector<32x64xf32> to vector<32x64xbf16>
    %c8_216 = arith.constant 8 : index
    %c0_217 = arith.constant 0 : index
    %c0_218 = arith.constant 0 : index
    %272 = vector.load %arg9[%c8_216, %c0_217, %c0_218] : memref<9x64x64xbf16, #tpu.memory_space<vmem>>, vector<1x64x64xbf16>
    %273 = vector.shape_cast %272 : vector<1x64x64xbf16> to vector<64x64xbf16>
    %cst_219 = arith.constant dense<0.000000e+00> : vector<32x64xf32>
    %274 = tpu.matmul %271, %273, %cst_219 {dimension_numbers = #tpu.dot_dimension_numbers<[1], [0], [0], [1], [0, 0, 1, 1], [], []>} : vector<32x64xbf16>, vector<64x64xbf16>, vector<32x64xf32> -> vector<32x64xf32>
    %275 = arith.addf %267, %274 : vector<32x64xf32>
    %c0_220 = arith.constant 0 : index
    %c0_221 = arith.constant 0 : index
    %276 = vector.load %arg10[%c0_220, %c0_221] : memref<2x64xf32, #tpu.memory_space<vmem>>, vector<2x64xf32>
    %277 = vector.extract_strided_slice %276 {offsets = [0, 0], sizes = [1, 64], strides = [1, 1]} : vector<2x64xf32> to vector<1x64xf32>
    %278 = vector.extract_strided_slice %276 {offsets = [1, 0], sizes = [1, 64], strides = [1, 1]} : vector<2x64xf32> to vector<1x64xf32>
    %cst_222 = arith.constant dense<0.000000e+00> : vector<64xf32>
    %279 = vector.multi_reduction <add>, %275, %cst_222 [0] : vector<32x64xf32> to vector<64xf32>
    %280 = vector.shape_cast %279 : vector<64xf32> to vector<1x64xf32>
    %cst_223 = arith.constant 3.125000e-02 : f32
    %281 = vector.broadcast %cst_223 : f32 to vector<1x64xf32>
    %282 = arith.mulf %280, %281 : vector<1x64xf32>
    %283 = arith.mulf %275, %275 : vector<32x64xf32>
    %cst_224 = arith.constant dense<0.000000e+00> : vector<64xf32>
    %284 = vector.multi_reduction <add>, %283, %cst_224 [0] : vector<32x64xf32> to vector<64xf32>
    %285 = vector.shape_cast %284 : vector<64xf32> to vector<1x64xf32>
    %cst_225 = arith.constant 3.125000e-02 : f32
    %286 = vector.broadcast %cst_225 : f32 to vector<1x64xf32>
    %287 = arith.mulf %285, %286 : vector<1x64xf32>
    %288 = arith.mulf %282, %282 : vector<1x64xf32>
    %289 = arith.subf %287, %288 : vector<1x64xf32>
    %290 = vector.broadcast %282 : vector<1x64xf32> to vector<32x64xf32>
    %291 = arith.subf %275, %290 : vector<32x64xf32>
    %cst_226 = arith.constant 0.000000e+00 : f32
    %292 = vector.broadcast %cst_226 : f32 to vector<1x64xf32>
    %293 = arith.maximumf %289, %292 : vector<1x64xf32>
    %cst_227 = arith.constant 9.99999974E-6 : f32
    %294 = vector.broadcast %cst_227 : f32 to vector<1x64xf32>
    %295 = arith.addf %293, %294 : vector<1x64xf32>
    %296 = math.rsqrt %295 : vector<1x64xf32>
    %297 = vector.broadcast %296 : vector<1x64xf32> to vector<32x64xf32>
    %298 = arith.mulf %291, %297 : vector<32x64xf32>
    %299 = vector.broadcast %277 : vector<1x64xf32> to vector<32x64xf32>
    %300 = arith.mulf %298, %299 : vector<32x64xf32>
    %301 = vector.broadcast %278 : vector<1x64xf32> to vector<32x64xf32>
    %302 = arith.addf %300, %301 : vector<32x64xf32>
    %cst_228 = arith.constant 0.000000e+00 : f32
    %303 = vector.broadcast %cst_228 : f32 to vector<32x64xf32>
    %304 = arith.maximumf %302, %303 : vector<32x64xf32>
    %305 = arith.addf %304, %102 : vector<32x64xf32>
    %cst_229 = arith.constant 0.000000e+00 : f32
    %306 = vector.broadcast %cst_229 : f32 to vector<32x64xf32>
    %307 = arith.maximumf %305, %306 : vector<32x64xf32>
    %308 = arith.truncf %307 : vector<32x64xf32> to vector<32x64xbf16>
    %c0_230 = arith.constant 0 : index
    %c0_231 = arith.constant 0 : index
    %309 = vector.load %arg17[%c0_230, %c0_231] : memref<8x32xbf16, #tpu.memory_space<vmem>>, vector<8x32xbf16>
    %cst_232 = arith.constant dense<0.000000e+00> : vector<8x64xf32>
    %310 = tpu.matmul %309, %308, %cst_232 {dimension_numbers = #tpu.dot_dimension_numbers<[1], [0], [0], [1], [0, 0, 1, 1], [], []>} : vector<8x32xbf16>, vector<32x64xbf16>, vector<8x64xf32> -> vector<8x64xf32>
    %311 = arith.truncf %310 : vector<8x64xf32> to vector<8x64xbf16>
    %c0_233 = arith.constant 0 : index
    %c0_234 = arith.constant 0 : index
    %312 = vector.load %arg18[%c0_233, %c0_234] : memref<64x128xbf16, #tpu.memory_space<vmem>>, vector<64x128xbf16>
    %cst_235 = arith.constant dense<0.000000e+00> : vector<8x128xf32>
    %313 = tpu.matmul %311, %312, %cst_235 {dimension_numbers = #tpu.dot_dimension_numbers<[1], [0], [0], [1], [0, 0, 1, 1], [], []>} : vector<8x64xbf16>, vector<64x128xbf16>, vector<8x128xf32> -> vector<8x128xf32>
    %c0_236 = arith.constant 0 : index
    %c0_237 = arith.constant 0 : index
    %314 = vector.load %arg19[%c0_236, %c0_237] : memref<2x128xf32, #tpu.memory_space<vmem>>, vector<2x128xf32>
    %315 = vector.extract_strided_slice %314 {offsets = [0, 0], sizes = [1, 128], strides = [1, 1]} : vector<2x128xf32> to vector<1x128xf32>
    %316 = vector.extract_strided_slice %314 {offsets = [1, 0], sizes = [1, 128], strides = [1, 1]} : vector<2x128xf32> to vector<1x128xf32>
    %cst_238 = arith.constant dense<0.000000e+00> : vector<128xf32>
    %317 = vector.multi_reduction <add>, %313, %cst_238 [0] : vector<8x128xf32> to vector<128xf32>
    %318 = vector.shape_cast %317 : vector<128xf32> to vector<1x128xf32>
    %cst_239 = arith.constant 1.250000e-01 : f32
    %319 = vector.broadcast %cst_239 : f32 to vector<1x128xf32>
    %320 = arith.mulf %318, %319 : vector<1x128xf32>
    %321 = arith.mulf %313, %313 : vector<8x128xf32>
    %cst_240 = arith.constant dense<0.000000e+00> : vector<128xf32>
    %322 = vector.multi_reduction <add>, %321, %cst_240 [0] : vector<8x128xf32> to vector<128xf32>
    %323 = vector.shape_cast %322 : vector<128xf32> to vector<1x128xf32>
    %cst_241 = arith.constant 1.250000e-01 : f32
    %324 = vector.broadcast %cst_241 : f32 to vector<1x128xf32>
    %325 = arith.mulf %323, %324 : vector<1x128xf32>
    %326 = arith.mulf %320, %320 : vector<1x128xf32>
    %327 = arith.subf %325, %326 : vector<1x128xf32>
    %328 = vector.broadcast %320 : vector<1x128xf32> to vector<8x128xf32>
    %329 = arith.subf %313, %328 : vector<8x128xf32>
    %cst_242 = arith.constant 0.000000e+00 : f32
    %330 = vector.broadcast %cst_242 : f32 to vector<1x128xf32>
    %331 = arith.maximumf %327, %330 : vector<1x128xf32>
    %cst_243 = arith.constant 9.99999974E-6 : f32
    %332 = vector.broadcast %cst_243 : f32 to vector<1x128xf32>
    %333 = arith.addf %331, %332 : vector<1x128xf32>
    %334 = math.rsqrt %333 : vector<1x128xf32>
    %335 = vector.broadcast %334 : vector<1x128xf32> to vector<8x128xf32>
    %336 = arith.mulf %329, %335 : vector<8x128xf32>
    %337 = vector.broadcast %315 : vector<1x128xf32> to vector<8x128xf32>
    %338 = arith.mulf %336, %337 : vector<8x128xf32>
    %339 = vector.broadcast %316 : vector<1x128xf32> to vector<8x128xf32>
    %340 = arith.addf %338, %339 : vector<8x128xf32>
    %341 = arith.truncf %307 : vector<32x64xf32> to vector<32x64xbf16>
    %c0_244 = arith.constant 0 : index
    %c0_245 = arith.constant 0 : index
    %c0_246 = arith.constant 0 : index
    %342 = vector.load %arg11[%c0_244, %c0_245, %c0_246] : memref<9x8x32xbf16, #tpu.memory_space<vmem>>, vector<1x8x32xbf16>
    %343 = vector.shape_cast %342 : vector<1x8x32xbf16> to vector<8x32xbf16>
    %cst_247 = arith.constant dense<0.000000e+00> : vector<8x64xf32>
    %344 = tpu.matmul %343, %341, %cst_247 {dimension_numbers = #tpu.dot_dimension_numbers<[1], [0], [0], [1], [0, 0, 1, 1], [], []>} : vector<8x32xbf16>, vector<32x64xbf16>, vector<8x64xf32> -> vector<8x64xf32>
    %345 = arith.truncf %344 : vector<8x64xf32> to vector<8x64xbf16>
    %c0_248 = arith.constant 0 : index
    %c0_249 = arith.constant 0 : index
    %c0_250 = arith.constant 0 : index
    %346 = vector.load %arg12[%c0_248, %c0_249, %c0_250] : memref<9x64x128xbf16, #tpu.memory_space<vmem>>, vector<1x64x128xbf16>
    %347 = vector.shape_cast %346 : vector<1x64x128xbf16> to vector<64x128xbf16>
    %cst_251 = arith.constant dense<0.000000e+00> : vector<8x128xf32>
    %348 = tpu.matmul %345, %347, %cst_251 {dimension_numbers = #tpu.dot_dimension_numbers<[1], [0], [0], [1], [0, 0, 1, 1], [], []>} : vector<8x64xbf16>, vector<64x128xbf16>, vector<8x128xf32> -> vector<8x128xf32>
    %c1_252 = arith.constant 1 : index
    %c0_253 = arith.constant 0 : index
    %c0_254 = arith.constant 0 : index
    %349 = vector.load %arg11[%c1_252, %c0_253, %c0_254] : memref<9x8x32xbf16, #tpu.memory_space<vmem>>, vector<1x8x32xbf16>
    %350 = vector.shape_cast %349 : vector<1x8x32xbf16> to vector<8x32xbf16>
    %cst_255 = arith.constant dense<0.000000e+00> : vector<8x64xf32>
    %351 = tpu.matmul %350, %341, %cst_255 {dimension_numbers = #tpu.dot_dimension_numbers<[1], [0], [0], [1], [0, 0, 1, 1], [], []>} : vector<8x32xbf16>, vector<32x64xbf16>, vector<8x64xf32> -> vector<8x64xf32>
    %352 = arith.truncf %351 : vector<8x64xf32> to vector<8x64xbf16>
    %c1_256 = arith.constant 1 : index
    %c0_257 = arith.constant 0 : index
    %c0_258 = arith.constant 0 : index
    %353 = vector.load %arg12[%c1_256, %c0_257, %c0_258] : memref<9x64x128xbf16, #tpu.memory_space<vmem>>, vector<1x64x128xbf16>
    %354 = vector.shape_cast %353 : vector<1x64x128xbf16> to vector<64x128xbf16>
    %cst_259 = arith.constant dense<0.000000e+00> : vector<8x128xf32>
    %355 = tpu.matmul %352, %354, %cst_259 {dimension_numbers = #tpu.dot_dimension_numbers<[1], [0], [0], [1], [0, 0, 1, 1], [], []>} : vector<8x64xbf16>, vector<64x128xbf16>, vector<8x128xf32> -> vector<8x128xf32>
    %356 = arith.addf %348, %355 : vector<8x128xf32>
    %c2_260 = arith.constant 2 : index
    %c0_261 = arith.constant 0 : index
    %c0_262 = arith.constant 0 : index
    %357 = vector.load %arg11[%c2_260, %c0_261, %c0_262] : memref<9x8x32xbf16, #tpu.memory_space<vmem>>, vector<1x8x32xbf16>
    %358 = vector.shape_cast %357 : vector<1x8x32xbf16> to vector<8x32xbf16>
    %cst_263 = arith.constant dense<0.000000e+00> : vector<8x64xf32>
    %359 = tpu.matmul %358, %341, %cst_263 {dimension_numbers = #tpu.dot_dimension_numbers<[1], [0], [0], [1], [0, 0, 1, 1], [], []>} : vector<8x32xbf16>, vector<32x64xbf16>, vector<8x64xf32> -> vector<8x64xf32>
    %360 = arith.truncf %359 : vector<8x64xf32> to vector<8x64xbf16>
    %c2_264 = arith.constant 2 : index
    %c0_265 = arith.constant 0 : index
    %c0_266 = arith.constant 0 : index
    %361 = vector.load %arg12[%c2_264, %c0_265, %c0_266] : memref<9x64x128xbf16, #tpu.memory_space<vmem>>, vector<1x64x128xbf16>
    %362 = vector.shape_cast %361 : vector<1x64x128xbf16> to vector<64x128xbf16>
    %cst_267 = arith.constant dense<0.000000e+00> : vector<8x128xf32>
    %363 = tpu.matmul %360, %362, %cst_267 {dimension_numbers = #tpu.dot_dimension_numbers<[1], [0], [0], [1], [0, 0, 1, 1], [], []>} : vector<8x64xbf16>, vector<64x128xbf16>, vector<8x128xf32> -> vector<8x128xf32>
    %364 = arith.addf %356, %363 : vector<8x128xf32>
    %c3_268 = arith.constant 3 : index
    %c0_269 = arith.constant 0 : index
    %c0_270 = arith.constant 0 : index
    %365 = vector.load %arg11[%c3_268, %c0_269, %c0_270] : memref<9x8x32xbf16, #tpu.memory_space<vmem>>, vector<1x8x32xbf16>
    %366 = vector.shape_cast %365 : vector<1x8x32xbf16> to vector<8x32xbf16>
    %cst_271 = arith.constant dense<0.000000e+00> : vector<8x64xf32>
    %367 = tpu.matmul %366, %341, %cst_271 {dimension_numbers = #tpu.dot_dimension_numbers<[1], [0], [0], [1], [0, 0, 1, 1], [], []>} : vector<8x32xbf16>, vector<32x64xbf16>, vector<8x64xf32> -> vector<8x64xf32>
    %368 = arith.truncf %367 : vector<8x64xf32> to vector<8x64xbf16>
    %c3_272 = arith.constant 3 : index
    %c0_273 = arith.constant 0 : index
    %c0_274 = arith.constant 0 : index
    %369 = vector.load %arg12[%c3_272, %c0_273, %c0_274] : memref<9x64x128xbf16, #tpu.memory_space<vmem>>, vector<1x64x128xbf16>
    %370 = vector.shape_cast %369 : vector<1x64x128xbf16> to vector<64x128xbf16>
    %cst_275 = arith.constant dense<0.000000e+00> : vector<8x128xf32>
    %371 = tpu.matmul %368, %370, %cst_275 {dimension_numbers = #tpu.dot_dimension_numbers<[1], [0], [0], [1], [0, 0, 1, 1], [], []>} : vector<8x64xbf16>, vector<64x128xbf16>, vector<8x128xf32> -> vector<8x128xf32>
    %372 = arith.addf %364, %371 : vector<8x128xf32>
    %c4_276 = arith.constant 4 : index
    %c0_277 = arith.constant 0 : index
    %c0_278 = arith.constant 0 : index
    %373 = vector.load %arg11[%c4_276, %c0_277, %c0_278] : memref<9x8x32xbf16, #tpu.memory_space<vmem>>, vector<1x8x32xbf16>
    %374 = vector.shape_cast %373 : vector<1x8x32xbf16> to vector<8x32xbf16>
    %cst_279 = arith.constant dense<0.000000e+00> : vector<8x64xf32>
    %375 = tpu.matmul %374, %341, %cst_279 {dimension_numbers = #tpu.dot_dimension_numbers<[1], [0], [0], [1], [0, 0, 1, 1], [], []>} : vector<8x32xbf16>, vector<32x64xbf16>, vector<8x64xf32> -> vector<8x64xf32>
    %376 = arith.truncf %375 : vector<8x64xf32> to vector<8x64xbf16>
    %c4_280 = arith.constant 4 : index
    %c0_281 = arith.constant 0 : index
    %c0_282 = arith.constant 0 : index
    %377 = vector.load %arg12[%c4_280, %c0_281, %c0_282] : memref<9x64x128xbf16, #tpu.memory_space<vmem>>, vector<1x64x128xbf16>
    %378 = vector.shape_cast %377 : vector<1x64x128xbf16> to vector<64x128xbf16>
    %cst_283 = arith.constant dense<0.000000e+00> : vector<8x128xf32>
    %379 = tpu.matmul %376, %378, %cst_283 {dimension_numbers = #tpu.dot_dimension_numbers<[1], [0], [0], [1], [0, 0, 1, 1], [], []>} : vector<8x64xbf16>, vector<64x128xbf16>, vector<8x128xf32> -> vector<8x128xf32>
    %380 = arith.addf %372, %379 : vector<8x128xf32>
    %c5_284 = arith.constant 5 : index
    %c0_285 = arith.constant 0 : index
    %c0_286 = arith.constant 0 : index
    %381 = vector.load %arg11[%c5_284, %c0_285, %c0_286] : memref<9x8x32xbf16, #tpu.memory_space<vmem>>, vector<1x8x32xbf16>
    %382 = vector.shape_cast %381 : vector<1x8x32xbf16> to vector<8x32xbf16>
    %cst_287 = arith.constant dense<0.000000e+00> : vector<8x64xf32>
    %383 = tpu.matmul %382, %341, %cst_287 {dimension_numbers = #tpu.dot_dimension_numbers<[1], [0], [0], [1], [0, 0, 1, 1], [], []>} : vector<8x32xbf16>, vector<32x64xbf16>, vector<8x64xf32> -> vector<8x64xf32>
    %384 = arith.truncf %383 : vector<8x64xf32> to vector<8x64xbf16>
    %c5_288 = arith.constant 5 : index
    %c0_289 = arith.constant 0 : index
    %c0_290 = arith.constant 0 : index
    %385 = vector.load %arg12[%c5_288, %c0_289, %c0_290] : memref<9x64x128xbf16, #tpu.memory_space<vmem>>, vector<1x64x128xbf16>
    %386 = vector.shape_cast %385 : vector<1x64x128xbf16> to vector<64x128xbf16>
    %cst_291 = arith.constant dense<0.000000e+00> : vector<8x128xf32>
    %387 = tpu.matmul %384, %386, %cst_291 {dimension_numbers = #tpu.dot_dimension_numbers<[1], [0], [0], [1], [0, 0, 1, 1], [], []>} : vector<8x64xbf16>, vector<64x128xbf16>, vector<8x128xf32> -> vector<8x128xf32>
    %388 = arith.addf %380, %387 : vector<8x128xf32>
    %c6_292 = arith.constant 6 : index
    %c0_293 = arith.constant 0 : index
    %c0_294 = arith.constant 0 : index
    %389 = vector.load %arg11[%c6_292, %c0_293, %c0_294] : memref<9x8x32xbf16, #tpu.memory_space<vmem>>, vector<1x8x32xbf16>
    %390 = vector.shape_cast %389 : vector<1x8x32xbf16> to vector<8x32xbf16>
    %cst_295 = arith.constant dense<0.000000e+00> : vector<8x64xf32>
    %391 = tpu.matmul %390, %341, %cst_295 {dimension_numbers = #tpu.dot_dimension_numbers<[1], [0], [0], [1], [0, 0, 1, 1], [], []>} : vector<8x32xbf16>, vector<32x64xbf16>, vector<8x64xf32> -> vector<8x64xf32>
    %392 = arith.truncf %391 : vector<8x64xf32> to vector<8x64xbf16>
    %c6_296 = arith.constant 6 : index
    %c0_297 = arith.constant 0 : index
    %c0_298 = arith.constant 0 : index
    %393 = vector.load %arg12[%c6_296, %c0_297, %c0_298] : memref<9x64x128xbf16, #tpu.memory_space<vmem>>, vector<1x64x128xbf16>
    %394 = vector.shape_cast %393 : vector<1x64x128xbf16> to vector<64x128xbf16>
    %cst_299 = arith.constant dense<0.000000e+00> : vector<8x128xf32>
    %395 = tpu.matmul %392, %394, %cst_299 {dimension_numbers = #tpu.dot_dimension_numbers<[1], [0], [0], [1], [0, 0, 1, 1], [], []>} : vector<8x64xbf16>, vector<64x128xbf16>, vector<8x128xf32> -> vector<8x128xf32>
    %396 = arith.addf %388, %395 : vector<8x128xf32>
    %c7_300 = arith.constant 7 : index
    %c0_301 = arith.constant 0 : index
    %c0_302 = arith.constant 0 : index
    %397 = vector.load %arg11[%c7_300, %c0_301, %c0_302] : memref<9x8x32xbf16, #tpu.memory_space<vmem>>, vector<1x8x32xbf16>
    %398 = vector.shape_cast %397 : vector<1x8x32xbf16> to vector<8x32xbf16>
    %cst_303 = arith.constant dense<0.000000e+00> : vector<8x64xf32>
    %399 = tpu.matmul %398, %341, %cst_303 {dimension_numbers = #tpu.dot_dimension_numbers<[1], [0], [0], [1], [0, 0, 1, 1], [], []>} : vector<8x32xbf16>, vector<32x64xbf16>, vector<8x64xf32> -> vector<8x64xf32>
    %400 = arith.truncf %399 : vector<8x64xf32> to vector<8x64xbf16>
    %c7_304 = arith.constant 7 : index
    %c0_305 = arith.constant 0 : index
    %c0_306 = arith.constant 0 : index
    %401 = vector.load %arg12[%c7_304, %c0_305, %c0_306] : memref<9x64x128xbf16, #tpu.memory_space<vmem>>, vector<1x64x128xbf16>
    %402 = vector.shape_cast %401 : vector<1x64x128xbf16> to vector<64x128xbf16>
    %cst_307 = arith.constant dense<0.000000e+00> : vector<8x128xf32>
    %403 = tpu.matmul %400, %402, %cst_307 {dimension_numbers = #tpu.dot_dimension_numbers<[1], [0], [0], [1], [0, 0, 1, 1], [], []>} : vector<8x64xbf16>, vector<64x128xbf16>, vector<8x128xf32> -> vector<8x128xf32>
    %404 = arith.addf %396, %403 : vector<8x128xf32>
    %c8_308 = arith.constant 8 : index
    %c0_309 = arith.constant 0 : index
    %c0_310 = arith.constant 0 : index
    %405 = vector.load %arg11[%c8_308, %c0_309, %c0_310] : memref<9x8x32xbf16, #tpu.memory_space<vmem>>, vector<1x8x32xbf16>
    %406 = vector.shape_cast %405 : vector<1x8x32xbf16> to vector<8x32xbf16>
    %cst_311 = arith.constant dense<0.000000e+00> : vector<8x64xf32>
    %407 = tpu.matmul %406, %341, %cst_311 {dimension_numbers = #tpu.dot_dimension_numbers<[1], [0], [0], [1], [0, 0, 1, 1], [], []>} : vector<8x32xbf16>, vector<32x64xbf16>, vector<8x64xf32> -> vector<8x64xf32>
    %408 = arith.truncf %407 : vector<8x64xf32> to vector<8x64xbf16>
    %c8_312 = arith.constant 8 : index
    %c0_313 = arith.constant 0 : index
    %c0_314 = arith.constant 0 : index
    %409 = vector.load %arg12[%c8_312, %c0_313, %c0_314] : memref<9x64x128xbf16, #tpu.memory_space<vmem>>, vector<1x64x128xbf16>
    %410 = vector.shape_cast %409 : vector<1x64x128xbf16> to vector<64x128xbf16>
    %cst_315 = arith.constant dense<0.000000e+00> : vector<8x128xf32>
    %411 = tpu.matmul %408, %410, %cst_315 {dimension_numbers = #tpu.dot_dimension_numbers<[1], [0], [0], [1], [0, 0, 1, 1], [], []>} : vector<8x64xbf16>, vector<64x128xbf16>, vector<8x128xf32> -> vector<8x128xf32>
    %412 = arith.addf %404, %411 : vector<8x128xf32>
    %c0_316 = arith.constant 0 : index
    %c0_317 = arith.constant 0 : index
    %413 = vector.load %arg13[%c0_316, %c0_317] : memref<2x128xf32, #tpu.memory_space<vmem>>, vector<2x128xf32>
    %414 = vector.extract_strided_slice %413 {offsets = [0, 0], sizes = [1, 128], strides = [1, 1]} : vector<2x128xf32> to vector<1x128xf32>
    %415 = vector.extract_strided_slice %413 {offsets = [1, 0], sizes = [1, 128], strides = [1, 1]} : vector<2x128xf32> to vector<1x128xf32>
    %cst_318 = arith.constant dense<0.000000e+00> : vector<128xf32>
    %416 = vector.multi_reduction <add>, %412, %cst_318 [0] : vector<8x128xf32> to vector<128xf32>
    %417 = vector.shape_cast %416 : vector<128xf32> to vector<1x128xf32>
    %cst_319 = arith.constant 1.250000e-01 : f32
    %418 = vector.broadcast %cst_319 : f32 to vector<1x128xf32>
    %419 = arith.mulf %417, %418 : vector<1x128xf32>
    %420 = arith.mulf %412, %412 : vector<8x128xf32>
    %cst_320 = arith.constant dense<0.000000e+00> : vector<128xf32>
    %421 = vector.multi_reduction <add>, %420, %cst_320 [0] : vector<8x128xf32> to vector<128xf32>
    %422 = vector.shape_cast %421 : vector<128xf32> to vector<1x128xf32>
    %cst_321 = arith.constant 1.250000e-01 : f32
    %423 = vector.broadcast %cst_321 : f32 to vector<1x128xf32>
    %424 = arith.mulf %422, %423 : vector<1x128xf32>
    %425 = arith.mulf %419, %419 : vector<1x128xf32>
    %426 = arith.subf %424, %425 : vector<1x128xf32>
    %427 = vector.broadcast %419 : vector<1x128xf32> to vector<8x128xf32>
    %428 = arith.subf %412, %427 : vector<8x128xf32>
    %cst_322 = arith.constant 0.000000e+00 : f32
    %429 = vector.broadcast %cst_322 : f32 to vector<1x128xf32>
    %430 = arith.maximumf %426, %429 : vector<1x128xf32>
    %cst_323 = arith.constant 9.99999974E-6 : f32
    %431 = vector.broadcast %cst_323 : f32 to vector<1x128xf32>
    %432 = arith.addf %430, %431 : vector<1x128xf32>
    %433 = math.rsqrt %432 : vector<1x128xf32>
    %434 = vector.broadcast %433 : vector<1x128xf32> to vector<8x128xf32>
    %435 = arith.mulf %428, %434 : vector<8x128xf32>
    %436 = vector.broadcast %414 : vector<1x128xf32> to vector<8x128xf32>
    %437 = arith.mulf %435, %436 : vector<8x128xf32>
    %438 = vector.broadcast %415 : vector<1x128xf32> to vector<8x128xf32>
    %439 = arith.addf %437, %438 : vector<8x128xf32>
    %cst_324 = arith.constant 0.000000e+00 : f32
    %440 = vector.broadcast %cst_324 : f32 to vector<8x128xf32>
    %441 = arith.maximumf %439, %440 : vector<8x128xf32>
    %442 = arith.truncf %441 : vector<8x128xf32> to vector<8x128xbf16>
    %c0_325 = arith.constant 0 : index
    %c0_326 = arith.constant 0 : index
    %c0_327 = arith.constant 0 : index
    %443 = vector.load %arg14[%c0_325, %c0_326, %c0_327] : memref<9x8x8xbf16, #tpu.memory_space<vmem>>, vector<1x8x8xbf16>
    %444 = vector.shape_cast %443 : vector<1x8x8xbf16> to vector<8x8xbf16>
    %cst_328 = arith.constant dense<0.000000e+00> : vector<8x128xf32>
    %445 = tpu.matmul %444, %442, %cst_328 {dimension_numbers = #tpu.dot_dimension_numbers<[1], [0], [0], [1], [0, 0, 1, 1], [], []>} : vector<8x8xbf16>, vector<8x128xbf16>, vector<8x128xf32> -> vector<8x128xf32>
    %446 = arith.truncf %445 : vector<8x128xf32> to vector<8x128xbf16>
    %c0_329 = arith.constant 0 : index
    %c0_330 = arith.constant 0 : index
    %c0_331 = arith.constant 0 : index
    %447 = vector.load %arg15[%c0_329, %c0_330, %c0_331] : memref<9x128x128xbf16, #tpu.memory_space<vmem>>, vector<1x128x128xbf16>
    %448 = vector.shape_cast %447 : vector<1x128x128xbf16> to vector<128x128xbf16>
    %cst_332 = arith.constant dense<0.000000e+00> : vector<8x128xf32>
    %449 = tpu.matmul %446, %448, %cst_332 {dimension_numbers = #tpu.dot_dimension_numbers<[1], [0], [0], [1], [0, 0, 1, 1], [], []>} : vector<8x128xbf16>, vector<128x128xbf16>, vector<8x128xf32> -> vector<8x128xf32>
    %c1_333 = arith.constant 1 : index
    %c0_334 = arith.constant 0 : index
    %c0_335 = arith.constant 0 : index
    %450 = vector.load %arg14[%c1_333, %c0_334, %c0_335] : memref<9x8x8xbf16, #tpu.memory_space<vmem>>, vector<1x8x8xbf16>
    %451 = vector.shape_cast %450 : vector<1x8x8xbf16> to vector<8x8xbf16>
    %cst_336 = arith.constant dense<0.000000e+00> : vector<8x128xf32>
    %452 = tpu.matmul %451, %442, %cst_336 {dimension_numbers = #tpu.dot_dimension_numbers<[1], [0], [0], [1], [0, 0, 1, 1], [], []>} : vector<8x8xbf16>, vector<8x128xbf16>, vector<8x128xf32> -> vector<8x128xf32>
    %453 = arith.truncf %452 : vector<8x128xf32> to vector<8x128xbf16>
    %c1_337 = arith.constant 1 : index
    %c0_338 = arith.constant 0 : index
    %c0_339 = arith.constant 0 : index
    %454 = vector.load %arg15[%c1_337, %c0_338, %c0_339] : memref<9x128x128xbf16, #tpu.memory_space<vmem>>, vector<1x128x128xbf16>
    %455 = vector.shape_cast %454 : vector<1x128x128xbf16> to vector<128x128xbf16>
    %cst_340 = arith.constant dense<0.000000e+00> : vector<8x128xf32>
    %456 = tpu.matmul %453, %455, %cst_340 {dimension_numbers = #tpu.dot_dimension_numbers<[1], [0], [0], [1], [0, 0, 1, 1], [], []>} : vector<8x128xbf16>, vector<128x128xbf16>, vector<8x128xf32> -> vector<8x128xf32>
    %457 = arith.addf %449, %456 : vector<8x128xf32>
    %c2_341 = arith.constant 2 : index
    %c0_342 = arith.constant 0 : index
    %c0_343 = arith.constant 0 : index
    %458 = vector.load %arg14[%c2_341, %c0_342, %c0_343] : memref<9x8x8xbf16, #tpu.memory_space<vmem>>, vector<1x8x8xbf16>
    %459 = vector.shape_cast %458 : vector<1x8x8xbf16> to vector<8x8xbf16>
    %cst_344 = arith.constant dense<0.000000e+00> : vector<8x128xf32>
    %460 = tpu.matmul %459, %442, %cst_344 {dimension_numbers = #tpu.dot_dimension_numbers<[1], [0], [0], [1], [0, 0, 1, 1], [], []>} : vector<8x8xbf16>, vector<8x128xbf16>, vector<8x128xf32> -> vector<8x128xf32>
    %461 = arith.truncf %460 : vector<8x128xf32> to vector<8x128xbf16>
    %c2_345 = arith.constant 2 : index
    %c0_346 = arith.constant 0 : index
    %c0_347 = arith.constant 0 : index
    %462 = vector.load %arg15[%c2_345, %c0_346, %c0_347] : memref<9x128x128xbf16, #tpu.memory_space<vmem>>, vector<1x128x128xbf16>
    %463 = vector.shape_cast %462 : vector<1x128x128xbf16> to vector<128x128xbf16>
    %cst_348 = arith.constant dense<0.000000e+00> : vector<8x128xf32>
    %464 = tpu.matmul %461, %463, %cst_348 {dimension_numbers = #tpu.dot_dimension_numbers<[1], [0], [0], [1], [0, 0, 1, 1], [], []>} : vector<8x128xbf16>, vector<128x128xbf16>, vector<8x128xf32> -> vector<8x128xf32>
    %465 = arith.addf %457, %464 : vector<8x128xf32>
    %c3_349 = arith.constant 3 : index
    %c0_350 = arith.constant 0 : index
    %c0_351 = arith.constant 0 : index
    %466 = vector.load %arg14[%c3_349, %c0_350, %c0_351] : memref<9x8x8xbf16, #tpu.memory_space<vmem>>, vector<1x8x8xbf16>
    %467 = vector.shape_cast %466 : vector<1x8x8xbf16> to vector<8x8xbf16>
    %cst_352 = arith.constant dense<0.000000e+00> : vector<8x128xf32>
    %468 = tpu.matmul %467, %442, %cst_352 {dimension_numbers = #tpu.dot_dimension_numbers<[1], [0], [0], [1], [0, 0, 1, 1], [], []>} : vector<8x8xbf16>, vector<8x128xbf16>, vector<8x128xf32> -> vector<8x128xf32>
    %469 = arith.truncf %468 : vector<8x128xf32> to vector<8x128xbf16>
    %c3_353 = arith.constant 3 : index
    %c0_354 = arith.constant 0 : index
    %c0_355 = arith.constant 0 : index
    %470 = vector.load %arg15[%c3_353, %c0_354, %c0_355] : memref<9x128x128xbf16, #tpu.memory_space<vmem>>, vector<1x128x128xbf16>
    %471 = vector.shape_cast %470 : vector<1x128x128xbf16> to vector<128x128xbf16>
    %cst_356 = arith.constant dense<0.000000e+00> : vector<8x128xf32>
    %472 = tpu.matmul %469, %471, %cst_356 {dimension_numbers = #tpu.dot_dimension_numbers<[1], [0], [0], [1], [0, 0, 1, 1], [], []>} : vector<8x128xbf16>, vector<128x128xbf16>, vector<8x128xf32> -> vector<8x128xf32>
    %473 = arith.addf %465, %472 : vector<8x128xf32>
    %c4_357 = arith.constant 4 : index
    %c0_358 = arith.constant 0 : index
    %c0_359 = arith.constant 0 : index
    %474 = vector.load %arg14[%c4_357, %c0_358, %c0_359] : memref<9x8x8xbf16, #tpu.memory_space<vmem>>, vector<1x8x8xbf16>
    %475 = vector.shape_cast %474 : vector<1x8x8xbf16> to vector<8x8xbf16>
    %cst_360 = arith.constant dense<0.000000e+00> : vector<8x128xf32>
    %476 = tpu.matmul %475, %442, %cst_360 {dimension_numbers = #tpu.dot_dimension_numbers<[1], [0], [0], [1], [0, 0, 1, 1], [], []>} : vector<8x8xbf16>, vector<8x128xbf16>, vector<8x128xf32> -> vector<8x128xf32>
    %477 = arith.truncf %476 : vector<8x128xf32> to vector<8x128xbf16>
    %c4_361 = arith.constant 4 : index
    %c0_362 = arith.constant 0 : index
    %c0_363 = arith.constant 0 : index
    %478 = vector.load %arg15[%c4_361, %c0_362, %c0_363] : memref<9x128x128xbf16, #tpu.memory_space<vmem>>, vector<1x128x128xbf16>
    %479 = vector.shape_cast %478 : vector<1x128x128xbf16> to vector<128x128xbf16>
    %cst_364 = arith.constant dense<0.000000e+00> : vector<8x128xf32>
    %480 = tpu.matmul %477, %479, %cst_364 {dimension_numbers = #tpu.dot_dimension_numbers<[1], [0], [0], [1], [0, 0, 1, 1], [], []>} : vector<8x128xbf16>, vector<128x128xbf16>, vector<8x128xf32> -> vector<8x128xf32>
    %481 = arith.addf %473, %480 : vector<8x128xf32>
    %c5_365 = arith.constant 5 : index
    %c0_366 = arith.constant 0 : index
    %c0_367 = arith.constant 0 : index
    %482 = vector.load %arg14[%c5_365, %c0_366, %c0_367] : memref<9x8x8xbf16, #tpu.memory_space<vmem>>, vector<1x8x8xbf16>
    %483 = vector.shape_cast %482 : vector<1x8x8xbf16> to vector<8x8xbf16>
    %cst_368 = arith.constant dense<0.000000e+00> : vector<8x128xf32>
    %484 = tpu.matmul %483, %442, %cst_368 {dimension_numbers = #tpu.dot_dimension_numbers<[1], [0], [0], [1], [0, 0, 1, 1], [], []>} : vector<8x8xbf16>, vector<8x128xbf16>, vector<8x128xf32> -> vector<8x128xf32>
    %485 = arith.truncf %484 : vector<8x128xf32> to vector<8x128xbf16>
    %c5_369 = arith.constant 5 : index
    %c0_370 = arith.constant 0 : index
    %c0_371 = arith.constant 0 : index
    %486 = vector.load %arg15[%c5_369, %c0_370, %c0_371] : memref<9x128x128xbf16, #tpu.memory_space<vmem>>, vector<1x128x128xbf16>
    %487 = vector.shape_cast %486 : vector<1x128x128xbf16> to vector<128x128xbf16>
    %cst_372 = arith.constant dense<0.000000e+00> : vector<8x128xf32>
    %488 = tpu.matmul %485, %487, %cst_372 {dimension_numbers = #tpu.dot_dimension_numbers<[1], [0], [0], [1], [0, 0, 1, 1], [], []>} : vector<8x128xbf16>, vector<128x128xbf16>, vector<8x128xf32> -> vector<8x128xf32>
    %489 = arith.addf %481, %488 : vector<8x128xf32>
    %c6_373 = arith.constant 6 : index
    %c0_374 = arith.constant 0 : index
    %c0_375 = arith.constant 0 : index
    %490 = vector.load %arg14[%c6_373, %c0_374, %c0_375] : memref<9x8x8xbf16, #tpu.memory_space<vmem>>, vector<1x8x8xbf16>
    %491 = vector.shape_cast %490 : vector<1x8x8xbf16> to vector<8x8xbf16>
    %cst_376 = arith.constant dense<0.000000e+00> : vector<8x128xf32>
    %492 = tpu.matmul %491, %442, %cst_376 {dimension_numbers = #tpu.dot_dimension_numbers<[1], [0], [0], [1], [0, 0, 1, 1], [], []>} : vector<8x8xbf16>, vector<8x128xbf16>, vector<8x128xf32> -> vector<8x128xf32>
    %493 = arith.truncf %492 : vector<8x128xf32> to vector<8x128xbf16>
    %c6_377 = arith.constant 6 : index
    %c0_378 = arith.constant 0 : index
    %c0_379 = arith.constant 0 : index
    %494 = vector.load %arg15[%c6_377, %c0_378, %c0_379] : memref<9x128x128xbf16, #tpu.memory_space<vmem>>, vector<1x128x128xbf16>
    %495 = vector.shape_cast %494 : vector<1x128x128xbf16> to vector<128x128xbf16>
    %cst_380 = arith.constant dense<0.000000e+00> : vector<8x128xf32>
    %496 = tpu.matmul %493, %495, %cst_380 {dimension_numbers = #tpu.dot_dimension_numbers<[1], [0], [0], [1], [0, 0, 1, 1], [], []>} : vector<8x128xbf16>, vector<128x128xbf16>, vector<8x128xf32> -> vector<8x128xf32>
    %497 = arith.addf %489, %496 : vector<8x128xf32>
    %c7_381 = arith.constant 7 : index
    %c0_382 = arith.constant 0 : index
    %c0_383 = arith.constant 0 : index
    %498 = vector.load %arg14[%c7_381, %c0_382, %c0_383] : memref<9x8x8xbf16, #tpu.memory_space<vmem>>, vector<1x8x8xbf16>
    %499 = vector.shape_cast %498 : vector<1x8x8xbf16> to vector<8x8xbf16>
    %cst_384 = arith.constant dense<0.000000e+00> : vector<8x128xf32>
    %500 = tpu.matmul %499, %442, %cst_384 {dimension_numbers = #tpu.dot_dimension_numbers<[1], [0], [0], [1], [0, 0, 1, 1], [], []>} : vector<8x8xbf16>, vector<8x128xbf16>, vector<8x128xf32> -> vector<8x128xf32>
    %501 = arith.truncf %500 : vector<8x128xf32> to vector<8x128xbf16>
    %c7_385 = arith.constant 7 : index
    %c0_386 = arith.constant 0 : index
    %c0_387 = arith.constant 0 : index
    %502 = vector.load %arg15[%c7_385, %c0_386, %c0_387] : memref<9x128x128xbf16, #tpu.memory_space<vmem>>, vector<1x128x128xbf16>
    %503 = vector.shape_cast %502 : vector<1x128x128xbf16> to vector<128x128xbf16>
    %cst_388 = arith.constant dense<0.000000e+00> : vector<8x128xf32>
    %504 = tpu.matmul %501, %503, %cst_388 {dimension_numbers = #tpu.dot_dimension_numbers<[1], [0], [0], [1], [0, 0, 1, 1], [], []>} : vector<8x128xbf16>, vector<128x128xbf16>, vector<8x128xf32> -> vector<8x128xf32>
    %505 = arith.addf %497, %504 : vector<8x128xf32>
    %c8_389 = arith.constant 8 : index
    %c0_390 = arith.constant 0 : index
    %c0_391 = arith.constant 0 : index
    %506 = vector.load %arg14[%c8_389, %c0_390, %c0_391] : memref<9x8x8xbf16, #tpu.memory_space<vmem>>, vector<1x8x8xbf16>
    %507 = vector.shape_cast %506 : vector<1x8x8xbf16> to vector<8x8xbf16>
    %cst_392 = arith.constant dense<0.000000e+00> : vector<8x128xf32>
    %508 = tpu.matmul %507, %442, %cst_392 {dimension_numbers = #tpu.dot_dimension_numbers<[1], [0], [0], [1], [0, 0, 1, 1], [], []>} : vector<8x8xbf16>, vector<8x128xbf16>, vector<8x128xf32> -> vector<8x128xf32>
    %509 = arith.truncf %508 : vector<8x128xf32> to vector<8x128xbf16>
    %c8_393 = arith.constant 8 : index
    %c0_394 = arith.constant 0 : index
    %c0_395 = arith.constant 0 : index
    %510 = vector.load %arg15[%c8_393, %c0_394, %c0_395] : memref<9x128x128xbf16, #tpu.memory_space<vmem>>, vector<1x128x128xbf16>
    %511 = vector.shape_cast %510 : vector<1x128x128xbf16> to vector<128x128xbf16>
    %cst_396 = arith.constant dense<0.000000e+00> : vector<8x128xf32>
    %512 = tpu.matmul %509, %511, %cst_396 {dimension_numbers = #tpu.dot_dimension_numbers<[1], [0], [0], [1], [0, 0, 1, 1], [], []>} : vector<8x128xbf16>, vector<128x128xbf16>, vector<8x128xf32> -> vector<8x128xf32>
    %513 = arith.addf %505, %512 : vector<8x128xf32>
    %c0_397 = arith.constant 0 : index
    %c0_398 = arith.constant 0 : index
    %514 = vector.load %arg16[%c0_397, %c0_398] : memref<2x128xf32, #tpu.memory_space<vmem>>, vector<2x128xf32>
    %515 = vector.extract_strided_slice %514 {offsets = [0, 0], sizes = [1, 128], strides = [1, 1]} : vector<2x128xf32> to vector<1x128xf32>
    %516 = vector.extract_strided_slice %514 {offsets = [1, 0], sizes = [1, 128], strides = [1, 1]} : vector<2x128xf32> to vector<1x128xf32>
    %cst_399 = arith.constant dense<0.000000e+00> : vector<128xf32>
    %517 = vector.multi_reduction <add>, %513, %cst_399 [0] : vector<8x128xf32> to vector<128xf32>
    %518 = vector.shape_cast %517 : vector<128xf32> to vector<1x128xf32>
    %cst_400 = arith.constant 1.250000e-01 : f32
    %519 = vector.broadcast %cst_400 : f32 to vector<1x128xf32>
    %520 = arith.mulf %518, %519 : vector<1x128xf32>
    %521 = arith.mulf %513, %513 : vector<8x128xf32>
    %cst_401 = arith.constant dense<0.000000e+00> : vector<128xf32>
    %522 = vector.multi_reduction <add>, %521, %cst_401 [0] : vector<8x128xf32> to vector<128xf32>
    %523 = vector.shape_cast %522 : vector<128xf32> to vector<1x128xf32>
    %cst_402 = arith.constant 1.250000e-01 : f32
    %524 = vector.broadcast %cst_402 : f32 to vector<1x128xf32>
    %525 = arith.mulf %523, %524 : vector<1x128xf32>
    %526 = arith.mulf %520, %520 : vector<1x128xf32>
    %527 = arith.subf %525, %526 : vector<1x128xf32>
    %528 = vector.broadcast %520 : vector<1x128xf32> to vector<8x128xf32>
    %529 = arith.subf %513, %528 : vector<8x128xf32>
    %cst_403 = arith.constant 0.000000e+00 : f32
    %530 = vector.broadcast %cst_403 : f32 to vector<1x128xf32>
    %531 = arith.maximumf %527, %530 : vector<1x128xf32>
    %cst_404 = arith.constant 9.99999974E-6 : f32
    %532 = vector.broadcast %cst_404 : f32 to vector<1x128xf32>
    %533 = arith.addf %531, %532 : vector<1x128xf32>
    %534 = math.rsqrt %533 : vector<1x128xf32>
    %535 = vector.broadcast %534 : vector<1x128xf32> to vector<8x128xf32>
    %536 = arith.mulf %529, %535 : vector<8x128xf32>
    %537 = vector.broadcast %515 : vector<1x128xf32> to vector<8x128xf32>
    %538 = arith.mulf %536, %537 : vector<8x128xf32>
    %539 = vector.broadcast %516 : vector<1x128xf32> to vector<8x128xf32>
    %540 = arith.addf %538, %539 : vector<8x128xf32>
    %cst_405 = arith.constant 0.000000e+00 : f32
    %541 = vector.broadcast %cst_405 : f32 to vector<8x128xf32>
    %542 = arith.maximumf %540, %541 : vector<8x128xf32>
    %543 = arith.addf %542, %340 : vector<8x128xf32>
    %cst_406 = arith.constant 0.000000e+00 : f32
    %544 = vector.broadcast %cst_406 : f32 to vector<8x128xf32>
    %545 = arith.maximumf %543, %544 : vector<8x128xf32>
    %546 = arith.truncf %545 : vector<8x128xf32> to vector<8x128xbf16>
    %c0_407 = arith.constant 0 : index
    %c0_408 = arith.constant 0 : index
    %547 = vector.load %arg26[%c0_407, %c0_408] : memref<2x8xbf16, #tpu.memory_space<vmem>>, vector<2x8xbf16>
    %cst_409 = arith.constant dense<0.000000e+00> : vector<2x128xf32>
    %548 = tpu.matmul %547, %546, %cst_409 {dimension_numbers = #tpu.dot_dimension_numbers<[1], [0], [0], [1], [0, 0, 1, 1], [], []>} : vector<2x8xbf16>, vector<8x128xbf16>, vector<2x128xf32> -> vector<2x128xf32>
    %549 = arith.truncf %548 : vector<2x128xf32> to vector<2x128xbf16>
    %c0_410 = arith.constant 0 : index
    %c0_411 = arith.constant 0 : index
    %550 = vector.load %arg27[%c0_410, %c0_411] : memref<128x256xbf16, #tpu.memory_space<vmem>>, vector<128x256xbf16>
    %cst_412 = arith.constant dense<0.000000e+00> : vector<2x256xf32>
    %551 = tpu.matmul %549, %550, %cst_412 {dimension_numbers = #tpu.dot_dimension_numbers<[1], [0], [0], [1], [0, 0, 1, 1], [], []>} : vector<2x128xbf16>, vector<128x256xbf16>, vector<2x256xf32> -> vector<2x256xf32>
    %c0_413 = arith.constant 0 : index
    %c0_414 = arith.constant 0 : index
    %552 = vector.load %arg28[%c0_413, %c0_414] : memref<2x256xf32, #tpu.memory_space<vmem>>, vector<2x256xf32>
    %553 = vector.extract_strided_slice %552 {offsets = [0, 0], sizes = [1, 256], strides = [1, 1]} : vector<2x256xf32> to vector<1x256xf32>
    %554 = vector.extract_strided_slice %552 {offsets = [1, 0], sizes = [1, 256], strides = [1, 1]} : vector<2x256xf32> to vector<1x256xf32>
    %cst_415 = arith.constant dense<0.000000e+00> : vector<256xf32>
    %555 = vector.multi_reduction <add>, %551, %cst_415 [0] : vector<2x256xf32> to vector<256xf32>
    %556 = vector.shape_cast %555 : vector<256xf32> to vector<1x256xf32>
    %cst_416 = arith.constant 5.000000e-01 : f32
    %557 = vector.broadcast %cst_416 : f32 to vector<1x256xf32>
    %558 = arith.mulf %556, %557 : vector<1x256xf32>
    %559 = arith.mulf %551, %551 : vector<2x256xf32>
    %cst_417 = arith.constant dense<0.000000e+00> : vector<256xf32>
    %560 = vector.multi_reduction <add>, %559, %cst_417 [0] : vector<2x256xf32> to vector<256xf32>
    %561 = vector.shape_cast %560 : vector<256xf32> to vector<1x256xf32>
    %cst_418 = arith.constant 5.000000e-01 : f32
    %562 = vector.broadcast %cst_418 : f32 to vector<1x256xf32>
    %563 = arith.mulf %561, %562 : vector<1x256xf32>
    %564 = arith.mulf %558, %558 : vector<1x256xf32>
    %565 = arith.subf %563, %564 : vector<1x256xf32>
    %566 = vector.broadcast %558 : vector<1x256xf32> to vector<2x256xf32>
    %567 = arith.subf %551, %566 : vector<2x256xf32>
    %cst_419 = arith.constant 0.000000e+00 : f32
    %568 = vector.broadcast %cst_419 : f32 to vector<1x256xf32>
    %569 = arith.maximumf %565, %568 : vector<1x256xf32>
    %cst_420 = arith.constant 9.99999974E-6 : f32
    %570 = vector.broadcast %cst_420 : f32 to vector<1x256xf32>
    %571 = arith.addf %569, %570 : vector<1x256xf32>
    %572 = math.rsqrt %571 : vector<1x256xf32>
    %573 = vector.broadcast %572 : vector<1x256xf32> to vector<2x256xf32>
    %574 = arith.mulf %567, %573 : vector<2x256xf32>
    %575 = vector.broadcast %553 : vector<1x256xf32> to vector<2x256xf32>
    %576 = arith.mulf %574, %575 : vector<2x256xf32>
    %577 = vector.broadcast %554 : vector<1x256xf32> to vector<2x256xf32>
    %578 = arith.addf %576, %577 : vector<2x256xf32>
    %579 = arith.truncf %545 : vector<8x128xf32> to vector<8x128xbf16>
    %c0_421 = arith.constant 0 : index
    %c0_422 = arith.constant 0 : index
    %c0_423 = arith.constant 0 : index
    %580 = vector.load %arg20[%c0_421, %c0_422, %c0_423] : memref<4x2x8xbf16, #tpu.memory_space<vmem>>, vector<1x2x8xbf16>
    %581 = vector.shape_cast %580 : vector<1x2x8xbf16> to vector<2x8xbf16>
    %cst_424 = arith.constant dense<0.000000e+00> : vector<2x128xf32>
    %582 = tpu.matmul %581, %579, %cst_424 {dimension_numbers = #tpu.dot_dimension_numbers<[1], [0], [0], [1], [0, 0, 1, 1], [], []>} : vector<2x8xbf16>, vector<8x128xbf16>, vector<2x128xf32> -> vector<2x128xf32>
    %583 = arith.truncf %582 : vector<2x128xf32> to vector<2x128xbf16>
    %c4_425 = arith.constant 4 : index
    %c0_426 = arith.constant 0 : index
    %c0_427 = arith.constant 0 : index
    %584 = vector.load %arg21[%c4_425, %c0_426, %c0_427] : memref<9x128x256xbf16, #tpu.memory_space<vmem>>, vector<1x128x256xbf16>
    %585 = vector.shape_cast %584 : vector<1x128x256xbf16> to vector<128x256xbf16>
    %cst_428 = arith.constant dense<0.000000e+00> : vector<2x256xf32>
    %586 = tpu.matmul %583, %585, %cst_428 {dimension_numbers = #tpu.dot_dimension_numbers<[1], [0], [0], [1], [0, 0, 1, 1], [], []>} : vector<2x128xbf16>, vector<128x256xbf16>, vector<2x256xf32> -> vector<2x256xf32>
    %c1_429 = arith.constant 1 : index
    %c0_430 = arith.constant 0 : index
    %c0_431 = arith.constant 0 : index
    %587 = vector.load %arg20[%c1_429, %c0_430, %c0_431] : memref<4x2x8xbf16, #tpu.memory_space<vmem>>, vector<1x2x8xbf16>
    %588 = vector.shape_cast %587 : vector<1x2x8xbf16> to vector<2x8xbf16>
    %cst_432 = arith.constant dense<0.000000e+00> : vector<2x128xf32>
    %589 = tpu.matmul %588, %579, %cst_432 {dimension_numbers = #tpu.dot_dimension_numbers<[1], [0], [0], [1], [0, 0, 1, 1], [], []>} : vector<2x8xbf16>, vector<8x128xbf16>, vector<2x128xf32> -> vector<2x128xf32>
    %590 = arith.truncf %589 : vector<2x128xf32> to vector<2x128xbf16>
    %c5_433 = arith.constant 5 : index
    %c0_434 = arith.constant 0 : index
    %c0_435 = arith.constant 0 : index
    %591 = vector.load %arg21[%c5_433, %c0_434, %c0_435] : memref<9x128x256xbf16, #tpu.memory_space<vmem>>, vector<1x128x256xbf16>
    %592 = vector.shape_cast %591 : vector<1x128x256xbf16> to vector<128x256xbf16>
    %cst_436 = arith.constant dense<0.000000e+00> : vector<2x256xf32>
    %593 = tpu.matmul %590, %592, %cst_436 {dimension_numbers = #tpu.dot_dimension_numbers<[1], [0], [0], [1], [0, 0, 1, 1], [], []>} : vector<2x128xbf16>, vector<128x256xbf16>, vector<2x256xf32> -> vector<2x256xf32>
    %594 = arith.addf %586, %593 : vector<2x256xf32>
    %c2_437 = arith.constant 2 : index
    %c0_438 = arith.constant 0 : index
    %c0_439 = arith.constant 0 : index
    %595 = vector.load %arg20[%c2_437, %c0_438, %c0_439] : memref<4x2x8xbf16, #tpu.memory_space<vmem>>, vector<1x2x8xbf16>
    %596 = vector.shape_cast %595 : vector<1x2x8xbf16> to vector<2x8xbf16>
    %cst_440 = arith.constant dense<0.000000e+00> : vector<2x128xf32>
    %597 = tpu.matmul %596, %579, %cst_440 {dimension_numbers = #tpu.dot_dimension_numbers<[1], [0], [0], [1], [0, 0, 1, 1], [], []>} : vector<2x8xbf16>, vector<8x128xbf16>, vector<2x128xf32> -> vector<2x128xf32>
    %598 = arith.truncf %597 : vector<2x128xf32> to vector<2x128xbf16>
    %c7_441 = arith.constant 7 : index
    %c0_442 = arith.constant 0 : index
    %c0_443 = arith.constant 0 : index
    %599 = vector.load %arg21[%c7_441, %c0_442, %c0_443] : memref<9x128x256xbf16, #tpu.memory_space<vmem>>, vector<1x128x256xbf16>
    %600 = vector.shape_cast %599 : vector<1x128x256xbf16> to vector<128x256xbf16>
    %cst_444 = arith.constant dense<0.000000e+00> : vector<2x256xf32>
    %601 = tpu.matmul %598, %600, %cst_444 {dimension_numbers = #tpu.dot_dimension_numbers<[1], [0], [0], [1], [0, 0, 1, 1], [], []>} : vector<2x128xbf16>, vector<128x256xbf16>, vector<2x256xf32> -> vector<2x256xf32>
    %602 = arith.addf %594, %601 : vector<2x256xf32>
    %c3_445 = arith.constant 3 : index
    %c0_446 = arith.constant 0 : index
    %c0_447 = arith.constant 0 : index
    %603 = vector.load %arg20[%c3_445, %c0_446, %c0_447] : memref<4x2x8xbf16, #tpu.memory_space<vmem>>, vector<1x2x8xbf16>
    %604 = vector.shape_cast %603 : vector<1x2x8xbf16> to vector<2x8xbf16>
    %cst_448 = arith.constant dense<0.000000e+00> : vector<2x128xf32>
    %605 = tpu.matmul %604, %579, %cst_448 {dimension_numbers = #tpu.dot_dimension_numbers<[1], [0], [0], [1], [0, 0, 1, 1], [], []>} : vector<2x8xbf16>, vector<8x128xbf16>, vector<2x128xf32> -> vector<2x128xf32>
    %606 = arith.truncf %605 : vector<2x128xf32> to vector<2x128xbf16>
    %c8_449 = arith.constant 8 : index
    %c0_450 = arith.constant 0 : index
    %c0_451 = arith.constant 0 : index
    %607 = vector.load %arg21[%c8_449, %c0_450, %c0_451] : memref<9x128x256xbf16, #tpu.memory_space<vmem>>, vector<1x128x256xbf16>
    %608 = vector.shape_cast %607 : vector<1x128x256xbf16> to vector<128x256xbf16>
    %cst_452 = arith.constant dense<0.000000e+00> : vector<2x256xf32>
    %609 = tpu.matmul %606, %608, %cst_452 {dimension_numbers = #tpu.dot_dimension_numbers<[1], [0], [0], [1], [0, 0, 1, 1], [], []>} : vector<2x128xbf16>, vector<128x256xbf16>, vector<2x256xf32> -> vector<2x256xf32>
    %610 = arith.addf %602, %609 : vector<2x256xf32>
    %c0_453 = arith.constant 0 : index
    %c0_454 = arith.constant 0 : index
    %611 = vector.load %arg22[%c0_453, %c0_454] : memref<2x256xf32, #tpu.memory_space<vmem>>, vector<2x256xf32>
    %612 = vector.extract_strided_slice %611 {offsets = [0, 0], sizes = [1, 256], strides = [1, 1]} : vector<2x256xf32> to vector<1x256xf32>
    %613 = vector.extract_strided_slice %611 {offsets = [1, 0], sizes = [1, 256], strides = [1, 1]} : vector<2x256xf32> to vector<1x256xf32>
    %cst_455 = arith.constant dense<0.000000e+00> : vector<256xf32>
    %614 = vector.multi_reduction <add>, %610, %cst_455 [0] : vector<2x256xf32> to vector<256xf32>
    %615 = vector.shape_cast %614 : vector<256xf32> to vector<1x256xf32>
    %cst_456 = arith.constant 5.000000e-01 : f32
    %616 = vector.broadcast %cst_456 : f32 to vector<1x256xf32>
    %617 = arith.mulf %615, %616 : vector<1x256xf32>
    %618 = arith.mulf %610, %610 : vector<2x256xf32>
    %cst_457 = arith.constant dense<0.000000e+00> : vector<256xf32>
    %619 = vector.multi_reduction <add>, %618, %cst_457 [0] : vector<2x256xf32> to vector<256xf32>
    %620 = vector.shape_cast %619 : vector<256xf32> to vector<1x256xf32>
    %cst_458 = arith.constant 5.000000e-01 : f32
    %621 = vector.broadcast %cst_458 : f32 to vector<1x256xf32>
    %622 = arith.mulf %620, %621 : vector<1x256xf32>
    %623 = arith.mulf %617, %617 : vector<1x256xf32>
    %624 = arith.subf %622, %623 : vector<1x256xf32>
    %625 = vector.broadcast %617 : vector<1x256xf32> to vector<2x256xf32>
    %626 = arith.subf %610, %625 : vector<2x256xf32>
    %cst_459 = arith.constant 0.000000e+00 : f32
    %627 = vector.broadcast %cst_459 : f32 to vector<1x256xf32>
    %628 = arith.maximumf %624, %627 : vector<1x256xf32>
    %cst_460 = arith.constant 9.99999974E-6 : f32
    %629 = vector.broadcast %cst_460 : f32 to vector<1x256xf32>
    %630 = arith.addf %628, %629 : vector<1x256xf32>
    %631 = math.rsqrt %630 : vector<1x256xf32>
    %632 = vector.broadcast %631 : vector<1x256xf32> to vector<2x256xf32>
    %633 = arith.mulf %626, %632 : vector<2x256xf32>
    %634 = vector.broadcast %612 : vector<1x256xf32> to vector<2x256xf32>
    %635 = arith.mulf %633, %634 : vector<2x256xf32>
    %636 = vector.broadcast %613 : vector<1x256xf32> to vector<2x256xf32>
    %637 = arith.addf %635, %636 : vector<2x256xf32>
    %cst_461 = arith.constant 0.000000e+00 : f32
    %638 = vector.broadcast %cst_461 : f32 to vector<2x256xf32>
    %639 = arith.maximumf %637, %638 : vector<2x256xf32>
    %640 = arith.truncf %639 : vector<2x256xf32> to vector<2x256xbf16>
    %c0_462 = arith.constant 0 : index
    %c0_463 = arith.constant 0 : index
    %c0_464 = arith.constant 0 : index
    %641 = vector.load %arg23[%c0_462, %c0_463, %c0_464] : memref<1x2x2xbf16, #tpu.memory_space<vmem>>, vector<1x2x2xbf16>
    %642 = vector.shape_cast %641 : vector<1x2x2xbf16> to vector<2x2xbf16>
    %cst_465 = arith.constant dense<0.000000e+00> : vector<2x256xf32>
    %643 = tpu.matmul %642, %640, %cst_465 {dimension_numbers = #tpu.dot_dimension_numbers<[1], [0], [0], [1], [0, 0, 1, 1], [], []>} : vector<2x2xbf16>, vector<2x256xbf16>, vector<2x256xf32> -> vector<2x256xf32>
    %644 = arith.truncf %643 : vector<2x256xf32> to vector<2x256xbf16>
    %c4_466 = arith.constant 4 : index
    %c0_467 = arith.constant 0 : index
    %c0_468 = arith.constant 0 : index
    %645 = vector.load %arg24[%c4_466, %c0_467, %c0_468] : memref<9x256x256xbf16, #tpu.memory_space<vmem>>, vector<1x256x256xbf16>
    %646 = vector.shape_cast %645 : vector<1x256x256xbf16> to vector<256x256xbf16>
    %cst_469 = arith.constant dense<0.000000e+00> : vector<2x256xf32>
    %647 = tpu.matmul %644, %646, %cst_469 {dimension_numbers = #tpu.dot_dimension_numbers<[1], [0], [0], [1], [0, 0, 1, 1], [], []>} : vector<2x256xbf16>, vector<256x256xbf16>, vector<2x256xf32> -> vector<2x256xf32>
    %c0_470 = arith.constant 0 : index
    %c0_471 = arith.constant 0 : index
    %648 = vector.load %arg25[%c0_470, %c0_471] : memref<2x256xf32, #tpu.memory_space<vmem>>, vector<2x256xf32>
    %649 = vector.extract_strided_slice %648 {offsets = [0, 0], sizes = [1, 256], strides = [1, 1]} : vector<2x256xf32> to vector<1x256xf32>
    %650 = vector.extract_strided_slice %648 {offsets = [1, 0], sizes = [1, 256], strides = [1, 1]} : vector<2x256xf32> to vector<1x256xf32>
    %cst_472 = arith.constant dense<0.000000e+00> : vector<256xf32>
    %651 = vector.multi_reduction <add>, %647, %cst_472 [0] : vector<2x256xf32> to vector<256xf32>
    %652 = vector.shape_cast %651 : vector<256xf32> to vector<1x256xf32>
    %cst_473 = arith.constant 5.000000e-01 : f32
    %653 = vector.broadcast %cst_473 : f32 to vector<1x256xf32>
    %654 = arith.mulf %652, %653 : vector<1x256xf32>
    %655 = arith.mulf %647, %647 : vector<2x256xf32>
    %cst_474 = arith.constant dense<0.000000e+00> : vector<256xf32>
    %656 = vector.multi_reduction <add>, %655, %cst_474 [0] : vector<2x256xf32> to vector<256xf32>
    %657 = vector.shape_cast %656 : vector<256xf32> to vector<1x256xf32>
    %cst_475 = arith.constant 5.000000e-01 : f32
    %658 = vector.broadcast %cst_475 : f32 to vector<1x256xf32>
    %659 = arith.mulf %657, %658 : vector<1x256xf32>
    %660 = arith.mulf %654, %654 : vector<1x256xf32>
    %661 = arith.subf %659, %660 : vector<1x256xf32>
    %662 = vector.broadcast %654 : vector<1x256xf32> to vector<2x256xf32>
    %663 = arith.subf %647, %662 : vector<2x256xf32>
    %cst_476 = arith.constant 0.000000e+00 : f32
    %664 = vector.broadcast %cst_476 : f32 to vector<1x256xf32>
    %665 = arith.maximumf %661, %664 : vector<1x256xf32>
    %cst_477 = arith.constant 9.99999974E-6 : f32
    %666 = vector.broadcast %cst_477 : f32 to vector<1x256xf32>
    %667 = arith.addf %665, %666 : vector<1x256xf32>
    %668 = math.rsqrt %667 : vector<1x256xf32>
    %669 = vector.broadcast %668 : vector<1x256xf32> to vector<2x256xf32>
    %670 = arith.mulf %663, %669 : vector<2x256xf32>
    %671 = vector.broadcast %649 : vector<1x256xf32> to vector<2x256xf32>
    %672 = arith.mulf %670, %671 : vector<2x256xf32>
    %673 = vector.broadcast %650 : vector<1x256xf32> to vector<2x256xf32>
    %674 = arith.addf %672, %673 : vector<2x256xf32>
    %cst_478 = arith.constant 0.000000e+00 : f32
    %675 = vector.broadcast %cst_478 : f32 to vector<2x256xf32>
    %676 = arith.maximumf %674, %675 : vector<2x256xf32>
    %677 = arith.addf %676, %578 : vector<2x256xf32>
    %cst_479 = arith.constant 0.000000e+00 : f32
    %678 = vector.broadcast %cst_479 : f32 to vector<2x256xf32>
    %679 = arith.maximumf %677, %678 : vector<2x256xf32>
    %680 = arith.truncf %679 : vector<2x256xf32> to vector<2x256xbf16>
    %c0_480 = arith.constant 0 : index
    %c0_481 = arith.constant 0 : index
    %681 = vector.load %arg35[%c0_480, %c0_481] : memref<2x2xbf16, #tpu.memory_space<vmem>>, vector<2x2xbf16>
    %cst_482 = arith.constant dense<0.000000e+00> : vector<2x256xf32>
    %682 = tpu.matmul %681, %680, %cst_482 {dimension_numbers = #tpu.dot_dimension_numbers<[1], [0], [0], [1], [0, 0, 1, 1], [], []>} : vector<2x2xbf16>, vector<2x256xbf16>, vector<2x256xf32> -> vector<2x256xf32>
    %683 = arith.truncf %682 : vector<2x256xf32> to vector<2x256xbf16>
    %c0_483 = arith.constant 0 : index
    %c0_484 = arith.constant 0 : index
    %684 = vector.load %arg36[%c0_483, %c0_484] : memref<256x512xbf16, #tpu.memory_space<vmem>>, vector<256x512xbf16>
    %cst_485 = arith.constant dense<0.000000e+00> : vector<2x512xf32>
    %685 = tpu.matmul %683, %684, %cst_485 {dimension_numbers = #tpu.dot_dimension_numbers<[1], [0], [0], [1], [0, 0, 1, 1], [], []>} : vector<2x256xbf16>, vector<256x512xbf16>, vector<2x512xf32> -> vector<2x512xf32>
    %c0_486 = arith.constant 0 : index
    %c0_487 = arith.constant 0 : index
    %686 = vector.load %arg37[%c0_486, %c0_487] : memref<2x512xf32, #tpu.memory_space<vmem>>, vector<2x512xf32>
    %687 = vector.extract_strided_slice %686 {offsets = [0, 0], sizes = [1, 512], strides = [1, 1]} : vector<2x512xf32> to vector<1x512xf32>
    %688 = vector.extract_strided_slice %686 {offsets = [1, 0], sizes = [1, 512], strides = [1, 1]} : vector<2x512xf32> to vector<1x512xf32>
    %cst_488 = arith.constant dense<0.000000e+00> : vector<512xf32>
    %689 = vector.multi_reduction <add>, %685, %cst_488 [0] : vector<2x512xf32> to vector<512xf32>
    %690 = vector.shape_cast %689 : vector<512xf32> to vector<1x512xf32>
    %cst_489 = arith.constant 5.000000e-01 : f32
    %691 = vector.broadcast %cst_489 : f32 to vector<1x512xf32>
    %692 = arith.mulf %690, %691 : vector<1x512xf32>
    %693 = arith.mulf %685, %685 : vector<2x512xf32>
    %cst_490 = arith.constant dense<0.000000e+00> : vector<512xf32>
    %694 = vector.multi_reduction <add>, %693, %cst_490 [0] : vector<2x512xf32> to vector<512xf32>
    %695 = vector.shape_cast %694 : vector<512xf32> to vector<1x512xf32>
    %cst_491 = arith.constant 5.000000e-01 : f32
    %696 = vector.broadcast %cst_491 : f32 to vector<1x512xf32>
    %697 = arith.mulf %695, %696 : vector<1x512xf32>
    %698 = arith.mulf %692, %692 : vector<1x512xf32>
    %699 = arith.subf %697, %698 : vector<1x512xf32>
    %700 = vector.broadcast %692 : vector<1x512xf32> to vector<2x512xf32>
    %701 = arith.subf %685, %700 : vector<2x512xf32>
    %cst_492 = arith.constant 0.000000e+00 : f32
    %702 = vector.broadcast %cst_492 : f32 to vector<1x512xf32>
    %703 = arith.maximumf %699, %702 : vector<1x512xf32>
    %cst_493 = arith.constant 9.99999974E-6 : f32
    %704 = vector.broadcast %cst_493 : f32 to vector<1x512xf32>
    %705 = arith.addf %703, %704 : vector<1x512xf32>
    %706 = math.rsqrt %705 : vector<1x512xf32>
    %707 = vector.broadcast %706 : vector<1x512xf32> to vector<2x512xf32>
    %708 = arith.mulf %701, %707 : vector<2x512xf32>
    %709 = vector.broadcast %687 : vector<1x512xf32> to vector<2x512xf32>
    %710 = arith.mulf %708, %709 : vector<2x512xf32>
    %711 = vector.broadcast %688 : vector<1x512xf32> to vector<2x512xf32>
    %712 = arith.addf %710, %711 : vector<2x512xf32>
    %713 = arith.truncf %679 : vector<2x256xf32> to vector<2x256xbf16>
    %c0_494 = arith.constant 0 : index
    %c0_495 = arith.constant 0 : index
    %c0_496 = arith.constant 0 : index
    %714 = vector.load %arg29[%c0_494, %c0_495, %c0_496] : memref<1x2x2xbf16, #tpu.memory_space<vmem>>, vector<1x2x2xbf16>
    %715 = vector.shape_cast %714 : vector<1x2x2xbf16> to vector<2x2xbf16>
    %cst_497 = arith.constant dense<0.000000e+00> : vector<2x256xf32>
    %716 = tpu.matmul %715, %713, %cst_497 {dimension_numbers = #tpu.dot_dimension_numbers<[1], [0], [0], [1], [0, 0, 1, 1], [], []>} : vector<2x2xbf16>, vector<2x256xbf16>, vector<2x256xf32> -> vector<2x256xf32>
    %717 = arith.truncf %716 : vector<2x256xf32> to vector<2x256xbf16>
    %c4_498 = arith.constant 4 : index
    %c0_499 = arith.constant 0 : index
    %c0_500 = arith.constant 0 : index
    %718 = vector.load %arg30[%c4_498, %c0_499, %c0_500] : memref<9x256x512xbf16, #tpu.memory_space<vmem>>, vector<1x256x512xbf16>
    %719 = vector.shape_cast %718 : vector<1x256x512xbf16> to vector<256x512xbf16>
    %cst_501 = arith.constant dense<0.000000e+00> : vector<2x512xf32>
    %720 = tpu.matmul %717, %719, %cst_501 {dimension_numbers = #tpu.dot_dimension_numbers<[1], [0], [0], [1], [0, 0, 1, 1], [], []>} : vector<2x256xbf16>, vector<256x512xbf16>, vector<2x512xf32> -> vector<2x512xf32>
    %c0_502 = arith.constant 0 : index
    %c0_503 = arith.constant 0 : index
    %721 = vector.load %arg31[%c0_502, %c0_503] : memref<2x512xf32, #tpu.memory_space<vmem>>, vector<2x512xf32>
    %722 = vector.extract_strided_slice %721 {offsets = [0, 0], sizes = [1, 512], strides = [1, 1]} : vector<2x512xf32> to vector<1x512xf32>
    %723 = vector.extract_strided_slice %721 {offsets = [1, 0], sizes = [1, 512], strides = [1, 1]} : vector<2x512xf32> to vector<1x512xf32>
    %cst_504 = arith.constant dense<0.000000e+00> : vector<512xf32>
    %724 = vector.multi_reduction <add>, %720, %cst_504 [0] : vector<2x512xf32> to vector<512xf32>
    %725 = vector.shape_cast %724 : vector<512xf32> to vector<1x512xf32>
    %cst_505 = arith.constant 5.000000e-01 : f32
    %726 = vector.broadcast %cst_505 : f32 to vector<1x512xf32>
    %727 = arith.mulf %725, %726 : vector<1x512xf32>
    %728 = arith.mulf %720, %720 : vector<2x512xf32>
    %cst_506 = arith.constant dense<0.000000e+00> : vector<512xf32>
    %729 = vector.multi_reduction <add>, %728, %cst_506 [0] : vector<2x512xf32> to vector<512xf32>
    %730 = vector.shape_cast %729 : vector<512xf32> to vector<1x512xf32>
    %cst_507 = arith.constant 5.000000e-01 : f32
    %731 = vector.broadcast %cst_507 : f32 to vector<1x512xf32>
    %732 = arith.mulf %730, %731 : vector<1x512xf32>
    %733 = arith.mulf %727, %727 : vector<1x512xf32>
    %734 = arith.subf %732, %733 : vector<1x512xf32>
    %735 = vector.broadcast %727 : vector<1x512xf32> to vector<2x512xf32>
    %736 = arith.subf %720, %735 : vector<2x512xf32>
    %cst_508 = arith.constant 0.000000e+00 : f32
    %737 = vector.broadcast %cst_508 : f32 to vector<1x512xf32>
    %738 = arith.maximumf %734, %737 : vector<1x512xf32>
    %cst_509 = arith.constant 9.99999974E-6 : f32
    %739 = vector.broadcast %cst_509 : f32 to vector<1x512xf32>
    %740 = arith.addf %738, %739 : vector<1x512xf32>
    %741 = math.rsqrt %740 : vector<1x512xf32>
    %742 = vector.broadcast %741 : vector<1x512xf32> to vector<2x512xf32>
    %743 = arith.mulf %736, %742 : vector<2x512xf32>
    %744 = vector.broadcast %722 : vector<1x512xf32> to vector<2x512xf32>
    %745 = arith.mulf %743, %744 : vector<2x512xf32>
    %746 = vector.broadcast %723 : vector<1x512xf32> to vector<2x512xf32>
    %747 = arith.addf %745, %746 : vector<2x512xf32>
    %cst_510 = arith.constant 0.000000e+00 : f32
    %748 = vector.broadcast %cst_510 : f32 to vector<2x512xf32>
    %749 = arith.maximumf %747, %748 : vector<2x512xf32>
    %750 = arith.truncf %749 : vector<2x512xf32> to vector<2x512xbf16>
    %c0_511 = arith.constant 0 : index
    %c0_512 = arith.constant 0 : index
    %c0_513 = arith.constant 0 : index
    %751 = vector.load %arg32[%c0_511, %c0_512, %c0_513] : memref<1x2x2xbf16, #tpu.memory_space<vmem>>, vector<1x2x2xbf16>
    %752 = vector.shape_cast %751 : vector<1x2x2xbf16> to vector<2x2xbf16>
    %cst_514 = arith.constant dense<0.000000e+00> : vector<2x512xf32>
    %753 = tpu.matmul %752, %750, %cst_514 {dimension_numbers = #tpu.dot_dimension_numbers<[1], [0], [0], [1], [0, 0, 1, 1], [], []>} : vector<2x2xbf16>, vector<2x512xbf16>, vector<2x512xf32> -> vector<2x512xf32>
    %754 = arith.truncf %753 : vector<2x512xf32> to vector<2x512xbf16>
    %c4_515 = arith.constant 4 : index
    %c0_516 = arith.constant 0 : index
    %c0_517 = arith.constant 0 : index
    %755 = vector.load %arg33[%c4_515, %c0_516, %c0_517] : memref<9x512x512xbf16, #tpu.memory_space<vmem>>, vector<1x512x512xbf16>
    %756 = vector.shape_cast %755 : vector<1x512x512xbf16> to vector<512x512xbf16>
    %cst_518 = arith.constant dense<0.000000e+00> : vector<2x512xf32>
    %757 = tpu.matmul %754, %756, %cst_518 {dimension_numbers = #tpu.dot_dimension_numbers<[1], [0], [0], [1], [0, 0, 1, 1], [], []>} : vector<2x512xbf16>, vector<512x512xbf16>, vector<2x512xf32> -> vector<2x512xf32>
    %c0_519 = arith.constant 0 : index
    %c0_520 = arith.constant 0 : index
    %758 = vector.load %arg34[%c0_519, %c0_520] : memref<2x512xf32, #tpu.memory_space<vmem>>, vector<2x512xf32>
    %759 = vector.extract_strided_slice %758 {offsets = [0, 0], sizes = [1, 512], strides = [1, 1]} : vector<2x512xf32> to vector<1x512xf32>
    %760 = vector.extract_strided_slice %758 {offsets = [1, 0], sizes = [1, 512], strides = [1, 1]} : vector<2x512xf32> to vector<1x512xf32>
    %cst_521 = arith.constant dense<0.000000e+00> : vector<512xf32>
    %761 = vector.multi_reduction <add>, %757, %cst_521 [0] : vector<2x512xf32> to vector<512xf32>
    %762 = vector.shape_cast %761 : vector<512xf32> to vector<1x512xf32>
    %cst_522 = arith.constant 5.000000e-01 : f32
    %763 = vector.broadcast %cst_522 : f32 to vector<1x512xf32>
    %764 = arith.mulf %762, %763 : vector<1x512xf32>
    %765 = arith.mulf %757, %757 : vector<2x512xf32>
    %cst_523 = arith.constant dense<0.000000e+00> : vector<512xf32>
    %766 = vector.multi_reduction <add>, %765, %cst_523 [0] : vector<2x512xf32> to vector<512xf32>
    %767 = vector.shape_cast %766 : vector<512xf32> to vector<1x512xf32>
    %cst_524 = arith.constant 5.000000e-01 : f32
    %768 = vector.broadcast %cst_524 : f32 to vector<1x512xf32>
    %769 = arith.mulf %767, %768 : vector<1x512xf32>
    %770 = arith.mulf %764, %764 : vector<1x512xf32>
    %771 = arith.subf %769, %770 : vector<1x512xf32>
    %772 = vector.broadcast %764 : vector<1x512xf32> to vector<2x512xf32>
    %773 = arith.subf %757, %772 : vector<2x512xf32>
    %cst_525 = arith.constant 0.000000e+00 : f32
    %774 = vector.broadcast %cst_525 : f32 to vector<1x512xf32>
    %775 = arith.maximumf %771, %774 : vector<1x512xf32>
    %cst_526 = arith.constant 9.99999974E-6 : f32
    %776 = vector.broadcast %cst_526 : f32 to vector<1x512xf32>
    %777 = arith.addf %775, %776 : vector<1x512xf32>
    %778 = math.rsqrt %777 : vector<1x512xf32>
    %779 = vector.broadcast %778 : vector<1x512xf32> to vector<2x512xf32>
    %780 = arith.mulf %773, %779 : vector<2x512xf32>
    %781 = vector.broadcast %759 : vector<1x512xf32> to vector<2x512xf32>
    %782 = arith.mulf %780, %781 : vector<2x512xf32>
    %783 = vector.broadcast %760 : vector<1x512xf32> to vector<2x512xf32>
    %784 = arith.addf %782, %783 : vector<2x512xf32>
    %cst_527 = arith.constant 0.000000e+00 : f32
    %785 = vector.broadcast %cst_527 : f32 to vector<2x512xf32>
    %786 = arith.maximumf %784, %785 : vector<2x512xf32>
    %787 = arith.addf %786, %712 : vector<2x512xf32>
    %cst_528 = arith.constant 0.000000e+00 : f32
    %788 = vector.broadcast %cst_528 : f32 to vector<2x512xf32>
    %789 = arith.maximumf %787, %788 : vector<2x512xf32>
    %c0_529 = arith.constant 0 : index
    %c0_530 = arith.constant 0 : index
    %790 = vector.load %arg38[%c0_529, %c0_530] : memref<2x2xf32, #tpu.memory_space<vmem>>, vector<2x2xf32>
    %cst_531 = arith.constant dense<0.000000e+00> : vector<2x512xf32>
    %791 = tpu.matmul %790, %789, %cst_531 {dimension_numbers = #tpu.dot_dimension_numbers<[1], [0], [0], [1], [0, 0, 1, 1], [], []>} : vector<2x2xf32>, vector<2x512xf32>, vector<2x512xf32> -> vector<2x512xf32>
    %c0_532 = arith.constant 0 : index
    %c0_533 = arith.constant 0 : index
    %792 = vector.load %arg39[%c0_532, %c0_533] : memref<512x128xf32, #tpu.memory_space<vmem>>, vector<512x128xf32>
    %cst_534 = arith.constant dense<0.000000e+00> : vector<2x128xf32>
    %793 = tpu.matmul %791, %792, %cst_534 {dimension_numbers = #tpu.dot_dimension_numbers<[1], [0], [0], [1], [0, 0, 1, 1], [], []>} : vector<2x512xf32>, vector<512x128xf32>, vector<2x128xf32> -> vector<2x128xf32>
    %c0_535 = arith.constant 0 : index
    %c0_536 = arith.constant 0 : index
    %794 = vector.load %arg40[%c0_535, %c0_536] : memref<1x128xf32, #tpu.memory_space<vmem>>, vector<1x128xf32>
    %795 = vector.broadcast %794 : vector<1x128xf32> to vector<2x128xf32>
    %796 = arith.addf %793, %795 : vector<2x128xf32>
    %c0_537 = arith.constant 0 : index
    %c0_538 = arith.constant 0 : index
    %797 = vector.load %arg41[%c0_537, %c0_538] : memref<2x128xf32, #tpu.memory_space<vmem>>, vector<2x128xf32>
    tpu.vector_store %arg41[%c0_537, %c0_538], %796 {strides = array<i32>} : memref<2x128xf32, #tpu.memory_space<vmem>>, vector<2x128xf32>,
    return
  }
}

</mosaic_0001>

<bundles_post_ra>
// kernel: resnet_forward.1
= control target key start
LH: loop header
LB: loop body
LE: loop exit
PB: predicated region body
PF: predicated region fallthrough
CT: control target
= control target key end

     0   :  { %s16575_s6 = smov 1   ;;  %s16576_s10 = smov 2   ;;  %s18460_s0 = inlined_call_operand.smem [shape: u32[42], index: -1, kind: input, shape index: {}] }
   0x1   :  { %s16661_s5 = sld [smem:[%s18460_s0]]   ;;  %s16577_s14 = smov 3  }
   0x2   :  { %s16666_s9 = sld [smem:[%s18460_s0 + %s16575_s6]]   ;;  %s16578_s18 = smov 4  }
   0x3   :  { %s16671_s13 = sld [smem:[%s18460_s0 + %s16576_s10]]   ;;  %s16579_s22 = smov 5  }
   0x4   :  { %s16676_s17 = sld [smem:[%s18460_s0 + %s16577_s14]]   ;;  %s16580_s26 = smov 6  }
   0x5   :  { %s16681_s21 = sld [smem:[%s18460_s0 + %s16578_s18]]   ;;  %s16581_s30 = smov 7  }
   0x6   :  { %s16686_s25 = sld [smem:[%s18460_s0 + %s16579_s22]]   ;;  %s16582_s4 = smov 8  }
   0x7   :  { %18471 = sst [smem:[#allocation60_spill]] %s16661_s5  ;;  %s16583_s10 = smov 9  }
   0x8   :  { %18472 = sst [smem:[#allocation61_spill]] %s16666_s9  ;;  %s16584_s15 = smov 10  }
   0x9   :  { %s16691_s29 = sld [smem:[%s18460_s0 + %s16580_s26]]   ;;  %s16585_s20 = smov 11  }
   0xa   :  { %s16696_s3 = sld [smem:[%s18460_s0 + %s16581_s30]]   ;;  %s16586_s26 = smov 12  }
   0xb   :  { %s16701_s8 = sld [smem:[%s18460_s0 + %s16582_s4]]   ;;  %s16587_s1 = smov 13  }
   0xc   :  { %18473 = sst [smem:[#allocation62_spill]] %s16686_s25  ;;  %s16588_s7 = smov 14  }
   0xd   :  { %s16706_s14 = sld [smem:[%s18460_s0 + %s16583_s10]]   ;;  %s16590_s22 = smov 16  }
   0xe   :  { %s16711_s19 = sld [smem:[%s18460_s0 + %s16584_s15]]   ;;  %s16589_s15 = smov 15  }
   0xf   :  { %s16716_s24 = sld [smem:[%s18460_s0 + %s16585_s20]]   ;;  %s16591_s28 = smov 17  }
  0x10   :  { %18474 = sst [smem:[#allocation63_spill]] %s16696_s3 }
  0x11   :  { %18475 = sst [smem:[#allocation64_spill]] %s16701_s8 }
  0x12   :  { %s16721_s30 = sld [smem:[%s18460_s0 + %s16586_s26]]  }
  0x13   :  { %s16726_s6 = sld [smem:[%s18460_s0 + %s16587_s1]]  }
  0x14   :  { %18476 = sst [smem:[#allocation65_spill]] %s16711_s19 }
  0x15   :  { %s16731_s12 = sld [smem:[%s18460_s0 + %s16588_s7]]   ;;  %s16592_s7 = smov 18  }
  0x16   :  { %s16736_s20 = sld [smem:[%s18460_s0 + %s16589_s15]]   ;;  %s16593_s15 = smov 19  }
  0x17   :  { %s16741_s27 = sld [smem:[%s18460_s0 + %s16590_s22]]   ;;  %s16594_s22 = smov 20  }
  0x18   :  { %18477 = sst [smem:[#allocation66_spill]] %s16721_s30 }
  0x19   :  { %s16746_s4 = sld [smem:[%s18460_s0 + %s16591_s28]]   ;;  %s16595_s28 = smov 21  }
  0x1a   :  { %s16751_s8 = sld [smem:[%s18460_s0 + %s16592_s7]]   ;;  %s16596_s7 = smov 22  }
  0x1b   :  { %18478 = sst [smem:[#allocation67_spill]] %s16731_s12 }
  0x1c   :  { %s16756_s25 = sld [smem:[%s18460_s0 + %s16593_s15]]   ;;  %s16597_s15 = smov 23  }
  0x1d   :  { %18479 = sst [smem:[#allocation68_spill]] %s16741_s27 }
  0x1e   :  { %s16761_s5 = sld [smem:[%s18460_s0 + %s16594_s22]]   ;;  %s16598_s22 = smov 24  }
  0x1f   :  { %18480 = sst [smem:[#allocation69_spill]] %s16746_s4 }
  0x20   :  { %s16766_s4 = sld [smem:[%s18460_s0 + %s16595_s28]]   ;;  %s16599_s28 = smov 25  }
  0x21   :  { %s16771_s9 = sld [smem:[%s18460_s0 + %s16596_s7]]   ;;  %s16600_s7 = smov 26  }
  0x22   :  { %18481 = sst [smem:[#allocation70_spill]] %s16756_s25 }
  0x23   :  { %s16776_s25 = sld [smem:[%s18460_s0 + %s16597_s15]]   ;;  %s16601_s15 = smov 27  }
  0x24   :  { %18482 = sst [smem:[#allocation71_spill]] %s16761_s5 }
  0x25   :  { %s16781_s5 = sld [smem:[%s18460_s0 + %s16598_s22]]   ;;  %s16602_s22 = smov 28  }
  0x26   :  { %s16786_s27 = sld [smem:[%s18460_s0 + %s16599_s28]]   ;;  %s16603_s28 = smov 29  }
  0x27   :  { %18483 = sst [smem:[#allocation72_spill]] %s16771_s9 }
  0x28   :  { %s16791_s9 = sld [smem:[%s18460_s0 + %s16600_s7]]   ;;  %s16604_s7 = smov 30  }
  0x29   :  { %18484 = sst [smem:[#allocation73_spill]] %s16776_s25 }
  0x2a   :  { %s16796_s25 = sld [smem:[%s18460_s0 + %s16601_s15]]   ;;  %s16605_s15 = smov 31  }
  0x2b   :  { %18485 = sst [smem:[#allocation74_spill]] %s16781_s5 }
  0x2c   :  { %s16801_s5 = sld [smem:[%s18460_s0 + %s16602_s22]]   ;;  %s16606_s22 = smov 32  }
  0x2d   :  { %s16806_s12 = sld [smem:[%s18460_s0 + %s16603_s28]]   ;;  %s16607_s28 = smov 33  }
  0x2e   :  { %18486 = sst [smem:[#allocation75_spill]] %s16791_s9 }
  0x2f   :  { %s16811_s9 = sld [smem:[%s18460_s0 + %s16604_s7]]   ;;  %s16608_s7 = smov 34  }
  0x30   :  { %18487 = sst [smem:[#allocation76_spill]] %s16796_s25 }
  0x31   :  { %s16816_s25 = sld [smem:[%s18460_s0 + %s16605_s15]]   ;;  %s16609_s15 = smov 35  }
  0x32   :  { %18488 = sst [smem:[#allocation77_spill]] %s16801_s5 }
  0x33   :  { %18489 = sst [smem:[#allocation78_spill]] %s16806_s12 }
  0x34   :  { %s16821_s5 = sld [smem:[%s18460_s0 + %s16606_s22]]   ;;  %s16610_s22 = smov 36  }
  0x35   :  { %s16826_s12 = sld [smem:[%s18460_s0 + %s16607_s28]]   ;;  %s16611_s28 = smov 37  }
  0x36   :  { %s16831_s30 = sld [smem:[%s18460_s0 + %s16608_s7]]   ;;  %s16612_s7 = smov 38  }
  0x37   :  { %18490 = sst [smem:[#allocation79_spill]] %s16816_s25 }
  0x38   :  { %s16836_s25 = sld [smem:[%s18460_s0 + %s16609_s15]]   ;;  %s16613_s15 = smov 39  }
  0x39   :  { %s16851_s19 = sld [smem:[%s18460_s0 + %s16612_s7]]  }
  0x3a   :  { %18491 = sst [smem:[#allocation80_spill]] %s16821_s5 }
  0x3b   :  { %18492 = sst [smem:[#allocation81_spill]] %s16826_s12 }
  0x3c   :  { %s16841_s5 = sld [smem:[%s18460_s0 + %s16610_s22]]   ;;  %s16614_s22 = smov 40  }
  0x3d   :  { %s16846_s12 = sld [smem:[%s18460_s0 + %s16611_s28]]   ;;  %s16615_s28 = smov 41  }
  0x3e   :  { %18493 = sst [smem:[#allocation82_spill]] %s16836_s25 }
  0x3f   :  { %s16856_s25 = sld [smem:[%s18460_s0 + %s16613_s15]]  }
  0x40   :  { %s16861_s3 = sld [smem:[%s18460_s0 + %s16614_s22]]  }
  0x43   :  { %18494 = sst [smem:[#allocation83_spill]] %s16846_s12 }
  0x44   :  { %s16866_s12 = sld [smem:[%s18460_s0 + %s16615_s28]]  }
  0x45   :  { %88 = vsyncpa [#allocation3], 0 }
  0x46   :  { %89 = vsyncpa [#allocation6], 0 }
  0x47   :  { %90 = vsyncpa [#allocation9], 0 }
  0x48   :  { %91 = vsyncpa [#allocation12], 0 }
  0x49   :  { %92 = vsyncpa [#allocation15], 0 }
  0x4a   :  { %93 = vsyncpa [#allocation18], 0 }
  0x4b   :  { %94 = vsyncpa [#allocation21], 0 }
  0x4c   :  { %95 = vsyncpa [#allocation24], 0 }
  0x4d   :  { %96 = vsyncpa [#allocation27], 0 }
  0x4e   :  { %97 = vsyncpa [#allocation30], 0 }
  0x4f   :  { %98 = vsyncpa [#allocation33], 0 }
  0x50   :  { %99 = vsyncpa [#allocation36], 0 }
  0x51   :  { %100 = vsyncpa [#allocation39], 0 }
  0x52   :  { %101 = vsyncpa [#allocation42], 0 }
  0x53   :  { %102 = vsyncpa [#allocation4], 0  ;;  %s16616_s7 = smov [#allocation5]   ;;  %s16617_s11 = smov [#allocation8]  }
  0x54   :  { %s124_s10 = sshll.u32 %s16616_s7, 4  ;;  %s148_s0 = sshll.u32 %s16617_s11, 4  ;;  %s125_s10 = int_to_ptr.vmem [resolvable:$true] %s124_s10  ;;  %s149_s0 = int_to_ptr.vmem [resolvable:$true] %s148_s0 }
  0x55   :  { %s15993_s15 = scalar_lea.vmem %s125_s10, 4608  ;;  %p15998_p1 = scmp.lt.s32.totalorder %s125_s10, %s125_s10 }
  0x56   :  { %p15994_p0 = scmp.ne.s32.totalorder %s125_s10, %s15993_s15  ;;  %p15999_p2 = scmp.lt.s32.totalorder %s15993_s15, %s15993_s15 }
  0x58   :  { %p16000_p3 = por %p15999_p2, %p15998_p1 }
  0x5a   :  { %p16001_p4 = pnand %p16000_p3, %p15994_p0 }
  0x5c   :  { %16004 = shalt.err (!%p16001_p4)
}
  0x5d   :  { %s16618_s16 = smov 128   ;;  %s16619_s18 = smov 8  }
  0x5e   :  { %130 = dma.hbm_to_vmem [thread:$0]  %s16676_s17, 4608, %s125_s10, [#allocation6], %s16618_s16, %s16618_s16, %s16619_s18  }
  0x5f   :  { %s16013_s22 = scalar_lea.vmem %s149_s0, 4608  ;;  %p16018_p6 = scmp.lt.s32.totalorder %s149_s0, %s149_s0 }
  0x60   :  { %p16014_p5 = scmp.ne.s32.totalorder %s149_s0, %s16013_s22  ;;  %p16019_p7 = scmp.lt.s32.totalorder %s16013_s22, %s16013_s22 }
  0x62   :  { %p16020_p8 = por %p16019_p7, %p16018_p6 }
  0x64   :  { %p16021_p9 = pnand %p16020_p8, %p16014_p5 }
  0x66   :  { %16024 = shalt.err (!%p16021_p9)
}
  0x67   :  { %s16620_s23 = smov 64   ;;  %s16621_s26 = smov 4  }
  0x68   :  { %154 = dma.hbm_to_vmem [thread:$0]  %s16691_s29, 4608, %s149_s0, [#allocation9], %s16620_s23, %s16620_s23, %s16621_s26  }
  0x69   :  { %s16622_s28 = smov [#allocation11]   ;;  %s16623_s2 = smov [#allocation14]  }
  0x6a   :  { %s172_s1 = sshll.u32 %s16622_s28, 4  ;;  %s194_s7 = sshll.u32 %s16623_s2, 4  ;;  %s173_s1 = int_to_ptr.vmem [resolvable:$true] %s172_s1  ;;  %s195_s7 = int_to_ptr.vmem [resolvable:$true] %s194_s7 }
  0x6b   :  { %s16033_s17 = scalar_lea.vmem %s173_s1, 4608  ;;  %p16038_p11 = scmp.lt.s32.totalorder %s173_s1, %s173_s1 }
  0x6c   :  { %p16034_p10 = scmp.ne.s32.totalorder %s173_s1, %s16033_s17  ;;  %p16039_p12 = scmp.lt.s32.totalorder %s16033_s17, %s16033_s17 }
  0x6e   :  { %p16040_p13 = por %p16039_p12, %p16038_p11 }
  0x70   :  { %p16041_p0 = pnand %p16040_p13, %p16034_p10 }
  0x72   :  { %16044 = shalt.err (!%p16041_p0)
}
  0x73   :  { %178 = dma.hbm_to_vmem [thread:$0]  %s16706_s14, 4608, %s173_s1, [#allocation12], %s16620_s23, %s16620_s23, %s16621_s26  }
  0x74   :  { %s16053_s10 = scalar_lea.vmem %s195_s7, 576  ;;  %p16058_p2 = scmp.lt.s32.totalorder %s195_s7, %s195_s7 }
  0x75   :  { %p16054_p1 = scmp.ne.s32.totalorder %s195_s7, %s16053_s10  ;;  %p16059_p3 = scmp.lt.s32.totalorder %s16053_s10, %s16053_s10 }
  0x77   :  { %p16060_p4 = por %p16059_p3, %p16058_p2 }
  0x79   :  { %p16061_p5 = pnand %p16060_p4, %p16054_p1 }
  0x7b   :  { %16064 = shalt.err (!%p16061_p5)
}
  0x7c   :  { %200 = dma.hbm_to_vmem [thread:$0]  %s16716_s24, 576, %s195_s7, [#allocation15], %s16620_s23, %s16620_s23, %s16621_s26  }
  0x7d   :  { %s16624_s29 = smov [#allocation17]   ;;  %s16625_s0 = smov [#allocation20]  }
  0x7e   :  { %s219_s11 = sshll.u32 %s16624_s29, 4  ;;  %s240_s15 = sshll.u32 %s16625_s0, 4  ;;  %s220_s11 = int_to_ptr.vmem [resolvable:$true] %s219_s11  ;;  %s241_s15 = int_to_ptr.vmem [resolvable:$true] %s240_s15 }
  0x7f   :  { %s16073_s22 = scalar_lea.vmem %s220_s11, 32  ;;  %p16078_p7 = scmp.lt.s32.totalorder %s220_s11, %s220_s11 }
  0x80   :  { %p16074_p6 = scmp.ne.s32.totalorder %s220_s11, %s16073_s22  ;;  %p16079_p8 = scmp.lt.s32.totalorder %s16073_s22, %s16073_s22 }
  0x82   :  { %p16080_p9 = por %p16079_p8, %p16078_p7 }
  0x84   :  { %p16081_p10 = pnand %p16080_p9, %p16074_p6 }
  0x86   :  { %16084 = shalt.err (!%p16081_p10)
}
  0x87   :  { %222 = dma.hbm_to_vmem [thread:$0]  %s16726_s6, 32, %s220_s11, [#allocation18]  }
  0x88   :  { %s16093_s14 = scalar_lea.vmem %s241_s15, 9216  ;;  %p16098_p12 = scmp.lt.s32.totalorder %s241_s15, %s241_s15 }
  0x89   :  { %p16094_p11 = scmp.ne.s32.totalorder %s241_s15, %s16093_s14  ;;  %p16099_p13 = scmp.lt.s32.totalorder %s16093_s14, %s16093_s14 }
  0x8b   :  { %p16100_p0 = por %p16099_p13, %p16098_p12 }
  0x8d   :  { %p16101_p1 = pnand %p16100_p0, %p16094_p11 }
  0x8f   :  { %16104 = shalt.err (!%p16101_p1)
}
  0x90   :  { %246 = dma.hbm_to_vmem [thread:$0]  %s16736_s20, 9216, %s241_s15, [#allocation21], %s16620_s23, %s16620_s23, %s16621_s26  }
  0x91   :  { %s16626_s24 = smov [#allocation23]   ;;  %s16627_s1 = smov [#allocation26]  }
  0x92   :  { %s264_s28 = sshll.u32 %s16626_s24, 4  ;;  %s288_s2 = sshll.u32 %s16627_s1, 4  ;;  %s265_s28 = int_to_ptr.vmem [resolvable:$true] %s264_s28  ;;  %s289_s2 = int_to_ptr.vmem [resolvable:$true] %s288_s2 }
  0x93   :  { %s16113_s7 = scalar_lea.vmem %s265_s28, 512  ;;  %p16118_p3 = scmp.lt.s32.totalorder %s265_s28, %s265_s28 }
  0x94   :  { %p16114_p2 = scmp.ne.s32.totalorder %s265_s28, %s16113_s7  ;;  %p16119_p4 = scmp.lt.s32.totalorder %s16113_s7, %s16113_s7 }
  0x96   :  { %p16120_p5 = por %p16119_p4, %p16118_p3 }
  0x98   :  { %p16121_p6 = pnand %p16120_p5, %p16114_p2 }
  0x9a   :  { %16124 = shalt.err (!%p16121_p6)
}
  0x9b   :  { %270 = dma.hbm_to_vmem [thread:$0]  %s16751_s8, 512, %s265_s28, [#allocation24], %s16620_s23, %s16620_s23, %s16621_s26  }
  0x9c   :  { %s16133_s6 = scalar_lea.vmem %s289_s2, 18432  ;;  %p16138_p8 = scmp.lt.s32.totalorder %s289_s2, %s289_s2 }
  0x9d   :  { %p16134_p7 = scmp.ne.s32.totalorder %s289_s2, %s16133_s6  ;;  %p16139_p9 = scmp.lt.s32.totalorder %s16133_s6, %s16133_s6 }
  0x9f   :  { %p16140_p10 = por %p16139_p9, %p16138_p8 }
  0xa1   :  { %p16141_p11 = pnand %p16140_p10, %p16134_p7 }
  0xa3   :  { %16144 = shalt.err (!%p16141_p11)
}
  0xa4   :  { %294 = dma.hbm_to_vmem [thread:$0]  %s16766_s4, 18432, %s289_s2, [#allocation27], %s16618_s16, %s16618_s16, %s16619_s18  }
  0xa5   :  { %s16628_s20 = smov [#allocation29]   ;;  %s16629_s10 = smov [#allocation32]  }
  0xa6   :  { %s315_s17 = sshll.u32 %s16628_s20, 4  ;;  %s340_s29 = sshll.u32 %s16629_s10, 4  ;;  %s316_s17 = int_to_ptr.vmem [resolvable:$true] %s315_s17  ;;  %s341_s29 = int_to_ptr.vmem [resolvable:$true] %s340_s29 }
  0xa7   :  { %s16153_s11 = scalar_lea.vmem %s316_s17, 64  ;;  %p16158_p13 = scmp.lt.s32.totalorder %s316_s17, %s316_s17 }
  0xa8   :  { %p16154_p12 = scmp.ne.s32.totalorder %s316_s17, %s16153_s11  ;;  %p16159_p0 = scmp.lt.s32.totalorder %s16153_s11, %s16153_s11 }
  0xaa   :  { %p16160_p1 = por %p16159_p0, %p16158_p13 }
  0xac   :  { %p16161_p2 = pnand %p16160_p1, %p16154_p12 }
  0xae   :  { %16164 = shalt.err (!%p16161_p2)
}
  0xaf   :  { %318 = dma.hbm_to_vmem [thread:$0]  %s16786_s27, 64, %s316_s17, [#allocation30]  }
  0xb0   :  { %s16173_s8 = scalar_lea.vmem %s341_s29, 73728  ;;  %p16178_p4 = scmp.lt.s32.totalorder %s341_s29, %s341_s29 }
  0xb1   :  { %p16174_p3 = scmp.ne.s32.totalorder %s341_s29, %s16173_s8  ;;  %p16179_p5 = scmp.lt.s32.totalorder %s16173_s8, %s16173_s8 }
  0xb3   :  { %p16180_p6 = por %p16179_p5, %p16178_p4 }
  0xb5   :  { %p16181_p7 = pnand %p16180_p6, %p16174_p3 }
  0xb7   :  { %16184 = shalt.err (!%p16181_p7)
}
  0xb8   :  { %s16630_s4 = smov 256   ;;  %s16631_s0 = smov 16  }
  0xb9   :  { %346 = dma.hbm_to_vmem [thread:$0]  %s16811_s9, 73728, %s341_s29, [#allocation33], %s16630_s4, %s16630_s4, %s16631_s0  }
  0xba   :  { %s16632_s15 = smov [#allocation35]   ;;  %s16633_s14 = smov [#allocation38]  }
  0xbb   :  { %s367_s22 = sshll.u32 %s16632_s15, 4  ;;  %s386_s24 = sshll.u32 %s16633_s14, 4  ;;  %s368_s22 = int_to_ptr.vmem [resolvable:$true] %s367_s22  ;;  %s387_s24 = int_to_ptr.vmem [resolvable:$true] %s386_s24 }
  0xbc   :  { %s16193_s28 = scalar_lea.vmem %s368_s22, 128  ;;  %p16198_p9 = scmp.lt.s32.totalorder %s368_s22, %s368_s22 }
  0xbd   :  { %p16194_p8 = scmp.ne.s32.totalorder %s368_s22, %s16193_s28  ;;  %p16199_p10 = scmp.lt.s32.totalorder %s16193_s28, %s16193_s28 }
  0xbf   :  { %p16200_p11 = por %p16199_p10, %p16198_p9 }
  0xc1   :  { %p16201_p12 = pnand %p16200_p11, %p16194_p8 }
  0xc3   :  { %16204 = shalt.err (!%p16201_p12)
}
  0xc4   :  { %370 = dma.hbm_to_vmem [thread:$0]  %s16831_s30, 128, %s368_s22, [#allocation36]  }
  0xc5   :  { %s16213_s27 = scalar_lea.vmem %s387_s24, 8192  ;;  %p16218_p0 = scmp.lt.s32.totalorder %s387_s24, %s387_s24 }
  0xc6   :  { %p16214_p13 = scmp.ne.s32.totalorder %s387_s24, %s16213_s27  ;;  %p16219_p1 = scmp.lt.s32.totalorder %s16213_s27, %s16213_s27 }
  0xc8   :  { %p16220_p2 = por %p16219_p1, %p16218_p0 }
  0xca   :  { %p16221_p3 = pnand %p16220_p2, %p16214_p13 }
  0xcc   :  { %16224 = shalt.err (!%p16221_p3)
}
  0xcd   :  { %392 = dma.hbm_to_vmem [thread:$0]  %s16841_s5, 8192, %s387_s24, [#allocation39], %s16630_s4, %s16630_s4, %s16631_s0  }
  0xce   :  { %s16634_s9 = smov [#allocation41]   ;;  %s16635_s2 = smov [#allocation2]  }
  0xcf   :  { %s410_s1 = sshll.u32 %s16634_s9, 4  ;;  %s112_s7 = sshll.u32 %s16635_s2, 4  ;;  %s411_s1 = int_to_ptr.vmem [resolvable:$true] %s410_s1  ;;  %s113_s7 = int_to_ptr.vmem [resolvable:$true] %s112_s7 }
  0xd0   :  { %s16233_s6 = scalar_lea.vmem %s411_s1, 8192  ;;  %p16238_p5 = scmp.lt.s32.totalorder %s411_s1, %s411_s1 }
  0xd1   :  { %p16234_p4 = scmp.ne.s32.totalorder %s411_s1, %s16233_s6  ;;  %p16239_p6 = scmp.lt.s32.totalorder %s16233_s6, %s16233_s6 }
  0xd3   :  { %p16240_p7 = por %p16239_p6, %p16238_p5 }
  0xd5   :  { %p16241_p8 = pnand %p16240_p7, %p16234_p4 }
  0xd7   :  { %16244 = shalt.err (!%p16241_p8)
}
  0xd8   :  { %416 = dma.hbm_to_vmem [thread:$0]  %s16856_s25, 8192, %s411_s1, [#allocation42], %s16618_s16, %s16618_s16, %s16619_s18  }
  0xd9   :  { %s16253_s30 = scalar_lea.vmem %s113_s7, 4608  ;;  %p16258_p10 = scmp.lt.s32.totalorder %s113_s7, %s113_s7 }
  0xda   :  { %p16254_p9 = scmp.ne.s32.totalorder %s113_s7, %s16253_s30  ;;  %p16259_p11 = scmp.lt.s32.totalorder %s16253_s30, %s16253_s30 }
  0xdc   :  { %p16260_p12 = por %p16259_p11, %p16258_p10 }
  0xde   :  { %p16261_p13 = pnand %p16260_p12, %p16254_p9 }
  0xe0   :  { %16264 = shalt.err (!%p16261_p13)
}
  0xe1   :  { %118 = dma.hbm_to_vmem [thread:$0]  %s16671_s13, 4608, %s113_s7, [#allocation3], %s16618_s16, %s16618_s16, %s16619_s18  }
  0xe2   :  { %s16636_s5 = smov [#allocation7]   ;;  %s16637_s17 = smov [#allocation10]  }
  0xe3   :  { %s137_s20 = sshll.u32 %s16636_s5, 4  ;;  %s161_s10 = sshll.u32 %s16637_s17, 4  ;;  %s138_s20 = int_to_ptr.vmem [resolvable:$true] %s137_s20  ;;  %s162_s10 = int_to_ptr.vmem [resolvable:$true] %s161_s10 }
  0xe4   :  { %s16273_s29 = scalar_lea.vmem %s138_s20, 32  ;;  %p16278_p1 = scmp.lt.s32.totalorder %s138_s20, %s138_s20 }
  0xe5   :  { %p16274_p0 = scmp.ne.s32.totalorder %s138_s20, %s16273_s29  ;;  %p16279_p2 = scmp.lt.s32.totalorder %s16273_s29, %s16273_s29 }
  0xe7   :  { %p16280_p3 = por %p16279_p2, %p16278_p1 }
  0xe9   :  { %p16281_p4 = pnand %p16280_p3, %p16274_p0 }
  0xeb   :  { %16284 = shalt.err (!%p16281_p4)
}
  0xec   :  { %140 = dma.hbm_to_vmem [thread:$0]  %s16681_s21, 32, %s138_s20, [#allocation6]  }
  0xed   :  { %s16293_s25 = scalar_lea.vmem %s162_s10, 32  ;;  %p16298_p6 = scmp.lt.s32.totalorder %s162_s10, %s162_s10 }
  0xee   :  { %p16294_p5 = scmp.ne.s32.totalorder %s162_s10, %s16293_s25  ;;  %p16299_p7 = scmp.lt.s32.totalorder %s16293_s25, %s16293_s25 }
  0xf0   :  { %p16300_p8 = por %p16299_p7, %p16298_p6 }
  0xf2   :  { %p16301_p9 = pnand %p16300_p8, %p16294_p5 }
  0xf4   :  { %16304 = shalt.err (!%p16301_p9)
}
  0xf5   :  { %s18495_s13 = sld [smem:[#allocation63_spill]]  ;;  %s16638_s16 = smov [#allocation13]  }
  0xf6   :  { %s185_s18 = sshll.u32 %s16638_s16, 4  ;;  %s16639_s11 = smov [#allocation16]   ;;  %s186_s18 = int_to_ptr.vmem [resolvable:$true] %s185_s18 }
  0xf7   :  { %s206_s8 = sshll.u32 %s16639_s11, 4  ;;  %s16313_s4 = scalar_lea.vmem %s186_s18, 32  ;;  %s207_s8 = int_to_ptr.vmem [resolvable:$true] %s206_s8 }
  0xf8   :  { %p16314_p10 = scmp.ne.s32.totalorder %s186_s18, %s16313_s4  ;;  %p16318_p11 = scmp.lt.s32.totalorder %s186_s18, %s186_s18 }
  0xf9   :  { %p16319_p12 = scmp.lt.s32.totalorder %s16313_s4, %s16313_s4 }
  0xfb   :  { %164 = dma.hbm_to_vmem [thread:$0]  %s18495_s13, 32, %s162_s10, [#allocation9]  }
  0xfc   :  { %p16320_p13 = por %p16319_p12, %p16318_p11 }
  0xfe   :  { %p16321_p0 = pnand %p16320_p13, %p16314_p10 }
 0x100   :  { %16324 = shalt.err (!%p16321_p0)
}
 0x101   :  { %s18496_s21 = sld [smem:[#allocation65_spill]]  ;;  %s16333_s0 = scalar_lea.vmem %s207_s8, 4608 }
 0x102   :  { %p16334_p1 = scmp.ne.s32.totalorder %s207_s8, %s16333_s0  ;;  %p16338_p2 = scmp.lt.s32.totalorder %s207_s8, %s207_s8 }
 0x103   :  { %p16339_p3 = scmp.lt.s32.totalorder %s16333_s0, %s16333_s0 }
 0x105   :  { %p16340_p4 = por %p16339_p3, %p16338_p2 }
 0x107   :  { %188 = dma.hbm_to_vmem [thread:$0]  %s18496_s21, 32, %s186_s18, [#allocation12]  }
 0x108   :  { %p16341_p5 = pnand %p16340_p4, %p16334_p1 }
 0x10a   :  { %16344 = shalt.err (!%p16341_p5)
}
 0x10b   :  { %s18497_s15 = sld [smem:[#allocation66_spill]]  ;;  %s16640_s22 = smov [#allocation19]  }
 0x10c   :  { %s228_s14 = sshll.u32 %s16640_s22, 4  ;;  %s16641_s24 = smov [#allocation22]   ;;  %s229_s14 = int_to_ptr.vmem [resolvable:$true] %s228_s14 }
 0x10d   :  { %s253_s28 = sshll.u32 %s16641_s24, 4  ;;  %s16353_s27 = scalar_lea.vmem %s229_s14, 576  ;;  %s254_s28 = int_to_ptr.vmem [resolvable:$true] %s253_s28 }
 0x10e   :  { %p16354_p6 = scmp.ne.s32.totalorder %s229_s14, %s16353_s27  ;;  %p16358_p7 = scmp.lt.s32.totalorder %s229_s14, %s229_s14 }
 0x10f   :  { %p16359_p8 = scmp.lt.s32.totalorder %s16353_s27, %s16353_s27 }
 0x111   :  { %212 = dma.hbm_to_vmem [thread:$0]  %s18497_s15, 4608, %s207_s8, [#allocation15], %s16620_s23, %s16620_s23, %s16621_s26  }
 0x112   :  { %p16360_p9 = por %p16359_p8, %p16358_p7 }
 0x114   :  { %p16361_p10 = pnand %p16360_p9, %p16354_p6 }
 0x116   :  { %16364 = shalt.err (!%p16361_p10)
}
 0x117   :  { %s18498_s9 = sld [smem:[#allocation67_spill]]  ;;  %s16373_s1 = scalar_lea.vmem %s254_s28, 32 }
 0x118   :  { %p16374_p11 = scmp.ne.s32.totalorder %s254_s28, %s16373_s1  ;;  %p16378_p12 = scmp.lt.s32.totalorder %s254_s28, %s254_s28 }
 0x119   :  { %p16379_p13 = scmp.lt.s32.totalorder %s16373_s1, %s16373_s1 }
 0x11b   :  { %p16380_p0 = por %p16379_p13, %p16378_p12 }
 0x11d   :  { %234 = dma.hbm_to_vmem [thread:$0]  %s18498_s9, 576, %s229_s14, [#allocation18], %s16620_s23, %s16620_s23, %s16621_s26  }
 0x11e   :  { %p16381_p1 = pnand %p16380_p0, %p16374_p11 }
 0x120   :  { %16384 = shalt.err (!%p16381_p1)
}
 0x121   :  { %s18499_s2 = sld [smem:[#allocation68_spill]]  ;;  %s16642_s7 = smov [#allocation25]  }
 0x122   :  { %s277_s6 = sshll.u32 %s16642_s7, 4  ;;  %s16643_s30 = smov [#allocation28]   ;;  %s278_s6 = int_to_ptr.vmem [resolvable:$true] %s277_s6 }
 0x123   :  { %s301_s5 = sshll.u32 %s16643_s30, 4  ;;  %s16393_s20 = scalar_lea.vmem %s278_s6, 32  ;;  %s302_s5 = int_to_ptr.vmem [resolvable:$true] %s301_s5 }
 0x124   :  { %p16394_p2 = scmp.ne.s32.totalorder %s278_s6, %s16393_s20  ;;  %p16398_p3 = scmp.lt.s32.totalorder %s278_s6, %s278_s6 }
 0x125   :  { %p16399_p4 = scmp.lt.s32.totalorder %s16393_s20, %s16393_s20 }
 0x127   :  { %256 = dma.hbm_to_vmem [thread:$0]  %s18499_s2, 32, %s254_s28, [#allocation21]  }
 0x128   :  { %p16400_p5 = por %p16399_p4, %p16398_p3 }
 0x12a   :  { %p16401_p6 = pnand %p16400_p5, %p16394_p2 }
 0x12c   :  { %16404 = shalt.err (!%p16401_p6)
}
 0x12d   :  { %s18500_s23 = sld [smem:[#allocation70_spill]]  ;;  %s16413_s26 = scalar_lea.vmem %s302_s5, 64 }
 0x12e   :  { %p16414_p7 = scmp.ne.s32.totalorder %s302_s5, %s16413_s26  ;;  %p16418_p8 = scmp.lt.s32.totalorder %s302_s5, %s302_s5 }
 0x12f   :  { %p16419_p9 = scmp.lt.s32.totalorder %s16413_s26, %s16413_s26 }
 0x131   :  { %p16420_p10 = por %p16419_p9, %p16418_p8 }
 0x133   :  { %280 = dma.hbm_to_vmem [thread:$0]  %s18500_s23, 32, %s278_s6, [#allocation24]  }
 0x134   :  { %p16421_p11 = pnand %p16420_p10, %p16414_p7 }
 0x136   :  { %16424 = shalt.err (!%p16421_p11)
}
 0x137   :  { %s18501_s17 = sld [smem:[#allocation72_spill]]  ;;  %s16644_s10 = smov [#allocation31]  }
 0x138   :  { %s329_s29 = sshll.u32 %s16644_s10, 4  ;;  %s16645_s25 = smov [#allocation34]   ;;  %s330_s29 = int_to_ptr.vmem [resolvable:$true] %s329_s29 }
 0x139   :  { %s353_s13 = sshll.u32 %s16645_s25, 4  ;;  %s16433_s16 = scalar_lea.vmem %s330_s29, 64  ;;  %s354_s13 = int_to_ptr.vmem [resolvable:$true] %s353_s13 }
 0x13a   :  { %p16434_p12 = scmp.ne.s32.totalorder %s330_s29, %s16433_s16  ;;  %p16438_p13 = scmp.lt.s32.totalorder %s330_s29, %s330_s29 }
 0x13b   :  { %p16439_p0 = scmp.lt.s32.totalorder %s16433_s16, %s16433_s16 }
 0x13d   :  { %304 = dma.hbm_to_vmem [thread:$0]  %s18501_s17, 64, %s302_s5, [#allocation27]  }
 0x13e   :  { %p16440_p1 = por %p16439_p0, %p16438_p13 }
 0x140   :  { %p16441_p2 = pnand %p16440_p1, %p16434_p12 }
 0x142   :  { %16444 = shalt.err (!%p16441_p2)
}
 0x143   :  { %s18502_s18 = sld [smem:[#allocation77_spill]]  ;;  %s16453_s11 = scalar_lea.vmem %s354_s13, 128 }
 0x144   :  { %p16454_p3 = scmp.ne.s32.totalorder %s354_s13, %s16453_s11  ;;  %p16458_p4 = scmp.lt.s32.totalorder %s354_s13, %s354_s13 }
 0x145   :  { %p16459_p5 = scmp.lt.s32.totalorder %s16453_s11, %s16453_s11 }
 0x147   :  { %p16460_p6 = por %p16459_p5, %p16458_p4 }
 0x149   :  { %332 = dma.hbm_to_vmem [thread:$0]  %s18502_s18, 64, %s330_s29, [#allocation30]  }
 0x14a   :  { %p16461_p7 = pnand %p16460_p6, %p16454_p3 }
 0x14c   :  { %16464 = shalt.err (!%p16461_p7)
}
 0x14d   :  { %s18503_s8 = sld [smem:[#allocation79_spill]]  ;;  %s16646_s4 = smov [#allocation37]  }
 0x14e   :  { %s377_s21 = sshll.u32 %s16646_s4, 4  ;;  %s16647_s0 = smov [#allocation40]   ;;  %s378_s21 = int_to_ptr.vmem [resolvable:$true] %s377_s21 }
 0x14f   :  { %s399_s15 = sshll.u32 %s16647_s0, 4  ;;  %s16473_s22 = scalar_lea.vmem %s378_s21, 16  ;;  %s400_s15 = int_to_ptr.vmem [resolvable:$true] %s399_s15 }
 0x150   :  { %p16474_p8 = scmp.ne.s32.totalorder %s378_s21, %s16473_s22  ;;  %s16477_s14 = scalar_lea.vmem %s378_s21, 32 }
 0x151   :  { %p16478_p9 = scmp.lt.s32.totalorder %s378_s21, %s378_s21  ;;  %p16479_p10 = scmp.lt.s32.totalorder %s16477_s14, %s16473_s22 }
 0x153   :  { %356 = dma.hbm_to_vmem [thread:$0]  %s18503_s8, 128, %s354_s13, [#allocation33]  }
 0x154   :  { %p16480_p11 = por %p16479_p10, %p16478_p9 }
 0x156   :  { %p16481_p12 = pnand %p16480_p11, %p16474_p8 }
 0x158   :  { %16484 = shalt.err (!%p16481_p12)
}
 0x159   :  { %s18504_s24 = sld [smem:[#allocation82_spill]]  ;;  %s16493_s28 = scalar_lea.vmem %s400_s15, 128 }
 0x15a   :  { %p16494_p13 = scmp.ne.s32.totalorder %s400_s15, %s16493_s28  ;;  %p16498_p0 = scmp.lt.s32.totalorder %s400_s15, %s400_s15 }
 0x15b   :  { %p16499_p1 = scmp.lt.s32.totalorder %s16493_s28, %s16493_s28 }
 0x15d   :  { %p16500_p2 = por %p16499_p1, %p16498_p0 }
 0x15f   :  { %380 = dma.hbm_to_vmem [thread:$0]  %s18504_s24, 16, %s378_s21, [#allocation36]  }
 0x160   :  { %p16501_p3 = pnand %p16500_p2, %p16494_p13 }
 0x162   :  { %16504 = shalt.err (!%p16501_p3)
}
 0x163   :  { %s18505_s27 = sld [smem:[#allocation83_spill]]  ;;  %s16648_s9 = smov [#allocation43]  }
 0x164   :  { %s423_s1 = sshll.u32 %s16648_s9, 4  ;;  %s424_s1 = int_to_ptr.vmem [resolvable:$true] %s423_s1 }
 0x165   :  { %s16513_s2 = scalar_lea.vmem %s424_s1, 16  ;;  %s16517_s7 = scalar_lea.vmem %s424_s1, 32 }
 0x166   :  { %p16514_p4 = scmp.ne.s32.totalorder %s424_s1, %s16513_s2  ;;  %p16518_p5 = scmp.lt.s32.totalorder %s424_s1, %s424_s1 }
 0x167   :  { %p16519_p6 = scmp.lt.s32.totalorder %s16517_s7, %s16513_s2 }
 0x169   :  { %402 = dma.hbm_to_vmem [thread:$0]  %s18505_s27, 128, %s400_s15, [#allocation39]  }
 0x16a   :  { %p16520_p7 = por %p16519_p6, %p16518_p5 }
 0x16c   :  { %p16521_p8 = pnand %p16520_p7, %p16514_p4 }
 0x16e   :  { %16524 = shalt.err (!%p16521_p8)
}
 0x16f   :  { %426 = dma.hbm_to_vmem [thread:$0]  %s16861_s3, 16, %s424_s1, [#allocation42]  }
 0x170   :  { %16545 = dma.done.wait [#allocation3], 4608  }
 0x171   :  { %16546 = vsyncadd [#allocation3], 4294962688 }
 0x172   :  { %16547 = dma.done.wait [#allocation6], 4640  }
 0x173   :  { %16548 = vsyncadd [#allocation6], 4294962656 }
 0x174   :  { %16549 = dma.done.wait [#allocation9], 4640  }
 0x175   :  { %16550 = vsyncadd [#allocation9], 4294962656 }
 0x176   :  { %16551 = dma.done.wait [#allocation12], 4640  }
 0x177   :  { %16552 = vsyncadd [#allocation12], 4294962656 }
 0x178   :  { %16553 = dma.done.wait [#allocation15], 5184  }
 0x179   :  { %16554 = vsyncadd [#allocation15], 4294962112 }
 0x17a   :  { %16555 = dma.done.wait [#allocation18], 608  }
 0x17b   :  { %16556 = vsyncadd [#allocation18], 4294966688 }
 0x17c   :  { %16557 = dma.done.wait [#allocation21], 9248  }
 0x17d   :  { %16558 = vsyncadd [#allocation21], 4294958048 }
 0x17e   :  { %16559 = dma.done.wait [#allocation24], 544  }
 0x17f   :  { %16560 = vsyncadd [#allocation24], 4294966752 }
 0x180   :  { %16561 = dma.done.wait [#allocation27], 18496  }
 0x181   :  { %16562 = vsyncadd [#allocation27], 4294948800 }
 0x182   :  { %16563 = dma.done.wait [#allocation30], 128  }
 0x183   :  { %16564 = vsyncadd [#allocation30], 4294967168 }
 0x184   :  { %16565 = dma.done.wait [#allocation33], 73856  }
 0x185   :  { %16566 = vsyncadd [#allocation33], 4294893440 }
 0x186   :  { %16567 = dma.done.wait [#allocation36], 144  }
 0x187   :  { %16568 = vsyncadd [#allocation36], 4294967152 }
 0x188   :  { %16569 = dma.done.wait [#allocation39], 8320  }
 0x189   :  { %16570 = vsyncadd [#allocation39], 4294958976 }
 0x18a   :  { %16571 = dma.done.wait [#allocation42], 8208  }
 0x18b   :  { %16572 = vsyncadd [#allocation42], 4294959088  ;;  %s18506_s3 = sld [smem:[#allocation61_spill]]  ;;  %v18469_v0 = vmov 0   ;;  %vm697_vm0 = vcmask 556032   ;;  %vm722_vm1 = vcmask 1041408  }
 0x18c   :  { %s18507_s6 = sld [smem:[#allocation60_spill]]  ;;  %726 = vmatprep.subr.bf16.mxu0 %v18469_v0  ;;  %15125 = vset.pattern.permute.xlu0 %v18469_v0  ;;  %v823_v31 = vld [vmem:[#allocation2] sm:$0xff]  ;;  %v828_v55 = vld [vmem:[#allocation5 + $0x8] sm:$0xff]  ;;  %vm1971_vm2 = vcmask 261120   ;;  %vm1889_vm3 = vcmask 523264   ;;  %vm16651_vm4 = vmmov 0  }
 0x18d   :  { %15126 = vset.pattern.permute.xlu1 %v18469_v0  ;;  %13913 = vmatprep.mubr.f32.mxu1 %v823_v31  ;;  %v1175_v32 = vld [vmem:[#allocation2 + $0x60] sm:$0xff]  ;;  %v944_v31 = vld [vmem:[#allocation5 + $0x30] sm:$0xff]  ;;  %s18508_s30 = sld [smem:[#allocation62_spill]]  ;;  %vm6330_vm5 = vcmask 1043456   ;;  %vm6326_vm6 = vcmask 64512   ;;  %vm8844_vm7 = vcmask 1040384  }
 0x18e   :  { %v827_v52 = vld [vmem:[#allocation5] sm:$0xff]  ;;  %s18513_s5 = sld [smem:[#allocation64_spill]]  ;;  %vm8840_vm8 = vcmask 15360  }
 0x18f   :  { %833 = vperm.xlu0 %15125, %v827_v52   ;;  %v1296_v52 = vld [vmem:[#allocation2 + $0x90] sm:$0xff]  ;;  %s18514_s20 = sld [smem:[#allocation69_spill]] }
 0x190   :  { %s18515_s23 = sld [smem:[#allocation76_spill]] }
 0x191   :  { %v15127_v1 = vld [vmem:[%s18506_s3 + $0x38] sm:$0xff]   ;;  %v15128_v2 = vld [vmem:[%s18506_s3 + $0x30] sm:$0xff]   ;;  %v15129_v3 = vld [vmem:[%s18506_s3 + $0x28] sm:$0xff]   ;;  %s18516_s26 = sld [smem:[#allocation75_spill]] }
 0x192   :  { %727 = vmatpush1.bf16.msra.mxu0 %v15127_v1  ;;  %v15130_v4 = vld [vmem:[%s18506_s3 + $0x20] sm:$0xff]   ;;  %v15131_v6 = vld [vmem:[%s18506_s3 + $0x18] sm:$0xff]   ;;  %v15132_v7 = vld [vmem:[%s18506_s3 + $0x10] sm:$0xff]   ;;  %s18517_s17 = sld [smem:[#allocation71_spill]] }
 0x193   :  { %728 = vmatprep.subr.bf16.mxu0 %v18469_v0  ;;  %v15142_v5 = vld [vmem:[%s18507_s6 + $0x4] ss:$8 sps:$4 sm:$0xff]   ;;  %v15135_v8 = vld [vmem:[%s18506_s3 + $0x60] ss:$0 sps:$4 sm:$0x33]   ;;  %v15136_v12 = vld [vmem:[%s18506_s3 + $0x58] sm:$0xff]   ;;  %838 = vperm.xlu0 %15125, %v828_v55  }
 0x194   :  { %12316 = vmatprep.mubr.msk.bf16.mxu0 %vm697_vm0, %v15142_v5  ;;  %v15133_v9 = vld [vmem:[%s18506_s3 + $0x8] sm:$0xff]   ;;  %v724_v10 = vsel %vm722_vm1, %v15135_v8, 0  ;;  %v15134_v11 = vld [vmem:[%s18506_s3] sm:$0xff]   ;;  %v15137_v13 = vld [vmem:[%s18506_s3 + $0x50] sm:$0xff]   ;;  %s18519_s10 = sld [smem:[#allocation74_spill]] }
 0x195   :  { %v15138_v14 = vld [vmem:[%s18506_s3 + $0x48] sm:$0xff]   ;;  %v15139_v15 = vld [vmem:[%s18506_s3 + $0x40] sm:$0xff]   ;;  %v15143_v17 = vld [vmem:[%s18507_s6 + $0x14] ss:$8 sps:$4 sm:$0xff]   ;;  %s18520_s29 = sld [smem:[#allocation73_spill]] }
 0x196   :  { %729 = vmatpush1.bf16.msra.mxu0 %v15128_v2  ;;  %v15140_v16 = vld [vmem:[%s18507_s6] ss:$8 sps:$4 sm:$0xff]   ;;  %v15145_v18 = vld [vmem:[%s18507_s6 + $0x10] ss:$8 sps:$4 sm:$0xff]   ;;  %v15146_v19 = vld [vmem:[%s18507_s6 + $0x24] ss:$8 sps:$4 sm:$0xff]  }
 0x197   :  { %730 = vmatprep.subr.bf16.mxu0 %v18469_v0  ;;  %v15148_v20 = vld [vmem:[%s18507_s6 + $0x20] ss:$8 sps:$4 sm:$0xff]   ;;  %v15149_v21 = vld [vmem:[%s18507_s6 + $0x34] ss:$8 sps:$4 sm:$0xff]   ;;  %v15151_v22 = vld [vmem:[%s18507_s6 + $0x30] ss:$8 sps:$4 sm:$0xff]  }
 0x198   :  { %v15152_v23 = vld [vmem:[%s18507_s6 + $0x44] ss:$8 sps:$4 sm:$0xff]   ;;  %v15154_v24 = vld [vmem:[%s18507_s6 + $0x40] ss:$8 sps:$4 sm:$0xff]   ;;  %v15155_v25 = vld [vmem:[%s18507_s6 + $0x54] ss:$8 sps:$4 sm:$0xff]  }
 0x199   :  { %v15157_v26 = vld [vmem:[%s18507_s6 + $0x50] ss:$8 sps:$4 sm:$0xff]   ;;  %v15158_v27 = vld [vmem:[%s18507_s6 + $0x64] ss:$8 sps:$4 sm:$0xff]   ;;  %v15160_v28 = vld [vmem:[%s18507_s6 + $0x60] ss:$8 sps:$4 sm:$0xff]  }
 0x19a   :  { %731 = vmatpush1.bf16.msra.mxu0 %v15129_v3  ;;  %v15161_v29 = vld [vmem:[%s18507_s6 + $0x74] ss:$8 sps:$4 sm:$0xff]   ;;  %v15163_v30 = vld [vmem:[%s18507_s6 + $0x70] ss:$8 sps:$4 sm:$0xff]   ;;  %v1176_v5 = vld [vmem:[#allocation2 + $0x68] sm:$0xff]  ;;  %s18521_s25 = sld [smem:[#allocation78_spill]] }
 0x19b   :  { %732 = vmatprep.subr.bf16.mxu0 %v18469_v0  ;;  %v1177_v8 = vld [vmem:[#allocation2 + $0x70] sm:$0xff]  ;;  %s18522_s13 = sld [smem:[#allocation81_spill]] }
 0x19c   :  { %v1301_v55 = vld [vmem:[#allocation5 + $0x90] sm:$0xff]  ;;  %s18523_s16 = sld [smem:[#allocation80_spill]] }
 0x19e   :  { %733 = vmatpush1.bf16.msra.mxu0 %v15130_v4  ;;  %v824_v4 = vld [vmem:[#allocation2 + $0x8] sm:$0xff] }
 0x19f   :  { %734 = vmatprep.subr.bf16.mxu0 %v18469_v0 }
 0x1a2   :  { %735 = vmatpush1.bf16.msra.mxu0 %v15131_v6  ;;  %v825_v6 = vld [vmem:[#allocation2 + $0x10] sm:$0xff] }
 0x1a3   :  { %736 = vmatprep.subr.bf16.mxu0 %v18469_v0 }
 0x1a6   :  { %737 = vmatpush1.bf16.msra.mxu0 %v15132_v7  ;;  %v826_v7 = vld [vmem:[#allocation2 + $0x18] sm:$0xff] }
 0x1a7   :  { %738 = vmatprep.subr.bf16.mxu0 %v18469_v0 }
 0x1aa   :  { %739 = vmatpush1.bf16.msra.mxu0 %v15133_v9  ;;  %v1178_v9 = vld [vmem:[#allocation2 + $0x78] sm:$0xff] }
 0x1ab   :  { %740 = vmatprep.subr.bf16.mxu0 %v18469_v0 }
 0x1ae   :  { %741 = vmatpush1.bf16.msra.mxu0 %v15134_v11  ;;  %v938_v11 = vld [vmem:[#allocation2 + $0x28] sm:$0xff] }
 0x1af   :  { %748 = vmatprep.subr.bf16.mxu0 %v18469_v0 }
 0x1b2   :  { %749 = vmatpush2.bf16.msra.mxu0 %v724_v10  ;;  %v937_v10 = vld [vmem:[#allocation2 + $0x20] sm:$0xff] }
 0x1b3   :  { %750 = vmatprep.subr.bf16.mxu0 %v18469_v0 }
 0x1b6   :  { %751 = vmatpush2.bf16.msra.mxu0 %v15136_v12  ;;  %v1413_v12 = vld [vmem:[#allocation2 + $0xa0] sm:$0xff] }
 0x1b7   :  { %752 = vmatprep.subr.bf16.mxu0 %v18469_v0 }
 0x1ba   :  { %753 = vmatpush2.bf16.msra.mxu0 %v15137_v13  ;;  %v1414_v13 = vld [vmem:[#allocation2 + $0xa8] sm:$0xff] }
 0x1bb   :  { %754 = vmatprep.subr.bf16.mxu0 %v18469_v0 }
 0x1be   :  { %755 = vmatpush2.bf16.msra.mxu0 %v15138_v14  ;;  %v939_v14 = vld [vmem:[#allocation2 + $0x30] sm:$0xff] }
 0x1bf   :  { %756 = vmatprep.subr.bf16.mxu0 %v18469_v0 }
 0x1c2   :  { %757 = vmatpush2.bf16.msra.mxu0 %v15139_v15  ;;  %v940_v15 = vld [vmem:[#allocation2 + $0x38] sm:$0xff] }
 0x1c5   :  { %759 = vmatmul.mubr.bf16.vlgmr.msra.gmra.mxu0 %v15140_v16  ;;  %v1056_v16 = vld [vmem:[#allocation2 + $0x40] sm:$0xff] }
 0x1c6   :  { %12317 = vmatprep.mubr.msk.bf16.mxu0 %vm697_vm0, %v15143_v17  ;;  %v1057_v17 = vld [vmem:[#allocation2 + $0x48] sm:$0xff] }
 0x1cd   :  { %767 = vmatmul.mubr.bf16.gmra.mxu0 %v15145_v18  ;;  %v1058_v18 = vld [vmem:[#allocation2 + $0x50] sm:$0xff] }
 0x1ce   :  { %12318 = vmatprep.mubr.msk.bf16.mxu0 %vm697_vm0, %v15146_v19  ;;  %v1415_v19 = vld [vmem:[#allocation2 + $0xb0] sm:$0xff] }
 0x1d5   :  { %775 = vmatmul.mubr.bf16.gmra.mxu0 %v15148_v20  ;;  %v1416_v20 = vld [vmem:[#allocation2 + $0xb8] sm:$0xff] }
 0x1d6   :  { %12319 = vmatprep.mubr.msk.bf16.mxu0 %vm697_vm0, %v15149_v21  ;;  %v942_v21 = vld [vmem:[#allocation5 + $0x20] sm:$0xff] }
 0x1d7   :  { %948 = vperm.xlu1 %15126, %v942_v21  }
 0x1dd   :  { %783 = vmatmul.mubr.bf16.gmra.mxu0 %v15151_v22  ;;  %v1059_v22 = vld [vmem:[#allocation2 + $0x58] sm:$0xff] }
 0x1de   :  { %12320 = vmatprep.mubr.msk.bf16.mxu0 %vm697_vm0, %v15152_v23  ;;  %v829_v23 = vld [vmem:[#allocation5 + $0x10] sm:$0xff] }
 0x1df   :  { %843 = vperm.xlu0 %15125, %v829_v23  }
 0x1e5   :  { %791 = vmatmul.mubr.bf16.gmra.mxu0 %v15154_v24  ;;  %v1651_v24 = vld [vmem:[#allocation2 + $0xe0] sm:$0xff] }
 0x1e6   :  { %12321 = vmatprep.mubr.msk.bf16.mxu0 %vm697_vm0, %v15155_v25  ;;  %v1652_v25 = vld [vmem:[#allocation2 + $0xe8] sm:$0xff] }
 0x1ed   :  { %799 = vmatmul.mubr.bf16.gmra.mxu0 %v15157_v26  ;;  %v943_v26 = vld [vmem:[#allocation5 + $0x28] sm:$0xff] }
 0x1ee   :  { %12322 = vmatprep.mubr.msk.bf16.mxu0 %vm697_vm0, %v15158_v27  ;;  %v1061_v27 = vld [vmem:[#allocation5 + $0x40] sm:$0xff]  ;;  %953 = vperm.xlu1 %15126, %v943_v26  }
 0x1ef   :  { %1067 = vperm.xlu0 %15125, %v1061_v27   ;;  %v15164_v27 = vld [vmem:[%s18508_s30] sm:$0xff]  }
 0x1f2   :  { %958 = vperm.xlu1 %15126, %v944_v31  }
 0x1f5   :  { %807 = vmatmul.mubr.bf16.gmra.mxu0 %v15160_v28  ;;  %v1294_v28 = vld [vmem:[#allocation2 + $0x80] sm:$0xff] }
 0x1f6   :  { %12323 = vmatprep.mubr.msk.bf16.mxu0 %vm697_vm0, %v15161_v29  ;;  %v1653_v29 = vld [vmem:[#allocation2 + $0xf0] sm:$0xff] }
 0x1fd   :  { %815 = vmatmul.mubr.bf16.gmra.mxu0 %v15163_v30  ;;  %v1654_v30 = vld [vmem:[#allocation2 + $0xf8] sm:$0xff] }
 0x1fe   :  { %14027 = vmatprep.mubr.f32.mxu0 %v1175_v32  ;;  %v830_v32 = vld [vmem:[#allocation5 + $0x18] sm:$0xff] }
 0x1ff   :  { %848 = vperm.xlu0 %15125, %v830_v32  }
 0x285   :  { %v16981_v33 = vpop.f32.mrf.mxu0 }
 0x287   :  { %v762_v34 = vpop.f32.mrf.mxu0 }
 0x288   :  { %v1062_v34 = vld [vmem:[#allocation5 + $0x48] sm:$0xff] }
 0x289   :  { %v16983_v35 = vpop.f32.mrf.mxu0  ;;  %1072 = vperm.xlu1 %15126, %v1062_v34  }
 0x28b   :  { %v765_v36 = vpop.f32.mrf.mxu0 }
 0x28c   :  { %v1063_v36 = vld [vmem:[#allocation5 + $0x50] sm:$0xff] }
 0x28d   :  { %v16985_v37 = vpop.f32.mrf.mxu0  ;;  %1077 = vperm.xlu0 %15125, %v1063_v36  }
 0x28f   :  { %v770_v38 = vpop.f32.mrf.mxu0 }
 0x290   :  { %v945_v38 = vld [vmem:[#allocation5 + $0x38] sm:$0xff] }
 0x291   :  { %v16987_v39 = vpop.f32.mrf.mxu0  ;;  %963 = vperm.xlu1 %15126, %v945_v38  }
 0x293   :  { %v773_v40 = vpop.f32.mrf.mxu0 }
 0x294   :  { %v1181_v40 = vld [vmem:[#allocation5 + $0x68] sm:$0xff] }
 0x295   :  { %v16989_v41 = vpop.f32.mrf.mxu0  ;;  %1191 = vperm.xlu0 %15125, %v1181_v40  }
 0x297   :  { %v778_v42 = vpop.f32.mrf.mxu0 }
 0x298   :  { %v1180_v42 = vld [vmem:[#allocation5 + $0x60] sm:$0xff] }
 0x299   :  { %v16991_v43 = vpop.f32.mrf.mxu0  ;;  %1186 = vperm.xlu1 %15126, %v1180_v42  }
 0x29b   :  { %v781_v44 = vpop.f32.mrf.mxu0 }
 0x29c   :  { %v1182_v44 = vld [vmem:[#allocation5 + $0x70] sm:$0xff] }
 0x29d   :  { %v16993_v45 = vpop.f32.mrf.mxu0  ;;  %1196 = vperm.xlu0 %15125, %v1182_v44  }
 0x29f   :  { %v786_v46 = vpop.f32.mrf.mxu0 }
 0x2a0   :  { %v1064_v46 = vld [vmem:[#allocation5 + $0x58] sm:$0xff] }
 0x2a1   :  { %v16995_v47 = vpop.f32.mrf.mxu0  ;;  %1082 = vperm.xlu1 %15126, %v1064_v46  }
 0x2a3   :  { %v789_v48 = vpop.f32.mrf.mxu0 }
 0x2a4   :  { %v1300_v48 = vld [vmem:[#allocation5 + $0x88] sm:$0xff] }
 0x2a5   :  { %v16997_v49 = vpop.f32.mrf.mxu0  ;;  %1310 = vperm.xlu0 %15125, %v1300_v48  }
 0x2a7   :  { %v794_v50 = vpop.f32.mrf.mxu0 }
 0x2a8   :  { %v1295_v50 = vld [vmem:[#allocation2 + $0x88] sm:$0xff] }
 0x2a9   :  { %v16999_v51 = vpop.f32.mrf.mxu0  ;;  %1315 = vperm.xlu0 %15125, %v1301_v55  }
 0x2ab   :  { %v797_v53 = vpop.f32.mrf.mxu0 }
 0x2ac   :  { %v1299_v53 = vld [vmem:[#allocation5 + $0x80] sm:$0xff] }
 0x2ad   :  { %v17001_v54 = vpop.f32.mrf.mxu0  ;;  %1305 = vperm.xlu1 %15126, %v1299_v53  }
 0x2af   :  { %v802_v56 = vpop.f32.mrf.mxu0 }
 0x2b0   :  { %v1297_v56 = vld [vmem:[#allocation2 + $0x98] sm:$0xff] }
 0x2b1   :  { %v17003_v57 = vpop.f32.mrf.mxu0 }
 0x2b3   :  { %v805_v58 = vpop.f32.mrf.mxu0 }
 0x2b4   :  { %v1532_v58 = vld [vmem:[#allocation2 + $0xc0] sm:$0xff] }
 0x2b5   :  { %v17005_v59 = vpop.f32.mrf.mxu0 }
 0x2b7   :  { %v810_v60 = vpop.f32.mrf.mxu0 }
 0x2b8   :  { %v1183_v60 = vld [vmem:[#allocation5 + $0x78] sm:$0xff] }
 0x2b9   :  { %v17007_v61 = vpop.f32.mrf.mxu0  ;;  %1201 = vperm.xlu1 %15126, %v1183_v60  }
 0x2bb   :  { %v813_v62 = vpop.f32.mrf.mxu0 }
 0x2bc   :  { %v1419_v62 = vld [vmem:[#allocation5 + $0xa8] sm:$0xff] }
 0x2bd   :  { %v17009_v63 = vpop.f32.mrf.mxu0  ;;  %1429 = vperm.xlu0 %15125, %v1419_v62  }
 0x2bf   :  { %v818_v1 = vpop.f32.mrf.mxu0 }
 0x2c0   :  { %v1418_v1 = vld [vmem:[#allocation5 + $0xa0] sm:$0xff] }
 0x2c1   :  { %v17011_v2 = vpop.f32.mrf.mxu0  ;;  %1424 = vperm.xlu1 %15126, %v1418_v1  }
 0x2c2   :  { %13881 = vmatprep.subr.mxu1 %v17011_v2  ;;  %13995 = vmatprep.subr.mxu0 %v17011_v2 }
 0x2c3   :  { %v821_v3 = vpop.f32.mrf.mxu0  ;;  %13882 = vmatpush3.msra.mxu1 %v17011_v2  ;;  %13996 = vmatpush3.msra.mxu0 %v17011_v2 }
 0x2c4   :  { %13883 = vmatprep.subr.mxu1 %v17009_v63  ;;  %13997 = vmatprep.subr.mxu0 %v17009_v63  ;;  %v1420_v3 = vld [vmem:[#allocation5 + $0xb0] sm:$0xff] }
 0x2c5   :  { %13884 = vmatpush3.msra.mxu1 %v17009_v63  ;;  %13998 = vmatpush3.msra.mxu0 %v17009_v63 }
 0x2c6   :  { %13885 = vmatprep.subr.mxu1 %v17007_v61  ;;  %13999 = vmatprep.subr.mxu0 %v17007_v61 }
 0x2c7   :  { %13886 = vmatpush3.msra.mxu1 %v17007_v61  ;;  %14000 = vmatpush3.msra.mxu0 %v17007_v61 }
 0x2c8   :  { %13887 = vmatprep.subr.mxu1 %v17005_v59  ;;  %14001 = vmatprep.subr.mxu0 %v17005_v59 }
 0x2c9   :  { %13888 = vmatpush3.msra.mxu1 %v17005_v59  ;;  %14002 = vmatpush3.msra.mxu0 %v17005_v59 }
 0x2ca   :  { %13889 = vmatprep.subr.mxu1 %v17003_v57  ;;  %14003 = vmatprep.subr.mxu0 %v17003_v57 }
 0x2cb   :  { %13890 = vmatpush3.msra.mxu1 %v17003_v57  ;;  %14004 = vmatpush3.msra.mxu0 %v17003_v57 }
 0x2cc   :  { %13891 = vmatprep.subr.mxu1 %v17001_v54  ;;  %14005 = vmatprep.subr.mxu0 %v17001_v54 }
 0x2cd   :  { %13892 = vmatpush3.msra.mxu1 %v17001_v54  ;;  %14006 = vmatpush3.msra.mxu0 %v17001_v54 }
 0x2ce   :  { %13893 = vmatprep.subr.mxu1 %v16999_v51  ;;  %14007 = vmatprep.subr.mxu0 %v16999_v51 }
 0x2cf   :  { %13894 = vmatpush3.msra.mxu1 %v16999_v51  ;;  %14008 = vmatpush3.msra.mxu0 %v16999_v51 }
 0x2d0   :  { %13895 = vmatprep.subr.mxu1 %v16997_v49  ;;  %14009 = vmatprep.subr.mxu0 %v16997_v49 }
 0x2d1   :  { %13896 = vmatpush3.msra.mxu1 %v16997_v49  ;;  %14010 = vmatpush3.msra.mxu0 %v16997_v49 }
 0x2d2   :  { %13897 = vmatprep.subr.mxu1 %v16995_v47  ;;  %14011 = vmatprep.subr.mxu0 %v16995_v47 }
 0x2d3   :  { %13898 = vmatpush3.msra.mxu1 %v16995_v47  ;;  %14012 = vmatpush3.msra.mxu0 %v16995_v47 }
 0x2d4   :  { %13899 = vmatprep.subr.mxu1 %v16993_v45  ;;  %14013 = vmatprep.subr.mxu0 %v16993_v45 }
 0x2d5   :  { %13900 = vmatpush3.msra.mxu1 %v16993_v45  ;;  %14014 = vmatpush3.msra.mxu0 %v16993_v45 }
 0x2d6   :  { %13901 = vmatprep.subr.mxu1 %v16991_v43  ;;  %14015 = vmatprep.subr.mxu0 %v16991_v43 }
 0x2d7   :  { %13902 = vmatpush3.msra.mxu1 %v16991_v43  ;;  %14016 = vmatpush3.msra.mxu0 %v16991_v43 }
 0x2d8   :  { %13903 = vmatprep.subr.mxu1 %v16989_v41  ;;  %14017 = vmatprep.subr.mxu0 %v16989_v41 }
 0x2d9   :  { %13904 = vmatpush3.msra.mxu1 %v16989_v41  ;;  %14018 = vmatpush3.msra.mxu0 %v16989_v41 }
 0x2da   :  { %13905 = vmatprep.subr.mxu1 %v16987_v39  ;;  %14019 = vmatprep.subr.mxu0 %v16987_v39 }
 0x2db   :  { %13906 = vmatpush3.msra.mxu1 %v16987_v39  ;;  %14020 = vmatpush3.msra.mxu0 %v16987_v39 }
 0x2dc   :  { %13907 = vmatprep.subr.mxu1 %v16985_v37  ;;  %14021 = vmatprep.subr.mxu0 %v16985_v37 }
 0x2dd   :  { %13908 = vmatpush3.msra.mxu1 %v16985_v37  ;;  %14022 = vmatpush3.msra.mxu0 %v16985_v37 }
 0x2de   :  { %13909 = vmatprep.subr.mxu1 %v16983_v35  ;;  %14023 = vmatprep.subr.mxu0 %v16983_v35 }
 0x2df   :  { %13910 = vmatpush3.msra.mxu1 %v16983_v35  ;;  %14024 = vmatpush3.msra.mxu0 %v16983_v35 }
 0x2e0   :  { %13911 = vmatprep.subr.mxu1 %v16981_v33  ;;  %14025 = vmatprep.subr.mxu0 %v16981_v33 }
 0x2e1   :  { %13912 = vmatpush3.msra.mxu1 %v16981_v33  ;;  %14026 = vmatpush3.msra.mxu0 %v16981_v33 }
 0x2e2   :  { %13914 = vmatmul.mubr.f32.vlgmr.msra.gmra.mxu1 %v824_v4  ;;  %13919 = vmatprep.subr.mxu1 %v17011_v2  ;;  %v1302_v4 = vld [vmem:[#allocation5 + $0x98] sm:$0xff] }
 0x2e3   :  { %14071 = vmatprep.subr.mxu0 %v17011_v2  ;;  %13920 = vmatpush3.msra.mxu1 %v17011_v2 }
 0x2e4   :  { %14028 = vmatmul.mubr.f32.vlgmr.msra.gmra.mxu0 %v1176_v5  ;;  %13921 = vmatprep.subr.mxu1 %v17009_v63  ;;  %v1538_v5 = vld [vmem:[#allocation5 + $0xc8] sm:$0xff] }
 0x2e5   :  { %14072 = vmatpush3.msra.mxu0 %v17011_v2  ;;  %13922 = vmatpush3.msra.mxu1 %v17009_v63 }
 0x2e6   :  { %14073 = vmatprep.subr.mxu0 %v17009_v63  ;;  %13923 = vmatprep.subr.mxu1 %v17007_v61 }
 0x2e7   :  { %14074 = vmatpush3.msra.mxu0 %v17009_v63  ;;  %13924 = vmatpush3.msra.mxu1 %v17007_v61 }
 0x2e8   :  { %14075 = vmatprep.subr.mxu0 %v17007_v61  ;;  %13925 = vmatprep.subr.mxu1 %v17005_v59 }
 0x2e9   :  { %14076 = vmatpush3.msra.mxu0 %v17007_v61  ;;  %13926 = vmatpush3.msra.mxu1 %v17005_v59 }
 0x2ea   :  { %14077 = vmatprep.subr.mxu0 %v17005_v59  ;;  %13927 = vmatprep.subr.mxu1 %v17003_v57 }
 0x2eb   :  { %14078 = vmatpush3.msra.mxu0 %v17005_v59  ;;  %13928 = vmatpush3.msra.mxu1 %v17003_v57 }
 0x2ec   :  { %14079 = vmatprep.subr.mxu0 %v17003_v57  ;;  %13929 = vmatprep.subr.mxu1 %v17001_v54 }
 0x2ed   :  { %14080 = vmatpush3.msra.mxu0 %v17003_v57  ;;  %13930 = vmatpush3.msra.mxu1 %v17001_v54 }
 0x2ee   :  { %14081 = vmatprep.subr.mxu0 %v17001_v54  ;;  %13931 = vmatprep.subr.mxu1 %v16999_v51 }
 0x2ef   :  { %14082 = vmatpush3.msra.mxu0 %v17001_v54  ;;  %13932 = vmatpush3.msra.mxu1 %v16999_v51 }
 0x2f0   :  { %14083 = vmatprep.subr.mxu0 %v16999_v51  ;;  %13933 = vmatprep.subr.mxu1 %v16997_v49 }
 0x2f1   :  { %14084 = vmatpush3.msra.mxu0 %v16999_v51  ;;  %13934 = vmatpush3.msra.mxu1 %v16997_v49 }
 0x2f2   :  { %14085 = vmatprep.subr.mxu0 %v16997_v49  ;;  %13935 = vmatprep.subr.mxu1 %v16995_v47 }
 0x2f3   :  { %14086 = vmatpush3.msra.mxu0 %v16997_v49  ;;  %13936 = vmatpush3.msra.mxu1 %v16995_v47 }
 0x2f4   :  { %14087 = vmatprep.subr.mxu0 %v16995_v47  ;;  %13937 = vmatprep.subr.mxu1 %v16993_v45 }
 0x2f5   :  { %14088 = vmatpush3.msra.mxu0 %v16995_v47  ;;  %13938 = vmatpush3.msra.mxu1 %v16993_v45 }
 0x2f6   :  { %14089 = vmatprep.subr.mxu0 %v16993_v45  ;;  %13939 = vmatprep.subr.mxu1 %v16991_v43 }
 0x2f7   :  { %14090 = vmatpush3.msra.mxu0 %v16993_v45  ;;  %13940 = vmatpush3.msra.mxu1 %v16991_v43 }
 0x2f8   :  { %14091 = vmatprep.subr.mxu0 %v16991_v43  ;;  %13941 = vmatprep.subr.mxu1 %v16989_v41 }
 0x2f9   :  { %14092 = vmatpush3.msra.mxu0 %v16991_v43  ;;  %13942 = vmatpush3.msra.mxu1 %v16989_v41 }
 0x2fa   :  { %14093 = vmatprep.subr.mxu0 %v16989_v41  ;;  %13943 = vmatprep.subr.mxu1 %v16987_v39 }
 0x2fb   :  { %14094 = vmatpush3.msra.mxu0 %v16989_v41  ;;  %13944 = vmatpush3.msra.mxu1 %v16987_v39 }
 0x2fc   :  { %14095 = vmatprep.subr.mxu0 %v16987_v39  ;;  %13916 = vmatprep.mubr.f32.mxu1 %v825_v6  ;;  %v1537_v6 = vld [vmem:[#allocation5 + $0xc0] sm:$0xff] }
 0x2fd   :  { %14096 = vmatpush3.msra.mxu0 %v16987_v39  ;;  %13945 = vmatprep.subr.mxu1 %v16985_v37 }
 0x2fe   :  { %14097 = vmatprep.subr.mxu0 %v16985_v37  ;;  %13917 = vmatmul.mubr.f32.gmra.mxu1 %v826_v7  ;;  %v1539_v7 = vld [vmem:[#allocation5 + $0xd0] sm:$0xff] }
 0x2ff   :  { %13946 = vmatpush3.msra.mxu1 %v16985_v37  ;;  %14098 = vmatpush3.msra.mxu0 %v16985_v37 }
 0x300   :  { %13947 = vmatprep.subr.mxu1 %v16983_v35  ;;  %14030 = vmatprep.mubr.f32.mxu0 %v1177_v8  ;;  %v1421_v8 = vld [vmem:[#allocation5 + $0xb8] sm:$0xff] }
 0x301   :  { %14099 = vmatprep.subr.mxu0 %v16983_v35  ;;  %13948 = vmatpush3.msra.mxu1 %v16983_v35 }
 0x302   :  { %14031 = vmatmul.mubr.f32.gmra.mxu0 %v1178_v9  ;;  %13949 = vmatprep.subr.mxu1 %v16981_v33  ;;  %v1657_v9 = vld [vmem:[#allocation5 + $0xe8] sm:$0xff] }
 0x303   :  { %14100 = vmatpush3.msra.mxu0 %v16983_v35  ;;  %13950 = vmatpush3.msra.mxu1 %v16981_v33 }
 0x304   :  { %14101 = vmatprep.subr.mxu0 %v16981_v33  ;;  %13951 = vmatprep.mubr.f32.mxu1 %v937_v10  ;;  %v1656_v10 = vld [vmem:[#allocation5 + $0xe0] sm:$0xff] }
 0x305   :  { %14102 = vmatpush3.msra.mxu0 %v16981_v33  ;;  %13952 = vmatmul.mubr.f32.vlgmr.msra.gmra.mxu1 %v938_v11  ;;  %v1658_v11 = vld [vmem:[#allocation5 + $0xf0] sm:$0xff] }
 0x306   :  { %13957 = vmatprep.subr.mxu1 %v17011_v2  ;;  %14103 = vmatprep.mubr.f32.mxu0 %v1413_v12  ;;  %v1540_v12 = vld [vmem:[#allocation5 + $0xd8] sm:$0xff] }
 0x307   :  { %14147 = vmatprep.subr.mxu0 %v17011_v2  ;;  %13958 = vmatpush3.msra.mxu1 %v17011_v2 }
 0x308   :  { %14104 = vmatmul.mubr.f32.vlgmr.msra.gmra.mxu0 %v1414_v13  ;;  %13959 = vmatprep.subr.mxu1 %v17009_v63  ;;  %v1776_v13 = vld [vmem:[#allocation5 + $0x108] sm:$0xff] }
 0x309   :  { %14148 = vmatpush3.msra.mxu0 %v17011_v2  ;;  %13954 = vmatprep.mubr.f32.mxu1 %v939_v14  ;;  %v1533_v14 = vld [vmem:[#allocation2 + $0xc8] sm:$0xff] }
 0x30a   :  { %14149 = vmatprep.subr.mxu0 %v17009_v63  ;;  %13960 = vmatpush3.msra.mxu1 %v17009_v63 }
 0x30b   :  { %14150 = vmatpush3.msra.mxu0 %v17009_v63  ;;  %13955 = vmatmul.mubr.f32.gmra.mxu1 %v940_v15  ;;  %v1534_v15 = vld [vmem:[#allocation2 + $0xd0] sm:$0xff] }
 0x30c   :  { %13961 = vmatprep.subr.mxu1 %v17007_v61  ;;  %14151 = vmatprep.subr.mxu0 %v17007_v61 }
 0x30d   :  { %13962 = vmatpush3.msra.mxu1 %v17007_v61  ;;  %14152 = vmatpush3.msra.mxu0 %v17007_v61 }
 0x30e   :  { %13963 = vmatprep.subr.mxu1 %v17005_v59  ;;  %14153 = vmatprep.subr.mxu0 %v17005_v59 }
 0x30f   :  { %13964 = vmatpush3.msra.mxu1 %v17005_v59  ;;  %14154 = vmatpush3.msra.mxu0 %v17005_v59 }
 0x310   :  { %13965 = vmatprep.subr.mxu1 %v17003_v57  ;;  %14155 = vmatprep.subr.mxu0 %v17003_v57 }
 0x311   :  { %13966 = vmatpush3.msra.mxu1 %v17003_v57  ;;  %14156 = vmatpush3.msra.mxu0 %v17003_v57 }
 0x312   :  { %13967 = vmatprep.subr.mxu1 %v17001_v54  ;;  %14157 = vmatprep.subr.mxu0 %v17001_v54 }
 0x313   :  { %13968 = vmatpush3.msra.mxu1 %v17001_v54  ;;  %14158 = vmatpush3.msra.mxu0 %v17001_v54 }
 0x314   :  { %13969 = vmatprep.subr.mxu1 %v16999_v51  ;;  %14159 = vmatprep.subr.mxu0 %v16999_v51 }
 0x315   :  { %13970 = vmatpush3.msra.mxu1 %v16999_v51  ;;  %14160 = vmatpush3.msra.mxu0 %v16999_v51 }
 0x316   :  { %13971 = vmatprep.subr.mxu1 %v16997_v49  ;;  %14161 = vmatprep.subr.mxu0 %v16997_v49 }
 0x317   :  { %13972 = vmatpush3.msra.mxu1 %v16997_v49  ;;  %14162 = vmatpush3.msra.mxu0 %v16997_v49 }
 0x318   :  { %13973 = vmatprep.subr.mxu1 %v16995_v47  ;;  %14163 = vmatprep.subr.mxu0 %v16995_v47 }
 0x319   :  { %13974 = vmatpush3.msra.mxu1 %v16995_v47  ;;  %14164 = vmatpush3.msra.mxu0 %v16995_v47 }
 0x31a   :  { %13975 = vmatprep.subr.mxu1 %v16993_v45  ;;  %14165 = vmatprep.subr.mxu0 %v16993_v45 }
 0x31b   :  { %13976 = vmatpush3.msra.mxu1 %v16993_v45  ;;  %14166 = vmatpush3.msra.mxu0 %v16993_v45 }
 0x31c   :  { %13977 = vmatprep.subr.mxu1 %v16991_v43  ;;  %14167 = vmatprep.subr.mxu0 %v16991_v43 }
 0x31d   :  { %13978 = vmatpush3.msra.mxu1 %v16991_v43  ;;  %14168 = vmatpush3.msra.mxu0 %v16991_v43 }
 0x31e   :  { %13979 = vmatprep.subr.mxu1 %v16989_v41  ;;  %14169 = vmatprep.subr.mxu0 %v16989_v41 }
 0x31f   :  { %13980 = vmatpush3.msra.mxu1 %v16989_v41  ;;  %14170 = vmatpush3.msra.mxu0 %v16989_v41 }
 0x320   :  { %13981 = vmatprep.subr.mxu1 %v16987_v39  ;;  %14171 = vmatprep.subr.mxu0 %v16987_v39 }
 0x321   :  { %13982 = vmatpush3.msra.mxu1 %v16987_v39  ;;  %14172 = vmatpush3.msra.mxu0 %v16987_v39 }
 0x322   :  { %13983 = vmatprep.subr.mxu1 %v16985_v37  ;;  %14173 = vmatprep.subr.mxu0 %v16985_v37 }
 0x323   :  { %13984 = vmatpush3.msra.mxu1 %v16985_v37  ;;  %14174 = vmatpush3.msra.mxu0 %v16985_v37 }
 0x324   :  { %13985 = vmatprep.subr.mxu1 %v16983_v35  ;;  %14175 = vmatprep.subr.mxu0 %v16983_v35 }
 0x325   :  { %13986 = vmatpush3.msra.mxu1 %v16983_v35  ;;  %14176 = vmatpush3.msra.mxu0 %v16983_v35 }
 0x326   :  { %13987 = vmatprep.subr.mxu1 %v16981_v33  ;;  %14177 = vmatprep.subr.mxu0 %v16981_v33 }
 0x327   :  { %13988 = vmatpush3.msra.mxu1 %v16981_v33  ;;  %13989 = vmatprep.mubr.f32.mxu1 %v1056_v16  ;;  %v1775_v16 = vld [vmem:[#allocation5 + $0x100] sm:$0xff] }
 0x328   :  { %14178 = vmatpush3.msra.mxu0 %v16981_v33  ;;  %13990 = vmatmul.mubr.f32.vlgmr.msra.gmra.mxu1 %v1057_v17  ;;  %v1777_v17 = vld [vmem:[#allocation5 + $0x110] sm:$0xff] }
 0x329   :  { %14033 = vmatprep.subr.mxu1 %v17011_v2  ;;  %13992 = vmatprep.mubr.f32.mxu1 %v1058_v18  ;;  %v1535_v18 = vld [vmem:[#allocation2 + $0xd8] sm:$0xff] }
 0x32a   :  { %14034 = vmatpush3.msra.mxu1 %v17011_v2  ;;  %14106 = vmatprep.mubr.f32.mxu0 %v1415_v19  ;;  %v1770_v19 = vld [vmem:[#allocation2 + $0x100] sm:$0xff] }
 0x32b   :  { %14035 = vmatprep.subr.mxu1 %v17009_v63  ;;  %14107 = vmatmul.mubr.f32.gmra.mxu0 %v1416_v20  ;;  %v1659_v20 = vld [vmem:[#allocation5 + $0xf8] sm:$0xff] }
 0x32c   :  { %14036 = vmatpush3.msra.mxu1 %v17009_v63  ;;  %14179 = vmatprep.mubr.f32.mxu0 %v1651_v24 }
 0x32d   :  { %13993 = vmatmul.mubr.f32.gmra.mxu1 %v1059_v22  ;;  %14037 = vmatprep.subr.mxu1 %v17007_v61 }
 0x32e   :  { %14038 = vmatpush3.msra.mxu1 %v17007_v61  ;;  %14065 = vmatprep.mubr.f32.mxu1 %v1294_v28  ;;  %v15165_v28 = vld [vmem:[%s18508_s30 + $0x10] sm:$0xff]  }
 0x32f   :  { %14039 = vmatprep.subr.mxu1 %v17005_v59  ;;  %14180 = vmatmul.mubr.f32.vlgmr.msra.gmra.mxu0 %v1652_v25 }
 0x330   :  { %14040 = vmatpush3.msra.mxu1 %v17005_v59  ;;  %14182 = vmatprep.mubr.f32.mxu0 %v1653_v29 }
 0x331   :  { %14041 = vmatprep.subr.mxu1 %v17003_v57  ;;  %1434 = vperm.xlu0 %15125, %v1420_v3  }
 0x332   :  { %14042 = vmatpush3.msra.mxu1 %v17003_v57  ;;  %1320 = vperm.xlu1 %15126, %v1302_v4  }
 0x333   :  { %14043 = vmatprep.subr.mxu1 %v17001_v54  ;;  %14183 = vmatmul.mubr.f32.gmra.mxu0 %v1654_v30 }
 0x334   :  { %14044 = vmatpush3.msra.mxu1 %v17001_v54  ;;  %14235 = vmatprep.mubr.msk.bf16.mxu0 %vm1971_vm2, %v15165_v28 }
 0x335   :  { %14045 = vmatprep.subr.mxu1 %v16999_v51  ;;  %1548 = vperm.xlu0 %15125, %v1538_v5  }
 0x336   :  { %14046 = vmatpush3.msra.mxu1 %v16999_v51  ;;  %1543 = vperm.xlu1 %15126, %v1537_v6  }
 0x337   :  { %14047 = vmatprep.subr.mxu1 %v16997_v49 }
 0x338   :  { %14048 = vmatpush3.msra.mxu1 %v16997_v49 }
 0x339   :  { %14049 = vmatprep.subr.mxu1 %v16995_v47  ;;  %1553 = vperm.xlu0 %15125, %v1539_v7  }
 0x33a   :  { %14050 = vmatpush3.msra.mxu1 %v16995_v47  ;;  %1439 = vperm.xlu1 %15126, %v1421_v8  }
 0x33b   :  { %14051 = vmatprep.subr.mxu1 %v16993_v45 }
 0x33c   :  { %14052 = vmatpush3.msra.mxu1 %v16993_v45 }
 0x33d   :  { %14053 = vmatprep.subr.mxu1 %v16991_v43  ;;  %1667 = vperm.xlu0 %15125, %v1657_v9  }
 0x33e   :  { %14054 = vmatpush3.msra.mxu1 %v16991_v43  ;;  %1662 = vperm.xlu1 %15126, %v1656_v10  }
 0x33f   :  { %14055 = vmatprep.subr.mxu1 %v16989_v41 }
 0x340   :  { %14056 = vmatpush3.msra.mxu1 %v16989_v41 }
 0x341   :  { %14057 = vmatprep.subr.mxu1 %v16987_v39  ;;  %1672 = vperm.xlu0 %15125, %v1658_v11  }
 0x342   :  { %14058 = vmatpush3.msra.mxu1 %v16987_v39  ;;  %1558 = vperm.xlu1 %15126, %v1540_v12  }
 0x343   :  { %14059 = vmatprep.subr.mxu1 %v16985_v37 }
 0x344   :  { %14060 = vmatpush3.msra.mxu1 %v16985_v37 }
 0x345   :  { %14061 = vmatprep.subr.mxu1 %v16983_v35  ;;  %1786 = vperm.xlu0 %15125, %v1776_v13  }
 0x346   :  { %14062 = vmatpush3.msra.mxu1 %v16983_v35  ;;  %1781 = vperm.xlu1 %15126, %v1775_v16  }
 0x347   :  { %14063 = vmatprep.subr.mxu1 %v16981_v33 }
 0x348   :  { %14064 = vmatpush3.msra.mxu1 %v16981_v33 }
 0x349   :  { %14066 = vmatmul.mubr.f32.vlgmr.msra.gmra.mxu1 %v1295_v50  ;;  %14109 = vmatprep.subr.mxu1 %v17011_v2 }
 0x34a   :  { %14110 = vmatpush3.msra.mxu1 %v17011_v2  ;;  %14068 = vmatprep.mubr.f32.mxu1 %v1296_v52 }
 0x34b   :  { %14111 = vmatprep.subr.mxu1 %v17009_v63  ;;  %1791 = vperm.xlu0 %15125, %v1777_v17  }
 0x34c   :  { %14112 = vmatpush3.msra.mxu1 %v17009_v63  ;;  %1677 = vperm.xlu1 %15126, %v1659_v20  }
 0x34d   :  { %14069 = vmatmul.mubr.f32.gmra.mxu1 %v1297_v56  ;;  %14113 = vmatprep.subr.mxu1 %v17007_v61 }
 0x34e   :  { %14114 = vmatpush3.msra.mxu1 %v17007_v61  ;;  %14141 = vmatprep.mubr.f32.mxu1 %v1532_v58 }
 0x34f   :  { %14115 = vmatprep.subr.mxu1 %v17005_v59 }
 0x350   :  { %14116 = vmatpush3.msra.mxu1 %v17005_v59 }
 0x351   :  { %14117 = vmatprep.subr.mxu1 %v17003_v57 }
 0x352   :  { %14118 = vmatpush3.msra.mxu1 %v17003_v57 }
 0x353   :  { %14119 = vmatprep.subr.mxu1 %v17001_v54 }
 0x354   :  { %14120 = vmatpush3.msra.mxu1 %v17001_v54 }
 0x355   :  { %14121 = vmatprep.subr.mxu1 %v16999_v51 }
 0x356   :  { %14122 = vmatpush3.msra.mxu1 %v16999_v51 }
 0x357   :  { %14123 = vmatprep.subr.mxu1 %v16997_v49 }
 0x358   :  { %14124 = vmatpush3.msra.mxu1 %v16997_v49 }
 0x359   :  { %14125 = vmatprep.subr.mxu1 %v16995_v47 }
 0x35a   :  { %14126 = vmatpush3.msra.mxu1 %v16995_v47 }
 0x35b   :  { %14127 = vmatprep.subr.mxu1 %v16993_v45 }
 0x35c   :  { %14128 = vmatpush3.msra.mxu1 %v16993_v45 }
 0x35d   :  { %14129 = vmatprep.subr.mxu1 %v16991_v43 }
 0x35e   :  { %14130 = vmatpush3.msra.mxu1 %v16991_v43 }
 0x35f   :  { %14131 = vmatprep.subr.mxu1 %v16989_v41 }
 0x360   :  { %14132 = vmatpush3.msra.mxu1 %v16989_v41 }
 0x361   :  { %14133 = vmatprep.subr.mxu1 %v16987_v39 }
 0x362   :  { %14134 = vmatpush3.msra.mxu1 %v16987_v39 }
 0x363   :  { %14135 = vmatprep.subr.mxu1 %v16985_v37 }
 0x364   :  { %14136 = vmatpush3.msra.mxu1 %v16985_v37 }
 0x365   :  { %14137 = vmatprep.subr.mxu1 %v16983_v35 }
 0x366   :  { %14138 = vmatpush3.msra.mxu1 %v16983_v35 }
 0x367   :  { %14139 = vmatprep.subr.mxu1 %v16981_v33 }
 0x368   :  { %14140 = vmatpush3.msra.mxu1 %v16981_v33 }
 0x369   :  { %14142 = vmatmul.mubr.f32.vlgmr.msra.gmra.mxu1 %v1533_v14  ;;  %14185 = vmatprep.subr.mxu1 %v17011_v2 }
 0x36a   :  { %14186 = vmatpush3.msra.mxu1 %v17011_v2  ;;  %14144 = vmatprep.mubr.f32.mxu1 %v1534_v15  ;;  %v1778_v2 = vld [vmem:[#allocation5 + $0x118] sm:$0xff] }
 0x36b   :  { %14187 = vmatprep.subr.mxu1 %v17009_v63  ;;  %1796 = vperm.xlu1 %15126, %v1778_v2  }
 0x36c   :  { %14188 = vmatpush3.msra.mxu1 %v17009_v63 }
 0x36d   :  { %14145 = vmatmul.mubr.f32.gmra.mxu1 %v1535_v18  ;;  %14189 = vmatprep.subr.mxu1 %v17007_v61 }
 0x36e   :  { %14190 = vmatpush3.msra.mxu1 %v17007_v61  ;;  %14217 = vmatprep.mubr.f32.mxu1 %v1770_v19 }
 0x36f   :  { %14191 = vmatprep.subr.mxu1 %v17005_v59 }
 0x370   :  { %14192 = vmatpush3.msra.mxu1 %v17005_v59 }
 0x371   :  { %14193 = vmatprep.subr.mxu1 %v17003_v57 }
 0x372   :  { %14194 = vmatpush3.msra.mxu1 %v17003_v57 }
 0x373   :  { %14195 = vmatprep.subr.mxu1 %v17001_v54 }
 0x374   :  { %14196 = vmatpush3.msra.mxu1 %v17001_v54 }
 0x375   :  { %14197 = vmatprep.subr.mxu1 %v16999_v51 }
 0x376   :  { %14198 = vmatpush3.msra.mxu1 %v16999_v51 }
 0x377   :  { %14199 = vmatprep.subr.mxu1 %v16997_v49 }
 0x378   :  { %14200 = vmatpush3.msra.mxu1 %v16997_v49 }
 0x379   :  { %14201 = vmatprep.subr.mxu1 %v16995_v47 }
 0x37a   :  { %14202 = vmatpush3.msra.mxu1 %v16995_v47  ;;  %v949_v47 = vpop.permute.xlu1 %948 }
 0x37b   :  { %14203 = vmatprep.subr.mxu1 %v16993_v45 }
 0x37c   :  { %14204 = vmatpush3.msra.mxu1 %v16993_v45  ;;  %v1771_v45 = vld [vmem:[#allocation2 + $0x108] sm:$0xff] }
 0x37d   :  { %14205 = vmatprep.subr.mxu1 %v16991_v43 }
 0x37e   :  { %14206 = vmatpush3.msra.mxu1 %v16991_v43  ;;  %v1772_v43 = vld [vmem:[#allocation2 + $0x110] sm:$0xff]  ;;  %v954_v49 = vpop.permute.xlu1 %953 }
 0x37f   :  { %14207 = vmatprep.subr.mxu1 %v16989_v41 }
 0x380   :  { %14208 = vmatpush3.msra.mxu1 %v16989_v41  ;;  %v1773_v41 = vld [vmem:[#allocation2 + $0x118] sm:$0xff] }
 0x381   :  { %14209 = vmatprep.subr.mxu1 %v16987_v39 }
 0x382   :  { %14210 = vmatpush3.msra.mxu1 %v16987_v39  ;;  %v834_v39 = vpop.permute.xlu0 %833 }
 0x383   :  { %14211 = vmatprep.subr.mxu1 %v16985_v37 }
 0x384   :  { %14212 = vmatpush3.msra.mxu1 %v16985_v37  ;;  %v959_v37 = vpop.permute.xlu1 %958 }
 0x385   :  { %14213 = vmatprep.subr.mxu1 %v16983_v35 }
 0x386   :  { %14214 = vmatpush3.msra.mxu1 %v16983_v35  ;;  %v839_v51 = vpop.permute.xlu0 %838 }
 0x387   :  { %14215 = vmatprep.subr.mxu1 %v16981_v33 }
 0x388   :  { %14216 = vmatpush3.msra.mxu1 %v16981_v33  ;;  %v1073_v35 = vpop.permute.xlu1 %1072 }
 0x389   :  { %14218 = vmatmul.mubr.f32.vlgmr.msra.gmra.mxu1 %v1771_v45 }
 0x38a   :  { %14220 = vmatprep.mubr.f32.mxu1 %v1772_v43  ;;  %v17301_v54 = vpop.permute.xlu0 %843 }
 0x38c   :  { %v964_v61 = vpop.permute.xlu1 %963 }
 0x38d   :  { %14221 = vmatmul.mubr.f32.gmra.mxu1 %v1773_v41 }
 0x38e   :  { %v1068_v57 = vpop.permute.xlu0 %1067  ;;  %14227 = vmatprep.mubr.msk.bf16.mxu1 %vm1971_vm2, %v15164_v27 }
 0x390   :  { %v17303_v33 = vpop.permute.xlu1 %1186 }
 0x392   :  { %v849_v63 = vpop.permute.xlu0 %848 }
 0x394   :  { %v1083_v25 = vpop.permute.xlu1 %1082 }
 0x396   :  { %v17305_v22 = vpop.permute.xlu0 %1077 }
 0x398   :  { %v1306_v30 = vpop.permute.xlu1 %1305 }
 0x39a   :  { %v1192_v26 = vpop.permute.xlu0 %1191 }
 0x39c   :  { %v1202_v36 = vpop.permute.xlu1 %1201 }
 0x39e   :  { %v17311_v31 = vpop.permute.xlu0 %1196 }
 0x3a0   :  { %v17313_v44 = vpop.permute.xlu1 %1424 }
 0x3a2   :  { %v13915_v59 = vpop.f32.mrf.mxu1  ;;  %v1311_v38 = vpop.permute.xlu0 %1310 }
 0x3a3   :  { %v923_v15 = vadd.f32 %v13915_v59, %v839_v51 }
 0x3a4   :  { %v917_v21 = vpop.f32.mrf.mxu1  ;;  %v14029_v48 = vpop.f32.mrf.mxu0 }
 0x3a5   :  { %v918_v19 = vadd.f32 %v917_v21, %v834_v39 }
 0x3a6   :  { %v17315_v46 = vpop.permute.xlu0 %1315  ;;  %v1270_v53 = vpop.f32.mrf.mxu0 }
 0x3a7   :  { %18509 = vst [vmem:[#allocation84_spill] sm:$0xff] %v17315_v46  ;;  %v1271_v51 = vadd.f32 %v1270_v53, %v17303_v33 }
 0x3aa   :  { %v1430_v55 = vpop.permute.xlu0 %1429 }
 0x3ad   :  { %v1321_v52 = vpop.permute.xlu1 %1320 }
 0x3ae   :  { %v17317_v1 = vpop.permute.xlu0 %1434 }
 0x3af   :  { %18510 = vst [vmem:[#allocation85_spill] sm:$0xff] %v17317_v1  ;;  %v1276_v1 = vadd.f32 %v14029_v48, %v1192_v26 }
 0x3b1   :  { %v1544_v62 = vpop.permute.xlu1 %1543 }
 0x3b2   :  { %v1549_v8 = vpop.permute.xlu0 %1548 }
 0x3b5   :  { %v1440_v6 = vpop.permute.xlu1 %1439 }
 0x3b6   :  { %v1554_v14 = vpop.permute.xlu0 %1553 }
 0x3b9   :  { %v17319_v12 = vpop.permute.xlu1 %1662 }
 0x3be   :  { %v13918_v23 = vpop.f32.mrf.mxu1 }
 0x3bf   :  { %v933_v28 = vadd.f32 %v13918_v23, %v849_v63 }
 0x3c0   :  { %v927_v24 = vpop.f32.mrf.mxu1 }
 0x3c2   :  { %v14032_v58 = vpop.f32.mrf.mxu0 }
 0x3c3   :  { %v1286_v23 = vadd.f32 %v14032_v58, %v1202_v36 }
 0x3c4   :  { %v1280_v4 = vpop.f32.mrf.mxu0 }
 0x3c5   :  { %v13953_v29 = vpop.f32.mrf.mxu1 }
 0x3c6   :  { %v1038_v11 = vadd.f32 %v13953_v29, %v954_v49  ;;  %v1559_v49 = vpop.permute.xlu1 %1558 }
 0x3c7   :  { %v1032_v32 = vpop.f32.mrf.mxu1 }
 0x3c8   :  { %v14105_v5 = vpop.f32.mrf.mxu0  ;;  %v1033_v13 = vadd.f32 %v1032_v32, %v949_v47  ;;  %v1052_v2 = vmax.f32 %v923_v15, %v1038_v11  ;;  %v928_v47 = vadd.f32 %v927_v24, %v17301_v54 }
 0x3c9   :  { %v1514_v54 = vadd.f32 %v14105_v5, %v1430_v55 }
 0x3ca   :  { %v1508_v9 = vpop.f32.mrf.mxu0  ;;  %v1051_v41 = vmax.f32 %v918_v19, %v1033_v13  ;;  %v1782_v24 = vpop.permute.xlu1 %1781 }
 0x3cb   :  { %v13956_v34 = vpop.f32.mrf.mxu1 }
 0x3cc   :  { %v1048_v45 = vadd.f32 %v13956_v34, %v964_v61 }
 0x3cd   :  { %v1042_v40 = vpop.f32.mrf.mxu1 }
 0x3ce   :  { %v1043_v27 = vadd.f32 %v1042_v40, %v959_v37  ;;  %v1054_v39 = vmax.f32 %v933_v28, %v1048_v45  ;;  %v1678_v5 = vpop.permute.xlu1 %1677 }
 0x3d0   :  { %v1053_v21 = vmax.f32 %v928_v47, %v1043_v27 }
 0x3e6   :  { %v1797_v47 = vpop.permute.xlu1 %1796 }
 0x3e8   :  { %v13991_v42 = vpop.f32.mrf.mxu1 }
 0x3e9   :  { %v1157_v16 = vadd.f32 %v13991_v42, %v1073_v35  ;;  %v1281_v42 = vadd.f32 %v1280_v4, %v17311_v31 }
 0x3ea   :  { %v1151_v50 = vpop.f32.mrf.mxu1 }
 0x3eb   :  { %v14108_v17 = vpop.f32.mrf.mxu0  ;;  %v1152_v20 = vadd.f32 %v1151_v50, %v1068_v57  ;;  %v1171_v0 = vmax.f32 %v1052_v2, %v1157_v16  ;;  %v1668_v57 = vpop.permute.xlu0 %1667 }
 0x3ec   :  { %v1524_v4 = vadd.f32 %v14108_v17, %v1440_v6 }
 0x3ed   :  { %v13994_v56 = vpop.f32.mrf.mxu1  ;;  %v1518_v29 = vpop.f32.mrf.mxu0  ;;  %v1170_v32 = vmax.f32 %v1051_v41, %v1152_v20  ;;  %v1290_v37 = vmax.f32 %v1171_v0, %v1276_v1 }
 0x3ee   :  { %v1167_v46 = vadd.f32 %v13994_v56, %v1083_v25 }
 0x3ef   :  { %v1161_v60 = vpop.f32.mrf.mxu1  ;;  %v14181_v26 = vpop.f32.mrf.mxu0  ;;  %v1289_v25 = vmax.f32 %v1170_v32, %v1271_v51 }
 0x3f0   :  { %v1162_v35 = vadd.f32 %v1161_v60, %v17305_v22  ;;  %v1173_v63 = vmax.f32 %v1054_v39, %v1167_v46  ;;  %v1509_v22 = vadd.f32 %v1508_v9, %v17313_v44  ;;  %v18512_v44 = vld [vmem:[#allocation85_spill] sm:$0xff]  ;;  %v1752_v16 = vadd.f32 %v14181_v26, %v1668_v57 }
 0x3f1   :  { %v1746_v0 = vpop.f32.mrf.mxu0  ;;  %v1519_v9 = vadd.f32 %v1518_v29, %v18512_v44 }
 0x3f2   :  { %v1172_v40 = vmax.f32 %v1053_v21, %v1162_v35  ;;  %v1292_v60 = vmax.f32 %v1173_v63, %v1286_v23 }
 0x3f4   :  { %v1291_v36 = vmax.f32 %v1172_v40, %v1281_v42 }
 0x409   :  { %v14067_v3 = vpop.f32.mrf.mxu1 }
 0x40a   :  { %v1395_v59 = vadd.f32 %v14067_v3, %v1311_v38  ;;  %v18511_v38 = vld [vmem:[#allocation84_spill] sm:$0xff] }
 0x40b   :  { %v1389_v7 = vpop.f32.mrf.mxu1 }
 0x40c   :  { %v1390_v34 = vadd.f32 %v1389_v7, %v1306_v30  ;;  %v1409_v48 = vmax.f32 %v1290_v37, %v1395_v59  ;;  %v1673_v30 = vpop.permute.xlu0 %1672 }
 0x40d   :  { %v14070_v10 = vpop.f32.mrf.mxu1 }
 0x40e   :  { %v1405_v33 = vadd.f32 %v14070_v10, %v1321_v52  ;;  %v1408_v53 = vmax.f32 %v1289_v25, %v1390_v34  ;;  %v1528_v3 = vmax.f32 %v1409_v48, %v1514_v54  ;;  %v14184_v52 = vpop.f32.mrf.mxu0 }
 0x40f   :  { %v1399_v18 = vpop.f32.mrf.mxu1 }
 0x410   :  { %v1400_v56 = vadd.f32 %v1399_v18, %v18511_v38  ;;  %v1411_v1 = vmax.f32 %v1292_v60, %v1405_v33  ;;  %v1527_v55 = vmax.f32 %v1408_v53, %v1509_v22  ;;  %v1787_v18 = vpop.permute.xlu0 %1786  ;;  %v1756_v45 = vpop.f32.mrf.mxu0 }
 0x411   :  { %v1757_v32 = vadd.f32 %v1756_v45, %v1673_v30 }
 0x412   :  { %v1410_v31 = vmax.f32 %v1291_v36, %v1400_v56  ;;  %v1530_v19 = vmax.f32 %v1411_v1, %v1524_v4 }
 0x414   :  { %v1529_v20 = vmax.f32 %v1410_v31, %v1519_v9 }
 0x429   :  { %v14143_v43 = vpop.f32.mrf.mxu1 }
 0x42a   :  { %v1633_v46 = vadd.f32 %v14143_v43, %v1549_v8 }
 0x42b   :  { %v1627_v61 = vpop.f32.mrf.mxu1 }
 0x42c   :  { %v1628_v58 = vadd.f32 %v1627_v61, %v1544_v62  ;;  %v1647_v10 = vmax.f32 %v1528_v3, %v1633_v46  ;;  %v1747_v62 = vadd.f32 %v1746_v0, %v17319_v12  ;;  %v1792_v12 = vpop.permute.xlu0 %1791 }
 0x42d   :  { %v14146_v50 = vpop.f32.mrf.mxu1 }
 0x42e   :  { %v1643_v11 = vadd.f32 %v14146_v50, %v1559_v49  ;;  %v1646_v13 = vmax.f32 %v1527_v55, %v1628_v58  ;;  %v1766_v41 = vmax.f32 %v1647_v10, %v1752_v16  ;;  %v1762_v49 = vadd.f32 %v14184_v52, %v1678_v5 }
 0x42f   :  { %v1637_v7 = vpop.f32.mrf.mxu1  ;;  %v1935_v16 = vlaneseq }
 0x430   :  { %v1638_v15 = vadd.f32 %v1637_v7, %v1554_v14  ;;  %v1649_v43 = vmax.f32 %v1530_v19, %v1643_v11  ;;  %v1765_v27 = vmax.f32 %v1646_v13, %v1747_v62 }
 0x432   :  { %v1648_v17 = vmax.f32 %v1529_v20, %v1638_v15  ;;  %v1768_v39 = vmax.f32 %v1649_v43, %v1762_v49 }
 0x434   :  { %v1767_v61 = vmax.f32 %v1648_v17, %v1757_v32 }
 0x449   :  { %v14219_v8 = vpop.f32.mrf.mxu1 }
 0x44a   :  { %v1871_v2 = vadd.f32 %v14219_v8, %v1787_v18  ;;  %v17342_v18 = vshrl.u32 %v1935_v16, 7  ;;  %v1888_v8 = vld [vmem:[#allocation7] sm:$0x3] }
 0x44b   :  { %v1865_v6 = vpop.f32.mrf.mxu1 }
 0x44c   :  { %v1866_v28 = vadd.f32 %v1865_v6, %v1782_v24  ;;  %v17329_v29 = vmax.f32 %v1766_v41, %v1871_v2  ;;  %v17345_v19 = vsub.s32 0, %v17342_v18  ;;  %v17348_v62 = vsub.s32 1, %v17342_v18 }
 0x44d   :  { %v14222_v14 = vpop.f32.mrf.mxu1 }
 0x44e   :  { %v1884_v51 = vmax.f32 %v1765_v27, %v1866_v28  ;;  %v1881_v35 = vadd.f32 %v14222_v14, %v1797_v47  ;;  %v1905_v21 = vmul.f32 %v17329_v29, %v17329_v29  ;;  %v1891_v23 = vsel %vm1889_vm3, %v17329_v29, 0.0 }
 0x44f   :  { %v1875_v57 = vpop.f32.mrf.mxu1  ;;  %v1938_v20 = vrot.slane %v1888_v8, %v17345_v19  ;;  %v1946_v17 = vrot.slane %v1888_v8, %v17348_v62 }
 0x450   :  { %v1904_v59 = vmul.f32 %v1884_v51, %v1884_v51  ;;  %v1890_v34 = vsel %vm1889_vm3, %v1884_v51, 0.0  ;;  %v1887_v37 = vmax.f32 %v1768_v39, %v1881_v35  ;;  %v1876_v63 = vadd.f32 %v1875_v57, %v1792_v12 }
 0x451   :  { %v1892_v40 = vadd.f32 %v1891_v23, %v1890_v34  ;;  %v1909_v42 = vsel %vm1889_vm3, %v1905_v21, 0.0  ;;  %v15168_v23 = vld [vmem:[#allocation8 + $0x38] sm:$0xff]  }
 0x452   :  { %v1908_v26 = vsel %vm1889_vm3, %v1904_v59, 0.0  ;;  %v1886_v25 = vmax.f32 %v1767_v61, %v1876_v63  ;;  %v1907_v54 = vmul.f32 %v1887_v37, %v1887_v37  ;;  %v1895_v22 = vsel %vm1889_vm3, %v1887_v37, 0.0 }
 0x453   :  { %v1910_v33 = vadd.f32 %v1909_v42, %v1908_v26  ;;  %v15172_v26 = vld [vmem:[#allocation8 + $0x18] sm:$0xff]   ;;  %v15169_v42 = vld [vmem:[#allocation8 + $0x30] sm:$0xff]  }
 0x454   :  { %v1893_v24 = vsel %vm1889_vm3, %v1886_v25, 0.0  ;;  %v1906_v48 = vmul.f32 %v1886_v25, %v1886_v25  ;;  %v1913_v60 = vsel %vm1889_vm3, %v1907_v54, 0.0  ;;  %v15173_v54 = vld [vmem:[#allocation8 + $0x10] sm:$0xff]  }
 0x455   :  { %v1894_v50 = vadd.f32 %v1893_v24, %v1892_v40  ;;  %v15167_v40 = vld [vmem:[%s18508_s30 + $0x18] sm:$0xff]   ;;  %v15170_v24 = vld [vmem:[#allocation8 + $0x28] sm:$0xff]  }
 0x456   :  { %v1911_v53 = vsel %vm1889_vm3, %v1906_v48, 0.0  ;;  %v15171_v48 = vld [vmem:[#allocation8 + $0x20] sm:$0xff]  }
 0x457   :  { %v1896_v38 = vadd.f32 %v1895_v22, %v1894_v50  ;;  %v1912_v56 = vadd.f32 %v1911_v53, %v1910_v33  ;;  %v15174_v33 = vld [vmem:[#allocation8 + $0x8] sm:$0xff]   ;;  %v15175_v50 = vld [vmem:[#allocation8] sm:$0xff]   ;;  %v15176_v22 = vld [vmem:[#allocation8 + $0x58] sm:$0xff]  }
 0x459   :  { %v1897_v30 = vrot.slane %v1896_v38, 4  ;;  %v1914_v0 = vadd.f32 %v1913_v60, %v1912_v56 }
 0x45b   :  { %v1898_v46 = vadd.f32 %v1897_v30, %v1896_v38  ;;  %v1915_v36 = vrot.slane %v1914_v0, 4 }
 0x45d   :  { %v1899_v58 = vrot.slane %v1898_v46, 2  ;;  %v1916_v1 = vadd.f32 %v1915_v36, %v1914_v0 }
 0x45f   :  { %v1900_v3 = vadd.f32 %v1899_v58, %v1898_v46  ;;  %v1917_v7 = vrot.slane %v1916_v1, 2 }
 0x461   :  { %v1901_v31 = vrot.slane %v1900_v3, 1  ;;  %v1918_v55 = vadd.f32 %v1917_v7, %v1916_v1 }
 0x463   :  { %v1902_v4 = vadd.f32 %v1901_v31, %v1900_v3  ;;  %v1919_v5 = vrot.slane %v1918_v55, 1  ;;  %v15177_v31 = vld [vmem:[#allocation8 + $0x50] sm:$0xff]  }
 0x465   :  { %v1903_v52 = vmul.f32 0.03125, %v1902_v4  ;;  %v1920_v10 = vadd.f32 %v1919_v5, %v1918_v55  ;;  %v15178_v55 = vld [vmem:[%s18508_s30 + $0x20] sm:$0xff]   ;;  %v15179_v4 = vld [vmem:[#allocation8 + $0x48] sm:$0xff]  }
 0x466   :  { %v15180_v5 = vld [vmem:[%s18508_s30 + $0x28] sm:$0xff]  }
 0x467   :  { %v1921_v11 = vmul.f32 0.03125, %v1920_v10  ;;  %v1922_v44 = vmul.f32 %v1903_v52, %v1903_v52  ;;  %v1924_v2 = vsub.f32 %v1884_v51, %v1903_v52  ;;  %v1925_v45 = vsub.f32 %v17329_v29, %v1903_v52  ;;  %v15182_v10 = vld [vmem:[%s18508_s30 + $0x30] sm:$0xff]  }
 0x468   :  { %v1926_v43 = vsub.f32 %v1886_v25, %v1903_v52  ;;  %v1927_v41 = vsub.f32 %v1887_v37, %v1903_v52  ;;  %v15166_v25 = vld [vmem:[%s18508_s30 + $0x8] sm:$0xff]  }
 0x469   :  { %v1923_v9 = vsub.f32 %v1921_v11, %v1922_v44  ;;  %v15181_v52 = vld [vmem:[#allocation8 + $0x40] sm:$0xff]   ;;  %v15183_v11 = vld [vmem:[#allocation8 + $0x78] sm:$0xff]  }
 0x46a   :  { %v15184_v44 = vld [vmem:[%s18508_s30 + $0x38] sm:$0xff]  }
 0x46b   :  { %v1928_v13 = vmax.f32 %v1923_v9, 0.0  ;;  %v15185_v9 = vld [vmem:[#allocation8 + $0x70] sm:$0xff]  }
 0x46d   :  { %v1929_v15 = vadd.f32 1e-05, %v1928_v13  ;;  %v15186_v13 = vld [vmem:[#allocation8 + $0x68] sm:$0xff]  }
 0x46f   :  { %15936 = vrsqrt.f32 %v1929_v15  ;;  %v15187_v15 = vld [vmem:[#allocation8 + $0x60] sm:$0xff]  }
 0x47c   :  { %v15937_v6 = vpop.eup %15936 }
 0x47d   :  { %v1931_v27 = vmul.f32 %v15937_v6, %v1924_v2  ;;  %v1932_v28 = vmul.f32 %v15937_v6, %v1925_v45  ;;  %v1933_v49 = vmul.f32 %v15937_v6, %v1926_v43  ;;  %v1934_v47 = vmul.f32 %v15937_v6, %v1927_v41 }
 0x47f   :  { %v1939_v14 = vmul.f32 %v1938_v20, %v1931_v27  ;;  %v1940_v32 = vmul.f32 %v1938_v20, %v1932_v28  ;;  %v1941_v35 = vmul.f32 %v1938_v20, %v1933_v49  ;;  %v1942_v39 = vmul.f32 %v1938_v20, %v1934_v47 }
 0x481   :  { %v17353_v57 = vadd.f32 %v1946_v17, %v1939_v14  ;;  %v17355_v12 = vadd.f32 %v1946_v17, %v1940_v32  ;;  %v17357_v51 = vadd.f32 %v1946_v17, %v1941_v35  ;;  %v17359_v29 = vadd.f32 %v1946_v17, %v1942_v39  ;;  %v15188_v35 = vld [vmem:[%s18508_s30 + $0x40] sm:$0xff]  }
 0x483   :  { %v1951_v59 = vmax.f32 %v17353_v57, 0.0  ;;  %v1952_v61 = vmax.f32 %v17355_v12, 0.0  ;;  %v1953_v21 = vmax.f32 %v17357_v51, 0.0  ;;  %v1954_v34 = vmax.f32 %v17359_v29, 0.0  ;;  %v5034_v57 = vld [vmem:[%s18514_s20] sm:$0xf] }
 0x484   :  { %v5187_v12 = vld [vmem:[#allocation14] sm:$0xf]  ;;  %v15272_v51 = vld [vmem:[#allocation23 + $0x18] sm:$0xff]  }
 0x485   :  { %v17369_v37 = vpack.c.bf16 %v1954_v34, %v1953_v21  ;;  %v17375_v63 = vpack.c.bf16 %v1952_v61, %v1951_v59  ;;  %v15274_v29 = vld [vmem:[#allocation23 + $0x10] sm:$0xff]  }
 0x487   :  { %14223 = vmatprep.subr.bf16.mxu1 %v17369_v37  ;;  %14231 = vmatprep.subr.bf16.mxu0 %v17369_v37 }
 0x488   :  { %14224 = vmatpush3.bf16.msra.mxu1 %v17369_v37  ;;  %14232 = vmatpush3.bf16.msra.mxu0 %v17369_v37 }
 0x489   :  { %14225 = vmatprep.subr.bf16.mxu1 %v17375_v63  ;;  %14233 = vmatprep.subr.bf16.mxu0 %v17375_v63 }
 0x48c   :  { %14226 = vmatpush3.bf16.msra.mxu1 %v17375_v63  ;;  %14234 = vmatpush3.bf16.msra.mxu0 %v17375_v63 }
 0x48d   :  { %14239 = vmatprep.subr.bf16.mxu1 %v15168_v23  ;;  %14251 = vmatprep.subr.bf16.mxu0 %v15172_v26 }
 0x48f   :  { %14228 = vmatmul.mubr.msk.bf16.vlgmr.msra.gmra.mxu1 %vm1971_vm2, %v15166_v25  ;;  %14236 = vmatmul.mubr.msk.bf16.vlgmr.msra.gmra.mxu0 %vm1971_vm2, %v15167_v40  ;;  %v15189_v40 = vld [vmem:[#allocation8 + $0x98] sm:$0xff]  }
 0x490   :  { %14240 = vmatpush3.bf16.msra.mxu1 %v15168_v23  ;;  %14252 = vmatpush3.bf16.msra.mxu0 %v15172_v26 }
 0x491   :  { %14241 = vmatprep.subr.bf16.mxu1 %v15169_v42  ;;  %14253 = vmatprep.subr.bf16.mxu0 %v15173_v54 }
 0x494   :  { %14242 = vmatpush3.bf16.msra.mxu1 %v15169_v42  ;;  %14254 = vmatpush3.bf16.msra.mxu0 %v15173_v54 }
 0x495   :  { %14243 = vmatprep.subr.bf16.mxu1 %v15170_v24  ;;  %14255 = vmatprep.subr.bf16.mxu0 %v15174_v33 }
 0x498   :  { %14244 = vmatpush3.bf16.msra.mxu1 %v15170_v24  ;;  %14256 = vmatpush3.bf16.msra.mxu0 %v15174_v33  ;;  %v15190_v24 = vld [vmem:[%s18508_s30 + $0x48] sm:$0xff]   ;;  %v15191_v33 = vld [vmem:[#allocation8 + $0x90] sm:$0xff]  }
 0x499   :  { %14245 = vmatprep.subr.bf16.mxu1 %v15171_v48  ;;  %14257 = vmatprep.subr.bf16.mxu0 %v15175_v50 }
 0x49c   :  { %14246 = vmatpush3.bf16.msra.mxu1 %v15171_v48  ;;  %14258 = vmatpush3.bf16.msra.mxu0 %v15175_v50  ;;  %v15193_v50 = vld [vmem:[%s18508_s30 + $0x50] sm:$0xff]  }
 0x49d   :  { %14263 = vmatprep.subr.bf16.mxu1 %v17369_v37  ;;  %14271 = vmatprep.subr.bf16.mxu0 %v15176_v22 }
 0x54f   :  { %v14229_v53 = vpop.f32.mrf.mxu1  ;;  %v14237_v38 = vpop.f32.mrf.mxu0 }
 0x551   :  { %v2012_v56 = vpop.f32.mrf.mxu1  ;;  %v2092_v60 = vpop.f32.mrf.mxu0 }
 0x553   :  { %v14230_v30 = vpop.f32.mrf.mxu1  ;;  %v14238_v0 = vpop.f32.mrf.mxu0 }
 0x554   :  { %v2028_v46 = vpack.c.bf16 %v14230_v30, %v14229_v53  ;;  %v2108_v7 = vpack.c.bf16 %v14238_v0, %v14237_v38  ;;  %v15194_v53 = vld [vmem:[#allocation8 + $0xb8] sm:$0xff]   ;;  %v15198_v30 = vld [vmem:[#allocation8 + $0xa8] sm:$0xff]   ;;  %v15199_v0 = vld [vmem:[#allocation8 + $0xa0] sm:$0xff]  }
 0x555   :  { %v2015_v36 = vpop.f32.mrf.mxu1  ;;  %v2095_v58 = vpop.f32.mrf.mxu0  ;;  %v15195_v38 = vld [vmem:[%s18508_s30 + $0x58] sm:$0xff]  }
 0x556   :  { %v2027_v1 = vpack.c.bf16 %v2015_v36, %v2012_v56  ;;  %v2107_v3 = vpack.c.bf16 %v2095_v58, %v2092_v60  ;;  %v15196_v56 = vld [vmem:[#allocation8 + $0x80] sm:$0xff]   ;;  %v15197_v60 = vld [vmem:[#allocation8 + $0xb0] sm:$0xff]  }
 0x558   :  { %14247 = vmatprep.mubr.msk.bf16.mxu1 %vm1889_vm3, %v2107_v3  ;;  %14259 = vmatprep.mubr.msk.bf16.mxu0 %vm1889_vm3, %v2027_v1 }
 0x559   :  { %14248 = vmatmul.mubr.msk.bf16.vlgmr.msra.gmra.mxu1 %vm1889_vm3, %v2108_v7  ;;  %14260 = vmatmul.mubr.msk.bf16.vlgmr.msra.gmra.mxu0 %vm1889_vm3, %v2028_v46 }
 0x55a   :  { %14264 = vmatpush3.bf16.msra.mxu1 %v17369_v37  ;;  %14272 = vmatpush3.bf16.msra.mxu0 %v15176_v22  ;;  %v15192_v22 = vld [vmem:[#allocation8 + $0x88] sm:$0xff]  }
 0x55b   :  { %14265 = vmatprep.subr.bf16.mxu1 %v17375_v63  ;;  %14273 = vmatprep.subr.bf16.mxu0 %v15177_v31 }
 0x55c   :  { %14267 = vmatprep.mubr.msk.bf16.mxu1 %vm1971_vm2, %v15178_v55 }
 0x55e   :  { %14266 = vmatpush3.bf16.msra.mxu1 %v17375_v63  ;;  %14274 = vmatpush3.bf16.msra.mxu0 %v15177_v31 }
 0x55f   :  { %14283 = vmatprep.subr.bf16.mxu1 %v17369_v37  ;;  %14275 = vmatprep.subr.bf16.mxu0 %v15179_v4 }
 0x561   :  { %14268 = vmatmul.mubr.msk.bf16.vlgmr.msra.gmra.mxu1 %vm1971_vm2, %v15180_v5 }
 0x562   :  { %14276 = vmatpush3.bf16.msra.mxu0 %v15179_v4  ;;  %14284 = vmatpush3.bf16.msra.mxu1 %v17369_v37 }
 0x563   :  { %14285 = vmatprep.subr.bf16.mxu1 %v17375_v63  ;;  %14277 = vmatprep.subr.bf16.mxu0 %v15181_v52 }
 0x564   :  { %14287 = vmatprep.mubr.msk.bf16.mxu1 %vm1971_vm2, %v15182_v10 }
 0x566   :  { %14278 = vmatpush3.bf16.msra.mxu0 %v15181_v52  ;;  %14286 = vmatpush3.bf16.msra.mxu1 %v17375_v63 }
 0x567   :  { %14303 = vmatprep.subr.bf16.mxu0 %v17369_v37  ;;  %14291 = vmatprep.subr.bf16.mxu1 %v15183_v11 }
 0x569   :  { %14288 = vmatmul.mubr.msk.bf16.vlgmr.msra.gmra.mxu1 %vm1971_vm2, %v15184_v44 }
 0x56a   :  { %14292 = vmatpush3.bf16.msra.mxu1 %v15183_v11 }
 0x56b   :  { %14293 = vmatprep.subr.bf16.mxu1 %v15185_v9 }
 0x56e   :  { %14294 = vmatpush3.bf16.msra.mxu1 %v15185_v9 }
 0x56f   :  { %14295 = vmatprep.subr.bf16.mxu1 %v15186_v13 }
 0x572   :  { %14296 = vmatpush3.bf16.msra.mxu1 %v15186_v13 }
 0x573   :  { %14297 = vmatprep.subr.bf16.mxu1 %v15187_v15 }
 0x576   :  { %14298 = vmatpush3.bf16.msra.mxu1 %v15187_v15 }
 0x577   :  { %14323 = vmatprep.subr.bf16.mxu1 %v17369_v37 }
 0x619   :  { %v14249_v16 = vpop.f32.mrf.mxu1  ;;  %v14261_v8 = vpop.f32.mrf.mxu0 }
 0x61a   :  { %v17411_v20 = vadd.f32 %v14261_v8, %v14249_v16 }
 0x61b   :  { %v2182_v2 = vpop.f32.mrf.mxu1  ;;  %v2261_v45 = vpop.f32.mrf.mxu0 }
 0x61c   :  { %v17413_v43 = vadd.f32 %v2261_v45, %v2182_v2  ;;  %v15200_v2 = vld [vmem:[%s18508_s30 + $0x60] sm:$0xff]  }
 0x61d   :  { %v14250_v41 = vpop.f32.mrf.mxu1  ;;  %v14262_v6 = vpop.f32.mrf.mxu0 }
 0x61e   :  { %v17415_v17 = vadd.f32 %v14262_v6, %v14250_v41 }
 0x61f   :  { %v17417_v27 = vpop.f32.mrf.mxu1  ;;  %v17439_v46 = vpop.f32.mrf.mxu0 }
 0x621   :  { %v14269_v28 = vpop.f32.mrf.mxu1 }
 0x623   :  { %v2331_v49 = vpop.f32.mrf.mxu1 }
 0x625   :  { %v14270_v47 = vpop.f32.mrf.mxu1 }
 0x626   :  { %v2347_v39 = vpack.c.bf16 %v14270_v47, %v14269_v28  ;;  %v15202_v47 = vld [vmem:[%s18508_s30 + $0x68] sm:$0xff]  }
 0x627   :  { %v2334_v14 = vpop.f32.mrf.mxu1 }
 0x628   :  { %v2346_v32 = vpack.c.bf16 %v2334_v14, %v2331_v49 }
 0x629   :  { %v14289_v23 = vpop.f32.mrf.mxu1 }
 0x62a   :  { %14279 = vmatprep.mubr.msk.bf16.mxu0 %vm1889_vm3, %v2346_v32  ;;  %v15203_v32 = vld [vmem:[#allocation8 + $0xd0] sm:$0xff]  }
 0x62b   :  { %14280 = vmatmul.mubr.msk.bf16.vlgmr.msra.gmra.mxu0 %vm1889_vm3, %v2347_v39  ;;  %v2495_v26 = vpop.f32.mrf.mxu1  ;;  %v15204_v39 = vld [vmem:[#allocation8 + $0xc8] sm:$0xff]  }
 0x62c   :  { %14304 = vmatpush3.bf16.msra.mxu0 %v17369_v37  ;;  %14307 = vmatprep.mubr.msk.bf16.mxu0 %vm1971_vm2, %v15188_v35  ;;  %v15205_v35 = vld [vmem:[%s18508_s30 + $0x70] sm:$0xff]  }
 0x62d   :  { %14305 = vmatprep.subr.bf16.mxu0 %v17375_v63  ;;  %v14290_v25 = vpop.f32.mrf.mxu1 }
 0x62e   :  { %v2511_v42 = vpack.c.bf16 %v14290_v25, %v14289_v23  ;;  %v15206_v23 = vld [vmem:[%s18508_s30 + $0x78] sm:$0xff]  }
 0x62f   :  { %v2498_v54 = vpop.f32.mrf.mxu1  ;;  %v15208_v25 = vld [vmem:[#allocation8 + $0xf8] sm:$0xff]  }
 0x630   :  { %v2510_v48 = vpack.c.bf16 %v2498_v54, %v2495_v26  ;;  %14306 = vmatpush3.bf16.msra.mxu0 %v17375_v63  ;;  %v15207_v26 = vld [vmem:[#allocation8 + $0xc0] sm:$0xff]  }
 0x631   :  { %14311 = vmatprep.subr.bf16.mxu0 %v15189_v40  ;;  %v15211_v54 = vld [vmem:[#allocation8 + $0xe0] sm:$0xff]  }
 0x632   :  { %14299 = vmatprep.mubr.msk.bf16.mxu1 %vm1889_vm3, %v2510_v48 }
 0x633   :  { %14300 = vmatmul.mubr.msk.bf16.vlgmr.msra.gmra.mxu1 %vm1889_vm3, %v2511_v42  ;;  %14308 = vmatmul.mubr.msk.bf16.vlgmr.msra.gmra.mxu0 %vm1971_vm2, %v15190_v24  ;;  %v15210_v42 = vld [vmem:[#allocation8 + $0xe8] sm:$0xff]  }
 0x634   :  { %14312 = vmatpush3.bf16.msra.mxu0 %v15189_v40  ;;  %14324 = vmatpush3.bf16.msra.mxu1 %v17369_v37  ;;  %v15209_v40 = vld [vmem:[#allocation8 + $0xf0] sm:$0xff]  }
 0x635   :  { %14325 = vmatprep.subr.bf16.mxu1 %v17375_v63  ;;  %14313 = vmatprep.subr.bf16.mxu0 %v15191_v33 }
 0x636   :  { %14327 = vmatprep.mubr.msk.bf16.mxu1 %vm1971_vm2, %v15193_v50 }
 0x638   :  { %14314 = vmatpush3.bf16.msra.mxu0 %v15191_v33  ;;  %14326 = vmatpush3.bf16.msra.mxu1 %v17375_v63 }
 0x639   :  { %14315 = vmatprep.subr.bf16.mxu0 %v15192_v22  ;;  %14331 = vmatprep.subr.bf16.mxu1 %v15194_v53 }
 0x63b   :  { %14328 = vmatmul.mubr.msk.bf16.vlgmr.msra.gmra.mxu1 %vm1971_vm2, %v15195_v38 }
 0x63c   :  { %14316 = vmatpush3.bf16.msra.mxu0 %v15192_v22  ;;  %14332 = vmatpush3.bf16.msra.mxu1 %v15194_v53 }
 0x63d   :  { %14317 = vmatprep.subr.bf16.mxu0 %v15196_v56  ;;  %14333 = vmatprep.subr.bf16.mxu1 %v15197_v60 }
 0x640   :  { %14318 = vmatpush3.bf16.msra.mxu0 %v15196_v56  ;;  %14334 = vmatpush3.bf16.msra.mxu1 %v15197_v60 }
 0x641   :  { %14343 = vmatprep.subr.bf16.mxu0 %v17369_v37  ;;  %14335 = vmatprep.subr.bf16.mxu1 %v15198_v30 }
 0x644   :  { %14336 = vmatpush3.bf16.msra.mxu1 %v15198_v30 }
 0x645   :  { %14337 = vmatprep.subr.bf16.mxu1 %v15199_v0 }
 0x648   :  { %14338 = vmatpush3.bf16.msra.mxu1 %v15199_v0 }
 0x649   :  { %14363 = vmatprep.subr.bf16.mxu1 %v17369_v37 }
 0x6eb   :  { %v14281_v36 = vpop.f32.mrf.mxu0 }
 0x6ec   :  { %v2438_v58 = vadd.f32 %v14281_v36, %v17411_v20 }
 0x6ed   :  { %v2421_v1 = vpop.f32.mrf.mxu0 }
 0x6ee   :  { %v2436_v3 = vadd.f32 %v2421_v1, %v17413_v43 }
 0x6ef   :  { %v14282_v7 = vpop.f32.mrf.mxu0 }
 0x6f0   :  { %v2439_v31 = vadd.f32 %v14282_v7, %v17415_v17  ;;  %v15201_v17 = vld [vmem:[#allocation8 + $0xd8] sm:$0xff]  }
 0x6f1   :  { %v17444_v55 = vpop.f32.mrf.mxu0 }
 0x6f3   :  { %v14301_v4 = vpop.f32.mrf.mxu1  ;;  %v14309_v5 = vpop.f32.mrf.mxu0 }
 0x6f4   :  { %v2602_v52 = vadd.f32 %v14301_v4, %v2438_v58 }
 0x6f5   :  { %v2585_v10 = vpop.f32.mrf.mxu1  ;;  %v2659_v11 = vpop.f32.mrf.mxu0 }
 0x6f6   :  { %v2600_v44 = vadd.f32 %v2585_v10, %v2436_v3 }
 0x6f7   :  { %v14302_v9 = vpop.f32.mrf.mxu1  ;;  %v14310_v13 = vpop.f32.mrf.mxu0 }
 0x6f8   :  { %v2603_v15 = vadd.f32 %v14302_v9, %v2439_v31  ;;  %v2675_v45 = vpack.c.bf16 %v14310_v13, %v14309_v5 }
 0x6f9   :  { %v17446_v16 = vpop.f32.mrf.mxu1  ;;  %v2662_v8 = vpop.f32.mrf.mxu0 }
 0x6fa   :  { %v2674_v20 = vpack.c.bf16 %v2662_v8, %v2659_v11  ;;  %v15213_v8 = vld [vmem:[%s18508_s30 + $0x88] sm:$0xff]  }
 0x6fb   :  { %v14329_v43 = vpop.f32.mrf.mxu1 }
 0x6fc   :  { %14319 = vmatprep.mubr.msk.bf16.mxu0 %vm1889_vm3, %v2674_v20 }
 0x6fd   :  { %14320 = vmatmul.mubr.msk.bf16.vlgmr.msra.gmra.mxu0 %vm1889_vm3, %v2675_v45  ;;  %v2823_v41 = vpop.f32.mrf.mxu1  ;;  %v15216_v45 = vld [vmem:[#allocation8 + $0x108] sm:$0xff]  }
 0x6fe   :  { %14344 = vmatpush3.bf16.msra.mxu0 %v17369_v37  ;;  %14347 = vmatprep.mubr.msk.bf16.mxu0 %vm1971_vm2, %v15200_v2  ;;  %v15214_v2 = vld [vmem:[#allocation8 + $0x118] sm:$0xff]  }
 0x6ff   :  { %14345 = vmatprep.subr.bf16.mxu0 %v17375_v63  ;;  %v14330_v6 = vpop.f32.mrf.mxu1 }
 0x700   :  { %v2839_v28 = vpack.c.bf16 %v14330_v6, %v14329_v43  ;;  %v15217_v43 = vld [vmem:[#allocation8 + $0x100] sm:$0xff]  }
 0x701   :  { %v2826_v49 = vpop.f32.mrf.mxu1 }
 0x702   :  { %v2838_v14 = vpack.c.bf16 %v2826_v49, %v2823_v41  ;;  %14346 = vmatpush3.bf16.msra.mxu0 %v17375_v63 }
 0x703   :  { %14351 = vmatprep.subr.bf16.mxu0 %v15201_v17 }
 0x704   :  { %14339 = vmatprep.mubr.msk.bf16.mxu1 %vm1889_vm3, %v2838_v14 }
 0x705   :  { %14340 = vmatmul.mubr.msk.bf16.vlgmr.msra.gmra.mxu1 %vm1889_vm3, %v2839_v28  ;;  %14348 = vmatmul.mubr.msk.bf16.vlgmr.msra.gmra.mxu0 %vm1971_vm2, %v15202_v47 }
 0x706   :  { %14352 = vmatpush3.bf16.msra.mxu0 %v15201_v17  ;;  %14364 = vmatpush3.bf16.msra.mxu1 %v17369_v37 }
 0x707   :  { %14365 = vmatprep.subr.bf16.mxu1 %v17375_v63  ;;  %14353 = vmatprep.subr.bf16.mxu0 %v15203_v32 }
 0x708   :  { %14367 = vmatprep.mubr.msk.bf16.mxu1 %vm1971_vm2, %v15205_v35 }
 0x70a   :  { %14354 = vmatpush3.bf16.msra.mxu0 %v15203_v32  ;;  %14366 = vmatpush3.bf16.msra.mxu1 %v17375_v63 }
 0x70b   :  { %14355 = vmatprep.subr.bf16.mxu0 %v15204_v39  ;;  %14371 = vmatprep.subr.bf16.mxu1 %v15208_v25 }
 0x70d   :  { %14368 = vmatmul.mubr.msk.bf16.vlgmr.msra.gmra.mxu1 %vm1971_vm2, %v15206_v23 }
 0x70e   :  { %14356 = vmatpush3.bf16.msra.mxu0 %v15204_v39  ;;  %14372 = vmatpush3.bf16.msra.mxu1 %v15208_v25  ;;  %v15218_v25 = vld [vmem:[#allocation11 + $0x38] sm:$0xff]  }
 0x70f   :  { %14357 = vmatprep.subr.bf16.mxu0 %v15207_v26  ;;  %14373 = vmatprep.subr.bf16.mxu1 %v15209_v40 }
 0x712   :  { %14358 = vmatpush3.bf16.msra.mxu0 %v15207_v26  ;;  %14374 = vmatpush3.bf16.msra.mxu1 %v15209_v40  ;;  %v15219_v40 = vld [vmem:[#allocation11 + $0x30] sm:$0xff]  }
 0x713   :  { %14383 = vmatprep.subr.bf16.mxu0 %v17369_v37  ;;  %14375 = vmatprep.subr.bf16.mxu1 %v15210_v42 }
 0x716   :  { %14376 = vmatpush3.bf16.msra.mxu1 %v15210_v42  ;;  %v15220_v42 = vld [vmem:[#allocation11 + $0x28] sm:$0xff]  }
 0x717   :  { %14377 = vmatprep.subr.bf16.mxu1 %v15211_v54 }
 0x71a   :  { %14378 = vmatpush3.bf16.msra.mxu1 %v15211_v54  ;;  %v15221_v54 = vld [vmem:[#allocation11 + $0x20] sm:$0xff]  }
 0x7bd   :  { %v14321_v24 = vpop.f32.mrf.mxu0 }
 0x7be   :  { %v2766_v48 = vadd.f32 %v14321_v24, %v2602_v52  ;;  %v15212_v52 = vld [vmem:[%s18508_s30 + $0x80] sm:$0xff]  }
 0x7bf   :  { %v2749_v33 = vpop.f32.mrf.mxu0  ;;  %v15222_v24 = vld [vmem:[%s18513_s5] sm:$0xff]  }
 0x7c0   :  { %v2764_v50 = vadd.f32 %v2749_v33, %v2600_v44  ;;  %v2265_v33 = vadd.f32 %v17439_v46, %v17417_v27 }
 0x7c1   :  { %v14322_v22 = vpop.f32.mrf.mxu0 }
 0x7c2   :  { %v2767_v53 = vadd.f32 %v14322_v22, %v2603_v15  ;;  %v2437_v22 = vadd.f32 %v17444_v55, %v2265_v33 }
 0x7c3   :  { %v17467_v38 = vpop.f32.mrf.mxu0 }
 0x7c5   :  { %v14341_v56 = vpop.f32.mrf.mxu1  ;;  %v14349_v60 = vpop.f32.mrf.mxu0 }
 0x7c6   :  { %v2930_v30 = vadd.f32 %v14341_v56, %v2766_v48 }
 0x7c7   :  { %v2913_v0 = vpop.f32.mrf.mxu1  ;;  %v2987_v36 = vpop.f32.mrf.mxu0 }
 0x7c8   :  { %v2928_v58 = vadd.f32 %v2913_v0, %v2764_v50 }
 0x7c9   :  { %v14342_v1 = vpop.f32.mrf.mxu1  ;;  %v14350_v3 = vpop.f32.mrf.mxu0 }
 0x7ca   :  { %v2931_v7 = vadd.f32 %v14342_v1, %v2767_v53  ;;  %v3003_v10 = vpack.c.bf16 %v14350_v3, %v14349_v60  ;;  %v2601_v53 = vadd.f32 %v17446_v16, %v2437_v22 }
 0x7cb   :  { %v17469_v31 = vpop.f32.mrf.mxu1  ;;  %v2990_v4 = vpop.f32.mrf.mxu0 }
 0x7cc   :  { %v3002_v5 = vpack.c.bf16 %v2990_v4, %v2987_v36  ;;  %v2765_v60 = vadd.f32 %v17467_v38, %v2601_v53 }
 0x7cd   :  { %v14369_v11 = vpop.f32.mrf.mxu1 }
 0x7ce   :  { %14359 = vmatprep.mubr.msk.bf16.mxu0 %vm1889_vm3, %v3002_v5  ;;  %v2929_v0 = vadd.f32 %v17469_v31, %v2765_v60 }
 0x7cf   :  { %14360 = vmatmul.mubr.msk.bf16.vlgmr.msra.gmra.mxu0 %vm1889_vm3, %v3003_v10  ;;  %v3151_v44 = vpop.f32.mrf.mxu1 }
 0x7d0   :  { %14384 = vmatpush3.bf16.msra.mxu0 %v17369_v37  ;;  %14387 = vmatprep.mubr.msk.bf16.mxu0 %vm1971_vm2, %v15212_v52  ;;  %v15215_v37 = vld [vmem:[#allocation8 + $0x110] sm:$0xff]  }
 0x7d1   :  { %14385 = vmatprep.subr.bf16.mxu0 %v17375_v63  ;;  %v14370_v9 = vpop.f32.mrf.mxu1 }
 0x7d2   :  { %v3167_v13 = vpack.c.bf16 %v14370_v9, %v14369_v11 }
 0x7d3   :  { %v3154_v15 = vpop.f32.mrf.mxu1 }
 0x7d4   :  { %v3166_v20 = vpack.c.bf16 %v3154_v15, %v3151_v44  ;;  %14386 = vmatpush3.bf16.msra.mxu0 %v17375_v63 }
 0x7d5   :  { %14391 = vmatprep.subr.bf16.mxu0 %v15214_v2 }
 0x7d6   :  { %14379 = vmatprep.mubr.msk.bf16.mxu1 %vm1889_vm3, %v3166_v20 }
 0x7d7   :  { %14380 = vmatmul.mubr.msk.bf16.vlgmr.msra.gmra.mxu1 %vm1889_vm3, %v3167_v13  ;;  %14388 = vmatmul.mubr.msk.bf16.vlgmr.msra.gmra.mxu0 %vm1971_vm2, %v15213_v8 }
 0x7d8   :  { %14392 = vmatpush3.bf16.msra.mxu0 %v15214_v2  ;;  %14407 = vmatprep.mubr.msk.bf16.mxu1 %vm1971_vm2, %v15222_v24 }
 0x7d9   :  { %14393 = vmatprep.subr.bf16.mxu0 %v15215_v37 }
 0x7dc   :  { %14394 = vmatpush3.bf16.msra.mxu0 %v15215_v37 }
 0x7dd   :  { %14395 = vmatprep.subr.bf16.mxu0 %v15216_v45 }
 0x7e0   :  { %14396 = vmatpush3.bf16.msra.mxu0 %v15216_v45 }
 0x7e1   :  { %14397 = vmatprep.subr.bf16.mxu0 %v15217_v43 }
 0x7e4   :  { %14398 = vmatpush3.bf16.msra.mxu0 %v15217_v43 }
 0x7e5   :  { %14419 = vmatprep.subr.bf16.mxu0 %v15218_v25 }
 0x88f   :  { %v14361_v41 = vpop.f32.mrf.mxu0 }
 0x890   :  { %v3094_v63 = vadd.f32 %v14361_v41, %v2930_v30 }
 0x891   :  { %v3077_v6 = vpop.f32.mrf.mxu0 }
 0x892   :  { %v3092_v17 = vadd.f32 %v3077_v6, %v2928_v58 }
 0x893   :  { %v14362_v28 = vpop.f32.mrf.mxu0 }
 0x894   :  { %v3095_v49 = vadd.f32 %v14362_v28, %v2931_v7 }
 0x895   :  { %v3080_v47 = vpop.f32.mrf.mxu0 }
 0x896   :  { %v3093_v3 = vadd.f32 %v3080_v47, %v2929_v0  ;;  %v3424_v0 = vld [vmem:[#allocation10] sm:$0x3] }
 0x897   :  { %v14389_v14 = vpop.f32.mrf.mxu0  ;;  %v14381_v48 = vpop.f32.mrf.mxu1 }
 0x898   :  { %v3258_v7 = vadd.f32 %v14381_v48, %v3094_v63 }
 0x899   :  { %v3315_v32 = vpop.f32.mrf.mxu0  ;;  %v3241_v50 = vpop.f32.mrf.mxu1 }
 0x89a   :  { %v3256_v36 = vadd.f32 %v3241_v50, %v3092_v17 }
 0x89b   :  { %v14390_v35 = vpop.f32.mrf.mxu0  ;;  %v14382_v56 = vpop.f32.mrf.mxu1 }
 0x89c   :  { %v3331_v26 = vpack.c.bf16 %v14390_v35, %v14389_v14  ;;  %v3259_v52 = vadd.f32 %v14382_v56, %v3095_v49 }
 0x89d   :  { %v3318_v39 = vpop.f32.mrf.mxu0  ;;  %v3244_v58 = vpop.f32.mrf.mxu1 }
 0x89e   :  { %v3330_v23 = vpack.c.bf16 %v3318_v39, %v3315_v32  ;;  %v3257_v27 = vadd.f32 %v3244_v58, %v3093_v3  ;;  %v3473_v58 = vrot.slane %v3424_v0, %v17345_v19  ;;  %v3481_v3 = vrot.slane %v3424_v0, %v17348_v62  ;;  %v15241_v0 = vld [vmem:[#allocation11 + $0x60] sm:$0xff]  }
 0x8a0   :  { %14399 = vmatprep.mubr.msk.bf16.mxu0 %vm1889_vm3, %v3330_v23 }
 0x8a1   :  { %14400 = vmatmul.mubr.msk.bf16.vlgmr.msra.gmra.mxu0 %vm1889_vm3, %v3331_v26 }
 0x8a2   :  { %14420 = vmatpush3.bf16.msra.mxu0 %v15218_v25 }
 0x8a3   :  { %14421 = vmatprep.subr.bf16.mxu0 %v15219_v40 }
 0x8a6   :  { %14422 = vmatpush3.bf16.msra.mxu0 %v15219_v40 }
 0x8a7   :  { %14423 = vmatprep.subr.bf16.mxu0 %v15220_v42 }
 0x8aa   :  { %14424 = vmatpush3.bf16.msra.mxu0 %v15220_v42 }
 0x8ab   :  { %14425 = vmatprep.subr.bf16.mxu0 %v15221_v54 }
 0x8ae   :  { %14426 = vmatpush3.bf16.msra.mxu0 %v15221_v54 }
 0x961   :  { %v14401_v30 = vpop.f32.mrf.mxu0 }
 0x962   :  { %v3422_v46 = vadd.f32 %v14401_v30, %v3258_v7 }
 0x963   :  { %v3405_v1 = vpop.f32.mrf.mxu0 }
 0x964   :  { %v3420_v4 = vadd.f32 %v3405_v1, %v3256_v36  ;;  %v3441_v44 = vmul.f32 %v3422_v46, %v3422_v46  ;;  %v3428_v15 = vsel %vm1889_vm3, %v3422_v46, 0.0 }
 0x965   :  { %v14402_v5 = vpop.f32.mrf.mxu0 }
 0x966   :  { %v3439_v55 = vmul.f32 %v3420_v4, %v3420_v4  ;;  %v3423_v11 = vadd.f32 %v14402_v5, %v3259_v52  ;;  %v3425_v38 = vsel %vm1889_vm3, %v3420_v4, 0.0  ;;  %v3446_v43 = vsel %vm1889_vm3, %v3441_v44, 0.0 }
 0x967   :  { %v3408_v10 = vpop.f32.mrf.mxu0 }
 0x968   :  { %v3421_v16 = vadd.f32 %v3408_v10, %v3257_v27  ;;  %v3443_v8 = vsel %vm1889_vm3, %v3439_v55, 0.0  ;;  %v3442_v20 = vmul.f32 %v3423_v11, %v3423_v11  ;;  %v3430_v41 = vsel %vm1889_vm3, %v3423_v11, 0.0 }
 0x96a   :  { %v3426_v9 = vsel %vm1889_vm3, %v3421_v16, 0.0  ;;  %v3440_v31 = vmul.f32 %v3421_v16, %v3421_v16  ;;  %v3448_v17 = vsel %vm1889_vm3, %v3442_v20, 0.0 }
 0x96b   :  { %v3427_v13 = vadd.f32 %v3426_v9, %v3425_v38 }
 0x96c   :  { %v3444_v2 = vsel %vm1889_vm3, %v3440_v31, 0.0 }
 0x96d   :  { %v3429_v37 = vadd.f32 %v3428_v15, %v3427_v13  ;;  %v3445_v45 = vadd.f32 %v3444_v2, %v3443_v8  ;;  %v15223_v2 = vld [vmem:[%s18513_s5 + $0x8] sm:$0xff]  }
 0x96f   :  { %v3431_v63 = vadd.f32 %v3430_v41, %v3429_v37  ;;  %v3447_v6 = vadd.f32 %v3446_v43, %v3445_v45  ;;  %v15224_v37 = vld [vmem:[%s18513_s5 + $0x10] sm:$0xff]   ;;  %v15226_v45 = vld [vmem:[#allocation11 + $0x18] sm:$0xff]  }
 0x970   :  { %v15225_v43 = vld [vmem:[%s18513_s5 + $0x18] sm:$0xff]  }
 0x971   :  { %v3432_v28 = vrot.slane %v3431_v63, 4  ;;  %v3449_v49 = vadd.f32 %v3448_v17, %v3447_v6  ;;  %v15227_v41 = vld [vmem:[#allocation11 + $0x10] sm:$0xff]   ;;  %v15229_v6 = vld [vmem:[#allocation11] sm:$0xff]   ;;  %v15230_v17 = vld [vmem:[#allocation11 + $0x58] sm:$0xff]  }
 0x973   :  { %v3433_v47 = vadd.f32 %v3432_v28, %v3431_v63  ;;  %v3450_v14 = vrot.slane %v3449_v49, 4  ;;  %v15228_v63 = vld [vmem:[#allocation11 + $0x8] sm:$0xff]  }
 0x975   :  { %v3434_v32 = vrot.slane %v3433_v47, 2  ;;  %v3451_v35 = vadd.f32 %v3450_v14, %v3449_v49 }
 0x977   :  { %v3435_v39 = vadd.f32 %v3434_v32, %v3433_v47  ;;  %v3452_v23 = vrot.slane %v3451_v35, 2 }
 0x979   :  { %v3436_v26 = vrot.slane %v3435_v39, 1  ;;  %v3453_v25 = vadd.f32 %v3452_v23, %v3451_v35  ;;  %v15231_v23 = vld [vmem:[#allocation11 + $0x50] sm:$0xff]  }
 0x97b   :  { %v3437_v40 = vadd.f32 %v3436_v26, %v3435_v39  ;;  %v3454_v42 = vrot.slane %v3453_v25, 1 }
 0x97d   :  { %v3438_v54 = vmul.f32 0.03125, %v3437_v40  ;;  %v3455_v24 = vadd.f32 %v3454_v42, %v3453_v25  ;;  %v15232_v40 = vld [vmem:[#allocation11 + $0x48] sm:$0xff]  }
 0x97f   :  { %v3456_v48 = vmul.f32 0.03125, %v3455_v24  ;;  %v3457_v33 = vmul.f32 %v3438_v54, %v3438_v54  ;;  %v3459_v50 = vsub.f32 %v3420_v4, %v3438_v54  ;;  %v3461_v22 = vsub.f32 %v3422_v46, %v3438_v54 }
 0x980   :  { %v3462_v53 = vsub.f32 %v3423_v11, %v3438_v54  ;;  %v3460_v36 = vsub.f32 %v3421_v16, %v3438_v54 }
 0x981   :  { %v3458_v56 = vsub.f32 %v3456_v48, %v3457_v33  ;;  %v15233_v48 = vld [vmem:[#allocation11 + $0x40] sm:$0xff]  }
 0x982   :  { %v15234_v33 = vld [vmem:[%s18513_s5 + $0x20] sm:$0xff]  }
 0x983   :  { %v3463_v60 = vmax.f32 %v3458_v56, 0.0  ;;  %v15238_v56 = vld [vmem:[%s18513_s5 + $0x38] sm:$0xff]  }
 0x985   :  { %v3464_v30 = vadd.f32 1e-05, %v3463_v60  ;;  %v15239_v60 = vld [vmem:[#allocation11 + $0x70] sm:$0xff]  }
 0x987   :  { %15938 = vrsqrt.f32 %v3464_v30  ;;  %v15240_v30 = vld [vmem:[#allocation11 + $0x68] sm:$0xff]  }
 0x994   :  { %v15939_v1 = vpop.eup %15938 }
 0x995   :  { %v3466_v7 = vmul.f32 %v15939_v1, %v3459_v50  ;;  %v3467_v5 = vmul.f32 %v15939_v1, %v3460_v36  ;;  %v3468_v52 = vmul.f32 %v15939_v1, %v3461_v22  ;;  %v3469_v27 = vmul.f32 %v15939_v1, %v3462_v53  ;;  %v15235_v50 = vld [vmem:[%s18513_s5 + $0x28] sm:$0xff]   ;;  %v15236_v22 = vld [vmem:[%s18513_s5 + $0x30] sm:$0xff]   ;;  %v15237_v53 = vld [vmem:[#allocation11 + $0x78] sm:$0xff]  }
 0x997   :  { %v3474_v10 = vmul.f32 %v3473_v58, %v3466_v7  ;;  %v3475_v55 = vmul.f32 %v3473_v58, %v3467_v5  ;;  %v3476_v4 = vmul.f32 %v3473_v58, %v3468_v52  ;;  %v3477_v46 = vmul.f32 %v3473_v58, %v3469_v27 }
 0x999   :  { %v3482_v11 = vadd.f32 %v3481_v3, %v3474_v10  ;;  %v3483_v44 = vadd.f32 %v3481_v3, %v3475_v55  ;;  %v3484_v38 = vadd.f32 %v3481_v3, %v3476_v4  ;;  %v3485_v9 = vadd.f32 %v3481_v3, %v3477_v46 }
 0x99b   :  { %v3486_v16 = vmax.f32 %v3482_v11, 0.0  ;;  %v3487_v31 = vmax.f32 %v3483_v44, 0.0  ;;  %v3488_v13 = vmax.f32 %v3484_v38, 0.0  ;;  %v3489_v15 = vmax.f32 %v3485_v9, 0.0  ;;  %v15242_v9 = vld [vmem:[%s18513_s5 + $0x40] sm:$0xff]  }
 0x99d   :  { %v17502_v8 = vpack.c.bf16 %v3487_v31, %v3486_v16  ;;  %v17504_v20 = vpack.c.bf16 %v3489_v15, %v3488_v13 }
 0x99f   :  { %14403 = vmatprep.subr.bf16.mxu1 %v17504_v20  ;;  %14443 = vmatprep.subr.bf16.mxu0 %v17504_v20 }
 0x9a0   :  { %14404 = vmatpush3.bf16.msra.mxu1 %v17504_v20 }
 0x9a1   :  { %14405 = vmatprep.subr.bf16.mxu1 %v17502_v8 }
 0x9a4   :  { %14406 = vmatpush3.bf16.msra.mxu1 %v17502_v8 }
 0x9a5   :  { %14411 = vmatprep.subr.bf16.mxu1 %v17504_v20 }
 0x9a7   :  { %14408 = vmatmul.mubr.msk.bf16.vlgmr.msra.gmra.mxu1 %vm1971_vm2, %v15223_v2  ;;  %v15243_v2 = vld [vmem:[#allocation11 + $0x98] sm:$0xff]  }
 0x9a8   :  { %14412 = vmatpush3.bf16.msra.mxu1 %v17504_v20  ;;  %14415 = vmatprep.mubr.msk.bf16.mxu1 %vm1971_vm2, %v15224_v37 }
 0x9a9   :  { %14413 = vmatprep.subr.bf16.mxu1 %v17502_v8 }
 0x9ac   :  { %14414 = vmatpush3.bf16.msra.mxu1 %v17502_v8 }
 0x9ad   :  { %14431 = vmatprep.subr.bf16.mxu1 %v15226_v45 }
 0x9af   :  { %14416 = vmatmul.mubr.msk.bf16.vlgmr.msra.gmra.mxu1 %vm1971_vm2, %v15225_v43  ;;  %v15244_v43 = vld [vmem:[%s18513_s5 + $0x48] sm:$0xff]  }
 0x9b0   :  { %14432 = vmatpush3.bf16.msra.mxu1 %v15226_v45 }
 0x9b1   :  { %14433 = vmatprep.subr.bf16.mxu1 %v15227_v41 }
 0x9b4   :  { %14434 = vmatpush3.bf16.msra.mxu1 %v15227_v41 }
 0x9b5   :  { %14435 = vmatprep.subr.bf16.mxu1 %v15228_v63 }
 0x9b8   :  { %14436 = vmatpush3.bf16.msra.mxu1 %v15228_v63  ;;  %v15245_v63 = vld [vmem:[#allocation11 + $0x90] sm:$0xff]  }
 0x9b9   :  { %14437 = vmatprep.subr.bf16.mxu1 %v15229_v6 }
 0x9bc   :  { %14438 = vmatpush3.bf16.msra.mxu1 %v15229_v6  ;;  %v15247_v6 = vld [vmem:[%s18513_s5 + $0x50] sm:$0xff]  }
 0x9bd   :  { %14451 = vmatprep.subr.bf16.mxu1 %v15230_v17 }
 0xa67   :  { %v14409_v28 = vpop.f32.mrf.mxu1 }
 0xa69   :  { %v3546_v49 = vpop.f32.mrf.mxu1 }
 0xa6b   :  { %v14410_v47 = vpop.f32.mrf.mxu1 }
 0xa6c   :  { %v3562_v35 = vpack.c.bf16 %v14410_v47, %v14409_v28  ;;  %v15248_v28 = vld [vmem:[#allocation11 + $0xb8] sm:$0xff]   ;;  %v15250_v47 = vld [vmem:[#allocation11 + $0x80] sm:$0xff]  }
 0xa6d   :  { %v3549_v14 = vpop.f32.mrf.mxu1 }
 0xa6e   :  { %v3561_v32 = vpack.c.bf16 %v3549_v14, %v3546_v49  ;;  %v15249_v49 = vld [vmem:[%s18513_s5 + $0x58] sm:$0xff]  }
 0xa6f   :  { %v14417_v39 = vpop.f32.mrf.mxu1  ;;  %v15251_v14 = vld [vmem:[#allocation11 + $0xb0] sm:$0xff]  }
 0xa70   :  { %14439 = vmatprep.mubr.msk.bf16.mxu1 %vm1889_vm3, %v3561_v32  ;;  %v15252_v32 = vld [vmem:[#allocation11 + $0xa8] sm:$0xff]  }
 0xa71   :  { %v3626_v26 = vpop.f32.mrf.mxu1  ;;  %14440 = vmatmul.mubr.msk.bf16.vlgmr.msra.gmra.mxu1 %vm1889_vm3, %v3562_v35  ;;  %v15253_v35 = vld [vmem:[#allocation11 + $0xa0] sm:$0xff]  }
 0xa72   :  { %14452 = vmatpush3.bf16.msra.mxu1 %v15230_v17  ;;  %v15246_v17 = vld [vmem:[#allocation11 + $0x88] sm:$0xff]  }
 0xa73   :  { %v14418_v25 = vpop.f32.mrf.mxu1  ;;  %14453 = vmatprep.subr.bf16.mxu1 %v15231_v23 }
 0xa74   :  { %v3642_v24 = vpack.c.bf16 %v14418_v25, %v14417_v39 }
 0xa75   :  { %v3629_v42 = vpop.f32.mrf.mxu1 }
 0xa76   :  { %v3641_v54 = vpack.c.bf16 %v3629_v42, %v3626_v26  ;;  %14454 = vmatpush3.bf16.msra.mxu1 %v15231_v23 }
 0xa77   :  { %14455 = vmatprep.subr.bf16.mxu1 %v15232_v40 }
 0xa78   :  { %14427 = vmatprep.mubr.msk.bf16.mxu0 %vm1889_vm3, %v3641_v54 }
 0xa79   :  { %14428 = vmatmul.mubr.msk.bf16.vlgmr.msra.gmra.mxu0 %vm1889_vm3, %v3642_v24 }
 0xa7a   :  { %14444 = vmatpush3.bf16.msra.mxu0 %v17504_v20  ;;  %14456 = vmatpush3.bf16.msra.mxu1 %v15232_v40 }
 0xa7b   :  { %14445 = vmatprep.subr.bf16.mxu0 %v17502_v8  ;;  %14457 = vmatprep.subr.bf16.mxu1 %v15233_v48 }
 0xa7c   :  { %14447 = vmatprep.mubr.msk.bf16.mxu0 %vm1971_vm2, %v15234_v33 }
 0xa7e   :  { %14446 = vmatpush3.bf16.msra.mxu0 %v17502_v8  ;;  %14458 = vmatpush3.bf16.msra.mxu1 %v15233_v48 }
 0xa7f   :  { %14463 = vmatprep.subr.bf16.mxu0 %v17504_v20  ;;  %14483 = vmatprep.subr.bf16.mxu1 %v17504_v20 }
 0xa81   :  { %14448 = vmatmul.mubr.msk.bf16.vlgmr.msra.gmra.mxu0 %vm1971_vm2, %v15235_v50 }
 0xa82   :  { %14464 = vmatpush3.bf16.msra.mxu0 %v17504_v20  ;;  %14467 = vmatprep.mubr.msk.bf16.mxu0 %vm1971_vm2, %v15236_v22 }
 0xa83   :  { %14465 = vmatprep.subr.bf16.mxu0 %v17502_v8 }
 0xa86   :  { %14466 = vmatpush3.bf16.msra.mxu0 %v17502_v8 }
 0xa87   :  { %14471 = vmatprep.subr.bf16.mxu0 %v15237_v53 }
 0xa89   :  { %14468 = vmatmul.mubr.msk.bf16.vlgmr.msra.gmra.mxu0 %vm1971_vm2, %v15238_v56 }
 0xa8a   :  { %14472 = vmatpush3.bf16.msra.mxu0 %v15237_v53 }
 0xa8b   :  { %14473 = vmatprep.subr.bf16.mxu0 %v15239_v60 }
 0xa8e   :  { %14474 = vmatpush3.bf16.msra.mxu0 %v15239_v60 }
 0xa8f   :  { %14475 = vmatprep.subr.bf16.mxu0 %v15240_v30 }
 0xa92   :  { %14476 = vmatpush3.bf16.msra.mxu0 %v15240_v30 }
 0xa93   :  { %14477 = vmatprep.subr.bf16.mxu0 %v15241_v0 }
 0xa96   :  { %14478 = vmatpush3.bf16.msra.mxu0 %v15241_v0 }
 0xa97   :  { %14503 = vmatprep.subr.bf16.mxu0 %v17504_v20 }
 0xb31   :  { %v14441_v36 = vpop.f32.mrf.mxu1 }
 0xb33   :  { %v3795_v58 = vpop.f32.mrf.mxu1 }
 0xb35   :  { %v14442_v52 = vpop.f32.mrf.mxu1 }
 0xb37   :  { %v17570_v39 = vpop.f32.mrf.mxu1 }
 0xb39   :  { %v14429_v1 = vpop.f32.mrf.mxu0 }
 0xb3a   :  { %v17542_v3 = vadd.f32 %v14441_v36, %v14429_v1 }
 0xb3b   :  { %v3716_v7 = vpop.f32.mrf.mxu0 }
 0xb3c   :  { %v17544_v5 = vadd.f32 %v3795_v58, %v3716_v7 }
 0xb3d   :  { %v14430_v27 = vpop.f32.mrf.mxu0 }
 0xb3e   :  { %v17546_v10 = vadd.f32 %v14442_v52, %v14430_v27 }
 0xb3f   :  { %v17548_v55 = vpop.f32.mrf.mxu0 }
 0xb41   :  { %v14449_v4 = vpop.f32.mrf.mxu0 }
 0xb43   :  { %v3865_v46 = vpop.f32.mrf.mxu0 }
 0xb45   :  { %v14450_v11 = vpop.f32.mrf.mxu0 }
 0xb46   :  { %v3881_v16 = vpack.c.bf16 %v14450_v11, %v14449_v4  ;;  %v15256_v11 = vld [vmem:[%s18513_s5 + $0x68] sm:$0xff]  }
 0xb47   :  { %v3868_v44 = vpop.f32.mrf.mxu0 }
 0xb48   :  { %v3880_v38 = vpack.c.bf16 %v3868_v44, %v3865_v46 }
 0xb49   :  { %v14469_v31 = vpop.f32.mrf.mxu0 }
 0xb4a   :  { %14459 = vmatprep.mubr.msk.bf16.mxu1 %vm1889_vm3, %v3880_v38  ;;  %v15257_v38 = vld [vmem:[#allocation11 + $0xd0] sm:$0xff]  }
 0xb4b   :  { %14460 = vmatmul.mubr.msk.bf16.vlgmr.msra.gmra.mxu1 %vm1889_vm3, %v3881_v16  ;;  %v4029_v13 = vpop.f32.mrf.mxu0  ;;  %v15258_v16 = vld [vmem:[#allocation11 + $0xc8] sm:$0xff]  }
 0xb4c   :  { %14484 = vmatpush3.bf16.msra.mxu1 %v17504_v20  ;;  %14487 = vmatprep.mubr.msk.bf16.mxu1 %vm1971_vm2, %v15242_v9  ;;  %v15259_v9 = vld [vmem:[%s18513_s5 + $0x70] sm:$0xff]  }
 0xb4d   :  { %14485 = vmatprep.subr.bf16.mxu1 %v17502_v8  ;;  %v14470_v15 = vpop.f32.mrf.mxu0 }
 0xb4e   :  { %v4045_v37 = vpack.c.bf16 %v14470_v15, %v14469_v31  ;;  %v15260_v31 = vld [vmem:[%s18513_s5 + $0x78] sm:$0xff]  }
 0xb4f   :  { %v4032_v45 = vpop.f32.mrf.mxu0  ;;  %v15262_v15 = vld [vmem:[#allocation11 + $0xf8] sm:$0xff]  }
 0xb50   :  { %v4044_v41 = vpack.c.bf16 %v4032_v45, %v4029_v13  ;;  %14486 = vmatpush3.bf16.msra.mxu1 %v17502_v8  ;;  %v15261_v13 = vld [vmem:[#allocation11 + $0xc0] sm:$0xff]  }
 0xb51   :  { %14491 = vmatprep.subr.bf16.mxu1 %v15243_v2  ;;  %v15265_v45 = vld [vmem:[#allocation11 + $0xe0] sm:$0xff]  }
 0xb52   :  { %14479 = vmatprep.mubr.msk.bf16.mxu0 %vm1889_vm3, %v4044_v41 }
 0xb53   :  { %14480 = vmatmul.mubr.msk.bf16.vlgmr.msra.gmra.mxu0 %vm1889_vm3, %v4045_v37  ;;  %14488 = vmatmul.mubr.msk.bf16.vlgmr.msra.gmra.mxu1 %vm1971_vm2, %v15244_v43  ;;  %v15264_v37 = vld [vmem:[#allocation11 + $0xe8] sm:$0xff]  }
 0xb54   :  { %14492 = vmatpush3.bf16.msra.mxu1 %v15243_v2  ;;  %14504 = vmatpush3.bf16.msra.mxu0 %v17504_v20  ;;  %v15263_v2 = vld [vmem:[#allocation11 + $0xf0] sm:$0xff]  }
 0xb55   :  { %14505 = vmatprep.subr.bf16.mxu0 %v17502_v8  ;;  %14493 = vmatprep.subr.bf16.mxu1 %v15245_v63 }
 0xb56   :  { %14507 = vmatprep.mubr.msk.bf16.mxu0 %vm1971_vm2, %v15247_v6 }
 0xb58   :  { %14494 = vmatpush3.bf16.msra.mxu1 %v15245_v63  ;;  %14506 = vmatpush3.bf16.msra.mxu0 %v17502_v8 }
 0xb59   :  { %14495 = vmatprep.subr.bf16.mxu1 %v15246_v17  ;;  %14511 = vmatprep.subr.bf16.mxu0 %v15248_v28 }
 0xb5b   :  { %14508 = vmatmul.mubr.msk.bf16.vlgmr.msra.gmra.mxu0 %vm1971_vm2, %v15249_v49 }
 0xb5c   :  { %14496 = vmatpush3.bf16.msra.mxu1 %v15246_v17  ;;  %14512 = vmatpush3.bf16.msra.mxu0 %v15248_v28 }
 0xb5d   :  { %14497 = vmatprep.subr.bf16.mxu1 %v15250_v47  ;;  %14513 = vmatprep.subr.bf16.mxu0 %v15251_v14 }
 0xb60   :  { %14498 = vmatpush3.bf16.msra.mxu1 %v15250_v47  ;;  %14514 = vmatpush3.bf16.msra.mxu0 %v15251_v14 }
 0xb61   :  { %14523 = vmatprep.subr.bf16.mxu1 %v17504_v20  ;;  %14515 = vmatprep.subr.bf16.mxu0 %v15252_v32 }
 0xb64   :  { %14516 = vmatpush3.bf16.msra.mxu0 %v15252_v32 }
 0xb65   :  { %14517 = vmatprep.subr.bf16.mxu0 %v15253_v35 }
 0xb68   :  { %14518 = vmatpush3.bf16.msra.mxu0 %v15253_v35 }
 0xb69   :  { %14543 = vmatprep.subr.bf16.mxu0 %v17504_v20 }
 0xc0b   :  { %v14461_v23 = vpop.f32.mrf.mxu1 }
 0xc0c   :  { %v3972_v26 = vadd.f32 %v14461_v23, %v17542_v3  ;;  %v15254_v3 = vld [vmem:[%s18513_s5 + $0x60] sm:$0xff]  }
 0xc0d   :  { %v3955_v25 = vpop.f32.mrf.mxu1 }
 0xc0e   :  { %v3970_v40 = vadd.f32 %v3955_v25, %v17544_v5 }
 0xc0f   :  { %v14462_v42 = vpop.f32.mrf.mxu1 }
 0xc10   :  { %v3973_v54 = vadd.f32 %v14462_v42, %v17546_v10  ;;  %v15255_v10 = vld [vmem:[#allocation11 + $0xd8] sm:$0xff]  }
 0xc11   :  { %v17575_v24 = vpop.f32.mrf.mxu1 }
 0xc13   :  { %v14481_v48 = vpop.f32.mrf.mxu0  ;;  %v14489_v33 = vpop.f32.mrf.mxu1 }
 0xc14   :  { %v4136_v50 = vadd.f32 %v14481_v48, %v3972_v26 }
 0xc15   :  { %v4119_v22 = vpop.f32.mrf.mxu0  ;;  %v4193_v53 = vpop.f32.mrf.mxu1 }
 0xc16   :  { %v4134_v56 = vadd.f32 %v4119_v22, %v3970_v40 }
 0xc17   :  { %v14482_v60 = vpop.f32.mrf.mxu0  ;;  %v14490_v30 = vpop.f32.mrf.mxu1 }
 0xc18   :  { %v4137_v0 = vadd.f32 %v14482_v60, %v3973_v54  ;;  %v4209_v7 = vpack.c.bf16 %v14490_v30, %v14489_v33 }
 0xc19   :  { %v17577_v36 = vpop.f32.mrf.mxu0  ;;  %v4196_v58 = vpop.f32.mrf.mxu1 }
 0xc1a   :  { %v4208_v1 = vpack.c.bf16 %v4196_v58, %v4193_v53  ;;  %v15267_v58 = vld [vmem:[%s18513_s5 + $0x88] sm:$0xff]  }
 0xc1b   :  { %v14509_v5 = vpop.f32.mrf.mxu0 }
 0xc1c   :  { %14499 = vmatprep.mubr.msk.bf16.mxu1 %vm1889_vm3, %v4208_v1 }
 0xc1d   :  { %14500 = vmatmul.mubr.msk.bf16.vlgmr.msra.gmra.mxu1 %vm1889_vm3, %v4209_v7  ;;  %v4357_v52 = vpop.f32.mrf.mxu0  ;;  %v15270_v7 = vld [vmem:[#allocation11 + $0x108] sm:$0xff]  }
 0xc1e   :  { %14524 = vmatpush3.bf16.msra.mxu1 %v17504_v20  ;;  %14527 = vmatprep.mubr.msk.bf16.mxu1 %vm1971_vm2, %v15254_v3  ;;  %v15268_v3 = vld [vmem:[#allocation11 + $0x118] sm:$0xff]  }
 0xc1f   :  { %14525 = vmatprep.subr.bf16.mxu1 %v17502_v8  ;;  %v14510_v27 = vpop.f32.mrf.mxu0 }
 0xc20   :  { %v4373_v4 = vpack.c.bf16 %v14510_v27, %v14509_v5  ;;  %v15271_v5 = vld [vmem:[#allocation11 + $0x100] sm:$0xff]  }
 0xc21   :  { %v4360_v46 = vpop.f32.mrf.mxu0 }
 0xc22   :  { %v4372_v44 = vpack.c.bf16 %v4360_v46, %v4357_v52  ;;  %14526 = vmatpush3.bf16.msra.mxu1 %v17502_v8 }
 0xc23   :  { %14531 = vmatprep.subr.bf16.mxu1 %v15255_v10 }
 0xc24   :  { %14519 = vmatprep.mubr.msk.bf16.mxu0 %vm1889_vm3, %v4372_v44 }
 0xc25   :  { %14520 = vmatmul.mubr.msk.bf16.vlgmr.msra.gmra.mxu0 %vm1889_vm3, %v4373_v4  ;;  %14528 = vmatmul.mubr.msk.bf16.vlgmr.msra.gmra.mxu1 %vm1971_vm2, %v15256_v11 }
 0xc26   :  { %14532 = vmatpush3.bf16.msra.mxu1 %v15255_v10  ;;  %14544 = vmatpush3.bf16.msra.mxu0 %v17504_v20 }
 0xc27   :  { %14545 = vmatprep.subr.bf16.mxu0 %v17502_v8  ;;  %14533 = vmatprep.subr.bf16.mxu1 %v15257_v38 }
 0xc28   :  { %14547 = vmatprep.mubr.msk.bf16.mxu0 %vm1971_vm2, %v15259_v9 }
 0xc2a   :  { %14534 = vmatpush3.bf16.msra.mxu1 %v15257_v38  ;;  %14546 = vmatpush3.bf16.msra.mxu0 %v17502_v8 }
 0xc2b   :  { %14535 = vmatprep.subr.bf16.mxu1 %v15258_v16  ;;  %14551 = vmatprep.subr.bf16.mxu0 %v15262_v15 }
 0xc2d   :  { %14548 = vmatmul.mubr.msk.bf16.vlgmr.msra.gmra.mxu0 %vm1971_vm2, %v15260_v31 }
 0xc2e   :  { %14536 = vmatpush3.bf16.msra.mxu1 %v15258_v16  ;;  %14552 = vmatpush3.bf16.msra.mxu0 %v15262_v15  ;;  %v16650_v15 = vmov 0.0  }
 0xc2f   :  { %14537 = vmatprep.subr.bf16.mxu1 %v15261_v13  ;;  %14553 = vmatprep.subr.bf16.mxu0 %v15263_v2 }
 0xc32   :  { %14538 = vmatpush3.bf16.msra.mxu1 %v15261_v13  ;;  %14554 = vmatpush3.bf16.msra.mxu0 %v15263_v2 }
 0xc33   :  { %14563 = vmatprep.subr.bf16.mxu1 %v17504_v20  ;;  %14555 = vmatprep.subr.bf16.mxu0 %v15264_v37 }
 0xc36   :  { %14556 = vmatpush3.bf16.msra.mxu0 %v15264_v37  ;;  %v3799_v37 = vadd.f32 %v17570_v39, %v17548_v55 }
 0xc37   :  { %14557 = vmatprep.subr.bf16.mxu0 %v15265_v45 }
 0xc3a   :  { %14558 = vmatpush3.bf16.msra.mxu0 %v15265_v45 }
 0xc3b   :  { %14583 = vmatprep.subr.bf16.mxu0 %v16650_v15 }
 0xcdd   :  { %v14501_v43 = vpop.f32.mrf.mxu1 }
 0xcde   :  { %v4300_v41 = vadd.f32 %v14501_v43, %v4136_v50  ;;  %v15266_v50 = vld [vmem:[%s18513_s5 + $0x80] sm:$0xff]   ;;  %v3971_v43 = vadd.f32 %v17575_v24, %v3799_v37 }
 0xcdf   :  { %v4283_v63 = vpop.f32.mrf.mxu1 }
 0xce0   :  { %v4298_v6 = vadd.f32 %v4283_v63, %v4134_v56 }
 0xce1   :  { %v14502_v17 = vpop.f32.mrf.mxu1 }
 0xce2   :  { %v4301_v28 = vadd.f32 %v14502_v17, %v4137_v0 }
 0xce3   :  { %v17598_v49 = vpop.f32.mrf.mxu1 }
 0xce5   :  { %v14521_v47 = vpop.f32.mrf.mxu0  ;;  %v14529_v14 = vpop.f32.mrf.mxu1 }
 0xce6   :  { %v4464_v32 = vadd.f32 %v14521_v47, %v4300_v41  ;;  %v4135_v41 = vadd.f32 %v17577_v36, %v3971_v43 }
 0xce7   :  { %v4447_v35 = vpop.f32.mrf.mxu0  ;;  %v4521_v23 = vpop.f32.mrf.mxu1 }
 0xce8   :  { %v4462_v26 = vadd.f32 %v4447_v35, %v4298_v6  ;;  %v4299_v6 = vadd.f32 %v17598_v49, %v4135_v41 }
 0xce9   :  { %v14522_v25 = vpop.f32.mrf.mxu0  ;;  %v14530_v40 = vpop.f32.mrf.mxu1 }
 0xcea   :  { %v4465_v42 = vadd.f32 %v14522_v25, %v4301_v28  ;;  %v4537_v22 = vpack.c.bf16 %v14530_v40, %v14529_v14 }
 0xceb   :  { %v4450_v54 = vpop.f32.mrf.mxu0  ;;  %v4524_v48 = vpop.f32.mrf.mxu1 }
 0xcec   :  { %v4536_v33 = vpack.c.bf16 %v4524_v48, %v4521_v23  ;;  %v4463_v28 = vadd.f32 %v4450_v54, %v4299_v6 }
 0xced   :  { %v14549_v53 = vpop.f32.mrf.mxu0 }
 0xcee   :  { %14539 = vmatprep.mubr.msk.bf16.mxu1 %vm1889_vm3, %v4536_v33 }
 0xcef   :  { %14540 = vmatmul.mubr.msk.bf16.vlgmr.msra.gmra.mxu1 %vm1889_vm3, %v4537_v22  ;;  %v4685_v56 = vpop.f32.mrf.mxu0 }
 0xcf0   :  { %14564 = vmatpush3.bf16.msra.mxu1 %v17504_v20  ;;  %14567 = vmatprep.mubr.msk.bf16.mxu1 %vm1971_vm2, %v15266_v50  ;;  %v15269_v20 = vld [vmem:[#allocation11 + $0x110] sm:$0xff]  }
 0xcf1   :  { %14565 = vmatprep.subr.bf16.mxu1 %v17502_v8  ;;  %v14550_v60 = vpop.f32.mrf.mxu0 }
 0xcf2   :  { %v4701_v30 = vpack.c.bf16 %v14550_v60, %v14549_v53 }
 0xcf3   :  { %v4688_v0 = vpop.f32.mrf.mxu0 }
 0xcf4   :  { %v4700_v1 = vpack.c.bf16 %v4688_v0, %v4685_v56  ;;  %14566 = vmatpush3.bf16.msra.mxu1 %v17502_v8 }
 0xcf5   :  { %14571 = vmatprep.subr.bf16.mxu1 %v15268_v3 }
 0xcf6   :  { %14559 = vmatprep.mubr.msk.bf16.mxu0 %vm1889_vm3, %v4700_v1 }
 0xcf7   :  { %14560 = vmatmul.mubr.msk.bf16.vlgmr.msra.gmra.mxu0 %vm1889_vm3, %v4701_v30  ;;  %14568 = vmatmul.mubr.msk.bf16.vlgmr.msra.gmra.mxu1 %vm1971_vm2, %v15267_v58 }
 0xcf8   :  { %14572 = vmatpush3.bf16.msra.mxu1 %v15268_v3  ;;  %14587 = vmatprep.mubr.msk.bf16.mxu0 %vm16651_vm4, %v16650_v15 }
 0xcf9   :  { %14573 = vmatprep.subr.bf16.mxu1 %v15269_v20 }
 0xcfc   :  { %14574 = vmatpush3.bf16.msra.mxu1 %v15269_v20 }
 0xcfd   :  { %14575 = vmatprep.subr.bf16.mxu1 %v15270_v7 }
 0xd00   :  { %14576 = vmatpush3.bf16.msra.mxu1 %v15270_v7 }
 0xd01   :  { %14577 = vmatprep.subr.bf16.mxu1 %v15271_v5 }
 0xd04   :  { %14578 = vmatpush3.bf16.msra.mxu1 %v15271_v5 }
 0xd05   :  { %14603 = vmatprep.subr.bf16.mxu1 %v16650_v15 }
 0xdaf   :  { %v14541_v52 = vpop.f32.mrf.mxu1 }
 0xdb0   :  { %v4628_v8 = vadd.f32 %v14541_v52, %v4464_v32 }
 0xdb1   :  { %v4611_v27 = vpop.f32.mrf.mxu1 }
 0xdb2   :  { %v4626_v10 = vadd.f32 %v4611_v27, %v4462_v26 }
 0xdb3   :  { %v14542_v4 = vpop.f32.mrf.mxu1 }
 0xdb4   :  { %v4629_v46 = vadd.f32 %v14542_v4, %v4465_v42 }
 0xdb5   :  { %v4614_v11 = vpop.f32.mrf.mxu1 }
 0xdb6   :  { %v4627_v35 = vadd.f32 %v4614_v11, %v4463_v28 }
 0xdb7   :  { %v14569_v44 = vpop.f32.mrf.mxu1  ;;  %v14561_v2 = vpop.f32.mrf.mxu0 }
 0xdb8   :  { %v4792_v23 = vadd.f32 %v14561_v2, %v4628_v8 }
 0xdb9   :  { %v4849_v38 = vpop.f32.mrf.mxu1  ;;  %v4775_v45 = vpop.f32.mrf.mxu0 }
 0xdba   :  { %v4790_v47 = vadd.f32 %v4775_v45, %v4626_v10 }
 0xdbb   :  { %v14570_v9 = vpop.f32.mrf.mxu1  ;;  %v14562_v63 = vpop.f32.mrf.mxu0 }
 0xdbc   :  { %v4865_v13 = vpack.c.bf16 %v14570_v9, %v14569_v44  ;;  %v4793_v40 = vadd.f32 %v14562_v63, %v4629_v46 }
 0xdbd   :  { %v4852_v16 = vpop.f32.mrf.mxu1  ;;  %v4778_v14 = vpop.f32.mrf.mxu0 }
 0xdbe   :  { %v4864_v31 = vpack.c.bf16 %v4852_v16, %v4849_v38  ;;  %v4791_v42 = vadd.f32 %v4778_v14, %v4627_v35 }
 0xdc0   :  { %14579 = vmatprep.mubr.msk.bf16.mxu1 %vm1889_vm3, %v4864_v31 }
 0xdc1   :  { %14580 = vmatmul.mubr.msk.bf16.vlgmr.msra.gmra.mxu1 %vm1889_vm3, %v4865_v13 }
 0xdc2   :  { %14607 = vmatprep.mubr.msk.bf16.mxu1 %vm16651_vm4, %v16650_v15 }
 0xe81   :  { %v14581_v17 = vpop.f32.mrf.mxu1 }
 0xe82   :  { %v4956_v55 = vadd.f32 %v14581_v17, %v4792_v23 }
 0xe83   :  { %v4939_v32 = vpop.f32.mrf.mxu1 }
 0xe84   :  { %v4954_v26 = vadd.f32 %v4939_v32, %v4790_v47  ;;  %v4975_v36 = vmul.f32 %v4956_v55, %v4956_v55  ;;  %v4962_v53 = vsel %vm1889_vm3, %v4956_v55, 0.0  ;;  %v4958_v47 = vld [vmem:[#allocation13] sm:$0x3] }
 0xe85   :  { %v14582_v25 = vpop.f32.mrf.mxu1  ;;  %v5007_v32 = vrot.slane %v4958_v47, %v17345_v19  ;;  %v5015_v23 = vrot.slane %v4958_v47, %v17348_v62 }
 0xe86   :  { %v4973_v48 = vmul.f32 %v4954_v26, %v4954_v26  ;;  %v4957_v24 = vadd.f32 %v14582_v25, %v4793_v40  ;;  %v4959_v50 = vsel %vm1889_vm3, %v4954_v26, 0.0  ;;  %v4980_v1 = vsel %vm1889_vm3, %v4975_v36, 0.0 }
 0xe87   :  { %v4942_v39 = vpop.f32.mrf.mxu1 }
 0xe88   :  { %v4955_v33 = vadd.f32 %v4942_v39, %v4791_v42  ;;  %v4977_v56 = vsel %vm1889_vm3, %v4973_v48, 0.0  ;;  %v4976_v60 = vmul.f32 %v4957_v24, %v4957_v24  ;;  %v4964_v3 = vsel %vm1889_vm3, %v4957_v24, 0.0 }
 0xe8a   :  { %v4960_v49 = vsel %vm1889_vm3, %v4955_v33, 0.0  ;;  %v4974_v54 = vmul.f32 %v4955_v33, %v4955_v33  ;;  %v4982_v5 = vsel %vm1889_vm3, %v4976_v60, 0.0 }
 0xe8b   :  { %v4961_v22 = vadd.f32 %v4960_v49, %v4959_v50 }
 0xe8c   :  { %v4978_v30 = vsel %vm1889_vm3, %v4974_v54, 0.0 }
 0xe8d   :  { %v4963_v0 = vadd.f32 %v4962_v53, %v4961_v22  ;;  %v4979_v58 = vadd.f32 %v4978_v30, %v4977_v56 }
 0xe8f   :  { %v4965_v20 = vadd.f32 %v4964_v3, %v4963_v0  ;;  %v4981_v7 = vadd.f32 %v4980_v1, %v4979_v58 }
 0xe91   :  { %v4966_v52 = vrot.slane %v4965_v20, 4  ;;  %v4983_v8 = vadd.f32 %v4982_v5, %v4981_v7 }
 0xe93   :  { %v4967_v27 = vadd.f32 %v4966_v52, %v4965_v20  ;;  %v4984_v10 = vrot.slane %v4983_v8, 4 }
 0xe95   :  { %v4968_v4 = vrot.slane %v4967_v27, 2  ;;  %v4985_v46 = vadd.f32 %v4984_v10, %v4983_v8  ;;  %v15278_v8 = vld [vmem:[#allocation23] sm:$0xff]   ;;  %v15279_v10 = vld [vmem:[#allocation16] sm:$0xff]  }
 0xe97   :  { %v4969_v11 = vadd.f32 %v4968_v4, %v4967_v27  ;;  %v4986_v44 = vrot.slane %v4985_v46, 2  ;;  %v15277_v27 = vld [vmem:[#allocation16 + $0x8] sm:$0xff]  }
 0xe99   :  { %v4970_v38 = vrot.slane %v4969_v11, 1  ;;  %v4987_v9 = vadd.f32 %v4986_v44, %v4985_v46 }
 0xe9b   :  { %v4971_v16 = vadd.f32 %v4970_v38, %v4969_v11  ;;  %v4988_v31 = vrot.slane %v4987_v9, 1  ;;  %v15280_v11 = vld [vmem:[#allocation16 + $0x38] sm:$0xff]  }
 0xe9d   :  { %v4972_v13 = vmul.f32 0.03125, %v4971_v16  ;;  %v4989_v2 = vadd.f32 %v4988_v31, %v4987_v9 }
 0xe9f   :  { %v4990_v37 = vmul.f32 0.03125, %v4989_v2  ;;  %v4991_v45 = vmul.f32 %v4972_v13, %v4972_v13  ;;  %v4993_v43 = vsub.f32 %v4954_v26, %v4972_v13  ;;  %v4995_v41 = vsub.f32 %v4956_v55, %v4972_v13  ;;  %v15281_v2 = vld [vmem:[#allocation16 + $0x30] sm:$0xff]  }
 0xea0   :  { %v4996_v63 = vsub.f32 %v4957_v24, %v4972_v13  ;;  %v4994_v14 = vsub.f32 %v4955_v33, %v4972_v13 }
 0xea1   :  { %v4992_v6 = vsub.f32 %v4990_v37, %v4991_v45 }
 0xea3   :  { %v4997_v17 = vmax.f32 %v4992_v6, 0.0 }
 0xea5   :  { %v4998_v28 = vadd.f32 1e-05, %v4997_v17  ;;  %v15283_v17 = vld [vmem:[#allocation16 + $0x20] sm:$0xff]  }
 0xea7   :  { %15940 = vrsqrt.f32 %v4998_v28 }
 0xeb4   :  { %v15941_v35 = vpop.eup %15940 }
 0xeb5   :  { %v5000_v25 = vmul.f32 %v15941_v35, %v4993_v43  ;;  %v5001_v40 = vmul.f32 %v15941_v35, %v4994_v14  ;;  %v5002_v42 = vmul.f32 %v15941_v35, %v4995_v41  ;;  %v5003_v39 = vmul.f32 %v15941_v35, %v4996_v63  ;;  %v15282_v41 = vld [vmem:[#allocation16 + $0x28] sm:$0xff]   ;;  %v5430_v14 = vld [vmem:[#allocation14 + $0x8] sm:$0xf]  ;;  %v15284_v35 = vld [vmem:[#allocation16 + $0x58] sm:$0xff]  }
 0xeb7   :  { %v5008_v48 = vmul.f32 %v5007_v32, %v5000_v25  ;;  %v5009_v36 = vmul.f32 %v5007_v32, %v5001_v40  ;;  %v5010_v26 = vmul.f32 %v5007_v32, %v5002_v42  ;;  %v5011_v55 = vmul.f32 %v5007_v32, %v5003_v39  ;;  %v5553_v32 = vld [vmem:[#allocation14 + $0xc] sm:$0xf]  ;;  %v15287_v40 = vld [vmem:[#allocation16 + $0x78] sm:$0xff]   ;;  %v15288_v42 = vld [vmem:[#allocation16 + $0x40] sm:$0xff]  }
 0xeb8   :  { %v15286_v25 = vld [vmem:[#allocation16 + $0x48] sm:$0xff]   ;;  %v15289_v39 = vld [vmem:[#allocation16 + $0x70] sm:$0xff]  }
 0xeb9   :  { %v5016_v24 = vadd.f32 %v5015_v23, %v5008_v48  ;;  %v5017_v50 = vadd.f32 %v5015_v23, %v5009_v36  ;;  %v5018_v49 = vadd.f32 %v5015_v23, %v5010_v26  ;;  %v5019_v54 = vadd.f32 %v5015_v23, %v5011_v55  ;;  %v15285_v23 = vld [vmem:[#allocation16 + $0x50] sm:$0xff]   ;;  %v15290_v48 = vld [vmem:[#allocation16 + $0x68] sm:$0xff]   ;;  %v15291_v36 = vld [vmem:[#allocation16 + $0x60] sm:$0xff]  }
 0xebb   :  { %v5020_v22 = vmax.f32 %v5016_v24, 0.0  ;;  %v5021_v53 = vmax.f32 %v5017_v50, 0.0  ;;  %v5022_v33 = vmax.f32 %v5018_v49, 0.0  ;;  %v5023_v56 = vmax.f32 %v5019_v54, 0.0 }
 0xebd   :  { %v5024_v60 = vadd.f32 %v5020_v22, %v1951_v59  ;;  %v5025_v30 = vadd.f32 %v5021_v53, %v1952_v61  ;;  %v5026_v0 = vadd.f32 %v5022_v33, %v1953_v21  ;;  %v5027_v58 = vadd.f32 %v5023_v56, %v1954_v34  ;;  %v5241_v59 = vld [vmem:[#allocation14 + $0x4] sm:$0xf]  ;;  %v15273_v61 = vld [vmem:[#allocation16 + $0x18] sm:$0xff]   ;;  %v15276_v21 = vld [vmem:[#allocation23 + $0x8] sm:$0xff]  }
 0xebe   :  { %v15275_v34 = vld [vmem:[#allocation16 + $0x10] sm:$0xff]  }
 0xebf   :  { %v5028_v1 = vmax.f32 %v5024_v60, 0.0  ;;  %v5029_v3 = vmax.f32 %v5025_v30, 0.0  ;;  %v5030_v20 = vmax.f32 %v5026_v0, 0.0  ;;  %v5031_v7 = vmax.f32 %v5027_v58, 0.0 }
 0xec1   :  { %v17642_v5 = vpack.c.bf16 %v5029_v3, %v5028_v1  ;;  %v17644_v52 = vpack.c.bf16 %v5031_v7, %v5030_v20 }
 0xec3   :  { %14584 = vmatpush3.bf16.msra.mxu0 %v17644_v52  ;;  %14604 = vmatpush3.bf16.msra.mxu1 %v17644_v52 }
 0xec4   :  { %14585 = vmatprep.subr.bf16.mxu0 %v16650_v15  ;;  %14605 = vmatprep.subr.bf16.mxu1 %v16650_v15 }
 0xec7   :  { %14586 = vmatpush3.bf16.msra.mxu0 %v17642_v5  ;;  %14606 = vmatpush3.bf16.msra.mxu1 %v17642_v5 }
 0xec8   :  { %14611 = vmatprep.subr.bf16.mxu1 %v16650_v15  ;;  %14591 = vmatprep.subr.bf16.mxu0 %v16650_v15 }
 0xeca   :  { %14588 = vmatmul.mubr.msk.bf16.vlgmr.msra.gmra.mxu0 %vm1971_vm2, %v5034_v57  ;;  %14608 = vmatmul.mubr.msk.bf16.vlgmr.msra.gmra.mxu1 %vm1971_vm2, %v5187_v12  ;;  %v5676_v12 = vld [vmem:[#allocation14 + $0x10] sm:$0xf] }
 0xecb   :  { %14612 = vmatpush3.bf16.msra.mxu1 %v17644_v52  ;;  %14615 = vmatprep.mubr.msk.bf16.mxu1 %vm16651_vm4, %v16650_v15 }
 0xecc   :  { %14613 = vmatprep.subr.bf16.mxu1 %v16650_v15  ;;  %14592 = vmatpush3.bf16.msra.mxu0 %v15272_v51 }
 0xecd   :  { %14593 = vmatprep.subr.bf16.mxu0 %v16650_v15  ;;  %14599 = vmatprep.mubr.msk.bf16.mxu0 %vm16651_vm4, %v16650_v15 }
 0xecf   :  { %14614 = vmatpush3.bf16.msra.mxu1 %v17642_v5 }
 0xed0   :  { %14631 = vmatprep.subr.bf16.mxu1 %v16650_v15  ;;  %14594 = vmatpush3.bf16.msra.mxu0 %v15274_v29  ;;  %v15292_v29 = vld [vmem:[#allocation16 + $0x98] sm:$0xff]  }
 0xed1   :  { %14595 = vmatprep.subr.bf16.mxu0 %v16650_v15 }
 0xed2   :  { %14616 = vmatmul.mubr.msk.bf16.vlgmr.msra.gmra.mxu1 %vm1971_vm2, %v5241_v59 }
 0xed3   :  { %14632 = vmatpush3.bf16.msra.mxu1 %v15273_v61  ;;  %14639 = vmatprep.mubr.msk.bf16.mxu1 %vm16651_vm4, %v16650_v15 }
 0xed4   :  { %14633 = vmatprep.subr.bf16.mxu1 %v16650_v15  ;;  %14596 = vmatpush3.bf16.msra.mxu0 %v15276_v21  ;;  %v15293_v21 = vld [vmem:[#allocation16 + $0x90] sm:$0xff]  }
 0xed5   :  { %14597 = vmatprep.subr.bf16.mxu0 %v16650_v15 }
 0xed7   :  { %14634 = vmatpush3.bf16.msra.mxu1 %v15275_v34 }
 0xed8   :  { %14635 = vmatprep.subr.bf16.mxu1 %v16650_v15  ;;  %14598 = vmatpush3.bf16.msra.mxu0 %v15278_v8  ;;  %v5799_v8 = vld [vmem:[#allocation14 + $0x14] sm:$0xf] }
 0xed9   :  { %14619 = vmatprep.subr.bf16.mxu0 %v16650_v15 }
 0xedb   :  { %14636 = vmatpush3.bf16.msra.mxu1 %v15277_v27  ;;  %v15294_v27 = vld [vmem:[#allocation16 + $0x88] sm:$0xff]  }
 0xedc   :  { %14637 = vmatprep.subr.bf16.mxu1 %v16650_v15 }
 0xedf   :  { %14638 = vmatpush3.bf16.msra.mxu1 %v15279_v10  ;;  %v15295_v10 = vld [vmem:[#allocation16 + $0xb8] sm:$0xff]  }
 0xee0   :  { %14651 = vmatprep.subr.bf16.mxu1 %v16650_v15 }
 0xf8a   :  { %v5072_v4 = vpop.f32.mrf.mxu0  ;;  %v5225_v46 = vpop.f32.mrf.mxu1 }
 0xf8b   :  { %v5078_v44 = vpack.c.bf16 %v5072_v4, %v5072_v4  ;;  %v5231_v38 = vpack.c.bf16 %v5225_v46, %v5225_v46  ;;  %v15296_v4 = vld [vmem:[#allocation16 + $0x80] sm:$0xff]   ;;  %v15297_v46 = vld [vmem:[#allocation16 + $0xb0] sm:$0xff]  }
 0xf8c   :  { %v14589_v9 = vpop.f32.mrf.mxu0  ;;  %v14609_v16 = vpop.f32.mrf.mxu1 }
 0xf8d   :  { %14600 = vmatmul.mubr.msk.bf16.vlgmr.msra.gmra.mxu0 %vm1889_vm3, %v5078_v44  ;;  %14640 = vmatmul.mubr.msk.bf16.vlgmr.msra.gmra.mxu1 %vm1889_vm3, %v5231_v38  ;;  %v15299_v44 = vld [vmem:[#allocation16 + $0xa0] sm:$0xff]  }
 0xf8e   :  { %14620 = vmatpush3.bf16.msra.mxu0 %v15280_v11  ;;  %v5075_v31 = vpop.f32.mrf.mxu0  ;;  %v5228_v13 = vpop.f32.mrf.mxu1  ;;  %14627 = vmatprep.mubr.msk.bf16.mxu0 %vm16651_vm4, %v16650_v15  ;;  %v15298_v11 = vld [vmem:[#allocation16 + $0xa8] sm:$0xff]  }
 0xf8f   :  { %14621 = vmatprep.subr.bf16.mxu0 %v16650_v15  ;;  %14659 = vmatprep.mubr.msk.bf16.mxu1 %vm16651_vm4, %v16650_v15 }
 0xf90   :  { %v14590_v37 = vpop.f32.mrf.mxu0  ;;  %v14610_v45 = vpop.f32.mrf.mxu1  ;;  %14652 = vmatpush3.bf16.msra.mxu1 %v15284_v35 }
 0xf91   :  { %14653 = vmatprep.subr.bf16.mxu1 %v16650_v15 }
 0xf92   :  { %14622 = vmatpush3.bf16.msra.mxu0 %v15281_v2  ;;  %v5279_v43 = vpop.f32.mrf.mxu1 }
 0xf93   :  { %14623 = vmatprep.subr.bf16.mxu0 %v16650_v15  ;;  %v5285_v47 = vpack.c.bf16 %v5279_v43, %v5279_v43 }
 0xf94   :  { %v14617_v63 = vpop.f32.mrf.mxu1  ;;  %14654 = vmatpush3.bf16.msra.mxu1 %v15285_v23  ;;  %v15300_v23 = vld [vmem:[#allocation16 + $0xd8] sm:$0xff]  }
 0xf95   :  { %14655 = vmatprep.subr.bf16.mxu1 %v16650_v15 }
 0xf96   :  { %14624 = vmatpush3.bf16.msra.mxu0 %v15282_v41  ;;  %v5282_v6 = vpop.f32.mrf.mxu1 }
 0xf97   :  { %14625 = vmatprep.subr.bf16.mxu0 %v16650_v15 }
 0xf98   :  { %v14618_v28 = vpop.f32.mrf.mxu1  ;;  %14656 = vmatpush3.bf16.msra.mxu1 %v15286_v25 }
 0xf99   :  { %14657 = vmatprep.subr.bf16.mxu1 %v16650_v15 }
 0xf9a   :  { %14626 = vmatpush3.bf16.msra.mxu0 %v15283_v17 }
 0xf9b   :  { %14643 = vmatprep.subr.bf16.mxu0 %v16650_v15 }
 0xf9c   :  { %14658 = vmatpush3.bf16.msra.mxu1 %v15288_v42  ;;  %v15301_v42 = vld [vmem:[#allocation16 + $0xd0] sm:$0xff]  }
 0xf9d   :  { %14628 = vmatmul.mubr.msk.bf16.vlgmr.msra.gmra.mxu0 %vm1889_vm3, %v5285_v47  ;;  %14683 = vmatprep.subr.bf16.mxu1 %v16650_v15 }
 0xf9e   :  { %14644 = vmatpush3.bf16.msra.mxu0 %v17644_v52  ;;  %14647 = vmatprep.mubr.msk.bf16.mxu0 %vm16651_vm4, %v16650_v15 }
 0xf9f   :  { %14645 = vmatprep.subr.bf16.mxu0 %v16650_v15 }
 0xfa2   :  { %14646 = vmatpush3.bf16.msra.mxu0 %v17642_v5 }
 0xfa3   :  { %14663 = vmatprep.subr.bf16.mxu0 %v16650_v15 }
 0xfa5   :  { %14648 = vmatmul.mubr.msk.bf16.vlgmr.msra.gmra.mxu0 %vm1971_vm2, %v5430_v14 }
 0xfa6   :  { %14664 = vmatpush3.bf16.msra.mxu0 %v17644_v52  ;;  %14667 = vmatprep.mubr.msk.bf16.mxu0 %vm16651_vm4, %v16650_v15 }
 0xfa7   :  { %14665 = vmatprep.subr.bf16.mxu0 %v16650_v15 }
 0xfaa   :  { %14666 = vmatpush3.bf16.msra.mxu0 %v17642_v5 }
 0xfab   :  { %14671 = vmatprep.subr.bf16.mxu0 %v16650_v15 }
 0xfad   :  { %14668 = vmatmul.mubr.msk.bf16.vlgmr.msra.gmra.mxu0 %vm1971_vm2, %v5553_v32  ;;  %v5922_v32 = vld [vmem:[#allocation14 + $0x18] sm:$0xf] }
 0xfae   :  { %14679 = vmatprep.mubr.msk.bf16.mxu0 %vm16651_vm4, %v16650_v15  ;;  %14672 = vmatpush3.bf16.msra.mxu0 %v15287_v40 }
 0xfaf   :  { %14673 = vmatprep.subr.bf16.mxu0 %v16650_v15 }
 0xfb2   :  { %14674 = vmatpush3.bf16.msra.mxu0 %v15289_v39 }
 0xfb3   :  { %14675 = vmatprep.subr.bf16.mxu0 %v16650_v15 }
 0xfb6   :  { %14676 = vmatpush3.bf16.msra.mxu0 %v15290_v48  ;;  %v6045_v48 = vld [vmem:[#allocation14 + $0x1c] sm:$0xf] }
 0xfb7   :  { %14677 = vmatprep.subr.bf16.mxu0 %v16650_v15 }
 0xfba   :  { %14678 = vmatpush3.bf16.msra.mxu0 %v15291_v36  ;;  %v15302_v36 = vld [vmem:[#allocation16 + $0xc8] sm:$0xff]  }
 0xfbb   :  { %14703 = vmatprep.subr.bf16.mxu0 %v16650_v15 }
0x104d   :  { %v17711_v26 = vpop.f32.mrf.mxu0  ;;  %v5423_v55 = vpop.f32.mrf.mxu1 }
0x104f   :  { %v14601_v24 = vpop.f32.mrf.mxu0  ;;  %v14641_v50 = vpop.f32.mrf.mxu1 }
0x1050   :  { %v15304_v24 = vld [vmem:[#allocation16 + $0xc0] sm:$0xff]   ;;  %v15305_v50 = vld [vmem:[#allocation16 + $0xf0] sm:$0xff]  }
0x1051   :  { %v5151_v49 = vpop.f32.mrf.mxu0  ;;  %v5426_v54 = vpop.f32.mrf.mxu1 }
0x1052   :  { %v15306_v49 = vld [vmem:[#allocation16 + $0xe8] sm:$0xff]   ;;  %v15307_v54 = vld [vmem:[#allocation16 + $0xe0] sm:$0xff]  }
0x1053   :  { %v14602_v22 = vpop.f32.mrf.mxu0  ;;  %v14642_v53 = vpop.f32.mrf.mxu1 }
0x105d   :  { %v5356_v33 = vpop.f32.mrf.mxu0 }
0x105e   :  { %v5424_v56 = vadd.f32 %v5423_v55, %v5356_v33  ;;  %v15303_v55 = vld [vmem:[#allocation16 + $0xf8] sm:$0xff]  }
0x105f   :  { %v14629_v60 = vpop.f32.mrf.mxu0 }
0x1061   :  { %v5359_v30 = vpop.f32.mrf.mxu0 }
0x1063   :  { %v14630_v0 = vpop.f32.mrf.mxu0 }
0x1065   :  { %v5468_v58 = vpop.f32.mrf.mxu0 }
0x1066   :  { %v5474_v1 = vpack.c.bf16 %v5468_v58, %v5468_v58 }
0x1067   :  { %v14649_v3 = vpop.f32.mrf.mxu0 }
0x1068   :  { %14660 = vmatmul.mubr.msk.bf16.vlgmr.msra.gmra.mxu1 %vm1889_vm3, %v5474_v1 }
0x1069   :  { %14684 = vmatpush3.bf16.msra.mxu1 %v17644_v52  ;;  %v5471_v20 = vpop.f32.mrf.mxu0  ;;  %14687 = vmatprep.mubr.msk.bf16.mxu1 %vm16651_vm4, %v16650_v15 }
0x106a   :  { %14685 = vmatprep.subr.bf16.mxu1 %v16650_v15 }
0x106b   :  { %v14650_v7 = vpop.f32.mrf.mxu0 }
0x106d   :  { %14686 = vmatpush3.bf16.msra.mxu1 %v17642_v5  ;;  %v5591_v57 = vpop.f32.mrf.mxu0 }
0x106e   :  { %v5597_v51 = vpack.c.bf16 %v5591_v57, %v5591_v57  ;;  %14691 = vmatprep.subr.bf16.mxu1 %v16650_v15 }
0x106f   :  { %v14669_v59 = vpop.f32.mrf.mxu0 }
0x1070   :  { %14680 = vmatmul.mubr.msk.bf16.vlgmr.msra.gmra.mxu0 %vm1889_vm3, %v5597_v51  ;;  %14688 = vmatmul.mubr.msk.bf16.vlgmr.msra.gmra.mxu1 %vm1971_vm2, %v5676_v12  ;;  %v6168_v59 = vld [vmem:[#allocation14 + $0x20] sm:$0xf] }
0x1071   :  { %14704 = vmatpush3.bf16.msra.mxu0 %v17644_v52  ;;  %14707 = vmatprep.mubr.msk.bf16.mxu0 %vm16651_vm4, %v16650_v15  ;;  %v5594_v61 = vpop.f32.mrf.mxu0 }
0x1072   :  { %14705 = vmatprep.subr.bf16.mxu0 %v16650_v15  ;;  %14692 = vmatpush3.bf16.msra.mxu1 %v15292_v29  ;;  %v15308_v61 = vld [vmem:[#allocation16 + $0x118] sm:$0xff]  }
0x1073   :  { %14693 = vmatprep.subr.bf16.mxu1 %v16650_v15  ;;  %v14670_v34 = vpop.f32.mrf.mxu0  ;;  %14699 = vmatprep.mubr.msk.bf16.mxu1 %vm16651_vm4, %v16650_v15 }
0x1075   :  { %14706 = vmatpush3.bf16.msra.mxu0 %v17642_v5 }
0x1076   :  { %14694 = vmatpush3.bf16.msra.mxu1 %v15293_v21  ;;  %14711 = vmatprep.subr.bf16.mxu0 %v16650_v15 }
0x1077   :  { %14695 = vmatprep.subr.bf16.mxu1 %v16650_v15 }
0x1078   :  { %14708 = vmatmul.mubr.msk.bf16.vlgmr.msra.gmra.mxu0 %vm1971_vm2, %v5799_v8  ;;  %v15309_v8 = vld [vmem:[#allocation16 + $0x110] sm:$0xff]  }
0x1079   :  { %14719 = vmatprep.mubr.msk.bf16.mxu0 %vm16651_vm4, %v16650_v15  ;;  %14712 = vmatpush3.bf16.msra.mxu0 %v15295_v10  ;;  %v15311_v10 = vld [vmem:[#allocation16 + $0x100] sm:$0xff]  }
0x107a   :  { %14696 = vmatpush3.bf16.msra.mxu1 %v15294_v27  ;;  %14713 = vmatprep.subr.bf16.mxu0 %v16650_v15  ;;  %v15310_v27 = vld [vmem:[#allocation16 + $0x108] sm:$0xff]  }
0x107b   :  { %14697 = vmatprep.subr.bf16.mxu1 %v16650_v15 }
0x107d   :  { %14714 = vmatpush3.bf16.msra.mxu0 %v15297_v46 }
0x107e   :  { %14698 = vmatpush3.bf16.msra.mxu1 %v15296_v4  ;;  %14715 = vmatprep.subr.bf16.mxu0 %v16650_v15 }
0x107f   :  { %14723 = vmatprep.subr.bf16.mxu1 %v16650_v15 }
0x1081   :  { %14716 = vmatpush3.bf16.msra.mxu0 %v15298_v11 }
0x1082   :  { %14717 = vmatprep.subr.bf16.mxu0 %v16650_v15 }
0x1085   :  { %14718 = vmatpush3.bf16.msra.mxu0 %v15299_v44 }
0x1086   :  { %14743 = vmatprep.subr.bf16.mxu0 %v16650_v15 }
0x1128   :  { %v5545_v38 = vpop.f32.mrf.mxu1 }
0x1129   :  { %v5551_v9 = vadd.f32 %v5545_v38, %v5424_v56 }
0x112a   :  { %v14661_v16 = vpop.f32.mrf.mxu1 }
0x112c   :  { %v5548_v31 = vpop.f32.mrf.mxu1 }
0x112e   :  { %v14662_v13 = vpop.f32.mrf.mxu1 }
0x1130   :  { %v5668_v2 = vpop.f32.mrf.mxu0  ;;  %v5714_v37 = vpop.f32.mrf.mxu1 }
0x1131   :  { %v5674_v45 = vadd.f32 %v5668_v2, %v5551_v9  ;;  %v5720_v43 = vpack.c.bf16 %v5714_v37, %v5714_v37 }
0x1132   :  { %v14681_v41 = vpop.f32.mrf.mxu0  ;;  %v14689_v63 = vpop.f32.mrf.mxu1 }
0x1133   :  { %14700 = vmatmul.mubr.msk.bf16.vlgmr.msra.gmra.mxu1 %vm1889_vm3, %v5720_v43 }
0x1134   :  { %14724 = vmatpush3.bf16.msra.mxu1 %v17644_v52  ;;  %v5671_v6 = vpop.f32.mrf.mxu0  ;;  %v5717_v17 = vpop.f32.mrf.mxu1  ;;  %14727 = vmatprep.mubr.msk.bf16.mxu1 %vm16651_vm4, %v16650_v15 }
0x1135   :  { %14725 = vmatprep.subr.bf16.mxu1 %v16650_v15  ;;  %v15314_v6 = vld [vmem:[#allocation20 + $0x78] sm:$0xff]   ;;  %v15316_v17 = vld [vmem:[#allocation20 + $0x70] sm:$0xff]  }
0x1136   :  { %v14682_v28 = vpop.f32.mrf.mxu0  ;;  %v14690_v47 = vpop.f32.mrf.mxu1 }
0x1137   :  { %v15318_v28 = vld [vmem:[#allocation20 + $0x68] sm:$0xff]   ;;  %v15320_v47 = vld [vmem:[#allocation20 + $0x60] sm:$0xff]  }
0x1138   :  { %14726 = vmatpush3.bf16.msra.mxu1 %v17642_v5  ;;  %v5837_v14 = vpop.f32.mrf.mxu0 }
0x1139   :  { %v5843_v35 = vpack.c.bf16 %v5837_v14, %v5837_v14  ;;  %14731 = vmatprep.subr.bf16.mxu1 %v16650_v15  ;;  %v15322_v14 = vld [vmem:[#allocation20 + $0x58] sm:$0xff]  }
0x113a   :  { %v14709_v25 = vpop.f32.mrf.mxu0 }
0x113b   :  { %14720 = vmatmul.mubr.msk.bf16.vlgmr.msra.gmra.mxu0 %vm1889_vm3, %v5843_v35  ;;  %14728 = vmatmul.mubr.msk.bf16.vlgmr.msra.gmra.mxu1 %vm1971_vm2, %v5922_v32  ;;  %v15324_v32 = vld [vmem:[#allocation20 + $0x50] sm:$0xff]  }
0x113c   :  { %14744 = vmatpush3.bf16.msra.mxu0 %v17644_v52  ;;  %14747 = vmatprep.mubr.msk.bf16.mxu0 %vm16651_vm4, %v16650_v15  ;;  %v5840_v40 = vpop.f32.mrf.mxu0 }
0x113d   :  { %14745 = vmatprep.subr.bf16.mxu0 %v16650_v15  ;;  %14732 = vmatpush3.bf16.msra.mxu1 %v15300_v23 }
0x113e   :  { %14733 = vmatprep.subr.bf16.mxu1 %v16650_v15  ;;  %v14710_v39 = vpop.f32.mrf.mxu0  ;;  %14739 = vmatprep.mubr.msk.bf16.mxu1 %vm16651_vm4, %v16650_v15 }
0x1140   :  { %14746 = vmatpush3.bf16.msra.mxu0 %v17642_v5 }
0x1141   :  { %14734 = vmatpush3.bf16.msra.mxu1 %v15301_v42  ;;  %14751 = vmatprep.subr.bf16.mxu0 %v16650_v15 }
0x1142   :  { %14735 = vmatprep.subr.bf16.mxu1 %v16650_v15 }
0x1143   :  { %14748 = vmatmul.mubr.msk.bf16.vlgmr.msra.gmra.mxu0 %vm1971_vm2, %v6045_v48 }
0x1144   :  { %14759 = vmatprep.mubr.msk.bf16.mxu0 %vm16651_vm4, %v16650_v15  ;;  %14752 = vmatpush3.bf16.msra.mxu0 %v15303_v55 }
0x1145   :  { %14736 = vmatpush3.bf16.msra.mxu1 %v15302_v36  ;;  %14753 = vmatprep.subr.bf16.mxu0 %v16650_v15 }
0x1146   :  { %14737 = vmatprep.subr.bf16.mxu1 %v16650_v15 }
0x1148   :  { %14754 = vmatpush3.bf16.msra.mxu0 %v15305_v50 }
0x1149   :  { %14738 = vmatpush3.bf16.msra.mxu1 %v15304_v24  ;;  %14755 = vmatprep.subr.bf16.mxu0 %v16650_v15 }
0x114a   :  { %14763 = vmatprep.subr.bf16.mxu1 %v16650_v15 }
0x114c   :  { %14756 = vmatpush3.bf16.msra.mxu0 %v15306_v49 }
0x114d   :  { %14757 = vmatprep.subr.bf16.mxu0 %v16650_v15 }
0x1150   :  { %14758 = vmatpush3.bf16.msra.mxu0 %v15307_v54 }
0x1151   :  { %14783 = vmatprep.subr.bf16.mxu0 %v16650_v15 }
0x11f3   :  { %v5791_v22 = vpop.f32.mrf.mxu1 }
0x11f4   :  { %v5797_v53 = vadd.f32 %v5791_v22, %v5674_v45 }
0x11f5   :  { %v14701_v33 = vpop.f32.mrf.mxu1 }
0x11f7   :  { %v5794_v56 = vpop.f32.mrf.mxu1 }
0x11f9   :  { %v14702_v60 = vpop.f32.mrf.mxu1 }
0x11fb   :  { %v5914_v30 = vpop.f32.mrf.mxu0  ;;  %v5960_v0 = vpop.f32.mrf.mxu1 }
0x11fc   :  { %v5920_v58 = vadd.f32 %v5914_v30, %v5797_v53  ;;  %v5966_v1 = vpack.c.bf16 %v5960_v0, %v5960_v0 }
0x11fd   :  { %v14721_v3 = vpop.f32.mrf.mxu0  ;;  %v14729_v20 = vpop.f32.mrf.mxu1 }
0x11fe   :  { %14740 = vmatmul.mubr.msk.bf16.vlgmr.msra.gmra.mxu1 %vm1889_vm3, %v5966_v1 }
0x11ff   :  { %14764 = vmatpush3.bf16.msra.mxu1 %v17644_v52  ;;  %v5917_v7 = vpop.f32.mrf.mxu0  ;;  %v5963_v57 = vpop.f32.mrf.mxu1  ;;  %14767 = vmatprep.mubr.msk.bf16.mxu1 %vm16651_vm4, %v16650_v15 }
0x1200   :  { %14765 = vmatprep.subr.bf16.mxu1 %v16650_v15  ;;  %v6290_v7 = vld [vmem:[#allocation17] sm:$0x3] }
0x1201   :  { %v14722_v12 = vpop.f32.mrf.mxu0  ;;  %v14730_v51 = vpop.f32.mrf.mxu1 }
0x1202   :  { %v6316_v12 = vrot.slane %v6290_v7, %v17345_v19 }
0x1203   :  { %14766 = vmatpush3.bf16.msra.mxu1 %v17642_v5  ;;  %v6083_v29 = vpop.f32.mrf.mxu0 }
0x1204   :  { %v6089_v21 = vpack.c.bf16 %v6083_v29, %v6083_v29  ;;  %14771 = vmatprep.subr.bf16.mxu1 %v16650_v15 }
0x1205   :  { %v14749_v34 = vpop.f32.mrf.mxu0 }
0x1206   :  { %14760 = vmatmul.mubr.msk.bf16.vlgmr.msra.gmra.mxu0 %vm1889_vm3, %v6089_v21  ;;  %14768 = vmatmul.mubr.msk.bf16.vlgmr.msra.gmra.mxu1 %vm1971_vm2, %v6168_v59  ;;  %v6321_v59 = vrot.slane %v6290_v7, %v17348_v62 }
0x1207   :  { %14772 = vmatpush3.bf16.msra.mxu1 %v15308_v61  ;;  %v6086_v52 = vpop.f32.mrf.mxu0  ;;  %14779 = vmatprep.mubr.msk.bf16.mxu1 %vm16651_vm4, %v16650_v15 }
0x1208   :  { %14773 = vmatprep.subr.bf16.mxu1 %v16650_v15  ;;  %14785 = vmatprep.mubr.msk.bf16.mxu0 %vm16651_vm4, %v16650_v15 }
0x1209   :  { %v14750_v5 = vpop.f32.mrf.mxu0 }
0x120b   :  { %14774 = vmatpush3.bf16.msra.mxu1 %v15309_v8  ;;  %v6325_v8 = vld [vmem:[#allocation19] sm:$0xf] }
0x120c   :  { %14775 = vmatprep.subr.bf16.mxu1 %v16650_v15 }
0x120f   :  { %14776 = vmatpush3.bf16.msra.mxu1 %v15310_v27  ;;  %v6392_v27 = vld [vmem:[#allocation19 + $0x4] sm:$0xf] }
0x1210   :  { %14777 = vmatprep.subr.bf16.mxu1 %v16650_v15 }
0x1213   :  { %14778 = vmatpush3.bf16.msra.mxu1 %v15311_v10  ;;  %v15312_v10 = vld [vmem:[#allocation20 + $0x38] sm:$0xff]  }
0x1214   :  { %14795 = vmatprep.subr.bf16.mxu1 %v16650_v15 }
0x12be   :  { %v6037_v4 = vpop.f32.mrf.mxu1 }
0x12bf   :  { %v6043_v46 = vadd.f32 %v6037_v4, %v5920_v58  ;;  %v15313_v4 = vld [vmem:[#allocation20 + $0x30] sm:$0xff]  }
0x12c0   :  { %v14741_v11 = vpop.f32.mrf.mxu1 }
0x12c1   :  { %v15317_v11 = vld [vmem:[#allocation20 + $0x20] sm:$0xff]  }
0x12c2   :  { %v6040_v44 = vpop.f32.mrf.mxu1 }
0x12c3   :  { %v15319_v44 = vld [vmem:[#allocation20 + $0x18] sm:$0xff]  }
0x12c4   :  { %v14742_v38 = vpop.f32.mrf.mxu1 }
0x12c5   :  { %v15321_v38 = vld [vmem:[#allocation20 + $0x10] sm:$0xff]  }
0x12c6   :  { %v6160_v9 = vpop.f32.mrf.mxu0  ;;  %v6206_v16 = vpop.f32.mrf.mxu1 }
0x12c7   :  { %v6166_v31 = vadd.f32 %v6160_v9, %v6043_v46  ;;  %v6212_v13 = vpack.c.bf16 %v6206_v16, %v6206_v16  ;;  %v15315_v46 = vld [vmem:[#allocation20 + $0x28] sm:$0xff]   ;;  %v15325_v16 = vld [vmem:[#allocation20] sm:$0xff]  }
0x12c8   :  { %v14769_v2 = vpop.f32.mrf.mxu1  ;;  %v14761_v37 = vpop.f32.mrf.mxu0  ;;  %v15323_v9 = vld [vmem:[#allocation20 + $0x8] sm:$0xff]  }
0x12c9   :  { %14780 = vmatmul.mubr.msk.bf16.vlgmr.msra.gmra.mxu1 %vm1889_vm3, %v6212_v13  ;;  %v15327_v13 = vld [vmem:[#allocation20 + $0x40] sm:$0xff]   ;;  %v15328_v37 = vld [vmem:[#allocation20 + $0xb8] sm:$0xff]  }
0x12ca   :  { %v6209_v45 = vpop.f32.mrf.mxu1  ;;  %v6163_v43 = vpop.f32.mrf.mxu0  ;;  %14811 = vmatprep.mubr.msk.bf16.mxu1 %vm16651_vm4, %v16650_v15  ;;  %14796 = vmatpush3.bf16.msra.mxu1 %v15314_v6 }
0x12cb   :  { %14797 = vmatprep.subr.bf16.mxu1 %v16650_v15 }
0x12cc   :  { %v14770_v41 = vpop.f32.mrf.mxu1  ;;  %v14762_v63 = vpop.f32.mrf.mxu0 }
0x12cd   :  { %v15329_v63 = vld [vmem:[#allocation20 + $0xb0] sm:$0xff]  }
0x12ce   :  { %14798 = vmatpush3.bf16.msra.mxu1 %v15316_v17 }
0x12cf   :  { %14799 = vmatprep.subr.bf16.mxu1 %v16650_v15 }
0x12d2   :  { %14800 = vmatpush3.bf16.msra.mxu1 %v15318_v28 }
0x12d3   :  { %14801 = vmatprep.subr.bf16.mxu1 %v16650_v15 }
0x12d6   :  { %14802 = vmatpush3.bf16.msra.mxu1 %v15320_v47  ;;  %v15330_v47 = vld [vmem:[#allocation20 + $0xa8] sm:$0xff]  }
0x12d7   :  { %14803 = vmatprep.subr.bf16.mxu1 %v16650_v15 }
0x12da   :  { %14804 = vmatpush3.bf16.msra.mxu1 %v15322_v14 }
0x12db   :  { %14805 = vmatprep.subr.bf16.mxu1 %v16650_v15 }
0x12de   :  { %14806 = vmatpush3.bf16.msra.mxu1 %v15324_v32 }
0x12df   :  { %14807 = vmatprep.subr.bf16.mxu1 %v16650_v15 }
0x1389   :  { %v6283_v35 = vpop.f32.mrf.mxu1 }
0x138a   :  { %v6289_v23 = vadd.f32 %v6283_v35, %v6166_v31  ;;  %v15326_v31 = vld [vmem:[#allocation20 + $0x48] sm:$0xff]   ;;  %v15332_v35 = vld [vmem:[#allocation20 + $0xa0] sm:$0xff]  }
0x138b   :  { %v14781_v25 = vpop.f32.mrf.mxu1  ;;  %14808 = vmatpush3.bf16.msra.mxu1 %v15326_v31  ;;  %v15350_v31 = vld [vmem:[#allocation20 + $0x118] sm:$0xff]  }
0x138c   :  { %v6291_v40 = vrot.slane %v6289_v23, 4  ;;  %v6298_v42 = vmul.f32 %v6289_v23, %v6289_v23  ;;  %14809 = vmatprep.subr.bf16.mxu1 %v16650_v15  ;;  %v6631_v25 = vld [vmem:[#allocation19 + $0x8] sm:$0xf] }
0x138d   :  { %v6286_v39 = vpop.f32.mrf.mxu1 }
0x138e   :  { %v6292_v48 = vadd.f32 %v6291_v40, %v6289_v23  ;;  %v6299_v36 = vrot.slane %v6298_v42, 4  ;;  %v6783_v40 = vld [vmem:[#allocation19 + $0xc] sm:$0xf]  ;;  %v15333_v39 = vld [vmem:[#allocation20 + $0xf0] sm:$0xff]  }
0x138f   :  { %v14782_v55 = vpop.f32.mrf.mxu1  ;;  %14810 = vmatpush3.bf16.msra.mxu1 %v15327_v13  ;;  %v15353_v13 = vld [vmem:[#allocation20 + $0x160] sm:$0xff]  }
0x1390   :  { %v6293_v24 = vrot.slane %v6292_v48, 2  ;;  %v6300_v50 = vadd.f32 %v6299_v36, %v6298_v42  ;;  %14835 = vmatprep.subr.bf16.mxu1 %v16650_v15  ;;  %v15331_v42 = vld [vmem:[#allocation20 + $0xf8] sm:$0xff]   ;;  %v15335_v36 = vld [vmem:[#allocation20 + $0xe8] sm:$0xff]   ;;  %v15336_v55 = vld [vmem:[#allocation20 + $0x90] sm:$0xff]  }
0x1392   :  { %v6294_v49 = vadd.f32 %v6293_v24, %v6292_v48  ;;  %v6301_v54 = vrot.slane %v6300_v50, 2  ;;  %v15334_v48 = vld [vmem:[#allocation20 + $0x98] sm:$0xff]   ;;  %v15337_v24 = vld [vmem:[#allocation20 + $0xe0] sm:$0xff]  }
0x1394   :  { %v6295_v22 = vrot.slane %v6294_v49, 1  ;;  %v6302_v53 = vadd.f32 %v6301_v54, %v6300_v50  ;;  %v15338_v50 = vld [vmem:[#allocation20 + $0x88] sm:$0xff]   ;;  %v15340_v54 = vld [vmem:[#allocation20 + $0x80] sm:$0xff]  }
0x1396   :  { %v6296_v33 = vadd.f32 %v6295_v22, %v6294_v49  ;;  %v6303_v56 = vrot.slane %v6302_v53, 1  ;;  %v15339_v49 = vld [vmem:[#allocation20 + $0xd8] sm:$0xff]   ;;  %v15341_v22 = vld [vmem:[#allocation20 + $0xd0] sm:$0xff]  }
0x1398   :  { %v6297_v60 = vmul.f32 0.125, %v6296_v33  ;;  %v6304_v30 = vadd.f32 %v6303_v56, %v6302_v53  ;;  %v15342_v53 = vld [vmem:[#allocation20 + $0xc8] sm:$0xff]   ;;  %v15343_v33 = vld [vmem:[#allocation20 + $0xc0] sm:$0xff]  }
0x139a   :  { %v6305_v0 = vmul.f32 0.125, %v6304_v30  ;;  %v6306_v58 = vmul.f32 %v6297_v60, %v6297_v60  ;;  %v6308_v57 = vsub.f32 %v6289_v23, %v6297_v60 }
0x139c   :  { %v6307_v1 = vsub.f32 %v6305_v0, %v6306_v58 }
0x139e   :  { %v6309_v3 = vmax.f32 %v6307_v1, 0.0 }
0x13a0   :  { %v6310_v20 = vadd.f32 1e-05, %v6309_v3 }
0x13a2   :  { %15942 = vrsqrt.f32 %v6310_v20 }
0x13af   :  { %v15943_v51 = vpop.eup %15942 }
0x13b0   :  { %v6312_v29 = vmul.f32 %v15943_v51, %v6308_v57 }
0x13b2   :  { %v6317_v61 = vmul.f32 %v6316_v12, %v6312_v29 }
0x13b4   :  { %v6322_v21 = vadd.f32 %v6321_v59, %v6317_v61 }
0x13b6   :  { %v6323_v34 = vmax.f32 %v6322_v21, 0.0  ;;  %v6935_v21 = vld [vmem:[#allocation19 + $0x10] sm:$0xf] }
0x13b8   :  { %v6324_v52 = vpack.c.bf16 %v6323_v34, %v6323_v34 }
0x13ba   :  { %v17798_v5 = vsel %vm6330_vm5, %v6324_v52, 0  ;;  %v15344_v52 = vld [vmem:[#allocation20 + $0x138] sm:$0xff]  }
0x13bb   :  { %14784 = vmatpush3.bf16.msra.mxu0 %v17798_v5 }
0x13bc   :  { %14789 = vmatprep.subr.bf16.mxu0 %v16650_v15 }
0x13be   :  { %14786 = vmatmul.mubr.msk.bf16.vlgmr.msra.gmra.mxu0 %vm6326_vm6, %v6325_v8 }
0x13bf   :  { %14790 = vmatpush3.bf16.msra.mxu0 %v17798_v5  ;;  %14791 = vmatprep.mubr.msk.bf16.mxu0 %vm16651_vm4, %v16650_v15 }
0x13c0   :  { %14815 = vmatprep.subr.bf16.mxu0 %v16650_v15 }
0x13c6   :  { %14792 = vmatmul.mubr.msk.bf16.vlgmr.msra.gmra.mxu0 %vm6326_vm6, %v6392_v27 }
0x13c7   :  { %14816 = vmatpush3.bf16.msra.mxu0 %v15312_v10  ;;  %14831 = vmatprep.mubr.msk.bf16.mxu0 %vm16651_vm4, %v16650_v15  ;;  %v15345_v10 = vld [vmem:[#allocation20 + $0x130] sm:$0xff]  }
0x13c8   :  { %14817 = vmatprep.subr.bf16.mxu0 %v16650_v15 }
0x13cb   :  { %14818 = vmatpush3.bf16.msra.mxu0 %v15313_v4 }
0x13cc   :  { %14819 = vmatprep.subr.bf16.mxu0 %v16650_v15 }
0x13cf   :  { %14820 = vmatpush3.bf16.msra.mxu0 %v15315_v46  ;;  %v7087_v46 = vld [vmem:[#allocation19 + $0x14] sm:$0xf] }
0x13d0   :  { %14821 = vmatprep.subr.bf16.mxu0 %v16650_v15 }
0x13d3   :  { %14822 = vmatpush3.bf16.msra.mxu0 %v15317_v11  ;;  %v15347_v11 = vld [vmem:[#allocation20 + $0x178] sm:$0xff]  }
0x13d4   :  { %14823 = vmatprep.subr.bf16.mxu0 %v16650_v15 }
0x13d7   :  { %14824 = vmatpush3.bf16.msra.mxu0 %v15319_v44  ;;  %v15346_v44 = vld [vmem:[#allocation20 + $0x128] sm:$0xff]  }
0x13d8   :  { %14825 = vmatprep.subr.bf16.mxu0 %v16650_v15 }
0x13db   :  { %14826 = vmatpush3.bf16.msra.mxu0 %v15321_v38  ;;  %v15349_v38 = vld [vmem:[#allocation20 + $0x170] sm:$0xff]  }
0x13dc   :  { %14827 = vmatprep.subr.bf16.mxu0 %v16650_v15 }
0x13df   :  { %14828 = vmatpush3.bf16.msra.mxu0 %v15323_v9  ;;  %v15348_v9 = vld [vmem:[#allocation20 + $0x120] sm:$0xff]  }
0x13e0   :  { %14829 = vmatprep.subr.bf16.mxu0 %v16650_v15 }
0x13e3   :  { %14830 = vmatpush3.bf16.msra.mxu0 %v15325_v16  ;;  %v15351_v16 = vld [vmem:[#allocation20 + $0x168] sm:$0xff]  }
0x13e4   :  { %14841 = vmatprep.subr.bf16.mxu0 %v16650_v15 }
0x147e   :  { %v6368_v2 = vpop.f32.mrf.mxu0 }
0x147f   :  { %v6374_v45 = vpack.c.bf16 %v6368_v2, %v6368_v2  ;;  %v15352_v2 = vld [vmem:[#allocation20 + $0x110] sm:$0xff]  }
0x1480   :  { %v14787_v43 = vpop.f32.mrf.mxu0 }
0x1481   :  { %14832 = vmatmul.mubr.bf16.vlgmr.msra.gmra.mxu0 %v6374_v45  ;;  %v15355_v45 = vld [vmem:[#allocation20 + $0x158] sm:$0xff]   ;;  %v15356_v43 = vld [vmem:[#allocation20 + $0x100] sm:$0xff]  }
0x1482   :  { %v6371_v41 = vpop.f32.mrf.mxu0  ;;  %14842 = vmatpush3.bf16.msra.mxu0 %v15328_v37  ;;  %14857 = vmatprep.mubr.msk.bf16.mxu0 %vm16651_vm4, %v16650_v15  ;;  %v15354_v37 = vld [vmem:[#allocation20 + $0x108] sm:$0xff]  }
0x1483   :  { %14843 = vmatprep.subr.bf16.mxu0 %v16650_v15  ;;  %v15357_v41 = vld [vmem:[#allocation20 + $0x150] sm:$0xff]  }
0x1484   :  { %v14788_v6 = vpop.f32.mrf.mxu0 }
0x1485   :  { %v15359_v6 = vld [vmem:[#allocation20 + $0x140] sm:$0xff]  }
0x1486   :  { %v6430_v17 = vpop.f32.mrf.mxu0  ;;  %14844 = vmatpush3.bf16.msra.mxu0 %v15329_v63  ;;  %v15358_v63 = vld [vmem:[#allocation20 + $0x148] sm:$0xff]  }
0x1487   :  { %v6436_v28 = vpack.c.bf16 %v6430_v17, %v6430_v17  ;;  %14845 = vmatprep.subr.bf16.mxu0 %v16650_v15 }
0x1488   :  { %v14793_v14 = vpop.f32.mrf.mxu0 }
0x1489   :  { %14812 = vmatmul.mubr.bf16.vlgmr.msra.gmra.mxu1 %v6436_v28 }
0x148a   :  { %14836 = vmatpush3.bf16.msra.mxu1 %v17798_v5  ;;  %v6433_v32 = vpop.f32.mrf.mxu0  ;;  %14837 = vmatprep.mubr.msk.bf16.mxu1 %vm16651_vm4, %v16650_v15 }
0x148b   :  { %14861 = vmatprep.subr.bf16.mxu1 %v16650_v15  ;;  %14846 = vmatpush3.bf16.msra.mxu0 %v15330_v47 }
0x148c   :  { %v14794_v23 = vpop.f32.mrf.mxu0  ;;  %14847 = vmatprep.subr.bf16.mxu0 %v16650_v15 }
0x148f   :  { %14848 = vmatpush3.bf16.msra.mxu0 %v15332_v35 }
0x1490   :  { %14849 = vmatprep.subr.bf16.mxu0 %v16650_v15 }
0x1491   :  { %14838 = vmatmul.mubr.msk.bf16.vlgmr.msra.gmra.mxu1 %vm6326_vm6, %v6631_v25 }
0x1492   :  { %14862 = vmatpush3.bf16.msra.mxu1 %v17798_v5  ;;  %14863 = vmatprep.mubr.msk.bf16.mxu1 %vm16651_vm4, %v16650_v15 }
0x1493   :  { %14867 = vmatprep.subr.bf16.mxu1 %v16650_v15  ;;  %14850 = vmatpush3.bf16.msra.mxu0 %v15334_v48 }
0x1494   :  { %14851 = vmatprep.subr.bf16.mxu0 %v16650_v15 }
0x1497   :  { %14852 = vmatpush3.bf16.msra.mxu0 %v15336_v55 }
0x1498   :  { %14853 = vmatprep.subr.bf16.mxu0 %v16650_v15 }
0x1499   :  { %14864 = vmatmul.mubr.msk.bf16.vlgmr.msra.gmra.mxu1 %vm6326_vm6, %v6783_v40 }
0x149a   :  { %14868 = vmatpush3.bf16.msra.mxu1 %v15331_v42  ;;  %14883 = vmatprep.mubr.msk.bf16.mxu1 %vm16651_vm4, %v16650_v15 }
0x149b   :  { %14869 = vmatprep.subr.bf16.mxu1 %v16650_v15  ;;  %14854 = vmatpush3.bf16.msra.mxu0 %v15338_v50 }
0x149c   :  { %14855 = vmatprep.subr.bf16.mxu0 %v16650_v15 }
0x149e   :  { %14870 = vmatpush3.bf16.msra.mxu1 %v15333_v39 }
0x149f   :  { %14871 = vmatprep.subr.bf16.mxu1 %v16650_v15  ;;  %14856 = vmatpush3.bf16.msra.mxu0 %v15340_v54 }
0x14a0   :  { %14887 = vmatprep.subr.bf16.mxu0 %v16650_v15 }
0x14a2   :  { %14872 = vmatpush3.bf16.msra.mxu1 %v15335_v36 }
0x14a3   :  { %14873 = vmatprep.subr.bf16.mxu1 %v16650_v15 }
0x14a6   :  { %14874 = vmatpush3.bf16.msra.mxu1 %v15337_v24 }
0x14a7   :  { %14875 = vmatprep.subr.bf16.mxu1 %v16650_v15 }
0x14aa   :  { %14876 = vmatpush3.bf16.msra.mxu1 %v15339_v49  ;;  %v7239_v49 = vld [vmem:[#allocation19 + $0x18] sm:$0xf] }
0x14ab   :  { %14877 = vmatprep.subr.bf16.mxu1 %v16650_v15 }
0x14ae   :  { %14878 = vmatpush3.bf16.msra.mxu1 %v15341_v22  ;;  %v15360_v22 = vld [vmem:[#allocation20 + $0x1b8] sm:$0xff]  }
0x14af   :  { %14879 = vmatprep.subr.bf16.mxu1 %v16650_v15 }
0x14b2   :  { %14880 = vmatpush3.bf16.msra.mxu1 %v15342_v53 }
0x14b3   :  { %14881 = vmatprep.subr.bf16.mxu1 %v16650_v15 }
0x14b6   :  { %14882 = vmatpush3.bf16.msra.mxu1 %v15343_v33 }
0x14b7   :  { %14913 = vmatprep.subr.bf16.mxu1 %v16650_v15 }
0x1541   :  { %v6624_v56 = vpop.f32.mrf.mxu0 }
0x1543   :  { %v14833_v60 = vpop.f32.mrf.mxu0 }
0x1545   :  { %v6627_v30 = vpop.f32.mrf.mxu0 }
0x1546   :  { %v7391_v30 = vld [vmem:[#allocation19 + $0x1c] sm:$0xf] }
0x1547   :  { %v14834_v0 = vpop.f32.mrf.mxu0 }
0x1548   :  { %v15363_v0 = vld [vmem:[#allocation20 + $0x1f8] sm:$0xff]  }
0x1549   :  { %v6536_v58 = vpop.f32.mrf.mxu1 }
0x154a   :  { %v17850_v1 = vadd.f32 %v6624_v56, %v6536_v58  ;;  %v15361_v56 = vld [vmem:[#allocation20 + $0x1b0] sm:$0xff]   ;;  %v15362_v58 = vld [vmem:[#allocation20 + $0x1a8] sm:$0xff]  }
0x154b   :  { %v14813_v3 = vpop.f32.mrf.mxu1 }
0x154c   :  { %v15364_v3 = vld [vmem:[#allocation20 + $0x1a0] sm:$0xff]  }
0x154d   :  { %v6539_v20 = vpop.f32.mrf.mxu1 }
0x154e   :  { %v15367_v20 = vld [vmem:[#allocation20 + $0x1e8] sm:$0xff]  }
0x154f   :  { %v14814_v7 = vpop.f32.mrf.mxu1 }
0x1550   :  { %v15366_v7 = vld [vmem:[#allocation20 + $0x198] sm:$0xff]  }
0x1551   :  { %v6669_v57 = vpop.f32.mrf.mxu1 }
0x1552   :  { %v6675_v12 = vpack.c.bf16 %v6669_v57, %v6669_v57  ;;  %v15368_v57 = vld [vmem:[#allocation20 + $0x190] sm:$0xff]  }
0x1553   :  { %v14839_v51 = vpop.f32.mrf.mxu1 }
0x1554   :  { %14858 = vmatmul.mubr.bf16.vlgmr.msra.gmra.mxu0 %v6675_v12  ;;  %v15369_v12 = vld [vmem:[#allocation20 + $0x1e0] sm:$0xff]   ;;  %v15370_v51 = vld [vmem:[#allocation20 + $0x188] sm:$0xff]  }
0x1555   :  { %14888 = vmatpush3.bf16.msra.mxu0 %v17798_v5  ;;  %v6672_v29 = vpop.f32.mrf.mxu1  ;;  %14889 = vmatprep.mubr.msk.bf16.mxu0 %vm16651_vm4, %v16650_v15 }
0x1556   :  { %14893 = vmatprep.subr.bf16.mxu0 %v16650_v15  ;;  %v15371_v29 = vld [vmem:[#allocation20 + $0x1d8] sm:$0xff]  }
0x1557   :  { %v14840_v59 = vpop.f32.mrf.mxu1 }
0x1558   :  { %v15372_v59 = vld [vmem:[#allocation20 + $0x180] sm:$0xff]  }
0x1559   :  { %v6821_v61 = vpop.f32.mrf.mxu1 }
0x155a   :  { %v6827_v34 = vpack.c.bf16 %v6821_v61, %v6821_v61  ;;  %v15373_v61 = vld [vmem:[#allocation20 + $0x1d0] sm:$0xff]  }
0x155b   :  { %v14865_v8 = vpop.f32.mrf.mxu1 }
0x155c   :  { %14884 = vmatmul.mubr.bf16.vlgmr.msra.gmra.mxu1 %v6827_v34  ;;  %14890 = vmatmul.mubr.msk.bf16.vlgmr.msra.gmra.mxu0 %vm6326_vm6, %v6935_v21  ;;  %v15374_v21 = vld [vmem:[#allocation20 + $0x1c8] sm:$0xff]   ;;  %v15375_v34 = vld [vmem:[#allocation20 + $0x1c0] sm:$0xff]  }
0x155d   :  { %14914 = vmatpush3.bf16.msra.mxu1 %v17798_v5  ;;  %14915 = vmatprep.mubr.msk.bf16.mxu1 %vm16651_vm4, %v16650_v15  ;;  %v6824_v27 = vpop.f32.mrf.mxu1 }
0x155e   :  { %14894 = vmatpush3.bf16.msra.mxu0 %v15344_v52  ;;  %14919 = vmatprep.subr.bf16.mxu1 %v16650_v15 }
0x155f   :  { %14895 = vmatprep.subr.bf16.mxu0 %v16650_v15  ;;  %v14866_v4 = vpop.f32.mrf.mxu1  ;;  %14909 = vmatprep.mubr.msk.bf16.mxu0 %vm16651_vm4, %v16650_v15 }
0x1562   :  { %14896 = vmatpush3.bf16.msra.mxu0 %v15345_v10 }
0x1563   :  { %14897 = vmatprep.subr.bf16.mxu0 %v16650_v15 }
0x1564   :  { %14916 = vmatmul.mubr.msk.bf16.vlgmr.msra.gmra.mxu1 %vm6326_vm6, %v7087_v46 }
0x1565   :  { %14920 = vmatpush3.bf16.msra.mxu1 %v15347_v11  ;;  %14935 = vmatprep.mubr.msk.bf16.mxu1 %vm16651_vm4, %v16650_v15 }
0x1566   :  { %14898 = vmatpush3.bf16.msra.mxu0 %v15346_v44  ;;  %14921 = vmatprep.subr.bf16.mxu1 %v16650_v15 }
0x1567   :  { %14899 = vmatprep.subr.bf16.mxu0 %v16650_v15 }
0x1569   :  { %14922 = vmatpush3.bf16.msra.mxu1 %v15349_v38 }
0x156a   :  { %14900 = vmatpush3.bf16.msra.mxu0 %v15348_v9  ;;  %14923 = vmatprep.subr.bf16.mxu1 %v16650_v15 }
0x156b   :  { %14901 = vmatprep.subr.bf16.mxu0 %v16650_v15 }
0x156d   :  { %14924 = vmatpush3.bf16.msra.mxu1 %v15351_v16 }
0x156e   :  { %14902 = vmatpush3.bf16.msra.mxu0 %v15350_v31  ;;  %14925 = vmatprep.subr.bf16.mxu1 %v16650_v15 }
0x156f   :  { %14903 = vmatprep.subr.bf16.mxu0 %v16650_v15 }
0x1571   :  { %14926 = vmatpush3.bf16.msra.mxu1 %v15353_v13 }
0x1572   :  { %14904 = vmatpush3.bf16.msra.mxu0 %v15352_v2  ;;  %14927 = vmatprep.subr.bf16.mxu1 %v16650_v15 }
0x1573   :  { %14905 = vmatprep.subr.bf16.mxu0 %v16650_v15 }
0x1575   :  { %14928 = vmatpush3.bf16.msra.mxu1 %v15355_v45 }
0x1576   :  { %14906 = vmatpush3.bf16.msra.mxu0 %v15354_v37  ;;  %14929 = vmatprep.subr.bf16.mxu1 %v16650_v15 }
0x1577   :  { %14907 = vmatprep.subr.bf16.mxu0 %v16650_v15 }
0x1579   :  { %14930 = vmatpush3.bf16.msra.mxu1 %v15357_v41  ;;  %v15376_v41 = vld [vmem:[#allocation20 + $0x238] sm:$0xff]  }
0x157a   :  { %14908 = vmatpush3.bf16.msra.mxu0 %v15356_v43  ;;  %14931 = vmatprep.subr.bf16.mxu1 %v16650_v15  ;;  %v7543_v43 = vld [vmem:[#allocation19 + $0x20] sm:$0xf] }
0x157b   :  { %14939 = vmatprep.subr.bf16.mxu0 %v16650_v15 }
0x157d   :  { %14932 = vmatpush3.bf16.msra.mxu1 %v15358_v63 }
0x157e   :  { %14933 = vmatprep.subr.bf16.mxu1 %v16650_v15 }
0x1581   :  { %14934 = vmatpush3.bf16.msra.mxu1 %v15359_v6 }
0x1582   :  { %14965 = vmatprep.subr.bf16.mxu1 %v16650_v15 }
0x1614   :  { %v6775_v17 = vpop.f32.mrf.mxu0 }
0x1615   :  { %v6781_v28 = vadd.f32 %v6775_v17, %v17850_v1  ;;  %v15365_v1 = vld [vmem:[#allocation20 + $0x1f0] sm:$0xff]  }
0x1616   :  { %v14859_v47 = vpop.f32.mrf.mxu0  ;;  %v15377_v17 = vld [vmem:[#allocation20 + $0x230] sm:$0xff]  }
0x1617   :  { %v15378_v47 = vld [vmem:[#allocation20 + $0x228] sm:$0xff]  }
0x1618   :  { %v6778_v14 = vpop.f32.mrf.mxu0 }
0x1619   :  { %v15379_v14 = vld [vmem:[#allocation20 + $0x220] sm:$0xff]  }
0x161a   :  { %v14860_v32 = vpop.f32.mrf.mxu0 }
0x161b   :  { %v15380_v32 = vld [vmem:[#allocation20 + $0x218] sm:$0xff]  }
0x161c   :  { %v6927_v35 = vpop.f32.mrf.mxu1  ;;  %v6973_v23 = vpop.f32.mrf.mxu0 }
0x161d   :  { %v17883_v25 = vadd.f32 %v6927_v35, %v6781_v28  ;;  %v6979_v40 = vpack.c.bf16 %v6973_v23, %v6973_v23  ;;  %v15381_v35 = vld [vmem:[#allocation20 + $0x210] sm:$0xff]   ;;  %v15382_v23 = vld [vmem:[#allocation20 + $0x208] sm:$0xff]  }
0x161e   :  { %v14885_v42 = vpop.f32.mrf.mxu1  ;;  %v14891_v39 = vpop.f32.mrf.mxu0 }
0x161f   :  { %14910 = vmatmul.mubr.bf16.vlgmr.msra.gmra.mxu0 %v6979_v40 }
0x1620   :  { %14940 = vmatpush3.bf16.msra.mxu0 %v17798_v5  ;;  %v6930_v48 = vpop.f32.mrf.mxu1  ;;  %v6976_v36 = vpop.f32.mrf.mxu0  ;;  %14941 = vmatprep.mubr.msk.bf16.mxu0 %vm16651_vm4, %v16650_v15 }
0x1621   :  { %14945 = vmatprep.subr.bf16.mxu0 %v16650_v15 }
0x1622   :  { %v14886_v55 = vpop.f32.mrf.mxu1  ;;  %v14892_v24 = vpop.f32.mrf.mxu0 }
0x1624   :  { %v7125_v50 = vpop.f32.mrf.mxu1 }
0x1625   :  { %v7131_v54 = vpack.c.bf16 %v7125_v50, %v7125_v50 }
0x1626   :  { %v14917_v53 = vpop.f32.mrf.mxu1 }
0x1627   :  { %14936 = vmatmul.mubr.bf16.vlgmr.msra.gmra.mxu1 %v7131_v54  ;;  %14942 = vmatmul.mubr.msk.bf16.vlgmr.msra.gmra.mxu0 %vm6326_vm6, %v7239_v49 }
0x1628   :  { %14966 = vmatpush3.bf16.msra.mxu1 %v17798_v5  ;;  %14967 = vmatprep.mubr.msk.bf16.mxu1 %vm16651_vm4, %v16650_v15  ;;  %v7128_v33 = vpop.f32.mrf.mxu1 }
0x1629   :  { %14946 = vmatpush3.bf16.msra.mxu0 %v15360_v22  ;;  %14971 = vmatprep.subr.bf16.mxu1 %v16650_v15 }
0x162a   :  { %14947 = vmatprep.subr.bf16.mxu0 %v16650_v15  ;;  %v14918_v60 = vpop.f32.mrf.mxu1  ;;  %14961 = vmatprep.mubr.msk.bf16.mxu0 %vm16651_vm4, %v16650_v15 }
0x162d   :  { %14948 = vmatpush3.bf16.msra.mxu0 %v15361_v56 }
0x162e   :  { %14949 = vmatprep.subr.bf16.mxu0 %v16650_v15 }
0x162f   :  { %14968 = vmatmul.mubr.msk.bf16.vlgmr.msra.gmra.mxu1 %vm6326_vm6, %v7391_v30  ;;  %v5155_v30 = vrot.slane %v17711_v26, 4 }
0x1630   :  { %14972 = vmatpush3.bf16.msra.mxu1 %v15363_v0  ;;  %14987 = vmatprep.mubr.msk.bf16.mxu1 %vm16651_vm4, %v16650_v15  ;;  %v5162_v0 = vmul.f32 %v17711_v26, %v17711_v26 }
0x1631   :  { %14950 = vmatpush3.bf16.msra.mxu0 %v15362_v58  ;;  %14973 = vmatprep.subr.bf16.mxu1 %v16650_v15  ;;  %v5156_v58 = vadd.f32 %v5155_v30, %v17711_v26 }
0x1632   :  { %14951 = vmatprep.subr.bf16.mxu0 %v16650_v15 }
0x1634   :  { %14974 = vmatpush3.bf16.msra.mxu1 %v15365_v1  ;;  %v5163_v1 = vrot.slane %v5162_v0, 4 }
0x1635   :  { %14952 = vmatpush3.bf16.msra.mxu0 %v15364_v3  ;;  %14975 = vmatprep.subr.bf16.mxu1 %v16650_v15  ;;  %v5157_v3 = vrot.slane %v5156_v58, 2 }
0x1636   :  { %14953 = vmatprep.subr.bf16.mxu0 %v16650_v15 }
0x1638   :  { %14976 = vmatpush3.bf16.msra.mxu1 %v15367_v20  ;;  %v5164_v20 = vadd.f32 %v5163_v1, %v5162_v0  ;;  %v15386_v1 = vld [vmem:[%s18515_s23 + $0x74] ss:$8 sps:$4 sm:$0xff]  }
0x1639   :  { %14954 = vmatpush3.bf16.msra.mxu0 %v15366_v7  ;;  %14977 = vmatprep.subr.bf16.mxu1 %v16650_v15  ;;  %v5158_v7 = vadd.f32 %v5157_v3, %v5156_v58 }
0x163a   :  { %14955 = vmatprep.subr.bf16.mxu0 %v16650_v15 }
0x163c   :  { %14978 = vmatpush3.bf16.msra.mxu1 %v15369_v12  ;;  %v5159_v12 = vrot.slane %v5158_v7, 1 }
0x163d   :  { %14956 = vmatpush3.bf16.msra.mxu0 %v15368_v57  ;;  %14979 = vmatprep.subr.bf16.mxu1 %v16650_v15  ;;  %v5165_v57 = vrot.slane %v5164_v20, 2 }
0x163e   :  { %14957 = vmatprep.subr.bf16.mxu0 %v16650_v15 }
0x1640   :  { %14980 = vmatpush3.bf16.msra.mxu1 %v15371_v29  ;;  %v5160_v29 = vadd.f32 %v5159_v12, %v5158_v7  ;;  %v8006_v7 = vld [vmem:[%s18517_s17] sm:$0x1]  ;;  %v15401_v12 = vld [vmem:[#allocation26 + $0x274] ss:$8 sps:$4 sm:$0xff]  }
0x1641   :  { %14958 = vmatpush3.bf16.msra.mxu0 %v15370_v51  ;;  %14981 = vmatprep.subr.bf16.mxu1 %v16650_v15  ;;  %v5166_v51 = vadd.f32 %v5165_v57, %v5164_v20  ;;  %v7731_v20 = vld [vmem:[%s18516_s26] sm:$0x1]  ;;  %v15384_v57 = vld [vmem:[%s18515_s23 + $0x70] ss:$8 sps:$4 sm:$0xff]  }
0x1642   :  { %14959 = vmatprep.subr.bf16.mxu0 %v16650_v15 }
0x1644   :  { %14982 = vmatpush3.bf16.msra.mxu1 %v15373_v61 }
0x1645   :  { %14960 = vmatpush3.bf16.msra.mxu0 %v15372_v59  ;;  %14983 = vmatprep.subr.bf16.mxu1 %v16650_v15  ;;  %v5167_v59 = vrot.slane %v5166_v51, 1 }
0x1646   :  { %14991 = vmatprep.subr.bf16.mxu0 %v16650_v15 }
0x1648   :  { %14984 = vmatpush3.bf16.msra.mxu1 %v15374_v21  ;;  %v5161_v21 = vmul.f32 0.125, %v5160_v29  ;;  %v15387_v29 = vld [vmem:[%s18515_s23 + $0x60] ss:$8 sps:$4 sm:$0xff]  }
0x1649   :  { %14985 = vmatprep.subr.bf16.mxu1 %v16650_v15 }
0x164c   :  { %14986 = vmatpush3.bf16.msra.mxu1 %v15375_v34  ;;  %v5168_v34 = vadd.f32 %v5167_v59, %v5166_v51  ;;  %v15389_v51 = vld [vmem:[%s18515_s23 + $0x64] ss:$8 sps:$4 sm:$0xff]   ;;  %v15392_v59 = vld [vmem:[%s18515_s23 + $0x54] ss:$8 sps:$4 sm:$0xff]  }
0x164d   :  { %15017 = vmatprep.subr.bf16.mxu1 %v16650_v15 }
0x16df   :  { %v7079_v52 = vpop.f32.mrf.mxu0 }
0x16e0   :  { %v7085_v8 = vadd.f32 %v7079_v52, %v17883_v25  ;;  %v15383_v25 = vld [vmem:[#allocation20 + $0x200] sm:$0xff]  }
0x16e1   :  { %v14911_v27 = vpop.f32.mrf.mxu0 }
0x16e3   :  { %v7082_v10 = vpop.f32.mrf.mxu0 }
0x16e5   :  { %v14912_v4 = vpop.f32.mrf.mxu0 }
0x16e7   :  { %v7231_v46 = vpop.f32.mrf.mxu1  ;;  %v7277_v11 = vpop.f32.mrf.mxu0 }
0x16e8   :  { %v7237_v44 = vadd.f32 %v7231_v46, %v7085_v8  ;;  %v7283_v38 = vpack.c.bf16 %v7277_v11, %v7277_v11  ;;  %v5169_v46 = vmul.f32 0.125, %v5168_v34  ;;  %v5170_v11 = vmul.f32 %v5161_v21, %v5161_v21  ;;  %v15399_v34 = vld [vmem:[#allocation26 + $0x270] ss:$8 sps:$4 sm:$0xff]  }
0x16e9   :  { %v14937_v9 = vpop.f32.mrf.mxu1  ;;  %v14943_v16 = vpop.f32.mrf.mxu0 }
0x16ea   :  { %14962 = vmatmul.mubr.bf16.vlgmr.msra.gmra.mxu0 %v7283_v38 }
0x16eb   :  { %14992 = vmatpush3.bf16.msra.mxu0 %v17798_v5  ;;  %v7234_v31 = vpop.f32.mrf.mxu1  ;;  %v7280_v13 = vpop.f32.mrf.mxu0  ;;  %14993 = vmatprep.mubr.msk.bf16.mxu0 %vm16651_vm4, %v16650_v15 }
0x16ec   :  { %14997 = vmatprep.subr.bf16.mxu0 %v16650_v15  ;;  %v5171_v13 = vsub.f32 %v5169_v46, %v5170_v11  ;;  %v15413_v46 = vld [vmem:[#allocation26 + $0x254] ss:$8 sps:$4 sm:$0xff]   ;;  %v15398_v11 = vld [vmem:[%s18515_s23 + $0x34] ss:$8 sps:$4 sm:$0xff]  }
0x16ed   :  { %v14938_v2 = vpop.f32.mrf.mxu1  ;;  %v14944_v37 = vpop.f32.mrf.mxu0 }
0x16ef   :  { %v7429_v45 = vpop.f32.mrf.mxu1 }
0x16f0   :  { %v7435_v63 = vpack.c.bf16 %v7429_v45, %v7429_v45 }
0x16f1   :  { %v14969_v6 = vpop.f32.mrf.mxu1 }
0x16f2   :  { %14988 = vmatmul.mubr.bf16.vlgmr.msra.gmra.mxu1 %v7435_v63  ;;  %14994 = vmatmul.mubr.msk.bf16.vlgmr.msra.gmra.mxu0 %vm6326_vm6, %v7543_v43 }
0x16f3   :  { %14998 = vmatpush3.bf16.msra.mxu0 %v15376_v41  ;;  %v7432_v5 = vpop.f32.mrf.mxu1  ;;  %15013 = vmatprep.mubr.msk.bf16.mxu0 %vm16651_vm4, %v16650_v15  ;;  %v5173_v41 = vmax.f32 %v5171_v13, 0.0  ;;  %v15408_v13 = vld [vmem:[%s18515_s23 + $0x10] ss:$8 sps:$4 sm:$0xff]  }
0x16f4   :  { %14999 = vmatprep.subr.bf16.mxu0 %v16650_v15  ;;  %15019 = vmatprep.mubr.msk.bf16.mxu1 %vm16651_vm4, %v16650_v15 }
0x16f5   :  { %v14970_v28 = vpop.f32.mrf.mxu1 }
0x16f6   :  { %v5174_v28 = vadd.f32 1e-05, %v5173_v41  ;;  %v15422_v41 = vld [vmem:[#allocation26 + $0x2f4] ss:$8 sps:$4 sm:$0xff]  }
0x16f7   :  { %15000 = vmatpush3.bf16.msra.mxu0 %v15377_v17 }
0x16f8   :  { %15001 = vmatprep.subr.bf16.mxu0 %v16650_v15  ;;  %15944 = vrsqrt.f32 %v5174_v28  ;;  %v15437_v28 = vld [vmem:[#allocation26 + $0x214] ss:$8 sps:$4 sm:$0xff]  }
0x16fb   :  { %15002 = vmatpush3.bf16.msra.mxu0 %v15378_v47 }
0x16fc   :  { %15003 = vmatprep.subr.bf16.mxu0 %v16650_v15 }
0x16ff   :  { %15004 = vmatpush3.bf16.msra.mxu0 %v15379_v14 }
0x1700   :  { %15005 = vmatprep.subr.bf16.mxu0 %v16650_v15 }
0x1703   :  { %15006 = vmatpush3.bf16.msra.mxu0 %v15380_v32 }
0x1704   :  { %15007 = vmatprep.subr.bf16.mxu0 %v16650_v15 }
0x1707   :  { %15008 = vmatpush3.bf16.msra.mxu0 %v15381_v35 }
0x1708   :  { %15009 = vmatprep.subr.bf16.mxu0 %v16650_v15 }
0x170b   :  { %15010 = vmatpush3.bf16.msra.mxu0 %v15382_v23 }
0x170c   :  { %15011 = vmatprep.subr.bf16.mxu0 %v16650_v15 }
0x170f   :  { %15012 = vmatpush3.bf16.msra.mxu0 %v15383_v25  ;;  %v15945_v25 = vpop.eup %15944 }
0x1710   :  { %15023 = vmatprep.subr.bf16.mxu0 %v16650_v15 }
0x17aa   :  { %v7383_v40 = vpop.f32.mrf.mxu0 }
0x17ab   :  { %v7389_v42 = vadd.f32 %v7383_v40, %v7237_v44  ;;  %v5154_v40 = vld [vmem:[#allocation25] sm:$0x3] }
0x17ac   :  { %v14963_v39 = vpop.f32.mrf.mxu0 }
0x17ad   :  { %v5172_v39 = vsub.f32 %v17711_v26, %v5161_v21  ;;  %v12727_v21 = vld [vmem:[%s18517_s17 + $0x1] sm:$0x1] }
0x17ae   :  { %v7386_v48 = vpop.f32.mrf.mxu0 }
0x17af   :  { %v5176_v48 = vmul.f32 %v15945_v25, %v5172_v39 }
0x17b0   :  { %v14964_v36 = vpop.f32.mrf.mxu0 }
0x17b1   :  { %v5180_v36 = vrot.slane %v5154_v40, %v17345_v19 }
0x17b2   :  { %v7535_v55 = vpop.f32.mrf.mxu1  ;;  %v7581_v24 = vpop.f32.mrf.mxu0 }
0x17b3   :  { %v7541_v50 = vadd.f32 %v7535_v55, %v7389_v42  ;;  %v7587_v49 = vpack.c.bf16 %v7581_v24, %v7581_v24  ;;  %v7694_v42 = vld [vmem:[#allocation22] sm:$0x3] }
0x17b4   :  { %v14995_v54 = vpop.f32.mrf.mxu0  ;;  %v14989_v22 = vpop.f32.mrf.mxu1  ;;  %v7720_v24 = vrot.slane %v7694_v42, %v17345_v19 }
0x17b5   :  { %15014 = vmatmul.mubr.bf16.vlgmr.msra.gmra.mxu0 %v7587_v49  ;;  %v7725_v54 = vrot.slane %v7694_v42, %v17348_v62  ;;  %v5181_v22 = vmul.f32 %v5180_v36, %v5176_v48  ;;  %v15428_v42 = vld [vmem:[#allocation26 + $0x2e4] ss:$8 sps:$4 sm:$0xff]  }
0x17b6   :  { %v7584_v53 = vpop.f32.mrf.mxu0  ;;  %v7538_v33 = vpop.f32.mrf.mxu1  ;;  %15025 = vmatprep.mubr.msk.bf16.mxu0 %vm16651_vm4, %v16650_v15 }
0x17b7   :  { %v5185_v33 = vrot.slane %v5154_v40, %v17348_v62 }
0x17b8   :  { %v14996_v56 = vpop.f32.mrf.mxu0  ;;  %v14990_v60 = vpop.f32.mrf.mxu1 }
0x17b9   :  { %v5186_v26 = vadd.f32 %v5185_v33, %v5181_v22 }
0x1875   :  { %v7687_v61 = vpop.f32.mrf.mxu0 }
0x1876   :  { %v7693_v52 = vadd.f32 %v7687_v61, %v7541_v50  ;;  %v18518_v61 = vmov 0  }
0x1877   :  { %v15015_v8 = vpop.f32.mrf.mxu0 }
0x1878   :  { %v7695_v27 = vrot.slane %v7693_v52, 4  ;;  %v7702_v10 = vmul.f32 %v7693_v52, %v7693_v52  ;;  %v15407_v8 = vld [vmem:[#allocation26 + $0x264] ss:$8 sps:$4 sm:$0xff]  }
0x1879   :  { %v7690_v4 = vpop.f32.mrf.mxu0 }
0x187a   :  { %v7696_v44 = vadd.f32 %v7695_v27, %v7693_v52  ;;  %v7703_v38 = vrot.slane %v7702_v10, 4  ;;  %v15395_v27 = vld [vmem:[%s18515_s23 + $0x44] ss:$8 sps:$4 sm:$0xff]   ;;  %v15393_v4 = vld [vmem:[%s18515_s23 + $0x40] ss:$8 sps:$4 sm:$0xff]  }
0x187b   :  { %v15016_v9 = vpop.f32.mrf.mxu0 }
0x187c   :  { %v7697_v16 = vrot.slane %v7696_v44, 2  ;;  %v7704_v31 = vadd.f32 %v7703_v38, %v7702_v10  ;;  %v15405_v10 = vld [vmem:[#allocation26 + $0x260] ss:$8 sps:$4 sm:$0xff]   ;;  %v15396_v38 = vld [vmem:[%s18515_s23 + $0x30] ss:$8 sps:$4 sm:$0xff]  }
0x187d   :  { %v15404_v9 = vld [vmem:[%s18515_s23 + $0x24] ss:$8 sps:$4 sm:$0xff]  }
0x187e   :  { %v7698_v2 = vadd.f32 %v7697_v16, %v7696_v44  ;;  %v7705_v37 = vrot.slane %v7704_v31, 2  ;;  %v15411_v44 = vld [vmem:[#allocation26 + $0x250] ss:$8 sps:$4 sm:$0xff]   ;;  %v15402_v16 = vld [vmem:[%s18515_s23 + $0x20] ss:$8 sps:$4 sm:$0xff]  }
0x1880   :  { %v7699_v45 = vrot.slane %v7698_v2, 1  ;;  %v7706_v43 = vadd.f32 %v7705_v37, %v7704_v31  ;;  %v15410_v31 = vld [vmem:[%s18515_s23 + $0x14] ss:$8 sps:$4 sm:$0xff]   ;;  %v15414_v37 = vld [vmem:[%s18515_s23] ss:$8 sps:$4 sm:$0xff]  }
0x1882   :  { %v7700_v63 = vadd.f32 %v7699_v45, %v7698_v2  ;;  %v7707_v6 = vrot.slane %v7706_v43, 1  ;;  %v15416_v2 = vld [vmem:[%s18515_s23 + $0x4] ss:$8 sps:$4 sm:$0xff]   ;;  %v15419_v45 = vld [vmem:[#allocation26 + $0x244] ss:$8 sps:$4 sm:$0xff]  }
0x1884   :  { %v7701_v17 = vmul.f32 0.125, %v7700_v63  ;;  %v7708_v5 = vadd.f32 %v7707_v6, %v7706_v43  ;;  %v15417_v43 = vld [vmem:[#allocation26 + $0x240] ss:$8 sps:$4 sm:$0xff]   ;;  %v15425_v63 = vld [vmem:[#allocation26 + $0x234] ss:$8 sps:$4 sm:$0xff]  }
0x1885   :  { %v15423_v6 = vld [vmem:[#allocation26 + $0x230] ss:$8 sps:$4 sm:$0xff]  }
0x1886   :  { %v7709_v47 = vmul.f32 0.125, %v7708_v5  ;;  %v7710_v14 = vmul.f32 %v7701_v17, %v7701_v17  ;;  %v7712_v55 = vsub.f32 %v7693_v52, %v7701_v17  ;;  %v15390_v52 = vld [vmem:[%s18515_s23 + $0x50] ss:$8 sps:$4 sm:$0xff]   ;;  %v15429_v5 = vld [vmem:[#allocation26 + $0x220] ss:$8 sps:$4 sm:$0xff]  }
0x1887   :  { %v15431_v17 = vld [vmem:[#allocation26 + $0x224] ss:$8 sps:$4 sm:$0xff]  }
0x1888   :  { %v7711_v32 = vsub.f32 %v7709_v47, %v7710_v14  ;;  %v15435_v47 = vld [vmem:[#allocation26 + $0x210] ss:$8 sps:$4 sm:$0xff]   ;;  %v15443_v14 = vld [vmem:[#allocation26 + $0x204] ss:$8 sps:$4 sm:$0xff]  }
0x188a   :  { %v7713_v35 = vmax.f32 %v7711_v32, 0.0  ;;  %v15441_v32 = vld [vmem:[#allocation26 + $0x200] ss:$8 sps:$4 sm:$0xff]  }
0x188c   :  { %v7714_v23 = vadd.f32 1e-05, %v7713_v35 }
0x188e   :  { %15946 = vrsqrt.f32 %v7714_v23  ;;  %v15420_v23 = vld [vmem:[#allocation26 + $0x2f0] ss:$8 sps:$4 sm:$0xff]  }
0x189b   :  { %v15947_v50 = vpop.eup %15946 }
0x189c   :  { %v7716_v49 = vmul.f32 %v15947_v50, %v7712_v55 }
0x189e   :  { %v7721_v53 = vmul.f32 %v7720_v24, %v7716_v49  ;;  %v15426_v24 = vld [vmem:[#allocation26 + $0x2e0] ss:$8 sps:$4 sm:$0xff]   ;;  %v15434_v49 = vld [vmem:[#allocation26 + $0x2d4] ss:$8 sps:$4 sm:$0xff]  }
0x18a0   :  { %v7726_v56 = vadd.f32 %v7725_v54, %v7721_v53  ;;  %v15432_v53 = vld [vmem:[#allocation26 + $0x2d0] ss:$8 sps:$4 sm:$0xff]  }
0x18a2   :  { %v7727_v60 = vmax.f32 %v7726_v56, 0.0  ;;  %v15440_v56 = vld [vmem:[#allocation26 + $0x2c4] ss:$8 sps:$4 sm:$0xff]  }
0x18a4   :  { %v7728_v30 = vadd.f32 %v7727_v60, %v5186_v26  ;;  %v15438_v60 = vld [vmem:[#allocation26 + $0x2c0] ss:$8 sps:$4 sm:$0xff]  }
0x18a6   :  { %v7729_v0 = vmax.f32 %v7728_v30, 0.0 }
0x18a8   :  { %v7730_v58 = vpack.c.bf16 %v7729_v0, %v7729_v0  ;;  %v15446_v0 = vld [vmem:[#allocation26 + $0x2b4] ss:$8 sps:$4 sm:$0xff]  }
0x18aa   :  { %v17946_v3 = vsel %vm6330_vm5, %v7730_v58, 0 }
0x18ab   :  { %15018 = vmatpush3.bf16.msra.mxu1 %v17946_v3  ;;  %15024 = vmatpush3.bf16.msra.mxu0 %v17946_v3 }
0x18ac   :  { %15029 = vmatprep.subr.bf16.mxu0 %v16650_v15  ;;  %7875 = vmatprep.subr.bf16.mxu1 %v15386_v1  ;;  %v15444_v1 = vld [vmem:[#allocation26 + $0x2b0] ss:$8 sps:$4 sm:$0xff]  }
0x18ae   :  { %15020 = vmatmul.mubr.msk.bf16.vlgmr.msra.gmra.mxu1 %vm6326_vm6, %v7731_v20  ;;  %15026 = vmatmul.mubr.msk.bf16.vlgmr.msra.gmra.mxu0 %vm6326_vm6, %v8006_v7  ;;  %v15449_v20 = vld [vmem:[#allocation26 + $0x2a4] ss:$8 sps:$4 sm:$0xff]   ;;  %v15447_v7 = vld [vmem:[#allocation26 + $0x2a0] ss:$8 sps:$4 sm:$0xff]  }
0x18af   :  { %15030 = vmatpush3.bf16.msra.mxu0 %v17946_v3  ;;  %15031 = vmatprep.mubr.msk.bf16.mxu0 %vm16651_vm4, %v16650_v15 }
0x18b0   :  { %7876 = vmatpush1.bf16.msra.mxu1 %v15384_v57  ;;  %8332 = vmatprep.subr.bf16.mxu0 %v15401_v12  ;;  %v15452_v57 = vld [vmem:[#allocation26 + $0x294] ss:$8 sps:$4 sm:$0xff]   ;;  %v15450_v12 = vld [vmem:[#allocation26 + $0x290] ss:$8 sps:$4 sm:$0xff]  }
0x18b1   :  { %7877 = vmatprep.subr.bf16.mxu1 %v15389_v51  ;;  %7907 = vmatprep.mubr.bf16.mxu1 %v18518_v61  ;;  %v15455_v51 = vld [vmem:[#allocation26 + $0x284] ss:$8 sps:$4 sm:$0xff]  }
0x18b4   :  { %7878 = vmatpush1.bf16.msra.mxu1 %v15387_v29  ;;  %v15453_v29 = vld [vmem:[#allocation26 + $0x280] ss:$8 sps:$4 sm:$0xff]  }
0x18b5   :  { %7879 = vmatprep.subr.bf16.mxu1 %v15392_v59 }
0x18b6   :  { %15032 = vmatmul.mubr.msk.bf16.vlgmr.msra.gmra.mxu0 %vm6326_vm6, %v12727_v21  ;;  %v12761_v21 = vld [vmem:[%s18517_s17 + $0x2] sm:$0x1] }
0x18b7   :  { %8333 = vmatpush1.bf16.msra.mxu0 %v15399_v34  ;;  %8364 = vmatprep.mubr.bf16.mxu0 %v18518_v61  ;;  %v12779_v34 = vld [vmem:[%s18517_s17 + $0x3] sm:$0x1] }
0x18b8   :  { %7880 = vmatpush1.bf16.msra.mxu1 %v15390_v52  ;;  %8334 = vmatprep.subr.bf16.mxu0 %v15407_v8  ;;  %v15458_v52 = vld [vmem:[#allocation26 + $0x3f4] ss:$8 sps:$4 sm:$0xff]   ;;  %v15456_v8 = vld [vmem:[#allocation26 + $0x3f0] ss:$8 sps:$4 sm:$0xff]  }
0x18b9   :  { %7881 = vmatprep.subr.bf16.mxu1 %v15395_v27  ;;  %v15461_v27 = vld [vmem:[#allocation26 + $0x3e4] ss:$8 sps:$4 sm:$0xff]  }
0x18bb   :  { %8335 = vmatpush1.bf16.msra.mxu0 %v15405_v10  ;;  %v15459_v10 = vld [vmem:[#allocation26 + $0x3e0] ss:$8 sps:$4 sm:$0xff]  }
0x18bc   :  { %7882 = vmatpush1.bf16.msra.mxu1 %v15393_v4  ;;  %8336 = vmatprep.subr.bf16.mxu0 %v15413_v46  ;;  %v15464_v4 = vld [vmem:[#allocation26 + $0x3d4] ss:$8 sps:$4 sm:$0xff]  }
0x18bd   :  { %7883 = vmatprep.subr.bf16.mxu1 %v15398_v11  ;;  %v15467_v46 = vld [vmem:[#allocation26 + $0x474] ss:$8 sps:$4 sm:$0xff]   ;;  %v15462_v11 = vld [vmem:[#allocation26 + $0x3d0] ss:$8 sps:$4 sm:$0xff]  }
0x18bf   :  { %8337 = vmatpush1.bf16.msra.mxu0 %v15411_v44  ;;  %v15470_v44 = vld [vmem:[#allocation26 + $0x3c4] ss:$8 sps:$4 sm:$0xff]  }
0x18c0   :  { %7884 = vmatpush1.bf16.msra.mxu1 %v15396_v38  ;;  %8338 = vmatprep.subr.bf16.mxu0 %v15419_v45  ;;  %v15473_v38 = vld [vmem:[#allocation26 + $0x464] ss:$8 sps:$4 sm:$0xff]  }
0x18c1   :  { %7885 = vmatprep.subr.bf16.mxu1 %v15404_v9  ;;  %v15468_v9 = vld [vmem:[#allocation26 + $0x3c0] ss:$8 sps:$4 sm:$0xff]   ;;  %v15482_v45 = vld [vmem:[#allocation26 + $0x3a4] ss:$8 sps:$4 sm:$0xff]  }
0x18c3   :  { %8339 = vmatpush1.bf16.msra.mxu0 %v15417_v43  ;;  %v15485_v43 = vld [vmem:[#allocation26 + $0x444] ss:$8 sps:$4 sm:$0xff]  }
0x18c4   :  { %7886 = vmatpush1.bf16.msra.mxu1 %v15402_v16  ;;  %8340 = vmatprep.subr.bf16.mxu0 %v15425_v63  ;;  %v15471_v16 = vld [vmem:[#allocation26 + $0x460] ss:$8 sps:$4 sm:$0xff]  }
0x18c5   :  { %7887 = vmatprep.subr.bf16.mxu1 %v15410_v31  ;;  %v15476_v31 = vld [vmem:[#allocation26 + $0x3b4] ss:$8 sps:$4 sm:$0xff]   ;;  %v15483_v63 = vld [vmem:[#allocation26 + $0x440] ss:$8 sps:$4 sm:$0xff]  }
0x18c7   :  { %8341 = vmatpush1.bf16.msra.mxu0 %v15423_v6  ;;  %v15488_v6 = vld [vmem:[#allocation26 + $0x394] ss:$8 sps:$4 sm:$0xff]  }
0x18c8   :  { %7888 = vmatpush1.bf16.msra.mxu1 %v15408_v13  ;;  %8342 = vmatprep.subr.bf16.mxu0 %v15431_v17  ;;  %v15479_v13 = vld [vmem:[#allocation26 + $0x454] ss:$8 sps:$4 sm:$0xff]  }
0x18c9   :  { %7889 = vmatprep.subr.bf16.mxu1 %v15416_v2  ;;  %v15474_v2 = vld [vmem:[#allocation26 + $0x3b0] ss:$8 sps:$4 sm:$0xff]   ;;  %v15491_v17 = vld [vmem:[#allocation26 + $0x434] ss:$8 sps:$4 sm:$0xff]  }
0x18cb   :  { %8343 = vmatpush1.bf16.msra.mxu0 %v15429_v5  ;;  %v15486_v5 = vld [vmem:[#allocation26 + $0x390] ss:$8 sps:$4 sm:$0xff]  }
0x18cc   :  { %7890 = vmatpush1.bf16.msra.mxu1 %v15414_v37  ;;  %8344 = vmatprep.subr.bf16.mxu0 %v15437_v28  ;;  %v15477_v37 = vld [vmem:[#allocation26 + $0x450] ss:$8 sps:$4 sm:$0xff]  }
0x18cd   :  { %8211 = vmatprep.subr.bf16.mxu1 %v15422_v41  ;;  %v15480_v41 = vld [vmem:[#allocation26 + $0x3a0] ss:$8 sps:$4 sm:$0xff]   ;;  %v15489_v28 = vld [vmem:[#allocation26 + $0x430] ss:$8 sps:$4 sm:$0xff]  }
0x18cf   :  { %8345 = vmatpush1.bf16.msra.mxu0 %v15435_v47  ;;  %v15494_v47 = vld [vmem:[#allocation26 + $0x384] ss:$8 sps:$4 sm:$0xff]  }
0x18d0   :  { %8346 = vmatprep.subr.bf16.mxu0 %v15443_v14  ;;  %v15497_v14 = vld [vmem:[#allocation26 + $0x424] ss:$8 sps:$4 sm:$0xff]  }
0x18d3   :  { %8347 = vmatpush1.bf16.msra.mxu0 %v15441_v32  ;;  %v15492_v32 = vld [vmem:[#allocation26 + $0x380] ss:$8 sps:$4 sm:$0xff]  }
0x18d4   :  { %8516 = vmatprep.subr.bf16.mxu0 %v15458_v52 }
0x196e   :  { %v7772_v35 = vpop.f32.mrf.mxu1  ;;  %v8044_v25 = vpop.f32.mrf.mxu0 }
0x196f   :  { %v7778_v40 = vpack.c.bf16 %v7772_v35, %v7772_v35  ;;  %v8050_v39 = vpack.c.bf16 %v8044_v25, %v8044_v25  ;;  %v15495_v35 = vld [vmem:[#allocation26 + $0x420] ss:$8 sps:$4 sm:$0xff]   ;;  %v15498_v25 = vld [vmem:[#allocation26 + $0x410] ss:$8 sps:$4 sm:$0xff]  }
0x1970   :  { %v15021_v48 = vpop.f32.mrf.mxu1  ;;  %v15027_v36 = vpop.f32.mrf.mxu0 }
0x1971   :  { %7908 = vmatmul.mubr.bf16.vlgmr.msra.gmra.mxu1 %v7778_v40  ;;  %8365 = vmatmul.mubr.bf16.vlgmr.msra.gmra.mxu0 %v8050_v39  ;;  %v15501_v40 = vld [vmem:[#allocation26 + $0x400] ss:$8 sps:$4 sm:$0xff]  }
0x1972   :  { %8212 = vmatpush1.bf16.msra.mxu1 %v15420_v23  ;;  %v7775_v55 = vpop.f32.mrf.mxu1  ;;  %v8047_v50 = vpop.f32.mrf.mxu0  ;;  %8243 = vmatprep.mubr.bf16.mxu1 %v18518_v61  ;;  %v15500_v23 = vld [vmem:[#allocation26 + $0x414] ss:$8 sps:$4 sm:$0xff]  }
0x1973   :  { %8213 = vmatprep.subr.bf16.mxu1 %v15428_v42  ;;  %8548 = vmatprep.mubr.bf16.mxu0 %v18518_v61  ;;  %v15503_v42 = vld [vmem:[#allocation26 + $0x404] ss:$8 sps:$4 sm:$0xff]  }
0x1974   :  { %v15022_v54 = vpop.f32.mrf.mxu1  ;;  %v15028_v22 = vpop.f32.mrf.mxu0  ;;  %8517 = vmatpush1.bf16.msra.mxu0 %v15456_v8 }
0x1975   :  { %8518 = vmatprep.subr.bf16.mxu0 %v15461_v27 }
0x1976   :  { %8214 = vmatpush1.bf16.msra.mxu1 %v15426_v24  ;;  %v8107_v33 = vpop.f32.mrf.mxu0 }
0x1977   :  { %8215 = vmatprep.subr.bf16.mxu1 %v15434_v49  ;;  %v8113_v59 = vpack.c.bf16 %v8107_v33, %v8107_v33 }
0x1978   :  { %v15033_v26 = vpop.f32.mrf.mxu0  ;;  %8519 = vmatpush1.bf16.msra.mxu0 %v15459_v10 }
0x1979   :  { %8520 = vmatprep.subr.bf16.mxu0 %v15464_v4 }
0x197a   :  { %8216 = vmatpush1.bf16.msra.mxu1 %v15432_v53  ;;  %v8110_v30 = vpop.f32.mrf.mxu0 }
0x197b   :  { %8217 = vmatprep.subr.bf16.mxu1 %v15440_v56 }
0x197c   :  { %v15034_v58 = vpop.f32.mrf.mxu0  ;;  %8521 = vmatpush1.bf16.msra.mxu0 %v15462_v11 }
0x197d   :  { %8522 = vmatprep.subr.bf16.mxu0 %v15470_v44 }
0x197e   :  { %8218 = vmatpush1.bf16.msra.mxu1 %v15438_v60 }
0x197f   :  { %8219 = vmatprep.subr.bf16.mxu1 %v15446_v0 }
0x1980   :  { %8523 = vmatpush1.bf16.msra.mxu0 %v15468_v9 }
0x1981   :  { %8524 = vmatprep.subr.bf16.mxu0 %v15476_v31 }
0x1982   :  { %8220 = vmatpush1.bf16.msra.mxu1 %v15444_v1 }
0x1983   :  { %8221 = vmatprep.subr.bf16.mxu1 %v15449_v20 }
0x1984   :  { %8525 = vmatpush1.bf16.msra.mxu0 %v15474_v2 }
0x1985   :  { %8526 = vmatprep.subr.bf16.mxu0 %v15482_v45 }
0x1986   :  { %8222 = vmatpush1.bf16.msra.mxu1 %v15447_v7 }
0x1987   :  { %8223 = vmatprep.subr.bf16.mxu1 %v15452_v57 }
0x1988   :  { %8527 = vmatpush1.bf16.msra.mxu0 %v15480_v41 }
0x1989   :  { %8528 = vmatprep.subr.bf16.mxu0 %v15488_v6 }
0x198a   :  { %8224 = vmatpush1.bf16.msra.mxu1 %v15450_v12 }
0x198b   :  { %8225 = vmatprep.subr.bf16.mxu1 %v15455_v51 }
0x198c   :  { %8529 = vmatpush1.bf16.msra.mxu0 %v15486_v5 }
0x198d   :  { %8530 = vmatprep.subr.bf16.mxu0 %v15494_v47 }
0x198e   :  { %8226 = vmatpush1.bf16.msra.mxu1 %v15453_v29 }
0x198f   :  { %15035 = vmatprep.subr.bf16.mxu1 %v16650_v15 }
0x1990   :  { %8531 = vmatpush1.bf16.msra.mxu0 %v15492_v32 }
0x1991   :  { %8244 = vmatmul.mubr.bf16.vlgmr.msra.gmra.mxu1 %v8113_v59 }
0x1992   :  { %15036 = vmatpush3.bf16.msra.mxu1 %v17946_v3  ;;  %15037 = vmatprep.mubr.msk.bf16.mxu1 %vm16651_vm4, %v16650_v15 }
0x1993   :  { %15041 = vmatprep.subr.bf16.mxu1 %v16650_v15 }
0x1999   :  { %15038 = vmatmul.mubr.msk.bf16.vlgmr.msra.gmra.mxu1 %vm6326_vm6, %v12761_v21 }
0x199a   :  { %15042 = vmatpush3.bf16.msra.mxu1 %v17946_v3  ;;  %15043 = vmatprep.mubr.msk.bf16.mxu1 %vm16651_vm4, %v16650_v15  ;;  %v15465_v3 = vld [vmem:[#allocation26 + $0x470] ss:$8 sps:$4 sm:$0xff]  }
0x199b   :  { %8702 = vmatprep.subr.bf16.mxu1 %v15467_v46 }
0x19a1   :  { %15044 = vmatmul.mubr.msk.bf16.vlgmr.msra.gmra.mxu1 %vm6326_vm6, %v12779_v34 }
0x19a2   :  { %8734 = vmatprep.mubr.bf16.mxu1 %v18518_v61  ;;  %8703 = vmatpush1.bf16.msra.mxu1 %v15465_v3 }
0x19a3   :  { %8704 = vmatprep.subr.bf16.mxu1 %v15473_v38 }
0x19a6   :  { %8705 = vmatpush1.bf16.msra.mxu1 %v15471_v16 }
0x19a7   :  { %8706 = vmatprep.subr.bf16.mxu1 %v15479_v13 }
0x19aa   :  { %8707 = vmatpush1.bf16.msra.mxu1 %v15477_v37 }
0x19ab   :  { %8708 = vmatprep.subr.bf16.mxu1 %v15485_v43 }
0x19ae   :  { %8709 = vmatpush1.bf16.msra.mxu1 %v15483_v63 }
0x19af   :  { %8710 = vmatprep.subr.bf16.mxu1 %v15491_v17 }
0x19b2   :  { %8711 = vmatpush1.bf16.msra.mxu1 %v15489_v28 }
0x19b3   :  { %8712 = vmatprep.subr.bf16.mxu1 %v15497_v14 }
0x19b6   :  { %8713 = vmatpush1.bf16.msra.mxu1 %v15495_v35 }
0x19b7   :  { %8714 = vmatprep.subr.bf16.mxu1 %v15500_v23 }
0x19ba   :  { %8715 = vmatpush1.bf16.msra.mxu1 %v15498_v25 }
0x19bb   :  { %8716 = vmatprep.subr.bf16.mxu1 %v15503_v42 }
0x19be   :  { %8717 = vmatpush1.bf16.msra.mxu1 %v15501_v40 }
0x1a31   :  { %v17992_v39 = vpop.f32.mrf.mxu1  ;;  %v8366_v48 = vpop.f32.mrf.mxu0 }
0x1a33   :  { %v17994_v36 = vpop.f32.mrf.mxu1  ;;  %v8368_v55 = vpop.f32.mrf.mxu0 }
0x1a35   :  { %v7913_v24 = vpop.f32.mrf.mxu1  ;;  %v8370_v50 = vpop.f32.mrf.mxu0 }
0x1a37   :  { %v7914_v49 = vpop.f32.mrf.mxu1  ;;  %v8371_v54 = vpop.f32.mrf.mxu0 }
0x1a51   :  { %v8245_v22 = vpop.f32.mrf.mxu1 }
0x1a52   :  { %v8367_v53 = vadd.f32 %v8366_v48, %v8245_v22 }
0x1a53   :  { %v8247_v33 = vpop.f32.mrf.mxu1 }
0x1a54   :  { %v8369_v56 = vadd.f32 %v8368_v55, %v8247_v33 }
0x1a55   :  { %v8249_v26 = vpop.f32.mrf.mxu1 }
0x1a57   :  { %v8250_v60 = vpop.f32.mrf.mxu1 }
0x1a59   :  { %v8412_v30 = vpop.f32.mrf.mxu1 }
0x1a5a   :  { %v8418_v0 = vpack.c.bf16 %v8412_v30, %v8412_v30 }
0x1a5b   :  { %v15039_v58 = vpop.f32.mrf.mxu1 }
0x1a5c   :  { %8549 = vmatmul.mubr.bf16.vlgmr.msra.gmra.mxu0 %v8418_v0 }
0x1a5d   :  { %v8415_v1 = vpop.f32.mrf.mxu1  ;;  %8883 = vmatprep.mubr.bf16.mxu0 %v18518_v61 }
0x1a5f   :  { %v15040_v20 = vpop.f32.mrf.mxu1 }
0x1a61   :  { %v8598_v7 = vpop.f32.mrf.mxu1 }
0x1a62   :  { %v8604_v57 = vpack.c.bf16 %v8598_v7, %v8598_v7 }
0x1a63   :  { %v15045_v12 = vpop.f32.mrf.mxu1 }
0x1a64   :  { %8735 = vmatmul.mubr.bf16.vlgmr.msra.gmra.mxu1 %v8604_v57  ;;  %v8745_v12 = vld [vmem:[#allocation28] sm:$0xf] }
0x1a65   :  { %v8601_v51 = vpop.f32.mrf.mxu1  ;;  %9268 = vmatprep.mubr.bf16.mxu1 %v18518_v61 }
0x1a66   :  { %v8798_v51 = vrot.slane %v8745_v12, %v17345_v19 }
0x1a67   :  { %v15046_v29 = vpop.f32.mrf.mxu1 }
0x1a68   :  { %v18004_v29 = vsub.s32 2, %v17342_v18 }
0x1b1c   :  { %v8550_v59 = vpop.f32.mrf.mxu0 }
0x1b1d   :  { %v8557_v8 = vadd.f32 %v8550_v59, %v8367_v53  ;;  %v8818_v59 = vrot.slane %v8745_v12, %v17348_v62 }
0x1b1e   :  { %v8552_v21 = vpop.f32.mrf.mxu0 }
0x1b1f   :  { %v8558_v10 = vadd.f32 %v8552_v21, %v8369_v56  ;;  %v18008_v21 = vsub.s32 3, %v17342_v18 }
0x1b20   :  { %v8554_v34 = vpop.f32.mrf.mxu0 }
0x1b21   :  { %v8802_v34 = vrot.slane %v8745_v12, %v18004_v29 }
0x1b22   :  { %v8555_v52 = vpop.f32.mrf.mxu0 }
0x1b24   :  { %v8736_v27 = vpop.f32.mrf.mxu1 }
0x1b25   :  { %v8743_v4 = vadd.f32 %v8736_v27, %v8557_v8  ;;  %v8808_v8 = vrot.slane %v8798_v51, %v17345_v19  ;;  %v15549_v51 = vld [vmem:[%s18519_s10 + $0x480] ss:$8 sps:$4 sm:$0xff]  }
0x1b26   :  { %v8738_v46 = vpop.f32.mrf.mxu1 }
0x1b27   :  { %v8746_v11 = vsel %vm722_vm1, %v8743_v4, 0.0  ;;  %v8762_v3 = vmul.f32 %v8743_v4, %v8743_v4  ;;  %v8744_v44 = vadd.f32 %v8738_v46, %v8558_v10  ;;  %v8822_v10 = vrot.slane %v8745_v12, %v18008_v21  ;;  %v15551_v12 = vld [vmem:[%s18519_s10 + $0x484] ss:$8 sps:$4 sm:$0xff]  }
0x1b28   :  { %v8747_v38 = vrot.slane %v8746_v11, 4  ;;  %v8740_v9 = vpop.f32.mrf.mxu1 }
0x1b29   :  { %v8764_v16 = vsel %vm722_vm1, %v8762_v3, 0.0  ;;  %v8753_v31 = vsel %vm722_vm1, %v8744_v44, 0.0  ;;  %v8763_v13 = vmul.f32 %v8744_v44, %v8744_v44 }
0x1b2a   :  { %v8748_v2 = vadd.f32 %v8747_v38, %v8746_v11  ;;  %v8765_v37 = vrot.slane %v8764_v16, 4  ;;  %v8754_v45 = vrot.slane %v8753_v31, 4  ;;  %v8741_v43 = vpop.f32.mrf.mxu1  ;;  %v8828_v11 = vrot.slane %v8818_v59, %v17348_v62 }
0x1b2b   :  { %v8771_v41 = vsel %vm722_vm1, %v8763_v13, 0.0  ;;  %v8812_v38 = vrot.slane %v8802_v34, %v17345_v19  ;;  %v8832_v13 = vrot.slane %v8822_v10, %v17348_v62 }
0x1b2c   :  { %v8749_v63 = vrot.slane %v8748_v2, 2  ;;  %v8766_v6 = vadd.f32 %v8765_v37, %v8764_v16  ;;  %v8755_v17 = vadd.f32 %v8754_v45, %v8753_v31  ;;  %v8772_v5 = vrot.slane %v8771_v41, 4 }
0x1b2e   :  { %v8750_v28 = vadd.f32 %v8749_v63, %v8748_v2  ;;  %v8767_v47 = vrot.slane %v8766_v6, 2  ;;  %v8756_v14 = vrot.slane %v8755_v17, 2  ;;  %v8773_v32 = vadd.f32 %v8772_v5, %v8771_v41  ;;  %v15506_v63 = vld [vmem:[%s18519_s10 + $0x474] ss:$8 sps:$4 sm:$0xff]   ;;  %v15504_v5 = vld [vmem:[%s18519_s10 + $0x470] ss:$8 sps:$4 sm:$0xff]  }
0x1b30   :  { %v8751_v35 = vrot.slane %v8750_v28, 1  ;;  %v8768_v23 = vadd.f32 %v8767_v47, %v8766_v6  ;;  %v8757_v25 = vadd.f32 %v8756_v14, %v8755_v17  ;;  %v8774_v40 = vrot.slane %v8773_v32, 2  ;;  %v8839_v17 = vld [vmem:[%s18520_s29] sm:$0x1]  ;;  %v15512_v14 = vld [vmem:[%s18519_s10 + $0x454] ss:$8 sps:$4 sm:$0xff]  }
0x1b31   :  { %v15507_v47 = vld [vmem:[%s18519_s10 + $0x460] ss:$8 sps:$4 sm:$0xff]  }
0x1b32   :  { %v8752_v42 = vadd.f32 %v8751_v35, %v8750_v28  ;;  %v8769_v48 = vrot.slane %v8768_v23, 1  ;;  %v8758_v55 = vrot.slane %v8757_v25, 1  ;;  %v8775_v24 = vadd.f32 %v8774_v40, %v8773_v32  ;;  %v15509_v28 = vld [vmem:[%s18519_s10 + $0x464] ss:$8 sps:$4 sm:$0xff]   ;;  %v15510_v32 = vld [vmem:[%s18519_s10 + $0x450] ss:$8 sps:$4 sm:$0xff]  }
0x1b33   :  { %v15515_v35 = vld [vmem:[%s18519_s10 + $0x444] ss:$8 sps:$4 sm:$0xff]   ;;  %v15516_v40 = vld [vmem:[%s18519_s10 + $0x430] ss:$8 sps:$4 sm:$0xff]  }
0x1b34   :  { %v8760_v50 = vmul.f32 0.5, %v8752_v42  ;;  %v8770_v49 = vadd.f32 %v8769_v48, %v8768_v23  ;;  %v8759_v54 = vadd.f32 %v8758_v55, %v8757_v25  ;;  %v8776_v22 = vrot.slane %v8775_v24, 1  ;;  %v15513_v23 = vld [vmem:[%s18519_s10 + $0x440] ss:$8 sps:$4 sm:$0xff]   ;;  %v15518_v25 = vld [vmem:[%s18519_s10 + $0x434] ss:$8 sps:$4 sm:$0xff]  }
0x1b35   :  { %v15521_v42 = vld [vmem:[%s18519_s10 + $0x424] ss:$8 sps:$4 sm:$0xff]   ;;  %v15519_v48 = vld [vmem:[%s18519_s10 + $0x420] ss:$8 sps:$4 sm:$0xff]   ;;  %v15524_v55 = vld [vmem:[%s18519_s10 + $0x414] ss:$8 sps:$4 sm:$0xff]  }
0x1b36   :  { %v8778_v53 = vmul.f32 0.5, %v8770_v49  ;;  %v8780_v33 = vmul.f32 %v8760_v50, %v8760_v50  ;;  %v8761_v56 = vmul.f32 0.5, %v8759_v54  ;;  %v8777_v26 = vadd.f32 %v8776_v22, %v8775_v24  ;;  %v15522_v24 = vld [vmem:[%s18519_s10 + $0x410] ss:$8 sps:$4 sm:$0xff]   ;;  %v15525_v49 = vld [vmem:[%s18519_s10 + $0x400] ss:$8 sps:$4 sm:$0xff]  }
0x1b37   :  { %v8784_v52 = vsub.f32 %v8743_v4, %v8760_v50  ;;  %v15527_v50 = vld [vmem:[%s18519_s10 + $0x404] ss:$8 sps:$4 sm:$0xff]   ;;  %v15530_v54 = vld [vmem:[%s18519_s10 + $0x4f4] ss:$8 sps:$4 sm:$0xff]   ;;  %v15528_v22 = vld [vmem:[%s18519_s10 + $0x4f0] ss:$8 sps:$4 sm:$0xff]  }
0x1b38   :  { %v8782_v60 = vsub.f32 %v8778_v53, %v8780_v33  ;;  %v8781_v30 = vmul.f32 %v8761_v56, %v8761_v56  ;;  %v8779_v0 = vmul.f32 0.5, %v8777_v26  ;;  %v8785_v3 = vsub.f32 %v8744_v44, %v8761_v56  ;;  %v15533_v53 = vld [vmem:[%s18519_s10 + $0x4e4] ss:$8 sps:$4 sm:$0xff]   ;;  %v15531_v33 = vld [vmem:[%s18519_s10 + $0x4e0] ss:$8 sps:$4 sm:$0xff]  }
0x1b39   :  { %v15536_v56 = vld [vmem:[%s18519_s10 + $0x4d4] ss:$8 sps:$4 sm:$0xff]   ;;  %v15534_v26 = vld [vmem:[%s18519_s10 + $0x4d0] ss:$8 sps:$4 sm:$0xff]  }
0x1b3a   :  { %v8786_v58 = vmax.f32 %v8782_v60, 0.0  ;;  %v8783_v1 = vsub.f32 %v8779_v0, %v8781_v30  ;;  %v15539_v60 = vld [vmem:[%s18519_s10 + $0x4c4] ss:$8 sps:$4 sm:$0xff]   ;;  %v15537_v30 = vld [vmem:[%s18519_s10 + $0x4c0] ss:$8 sps:$4 sm:$0xff]  }
0x1b3b   :  { %v15542_v0 = vld [vmem:[%s18519_s10 + $0x4b4] ss:$8 sps:$4 sm:$0xff]  }
0x1b3c   :  { %v8788_v20 = vadd.f32 1e-05, %v8786_v58  ;;  %v8787_v7 = vmax.f32 %v8783_v1, 0.0  ;;  %v15540_v58 = vld [vmem:[%s18519_s10 + $0x4b0] ss:$8 sps:$4 sm:$0xff]  }
0x1b3d   :  { %v15545_v1 = vld [vmem:[%s18519_s10 + $0x4a4] ss:$8 sps:$4 sm:$0xff]  }
0x1b3e   :  { %15948 = vrsqrt.f32 %v8788_v20  ;;  %v8789_v57 = vadd.f32 1e-05, %v8787_v7  ;;  %v15543_v20 = vld [vmem:[%s18519_s10 + $0x4a0] ss:$8 sps:$4 sm:$0xff]   ;;  %v15548_v7 = vld [vmem:[%s18519_s10 + $0x494] ss:$8 sps:$4 sm:$0xff]  }
0x1b40   :  { %15950 = vrsqrt.f32 %v8789_v57  ;;  %v15546_v57 = vld [vmem:[%s18519_s10 + $0x490] ss:$8 sps:$4 sm:$0xff]  }
0x1b4b   :  { %v15949_v27 = vpop.eup %15948 }
0x1b4c   :  { %v8792_v46 = vmul.f32 %v15949_v27, %v8784_v52 }
0x1b4d   :  { %v15951_v9 = vpop.eup %15950 }
0x1b4e   :  { %v8813_v16 = vmul.f32 %v8808_v8, %v8792_v46  ;;  %v8793_v31 = vmul.f32 %v15951_v9, %v8785_v3  ;;  %v7917_v46 = vsel %vm722_vm1, %v17992_v39, 0.0  ;;  %v7924_v9 = vsel %vm722_vm1, %v17994_v36, 0.0 }
0x1b4f   :  { %v7918_v3 = vrot.slane %v7917_v46, 4 }
0x1b50   :  { %v8833_v4 = vadd.f32 %v8828_v11, %v8813_v16  ;;  %v8814_v2 = vmul.f32 %v8812_v38, %v8793_v31  ;;  %v7933_v11 = vmul.f32 %v17992_v39, %v17992_v39  ;;  %v7934_v16 = vmul.f32 %v17994_v36, %v17994_v36 }
0x1b51   :  { %v7919_v31 = vadd.f32 %v7918_v3, %v7917_v46  ;;  %v15614_v46 = vld [vmem:[#allocation38 + $0x6c] ss:$16 sps:$4 sm:$0xff]  }
0x1b52   :  { %v8835_v37 = vmax.f32 %v8833_v4, 0.0  ;;  %v8834_v45 = vadd.f32 %v8832_v13, %v8814_v2  ;;  %v7935_v38 = vsel %vm722_vm1, %v7933_v11, 0.0  ;;  %v7925_v4 = vrot.slane %v7924_v9, 4 }
0x1b53   :  { %v7936_v13 = vrot.slane %v7935_v38, 4  ;;  %v7942_v2 = vsel %vm722_vm1, %v7934_v16, 0.0 }
0x1b54   :  { %v8836_v43 = vmax.f32 %v8834_v45, 0.0  ;;  %v8837_v41 = vpack.c.bf16 %v8835_v37, %v8835_v37  ;;  %v7920_v37 = vrot.slane %v7919_v31, 2 }
0x1b55   :  { %v7937_v45 = vadd.f32 %v7936_v13, %v7935_v38 }
0x1b56   :  { %v8838_v44 = vpack.c.bf16 %v8836_v43, %v8836_v43  ;;  %v8846_v6 = vsel %vm8844_vm7, %v8837_v41, 0  ;;  %v7926_v43 = vadd.f32 %v7925_v4, %v7924_v9  ;;  %v7943_v41 = vrot.slane %v7942_v2, 4 }
0x1b58   :  { %12797 = vmatprep.subr.msk.bf16.mxu0 %vm8844_vm7, %v8838_v44  ;;  %v7921_v44 = vadd.f32 %v7920_v37, %v7919_v31 }
0x1b59   :  { %8866 = vmatpush1.bf16.msra.mxu0 %v8846_v6  ;;  %v7927_v6 = vrot.slane %v7926_v43, 2 }
0x1b5a   :  { %9087 = vmatprep.subr.bf16.mxu0 %v15506_v63  ;;  %v7938_v63 = vrot.slane %v7937_v45, 2 }
0x1b5c   :  { %12798 = vmatmul.mubr.msk.bf16.vlgmr.msra.gmra.mxu0 %vm8840_vm8, %v8839_v17  ;;  %v7944_v17 = vadd.f32 %v7943_v41, %v7942_v2  ;;  %v15612_v41 = vld [vmem:[#allocation38 + $0x68] ss:$16 sps:$4 sm:$0xff]  }
0x1b5d   :  { %9088 = vmatpush1.bf16.msra.mxu0 %v15504_v5  ;;  %v7922_v5 = vrot.slane %v7921_v44, 1 }
0x1b5e   :  { %9089 = vmatprep.subr.bf16.mxu0 %v15509_v28  ;;  %v7939_v28 = vadd.f32 %v7938_v63, %v7937_v45 }
0x1b61   :  { %9090 = vmatpush1.bf16.msra.mxu0 %v15507_v47  ;;  %v7928_v47 = vadd.f32 %v7927_v6, %v7926_v43 }
0x1b62   :  { %9091 = vmatprep.subr.bf16.mxu0 %v15512_v14  ;;  %v7945_v14 = vrot.slane %v7944_v17, 2 }
0x1b65   :  { %9092 = vmatpush1.bf16.msra.mxu0 %v15510_v32  ;;  %v15600_v32 = vld [vmem:[#allocation38 + $0xe8] ss:$16 sps:$4 sm:$0xff]  }
0x1b66   :  { %9093 = vmatprep.subr.bf16.mxu0 %v15515_v35  ;;  %v15602_v35 = vld [vmem:[#allocation38 + $0xec] ss:$16 sps:$4 sm:$0xff]  }
0x1b69   :  { %9094 = vmatpush1.bf16.msra.mxu0 %v15513_v23  ;;  %v7923_v23 = vadd.f32 %v7922_v5, %v7921_v44  ;;  %v15617_v44 = vld [vmem:[#allocation38 + $0x4c] ss:$16 sps:$4 sm:$0xff]  }
0x1b6a   :  { %9095 = vmatprep.subr.bf16.mxu0 %v15518_v25  ;;  %v7940_v25 = vrot.slane %v7939_v28, 1 }
0x1b6d   :  { %9096 = vmatpush1.bf16.msra.mxu0 %v15516_v40  ;;  %v7929_v40 = vrot.slane %v7928_v47, 1 }
0x1b6e   :  { %9097 = vmatprep.subr.bf16.mxu0 %v15521_v42  ;;  %v15605_v42 = vld [vmem:[#allocation38 + $0xcc] ss:$16 sps:$4 sm:$0xff]  }
0x1b71   :  { %9098 = vmatpush1.bf16.msra.mxu0 %v15519_v48  ;;  %v7946_v48 = vadd.f32 %v7945_v14, %v7944_v17 }
0x1b72   :  { %9099 = vmatprep.subr.bf16.mxu0 %v15524_v55  ;;  %v15603_v55 = vld [vmem:[#allocation38 + $0xc8] ss:$16 sps:$4 sm:$0xff]  }
0x1b75   :  { %9100 = vmatpush1.bf16.msra.mxu0 %v15522_v24  ;;  %v15608_v24 = vld [vmem:[#allocation38 + $0xac] ss:$16 sps:$4 sm:$0xff]  }
0x1b76   :  { %9101 = vmatprep.subr.bf16.mxu0 %v15527_v50  ;;  %v18062_v50 = vmul.f32 0.5, %v7923_v23 }
0x1b79   :  { %9102 = vmatpush1.bf16.msra.mxu0 %v15525_v49  ;;  %v7941_v49 = vadd.f32 %v7940_v25, %v7939_v28  ;;  %v15615_v25 = vld [vmem:[#allocation38 + $0x48] ss:$16 sps:$4 sm:$0xff]  }
0x1b7a   :  { %9103 = vmatprep.subr.bf16.mxu0 %v15530_v54  ;;  %v7930_v54 = vadd.f32 %v7929_v40, %v7928_v47  ;;  %v15620_v40 = vld [vmem:[#allocation38 + $0x2c] ss:$16 sps:$4 sm:$0xff]  }
0x1b7d   :  { %9104 = vmatpush2.bf16.msra.mxu0 %v15528_v22  ;;  %v7947_v22 = vrot.slane %v7946_v48, 1 }
0x1b7e   :  { %9105 = vmatprep.subr.bf16.mxu0 %v15533_v53 }
0x1b81   :  { %9106 = vmatpush2.bf16.msra.mxu0 %v15531_v33  ;;  %v15606_v33 = vld [vmem:[#allocation38 + $0xa8] ss:$16 sps:$4 sm:$0xff]  }
0x1b82   :  { %9107 = vmatprep.subr.bf16.mxu0 %v15536_v56 }
0x1b85   :  { %9108 = vmatpush2.bf16.msra.mxu0 %v15534_v26 }
0x1b86   :  { %9109 = vmatprep.subr.bf16.mxu0 %v15539_v60  ;;  %v15611_v60 = vld [vmem:[#allocation38 + $0x8c] ss:$16 sps:$4 sm:$0xff]  }
0x1b89   :  { %9110 = vmatpush2.bf16.msra.mxu0 %v15537_v30  ;;  %v7949_v30 = vmul.f32 0.5, %v7941_v49 }
0x1b8a   :  { %9111 = vmatprep.subr.bf16.mxu0 %v15542_v0  ;;  %v7951_v0 = vmul.f32 %v18062_v50, %v18062_v50 }
0x1b8c   :  { %v7953_v31 = vsub.f32 %v7949_v30, %v7951_v0  ;;  %v15623_v30 = vld [vmem:[#allocation38 + $0xc] ss:$16 sps:$4 sm:$0xff]  }
0x1b8d   :  { %9112 = vmatpush2.bf16.msra.mxu0 %v15540_v58  ;;  %v18072_v58 = vmul.f32 0.5, %v7930_v54 }
0x1b8e   :  { %9113 = vmatprep.subr.bf16.mxu0 %v15545_v1  ;;  %v7957_v28 = vmax.f32 %v7953_v31, 0.0 }
0x1b8f   :  { %v7952_v4 = vmul.f32 %v18072_v58, %v18072_v58 }
0x1b90   :  { %v7959_v54 = vadd.f32 1e-05, %v7957_v28 }
0x1b91   :  { %9114 = vmatpush2.bf16.msra.mxu0 %v15543_v20 }
0x1b92   :  { %9115 = vmatprep.subr.bf16.mxu0 %v15548_v7  ;;  %v7948_v7 = vadd.f32 %v7947_v22, %v7946_v48  ;;  %15952 = vrsqrt.f32 %v7959_v54 }
0x1b94   :  { %v7950_v13 = vmul.f32 0.5, %v7948_v7 }
0x1b95   :  { %9116 = vmatpush2.bf16.msra.mxu0 %v15546_v57 }
0x1b96   :  { %9117 = vmatprep.subr.bf16.mxu0 %v15551_v12  ;;  %v7954_v47 = vsub.f32 %v7950_v13, %v7952_v4  ;;  %v15630_v13 = vld [vmem:[#allocation38 + $0x1a8] ss:$16 sps:$4 sm:$0xff]  }
0x1b98   :  { %v7958_v49 = vmax.f32 %v7954_v47, 0.0  ;;  %v15633_v47 = vld [vmem:[#allocation38 + $0x188] ss:$16 sps:$4 sm:$0xff]  }
0x1b99   :  { %9118 = vmatpush2.bf16.msra.mxu0 %v15549_v51 }
0x1b9a   :  { %9704 = vmatprep.subr.bf16.mxu0 %v15602_v35  ;;  %v7960_v7 = vadd.f32 1e-05, %v7958_v49  ;;  %v15636_v49 = vld [vmem:[#allocation38 + $0x168] ss:$16 sps:$4 sm:$0xff]  }
0x1b9c   :  { %15954 = vrsqrt.f32 %v7960_v7 }
0x1b9f   :  { %v15953_v4 = vpop.eup %15952 }
0x1c1c   :  { %v8885_v59 = vpop.f32.mrf.mxu0 }
0x1c1d   :  { %v8892_v8 = vpack.c.bf16 %v8885_v59, %v8885_v59 }
0x1c1e   :  { %v8887_v34 = vpop.f32.mrf.mxu0 }
0x1c1f   :  { %v8893_v52 = vpack.c.bf16 %v8887_v34, %v8887_v34 }
0x1c20   :  { %v8889_v27 = vpop.f32.mrf.mxu0 }
0x1c21   :  { %9119 = vmatprep.mubr.bf16.mxu0 %v8893_v52  ;;  %v15609_v27 = vld [vmem:[#allocation38 + $0x88] ss:$16 sps:$4 sm:$0xff]  }
0x1c22   :  { %v8890_v10 = vpop.f32.mrf.mxu0  ;;  %9120 = vmatmul.mubr.bf16.vlgmr.msra.gmra.mxu0 %v8892_v8 }
0x1c23   :  { %9705 = vmatpush1.bf16.msra.mxu0 %v15600_v32 }
0x1c24   :  { %9706 = vmatprep.subr.bf16.mxu0 %v15605_v42 }
0x1c27   :  { %9707 = vmatpush1.bf16.msra.mxu0 %v15603_v55 }
0x1c28   :  { %9708 = vmatprep.subr.bf16.mxu0 %v15608_v24 }
0x1c2b   :  { %9709 = vmatpush1.bf16.msra.mxu0 %v15606_v33 }
0x1c2c   :  { %9710 = vmatprep.subr.bf16.mxu0 %v15611_v60 }
0x1c2f   :  { %9711 = vmatpush1.bf16.msra.mxu0 %v15609_v27  ;;  %v15624_v27 = vld [vmem:[#allocation38 + $0x1e8] ss:$16 sps:$4 sm:$0xff]  }
0x1c30   :  { %9712 = vmatprep.subr.bf16.mxu0 %v15614_v46  ;;  %v15629_v46 = vld [vmem:[#allocation38 + $0x1cc] ss:$16 sps:$4 sm:$0xff]  }
0x1c33   :  { %9713 = vmatpush1.bf16.msra.mxu0 %v15612_v41 }
0x1c34   :  { %9714 = vmatprep.subr.bf16.mxu0 %v15617_v44 }
0x1c37   :  { %9715 = vmatpush1.bf16.msra.mxu0 %v15615_v25 }
0x1c38   :  { %9716 = vmatprep.subr.bf16.mxu0 %v15620_v40 }
0x1ce2   :  { %v18064_v53 = vpop.f32.mrf.mxu0 }
0x1ce3   :  { %v9129_v56 = vsel %vm722_vm1, %v18064_v53, 0.0  ;;  %v9145_v26 = vmul.f32 %v18064_v53, %v18064_v53 }
0x1ce4   :  { %v9130_v1 = vrot.slane %v9129_v56, 4  ;;  %v18074_v20 = vpop.f32.mrf.mxu0 }
0x1ce5   :  { %v9147_v57 = vsel %vm722_vm1, %v9145_v26, 0.0  ;;  %v9136_v12 = vsel %vm722_vm1, %v18074_v20, 0.0  ;;  %v9146_v51 = vmul.f32 %v18074_v20, %v18074_v20  ;;  %v15618_v26 = vld [vmem:[#allocation38 + $0x28] ss:$16 sps:$4 sm:$0xff]  }
0x1ce6   :  { %v9131_v59 = vadd.f32 %v9130_v1, %v9129_v56  ;;  %v9148_v34 = vrot.slane %v9147_v57, 4  ;;  %v9137_v52 = vrot.slane %v9136_v12, 4  ;;  %v9125_v8 = vpop.f32.mrf.mxu0  ;;  %9717 = vmatpush1.bf16.msra.mxu0 %v15618_v26 }
0x1ce7   :  { %v9154_v10 = vsel %vm722_vm1, %v9146_v51, 0.0  ;;  %v15621_v51 = vld [vmem:[#allocation38 + $0x8] ss:$16 sps:$4 sm:$0xff]   ;;  %9718 = vmatprep.subr.bf16.mxu0 %v15623_v30 }
0x1ce8   :  { %v9132_v11 = vrot.slane %v9131_v59, 2  ;;  %v9149_v3 = vadd.f32 %v9148_v34, %v9147_v57  ;;  %v9138_v38 = vadd.f32 %v9137_v52, %v9136_v12  ;;  %v9155_v9 = vrot.slane %v9154_v10, 4  ;;  %v9126_v16 = vpop.f32.mrf.mxu0  ;;  %v15626_v34 = vld [vmem:[#allocation38 + $0x1ec] ss:$16 sps:$4 sm:$0xff]  }
0x1cea   :  { %v9133_v2 = vadd.f32 %v9132_v11, %v9131_v59  ;;  %v9150_v37 = vrot.slane %v9149_v3, 2  ;;  %v9139_v45 = vrot.slane %v9138_v38, 2  ;;  %v9156_v43 = vadd.f32 %v9155_v9, %v9154_v10  ;;  %9719 = vmatpush1.bf16.msra.mxu0 %v15621_v51  ;;  %v7916_v11 = vld [vmem:[#allocation31] sm:$0xf] }
0x1ceb   :  { %9720 = vmatprep.subr.bf16.mxu0 %v15626_v34  ;;  %v15632_v9 = vld [vmem:[#allocation38 + $0x1ac] ss:$16 sps:$4 sm:$0xff]   ;;  %v7969_v16 = vrot.slane %v7916_v11, %v17345_v19  ;;  %v7989_v28 = vrot.slane %v7916_v11, %v17348_v62  ;;  %v7993_v40 = vrot.slane %v7916_v11, %v18008_v21 }
0x1cec   :  { %v9134_v63 = vrot.slane %v9133_v2, 1  ;;  %v9151_v6 = vadd.f32 %v9150_v37, %v9149_v3  ;;  %v9140_v17 = vadd.f32 %v9139_v45, %v9138_v38  ;;  %v9157_v5 = vrot.slane %v9156_v43, 2  ;;  %v15627_v3 = vld [vmem:[#allocation38 + $0x1c8] ss:$16 sps:$4 sm:$0xff]  }
0x1ced   :  { %v9128_v38 = vld [vmem:[#allocation29] sm:$0xf]  ;;  %v7955_v37 = vsub.f32 %v17992_v39, %v18062_v50  ;;  %v7973_v45 = vrot.slane %v7916_v11, %v18004_v29  ;;  %v7979_v41 = vrot.slane %v7969_v16, %v17345_v19  ;;  %v7956_v50 = vsub.f32 %v17994_v36, %v18072_v58 }
0x1cee   :  { %v9135_v14 = vadd.f32 %v9134_v63, %v9133_v2  ;;  %v9152_v32 = vrot.slane %v9151_v6, 1  ;;  %v9141_v35 = vrot.slane %v9140_v17, 1  ;;  %v9158_v23 = vadd.f32 %v9157_v5, %v9156_v43  ;;  %9721 = vmatpush2.bf16.msra.mxu0 %v15624_v27  ;;  %v15635_v2 = vld [vmem:[#allocation38 + $0x18c] ss:$16 sps:$4 sm:$0xff]   ;;  %v15955_v63 = vpop.eup %15954  ;;  %v15554_v11 = vld [vmem:[#allocation38 + $0xe4] ss:$16 sps:$4 sm:$0xff]  }
0x1cef   :  { %9722 = vmatprep.subr.bf16.mxu0 %v15629_v46  ;;  %v9181_v31 = vrot.slane %v9128_v38, %v17345_v19  ;;  %v9201_v43 = vrot.slane %v9128_v38, %v17348_v62  ;;  %v9185_v44 = vrot.slane %v9128_v38, %v18004_v29  ;;  %v7999_v58 = vrot.slane %v7989_v28, %v17348_v62  ;;  %v15557_v16 = vld [vmem:[#allocation38 + $0xc4] ss:$16 sps:$4 sm:$0xff]  }
0x1cf0   :  { %v18084_v42 = vmul.f32 0.5, %v9135_v14  ;;  %v9153_v48 = vadd.f32 %v9152_v32, %v9151_v6  ;;  %v9142_v55 = vadd.f32 %v9141_v35, %v9140_v17  ;;  %v9159_v24 = vrot.slane %v9158_v23, 1  ;;  %v15638_v32 = vld [vmem:[#allocation38 + $0x16c] ss:$16 sps:$4 sm:$0xff]   ;;  %v15578_v28 = vld [vmem:[#allocation38 + $0x1e4] ss:$16 sps:$4 sm:$0xff]  }
0x1cf1   :  { %v7963_v6 = vmul.f32 %v15953_v4, %v7955_v37  ;;  %v9191_v5 = vrot.slane %v9181_v31, %v17345_v19  ;;  %v9205_v14 = vrot.slane %v9128_v38, %v18008_v21  ;;  %v7983_v35 = vrot.slane %v7973_v45, %v17345_v19  ;;  %v9226_v38 = vld [vmem:[#allocation37] sm:$0x1]  ;;  %v15555_v31 = vld [vmem:[#allocation38 + $0xc0] ss:$16 sps:$4 sm:$0xff]   ;;  %v15566_v45 = vld [vmem:[#allocation38 + $0x64] ss:$16 sps:$4 sm:$0xff]  }
0x1cf2   :  { %v9161_v22 = vmul.f32 0.5, %v9153_v48  ;;  %v9163_v33 = vmul.f32 %v18084_v42, %v18084_v42  ;;  %v18088_v56 = vmul.f32 0.5, %v9142_v55  ;;  %v9160_v60 = vadd.f32 %v9159_v24, %v9158_v23  ;;  %9723 = vmatpush2.bf16.msra.mxu0 %v15627_v3  ;;  %v15558_v4 = vld [vmem:[#allocation38 + $0xa0] ss:$16 sps:$4 sm:$0xff]  }
0x1cf3   :  { %9724 = vmatprep.subr.bf16.mxu0 %v15632_v9  ;;  %v9167_v17 = vsub.f32 %v18064_v53, %v18084_v42  ;;  %v9211_v25 = vrot.slane %v9201_v43, %v17348_v62  ;;  %v7964_v53 = vmul.f32 %v15955_v63, %v7956_v50  ;;  %v9195_v48 = vrot.slane %v9185_v44, %v17345_v19  ;;  %v15552_v9 = vld [vmem:[#allocation38 + $0xe0] ss:$16 sps:$4 sm:$0xff]   ;;  %v15572_v63 = vld [vmem:[#allocation38 + $0x24] ss:$16 sps:$4 sm:$0xff]  }
0x1cf4   :  { %v9165_v0 = vsub.f32 %v9161_v22, %v9163_v33  ;;  %v9164_v1 = vmul.f32 %v18088_v56, %v18088_v56  ;;  %v9162_v57 = vmul.f32 0.5, %v9160_v60  ;;  %v9168_v42 = vsub.f32 %v18074_v20, %v18088_v56  ;;  %v15641_v33 = vld [vmem:[#allocation38 + $0x14c] ss:$16 sps:$4 sm:$0xff]   ;;  %v15561_v37 = vld [vmem:[#allocation38 + $0x80] ss:$16 sps:$4 sm:$0xff]  }
0x1cf5   :  { %v7984_v24 = vmul.f32 %v7979_v41, %v7963_v6  ;;  %v9215_v22 = vrot.slane %v9205_v14, %v17348_v62  ;;  %v7985_v60 = vmul.f32 %v7983_v35, %v7964_v53  ;;  %v8003_v30 = vrot.slane %v7993_v40, %v17348_v62  ;;  %v15564_v43 = vld [vmem:[#allocation38 + $0x60] ss:$16 sps:$4 sm:$0xff]   ;;  %v15569_v41 = vld [vmem:[#allocation38 + $0x44] ss:$16 sps:$4 sm:$0xff]  }
0x1cf6   :  { %v9169_v12 = vmax.f32 %v9165_v0, 0.0  ;;  %v9166_v59 = vsub.f32 %v9162_v57, %v9164_v1  ;;  %9725 = vmatpush2.bf16.msra.mxu0 %v15630_v13  ;;  %v15639_v1 = vld [vmem:[#allocation38 + $0x148] ss:$16 sps:$4 sm:$0xff]   ;;  %v15644_v57 = vld [vmem:[#allocation38 + $0x12c] ss:$16 sps:$4 sm:$0xff]  }
0x1cf7   :  { %9726 = vmatprep.subr.bf16.mxu0 %v15635_v2  ;;  %v8004_v20 = vadd.f32 %v7999_v58, %v7984_v24  ;;  %v8005_v51 = vadd.f32 %v8003_v30, %v7985_v60  ;;  %v15560_v13 = vld [vmem:[#allocation38 + $0xa4] ss:$16 sps:$4 sm:$0xff]   ;;  %v15567_v44 = vld [vmem:[#allocation38 + $0x40] ss:$16 sps:$4 sm:$0xff]   ;;  %v15647_v58 = vld [vmem:[#allocation38 + $0x10c] ss:$16 sps:$4 sm:$0xff]  }
0x1cf8   :  { %v9171_v52 = vadd.f32 1e-05, %v9169_v12  ;;  %v9170_v8 = vmax.f32 %v9166_v59, 0.0  ;;  %v15563_v2 = vld [vmem:[#allocation38 + $0x84] ss:$16 sps:$4 sm:$0xff]  }
0x1cf9   :  { %v15570_v6 = vld [vmem:[#allocation38 + $0x20] ss:$16 sps:$4 sm:$0xff]   ;;  %v15584_v14 = vld [vmem:[#allocation38 + $0x1a4] ss:$16 sps:$4 sm:$0xff]  }
0x1cfa   :  { %15956 = vrsqrt.f32 %v9171_v52  ;;  %v9172_v10 = vadd.f32 1e-05, %v9170_v8  ;;  %9727 = vmatpush2.bf16.msra.mxu0 %v15633_v47  ;;  %v15642_v52 = vld [vmem:[#allocation38 + $0x128] ss:$16 sps:$4 sm:$0xff]   ;;  %v15576_v47 = vld [vmem:[#allocation38 + $0x1e0] ss:$16 sps:$4 sm:$0xff]  }
0x1cfb   :  { %9728 = vmatprep.subr.bf16.mxu0 %v15638_v32  ;;  %v15579_v50 = vld [vmem:[#allocation38 + $0x1c0] ss:$16 sps:$4 sm:$0xff]   ;;  %v15587_v35 = vld [vmem:[#allocation38 + $0x184] ss:$16 sps:$4 sm:$0xff]  }
0x1cfc   :  { %15958 = vrsqrt.f32 %v9172_v10  ;;  %v15582_v32 = vld [vmem:[#allocation38 + $0x1a0] ss:$16 sps:$4 sm:$0xff]   ;;  %v15593_v40 = vld [vmem:[#allocation38 + $0x144] ss:$16 sps:$4 sm:$0xff]  }
0x1cfd   :  { %v15588_v53 = vld [vmem:[#allocation38 + $0x160] ss:$16 sps:$4 sm:$0xff]   ;;  %v15599_v24 = vld [vmem:[#allocation38 + $0x104] ss:$16 sps:$4 sm:$0xff]  }
0x1cfe   :  { %9729 = vmatpush2.bf16.msra.mxu0 %v15636_v49  ;;  %v15645_v49 = vld [vmem:[#allocation38 + $0x108] ss:$16 sps:$4 sm:$0xff]  }
0x1cff   :  { %9730 = vmatprep.subr.bf16.mxu0 %v15641_v33 }
0x1d02   :  { %9731 = vmatpush2.bf16.msra.mxu0 %v15639_v1 }
0x1d03   :  { %9732 = vmatprep.subr.bf16.mxu0 %v15644_v57  ;;  %v15665_v57 = vld [vmem:[#allocation32 + $0x8ac] ss:$16 sps:$4 sm:$0xff]  }
0x1d06   :  { %9733 = vmatpush2.bf16.msra.mxu0 %v15642_v52  ;;  %v15671_v52 = vld [vmem:[#allocation32 + $0x88c] ss:$16 sps:$4 sm:$0xff]  }
0x1d07   :  { %v15957_v39 = vpop.eup %15956  ;;  %9734 = vmatprep.subr.bf16.mxu0 %v15647_v58  ;;  %v15723_v58 = vld [vmem:[#allocation32 + $0x968] ss:$16 sps:$4 sm:$0xff]  }
0x1d08   :  { %v9175_v23 = vmul.f32 %v15957_v39, %v9167_v17  ;;  %v15575_v17 = vld [vmem:[#allocation38 + $0x4] ss:$16 sps:$4 sm:$0xff]  }
0x1d09   :  { %v15959_v55 = vpop.eup %15958  ;;  %v15581_v39 = vld [vmem:[#allocation38 + $0x1c4] ss:$16 sps:$4 sm:$0xff]  }
0x1d0a   :  { %v9196_v36 = vmul.f32 %v9191_v5, %v9175_v23  ;;  %v9176_v54 = vmul.f32 %v15959_v55, %v9168_v42  ;;  %v15573_v5 = vld [vmem:[#allocation38] ss:$16 sps:$4 sm:$0xff]   ;;  %9735 = vmatpush2.bf16.msra.mxu0 %v15645_v49 }
0x1d0b   :  { %v15585_v23 = vld [vmem:[#allocation38 + $0x180] ss:$16 sps:$4 sm:$0xff]  }
0x1d0c   :  { %v9216_v26 = vadd.f32 %v9211_v25, %v9196_v36  ;;  %v9197_v0 = vmul.f32 %v9195_v48, %v9176_v54  ;;  %v15590_v25 = vld [vmem:[#allocation38 + $0x164] ss:$16 sps:$4 sm:$0xff]   ;;  %v15591_v42 = vld [vmem:[#allocation38 + $0x140] ss:$16 sps:$4 sm:$0xff]   ;;  %v15653_v54 = vld [vmem:[#allocation32 + $0x8ec] ss:$16 sps:$4 sm:$0xff]  }
0x1d0d   :  { %v15596_v48 = vld [vmem:[#allocation38 + $0x124] ss:$16 sps:$4 sm:$0xff]   ;;  %v15594_v55 = vld [vmem:[#allocation38 + $0x120] ss:$16 sps:$4 sm:$0xff]   ;;  %10396 = vmatprep.subr.bf16.mxu0 %v15653_v54 }
0x1d0e   :  { %v9218_v56 = vmax.f32 %v9216_v26, 0.0  ;;  %v9217_v7 = vadd.f32 %v9215_v22, %v9197_v0  ;;  %v15597_v36 = vld [vmem:[#allocation38 + $0x100] ss:$16 sps:$4 sm:$0xff]  }
0x1d0f   :  { %v15650_v0 = vld [vmem:[#allocation32 + $0x8e4] ss:$16 sps:$4 sm:$0xff]   ;;  %v15714_v49 = vld [vmem:[#allocation32 + $0x980] ss:$16 sps:$4 sm:$0xff]  }
0x1d10   :  { %v9220_v12 = vadd.f32 %v9218_v56, %v8004_v20  ;;  %v9219_v59 = vmax.f32 %v9217_v7, 0.0  ;;  %v15651_v20 = vld [vmem:[#allocation32 + $0x8e8] ss:$16 sps:$4 sm:$0xff]   ;;  %v15659_v56 = vld [vmem:[#allocation32 + $0x8cc] ss:$16 sps:$4 sm:$0xff]  }
0x1d11   :  { %v15657_v7 = vld [vmem:[#allocation32 + $0x8c8] ss:$16 sps:$4 sm:$0xff]   ;;  %v15722_v54 = vld [vmem:[#allocation32 + $0x964] ss:$16 sps:$4 sm:$0xff]  }
0x1d12   :  { %v9222_v34 = vmax.f32 %v9220_v12, 0.0  ;;  %v9221_v8 = vadd.f32 %v9219_v59, %v8005_v51  ;;  %v9923_v12 = vld [vmem:[%s18521_s25] sm:$0x1]  ;;  %v15656_v59 = vld [vmem:[#allocation32 + $0x8c4] ss:$16 sps:$4 sm:$0xff]  }
0x1d13   :  { %v15648_v51 = vld [vmem:[#allocation32 + $0x8e0] ss:$16 sps:$4 sm:$0xff]  }
0x1d14   :  { %v9223_v27 = vmax.f32 %v9221_v8, 0.0  ;;  %v9224_v10 = vpack.c.bf16 %v9222_v34, %v9222_v34  ;;  %v15663_v34 = vld [vmem:[#allocation32 + $0x8a8] ss:$16 sps:$4 sm:$0xff]   ;;  %v15654_v8 = vld [vmem:[#allocation32 + $0x8c0] ss:$16 sps:$4 sm:$0xff]  }
0x1d16   :  { %v18116_v46 = vpack.c.bf16 %v9223_v27, %v9223_v27  ;;  %v18121_v3 = vsel %vm8844_vm7, %v9224_v10, 0  ;;  %v15662_v27 = vld [vmem:[#allocation32 + $0x8a4] ss:$16 sps:$4 sm:$0xff]   ;;  %v15669_v10 = vld [vmem:[#allocation32 + $0x888] ss:$16 sps:$4 sm:$0xff]  }
0x1d18   :  { %12863 = vmatprep.subr.msk.bf16.mxu1 %vm8844_vm7, %v18116_v46 }
0x1d19   :  { %9251 = vmatpush1.bf16.msra.mxu1 %v18121_v3 }
0x1d1a   :  { %9663 = vmatprep.subr.bf16.mxu1 %v15554_v11  ;;  %v15660_v11 = vld [vmem:[#allocation32 + $0x8a0] ss:$16 sps:$4 sm:$0xff]  }
0x1d1c   :  { %12864 = vmatmul.mubr.msk.bf16.vlgmr.msra.gmra.mxu1 %vm8840_vm8, %v9226_v38  ;;  %v15675_v38 = vld [vmem:[#allocation32 + $0x868] ss:$16 sps:$4 sm:$0xff]  }
0x1d1d   :  { %9664 = vmatpush1.bf16.msra.mxu1 %v15552_v9  ;;  %v15683_v9 = vld [vmem:[#allocation32 + $0x84c] ss:$16 sps:$4 sm:$0xff]  }
0x1d1e   :  { %9665 = vmatprep.subr.bf16.mxu1 %v15557_v16  ;;  %v15666_v16 = vld [vmem:[#allocation32 + $0x880] ss:$16 sps:$4 sm:$0xff]  }
0x1d21   :  { %9666 = vmatpush1.bf16.msra.mxu1 %v15555_v31  ;;  %v15674_v31 = vld [vmem:[#allocation32 + $0x864] ss:$16 sps:$4 sm:$0xff]  }
0x1d22   :  { %9667 = vmatprep.subr.bf16.mxu1 %v15560_v13  ;;  %v15681_v13 = vld [vmem:[#allocation32 + $0x848] ss:$16 sps:$4 sm:$0xff]  }
0x1d25   :  { %9668 = vmatpush1.bf16.msra.mxu1 %v15558_v4  ;;  %v15689_v4 = vld [vmem:[#allocation32 + $0x82c] ss:$16 sps:$4 sm:$0xff]  }
0x1d26   :  { %9669 = vmatprep.subr.bf16.mxu1 %v15563_v2  ;;  %v15672_v2 = vld [vmem:[#allocation32 + $0x860] ss:$16 sps:$4 sm:$0xff]  }
0x1d29   :  { %9670 = vmatpush1.bf16.msra.mxu1 %v15561_v37  ;;  %v15680_v37 = vld [vmem:[#allocation32 + $0x844] ss:$16 sps:$4 sm:$0xff]  }
0x1d2a   :  { %9671 = vmatprep.subr.bf16.mxu1 %v15566_v45  ;;  %v15687_v45 = vld [vmem:[#allocation32 + $0x828] ss:$16 sps:$4 sm:$0xff]  }
0x1d2d   :  { %9672 = vmatpush1.bf16.msra.mxu1 %v15564_v43  ;;  %v15695_v43 = vld [vmem:[#allocation32 + $0x80c] ss:$16 sps:$4 sm:$0xff]  }
0x1d2e   :  { %9673 = vmatprep.subr.bf16.mxu1 %v15569_v41  ;;  %v15678_v41 = vld [vmem:[#allocation32 + $0x840] ss:$16 sps:$4 sm:$0xff]  }
0x1d31   :  { %9674 = vmatpush1.bf16.msra.mxu1 %v15567_v44  ;;  %v15686_v44 = vld [vmem:[#allocation32 + $0x824] ss:$16 sps:$4 sm:$0xff]  }
0x1d32   :  { %9675 = vmatprep.subr.bf16.mxu1 %v15572_v63  ;;  %v15693_v63 = vld [vmem:[#allocation32 + $0x808] ss:$16 sps:$4 sm:$0xff]  }
0x1d35   :  { %9676 = vmatpush1.bf16.msra.mxu1 %v15570_v6  ;;  %v15701_v6 = vld [vmem:[#allocation32 + $0x9ec] ss:$16 sps:$4 sm:$0xff]  }
0x1d36   :  { %9677 = vmatprep.subr.bf16.mxu1 %v15575_v17  ;;  %v15684_v17 = vld [vmem:[#allocation32 + $0x820] ss:$16 sps:$4 sm:$0xff]  }
0x1d39   :  { %9678 = vmatpush1.bf16.msra.mxu1 %v15573_v5  ;;  %v15692_v5 = vld [vmem:[#allocation32 + $0x804] ss:$16 sps:$4 sm:$0xff]  }
0x1d3a   :  { %9679 = vmatprep.subr.bf16.mxu1 %v15578_v28  ;;  %v15699_v28 = vld [vmem:[#allocation32 + $0x9e8] ss:$16 sps:$4 sm:$0xff]  }
0x1d3d   :  { %9680 = vmatpush2.bf16.msra.mxu1 %v15576_v47  ;;  %v15707_v47 = vld [vmem:[#allocation32 + $0x9cc] ss:$16 sps:$4 sm:$0xff]  }
0x1d3e   :  { %9681 = vmatprep.subr.bf16.mxu1 %v15581_v39  ;;  %v15690_v39 = vld [vmem:[#allocation32 + $0x800] ss:$16 sps:$4 sm:$0xff]  }
0x1d41   :  { %9682 = vmatpush2.bf16.msra.mxu1 %v15579_v50  ;;  %v15698_v50 = vld [vmem:[#allocation32 + $0x9e4] ss:$16 sps:$4 sm:$0xff]  }
0x1d42   :  { %9683 = vmatprep.subr.bf16.mxu1 %v15584_v14  ;;  %v15705_v14 = vld [vmem:[#allocation32 + $0x9c8] ss:$16 sps:$4 sm:$0xff]  }
0x1d45   :  { %9684 = vmatpush2.bf16.msra.mxu1 %v15582_v32  ;;  %v15713_v32 = vld [vmem:[#allocation32 + $0x9ac] ss:$16 sps:$4 sm:$0xff]  }
0x1d46   :  { %9685 = vmatprep.subr.bf16.mxu1 %v15587_v35  ;;  %v15696_v35 = vld [vmem:[#allocation32 + $0x9e0] ss:$16 sps:$4 sm:$0xff]  }
0x1d49   :  { %9686 = vmatpush2.bf16.msra.mxu1 %v15585_v23  ;;  %v15704_v23 = vld [vmem:[#allocation32 + $0x9c4] ss:$16 sps:$4 sm:$0xff]  }
0x1d4a   :  { %9687 = vmatprep.subr.bf16.mxu1 %v15590_v25  ;;  %v15711_v25 = vld [vmem:[#allocation32 + $0x9a8] ss:$16 sps:$4 sm:$0xff]  }
0x1d4d   :  { %9688 = vmatpush2.bf16.msra.mxu1 %v15588_v53  ;;  %v15719_v53 = vld [vmem:[#allocation32 + $0x98c] ss:$16 sps:$4 sm:$0xff]  }
0x1d4e   :  { %9689 = vmatprep.subr.bf16.mxu1 %v15593_v40  ;;  %v15702_v40 = vld [vmem:[#allocation32 + $0x9c0] ss:$16 sps:$4 sm:$0xff]  }
0x1d51   :  { %9690 = vmatpush2.bf16.msra.mxu1 %v15591_v42  ;;  %v15710_v42 = vld [vmem:[#allocation32 + $0x9a4] ss:$16 sps:$4 sm:$0xff]  }
0x1d52   :  { %9691 = vmatprep.subr.bf16.mxu1 %v15596_v48  ;;  %v15717_v48 = vld [vmem:[#allocation32 + $0x988] ss:$16 sps:$4 sm:$0xff]  }
0x1d55   :  { %9692 = vmatpush2.bf16.msra.mxu1 %v15594_v55  ;;  %v15725_v55 = vld [vmem:[#allocation32 + $0x96c] ss:$16 sps:$4 sm:$0xff]  }
0x1d56   :  { %9693 = vmatprep.subr.bf16.mxu1 %v15599_v24  ;;  %v15708_v24 = vld [vmem:[#allocation32 + $0x9a0] ss:$16 sps:$4 sm:$0xff]  }
0x1d59   :  { %9694 = vmatpush2.bf16.msra.mxu1 %v15597_v36  ;;  %v15716_v36 = vld [vmem:[#allocation32 + $0x984] ss:$16 sps:$4 sm:$0xff]  }
0x1d5a   :  { %12929 = vmatprep.subr.msk.bf16.mxu1 %vm8844_vm7, %v18116_v46  ;;  %v15677_v46 = vld [vmem:[#allocation32 + $0x86c] ss:$16 sps:$4 sm:$0xff]  }
0x1ddc   :  { %v9270_v22 = vpop.f32.mrf.mxu1 }
0x1ddd   :  { %v9277_v60 = vpack.c.bf16 %v9270_v22, %v9270_v22  ;;  %v15720_v22 = vld [vmem:[#allocation32 + $0x960] ss:$16 sps:$4 sm:$0xff]  }
0x1dde   :  { %v9272_v33 = vpop.f32.mrf.mxu1 }
0x1ddf   :  { %v9278_v26 = vpack.c.bf16 %v9272_v33, %v9272_v33  ;;  %v15728_v33 = vld [vmem:[#allocation32 + $0x944] ss:$16 sps:$4 sm:$0xff]  }
0x1de0   :  { %v9274_v30 = vpop.f32.mrf.mxu1 }
0x1de1   :  { %9695 = vmatprep.mubr.bf16.mxu1 %v9278_v26  ;;  %9736 = vmatprep.mubr.bf16.mxu0 %v9278_v26  ;;  %v15731_v26 = vld [vmem:[#allocation32 + $0x94c] ss:$16 sps:$4 sm:$0xff]   ;;  %v15729_v30 = vld [vmem:[#allocation32 + $0x948] ss:$16 sps:$4 sm:$0xff]  }
0x1de2   :  { %v9275_v1 = vpop.f32.mrf.mxu1  ;;  %9696 = vmatmul.mubr.bf16.vlgmr.msra.gmra.mxu1 %v9277_v60  ;;  %9737 = vmatmul.mubr.bf16.vlgmr.msra.gmra.mxu0 %v9277_v60  ;;  %v15726_v60 = vld [vmem:[#allocation32 + $0x940] ss:$16 sps:$4 sm:$0xff]  }
0x1de3   :  { %9942 = vmatpush1.bf16.msra.mxu1 %v18121_v3  ;;  %9959 = vmatprep.mubr.bf16.mxu1 %v18518_v61  ;;  %v15668_v3 = vld [vmem:[#allocation32 + $0x884] ss:$16 sps:$4 sm:$0xff]   ;;  %v15735_v1 = vld [vmem:[#allocation32 + $0x928] ss:$16 sps:$4 sm:$0xff]  }
0x1de4   :  { %10355 = vmatprep.subr.bf16.mxu1 %v15650_v0  ;;  %10397 = vmatpush1.bf16.msra.mxu0 %v15651_v20  ;;  %v15734_v0 = vld [vmem:[#allocation32 + $0x924] ss:$16 sps:$4 sm:$0xff]   ;;  %v15737_v20 = vld [vmem:[#allocation32 + $0x92c] ss:$16 sps:$4 sm:$0xff]  }
0x1de5   :  { %10398 = vmatprep.subr.bf16.mxu0 %v15659_v56  ;;  %v15732_v56 = vld [vmem:[#allocation32 + $0x920] ss:$16 sps:$4 sm:$0xff]  }
0x1de8   :  { %10399 = vmatpush1.bf16.msra.mxu0 %v15657_v7  ;;  %v15740_v7 = vld [vmem:[#allocation32 + $0x904] ss:$16 sps:$4 sm:$0xff]  }
0x1de9   :  { %10400 = vmatprep.subr.bf16.mxu0 %v15665_v57  ;;  %v15743_v57 = vld [vmem:[#allocation32 + $0x90c] ss:$16 sps:$4 sm:$0xff]  }
0x1dea   :  { %12930 = vmatmul.mubr.msk.bf16.vlgmr.msra.gmra.mxu1 %vm8840_vm8, %v9923_v12  ;;  %v15738_v12 = vld [vmem:[#allocation32 + $0x900] ss:$16 sps:$4 sm:$0xff]  }
0x1deb   :  { %10356 = vmatpush1.bf16.msra.mxu1 %v15648_v51  ;;  %v15741_v51 = vld [vmem:[#allocation32 + $0x908] ss:$16 sps:$4 sm:$0xff]  }
0x1dec   :  { %10357 = vmatprep.subr.bf16.mxu1 %v15656_v59  ;;  %10401 = vmatpush1.bf16.msra.mxu0 %v15663_v34 }
0x1ded   :  { %10402 = vmatprep.subr.bf16.mxu0 %v15671_v52 }
0x1def   :  { %10358 = vmatpush1.bf16.msra.mxu1 %v15654_v8 }
0x1df0   :  { %10359 = vmatprep.subr.bf16.mxu1 %v15662_v27  ;;  %10403 = vmatpush1.bf16.msra.mxu0 %v15669_v10 }
0x1df1   :  { %10404 = vmatprep.subr.bf16.mxu0 %v15677_v46 }
0x1df3   :  { %10360 = vmatpush1.bf16.msra.mxu1 %v15660_v11 }
0x1df4   :  { %10361 = vmatprep.subr.bf16.mxu1 %v15668_v3  ;;  %10405 = vmatpush1.bf16.msra.mxu0 %v15675_v38 }
0x1df5   :  { %10406 = vmatprep.subr.bf16.mxu0 %v15683_v9 }
0x1df7   :  { %10362 = vmatpush1.bf16.msra.mxu1 %v15666_v16 }
0x1df8   :  { %10363 = vmatprep.subr.bf16.mxu1 %v15674_v31  ;;  %10407 = vmatpush1.bf16.msra.mxu0 %v15681_v13 }
0x1df9   :  { %10408 = vmatprep.subr.bf16.mxu0 %v15689_v4 }
0x1dfb   :  { %10364 = vmatpush1.bf16.msra.mxu1 %v15672_v2 }
0x1dfc   :  { %10365 = vmatprep.subr.bf16.mxu1 %v15680_v37  ;;  %10409 = vmatpush1.bf16.msra.mxu0 %v15687_v45 }
0x1dfd   :  { %10410 = vmatprep.subr.bf16.mxu0 %v15695_v43 }
0x1dff   :  { %10366 = vmatpush1.bf16.msra.mxu1 %v15678_v41 }
0x1e00   :  { %10367 = vmatprep.subr.bf16.mxu1 %v15686_v44  ;;  %10411 = vmatpush1.bf16.msra.mxu0 %v15693_v63 }
0x1e01   :  { %10412 = vmatprep.subr.bf16.mxu0 %v15701_v6 }
0x1e03   :  { %10368 = vmatpush1.bf16.msra.mxu1 %v15684_v17 }
0x1e04   :  { %10369 = vmatprep.subr.bf16.mxu1 %v15692_v5  ;;  %10413 = vmatpush2.bf16.msra.mxu0 %v15699_v28 }
0x1e05   :  { %10414 = vmatprep.subr.bf16.mxu0 %v15707_v47 }
0x1e07   :  { %10370 = vmatpush1.bf16.msra.mxu1 %v15690_v39 }
0x1e08   :  { %10371 = vmatprep.subr.bf16.mxu1 %v15698_v50  ;;  %10415 = vmatpush2.bf16.msra.mxu0 %v15705_v14 }
0x1e09   :  { %10416 = vmatprep.subr.bf16.mxu0 %v15713_v32 }
0x1e0b   :  { %10372 = vmatpush2.bf16.msra.mxu1 %v15696_v35 }
0x1e0c   :  { %10373 = vmatprep.subr.bf16.mxu1 %v15704_v23  ;;  %10417 = vmatpush2.bf16.msra.mxu0 %v15711_v25 }
0x1e0d   :  { %10418 = vmatprep.subr.bf16.mxu0 %v15719_v53 }
0x1e0f   :  { %10374 = vmatpush2.bf16.msra.mxu1 %v15702_v40 }
0x1e10   :  { %10375 = vmatprep.subr.bf16.mxu1 %v15710_v42  ;;  %10419 = vmatpush2.bf16.msra.mxu0 %v15717_v48 }
0x1e11   :  { %10420 = vmatprep.subr.bf16.mxu0 %v15725_v55 }
0x1e13   :  { %10376 = vmatpush2.bf16.msra.mxu1 %v15708_v24 }
0x1e14   :  { %10377 = vmatprep.subr.bf16.mxu1 %v15716_v36  ;;  %10421 = vmatpush2.bf16.msra.mxu0 %v15723_v58 }
0x1e15   :  { %10422 = vmatprep.subr.bf16.mxu0 %v15731_v26 }
0x1e17   :  { %10378 = vmatpush2.bf16.msra.mxu1 %v15714_v49 }
0x1e18   :  { %10379 = vmatprep.subr.bf16.mxu1 %v15722_v54  ;;  %10423 = vmatpush2.bf16.msra.mxu0 %v15729_v30 }
0x1e19   :  { %10424 = vmatprep.subr.bf16.mxu0 %v15737_v20 }
0x1e1b   :  { %10380 = vmatpush2.bf16.msra.mxu1 %v15720_v22 }
0x1e1c   :  { %10381 = vmatprep.subr.bf16.mxu1 %v15728_v33  ;;  %10425 = vmatpush2.bf16.msra.mxu0 %v15735_v1 }
0x1e1d   :  { %10426 = vmatprep.subr.bf16.mxu0 %v15743_v57 }
0x1e1f   :  { %10382 = vmatpush2.bf16.msra.mxu1 %v15726_v60 }
0x1e20   :  { %10383 = vmatprep.subr.bf16.mxu1 %v15734_v0  ;;  %10427 = vmatpush2.bf16.msra.mxu0 %v15741_v51  ;;  %v18151_v51 = vsub.s32 4, %v17342_v18 }
0x1e23   :  { %10384 = vmatpush2.bf16.msra.mxu1 %v15732_v56 }
0x1e24   :  { %10385 = vmatprep.subr.bf16.mxu1 %v15740_v7 }
0x1e27   :  { %10386 = vmatpush2.bf16.msra.mxu1 %v15738_v12 }
0x1ea2   :  { %v18131_v59 = vpop.f32.mrf.mxu1  ;;  %v18133_v34 = vpop.f32.mrf.mxu0 }
0x1ea3   :  { %v9760_v52 = vsel %vm722_vm1, %v18133_v34, 0.0  ;;  %v9780_v8 = vmul.f32 %v18133_v34, %v18133_v34 }
0x1ea4   :  { %v9761_v27 = vrot.slane %v9760_v52, 4  ;;  %v18139_v10 = vpop.f32.mrf.mxu1  ;;  %v18141_v46 = vpop.f32.mrf.mxu0 }
0x1ea5   :  { %v9796_v11 = vsel %vm722_vm1, %v9780_v8, 0.0  ;;  %v9767_v31 = vsel %vm722_vm1, %v18141_v46, 0.0  ;;  %v9781_v13 = vmul.f32 %v18141_v46, %v18141_v46  ;;  %v18154_v8 = vsub.s32 5, %v17342_v18 }
0x1ea6   :  { %v9762_v3 = vadd.f32 %v9761_v27, %v9760_v52  ;;  %v9797_v38 = vrot.slane %v9796_v11, 4  ;;  %v9701_v9 = vpop.f32.mrf.mxu1  ;;  %v9742_v16 = vpop.f32.mrf.mxu0  ;;  %v9768_v43 = vrot.slane %v9767_v31, 4  ;;  %v9745_v52 = vld [vmem:[#allocation40] sm:$0xff] }
0x1ea7   :  { %v9803_v41 = vsel %vm722_vm1, %v9781_v13, 0.0  ;;  %v9854_v27 = vrot.slane %v9745_v52, %v18151_v51 }
0x1ea8   :  { %v9763_v4 = vrot.slane %v9762_v3, 2  ;;  %v9798_v2 = vadd.f32 %v9797_v38, %v9796_v11  ;;  %v9702_v37 = vpop.f32.mrf.mxu1  ;;  %v9743_v45 = vpop.f32.mrf.mxu0  ;;  %v9769_v17 = vadd.f32 %v9768_v43, %v9767_v31  ;;  %v9804_v5 = vrot.slane %v9803_v41, 4 }
0x1ea9   :  { %v18158_v11 = vsub.s32 6, %v17342_v18  ;;  %v18162_v38 = vsub.s32 7, %v17342_v18  ;;  %v9874_v16 = vrot.slane %v9854_v27, %v17345_v19 }
0x1eaa   :  { %v9764_v44 = vadd.f32 %v9763_v4, %v9762_v3  ;;  %v9799_v63 = vrot.slane %v9798_v2, 2  ;;  %v9961_v6 = vpop.f32.mrf.mxu1  ;;  %v9770_v50 = vrot.slane %v9769_v17, 2  ;;  %v9805_v14 = vadd.f32 %v9804_v5, %v9803_v41  ;;  %v15753_v5 = vld [vmem:[%s18522_s13 + $0x12e0] ss:$16 sps:$4 sm:$0xff]  }
0x1eab   :  { %v9968_v0 = vpack.c.bf16 %v9961_v6, %v9961_v6  ;;  %v9894_v3 = vrot.slane %v9745_v52, %v18154_v8  ;;  %v9858_v13 = vrot.slane %v9745_v52, %v18158_v11  ;;  %v9898_v37 = vrot.slane %v9745_v52, %v18162_v38 }
0x1eac   :  { %v9765_v28 = vrot.slane %v9764_v44, 1  ;;  %v9800_v47 = vadd.f32 %v9799_v63, %v9798_v2  ;;  %v9963_v39 = vpop.f32.mrf.mxu1  ;;  %v9771_v25 = vadd.f32 %v9770_v50, %v9769_v17  ;;  %v9806_v53 = vrot.slane %v9805_v14, 2  ;;  %v15767_v50 = vld [vmem:[%s18522_s13 + $0x12a4] ss:$16 sps:$4 sm:$0xff]  }
0x1ead   :  { %v9969_v60 = vpack.c.bf16 %v9963_v39, %v9963_v39  ;;  %v9914_v2 = vrot.slane %v9894_v3, %v17348_v62  ;;  %v9918_v63 = vrot.slane %v9898_v37, %v17348_v62  ;;  %v15765_v39 = vld [vmem:[%s18522_s13 + $0x12a0] ss:$16 sps:$4 sm:$0xff]  }
0x1eae   :  { %v9766_v32 = vadd.f32 %v9765_v28, %v9764_v44  ;;  %v9801_v35 = vrot.slane %v9800_v47, 1  ;;  %v9965_v23 = vpop.f32.mrf.mxu1  ;;  %v9772_v55 = vrot.slane %v9771_v25, 1  ;;  %v9807_v24 = vadd.f32 %v9806_v53, %v9805_v14  ;;  %v15755_v28 = vld [vmem:[%s18522_s13 + $0x12e4] ss:$16 sps:$4 sm:$0xff]   ;;  %v15771_v14 = vld [vmem:[%s18522_s13 + $0x1280] ss:$16 sps:$4 sm:$0xff]  }
0x1eaf   :  { %10387 = vmatprep.mubr.bf16.mxu1 %v9969_v60  ;;  %10428 = vmatprep.mubr.bf16.mxu0 %v9969_v60  ;;  %v15779_v23 = vld [vmem:[%s18522_s13 + $0x1264] ss:$16 sps:$4 sm:$0xff]   ;;  %v15825_v60 = vld [vmem:[%s18522_s13 + $0x1360] ss:$16 sps:$4 sm:$0xff]  }
0x1eb0   :  { %v9776_v40 = vmul.f32 0.5, %v9766_v32  ;;  %v9802_v42 = vadd.f32 %v9801_v35, %v9800_v47  ;;  %v9966_v48 = vpop.f32.mrf.mxu1  ;;  %v9773_v49 = vadd.f32 %v9772_v55, %v9771_v25  ;;  %v9808_v54 = vrot.slane %v9807_v24, 1  ;;  %10388 = vmatmul.mubr.bf16.vlgmr.msra.gmra.mxu1 %v9968_v0  ;;  %10429 = vmatmul.mubr.bf16.vlgmr.msra.gmra.mxu0 %v9968_v0  ;;  %v15761_v47 = vld [vmem:[%s18522_s13 + $0x12c4] ss:$16 sps:$4 sm:$0xff]   ;;  %v15777_v35 = vld [vmem:[%s18522_s13 + $0x1260] ss:$16 sps:$4 sm:$0xff]  }
0x1eb1   :  { %10671 = vmatprep.mubr.bf16.mxu1 %v18518_v61  ;;  %11535 = vmatprep.subr.bf16.mxu0 %v15755_v28  ;;  %v15773_v32 = vld [vmem:[%s18522_s13 + $0x1284] ss:$16 sps:$4 sm:$0xff]   ;;  %v15783_v25 = vld [vmem:[%s18522_s13 + $0x1240] ss:$16 sps:$4 sm:$0xff]  }
0x1eb2   :  { %v9812_v36 = vmul.f32 0.5, %v9802_v42  ;;  %v9816_v58 = vmul.f32 %v9776_v40, %v9776_v40  ;;  %v9777_v33 = vmul.f32 0.5, %v9773_v49  ;;  %v9809_v26 = vadd.f32 %v9808_v54, %v9807_v24  ;;  %11536 = vmatpush1.bf16.msra.mxu0 %v15753_v5  ;;  %v15785_v53 = vld [vmem:[%s18522_s13 + $0x1244] ss:$16 sps:$4 sm:$0xff]   ;;  %v15795_v48 = vld [vmem:[%s18522_s13 + $0x1200] ss:$16 sps:$4 sm:$0xff]  }
0x1eb3   :  { %v9824_v9 = vsub.f32 %v18133_v34, %v9776_v40  ;;  %v9878_v34 = vrot.slane %v9858_v13, %v17345_v19  ;;  %11537 = vmatprep.subr.bf16.mxu0 %v15761_v47  ;;  %v15789_v40 = vld [vmem:[%s18522_s13 + $0x1220] ss:$16 sps:$4 sm:$0xff]   ;;  %v15791_v42 = vld [vmem:[%s18522_s13 + $0x1224] ss:$16 sps:$4 sm:$0xff]  }
0x1eb4   :  { %v9820_v22 = vsub.f32 %v9812_v36, %v9816_v58  ;;  %v9813_v20 = vmul.f32 0.5, %v9809_v26  ;;  %v9817_v56 = vmul.f32 %v9777_v33, %v9777_v33  ;;  %v9825_v18 = vsub.f32 %v18141_v46, %v9777_v33  ;;  %v15759_v46 = vld [vmem:[%s18522_s13 + $0x12c0] ss:$16 sps:$4 sm:$0xff]   ;;  %v15797_v55 = vld [vmem:[%s18522_s13 + $0x1204] ss:$16 sps:$4 sm:$0xff]  }
0x1eb5   :  { %v15801_v24 = vld [vmem:[%s18522_s13 + $0x13e0] ss:$16 sps:$4 sm:$0xff]   ;;  %v15803_v36 = vld [vmem:[%s18522_s13 + $0x13e4] ss:$16 sps:$4 sm:$0xff]  }
0x1eb6   :  { %v9828_v30 = vmax.f32 %v9820_v22, 0.0  ;;  %v9821_v7 = vsub.f32 %v9813_v20, %v9817_v56  ;;  %11538 = vmatpush1.bf16.msra.mxu0 %v15759_v46  ;;  %v15807_v58 = vld [vmem:[%s18522_s13 + $0x13c0] ss:$16 sps:$4 sm:$0xff]   ;;  %v15809_v49 = vld [vmem:[%s18522_s13 + $0x13c4] ss:$16 sps:$4 sm:$0xff]  }
0x1eb7   :  { %11539 = vmatprep.subr.bf16.mxu0 %v15767_v50  ;;  %v15813_v54 = vld [vmem:[%s18522_s13 + $0x13a0] ss:$16 sps:$4 sm:$0xff]   ;;  %v15815_v22 = vld [vmem:[%s18522_s13 + $0x13a4] ss:$16 sps:$4 sm:$0xff]  }
0x1eb8   :  { %v9832_v1 = vadd.f32 1e-05, %v9828_v30  ;;  %v9829_v57 = vmax.f32 %v9821_v7, 0.0  ;;  %v15819_v33 = vld [vmem:[%s18522_s13 + $0x1380] ss:$16 sps:$4 sm:$0xff]  }
0x1eb9   :  { %v15821_v26 = vld [vmem:[%s18522_s13 + $0x1384] ss:$16 sps:$4 sm:$0xff]  }
0x1eba   :  { %15960 = vrsqrt.f32 %v9832_v1  ;;  %v9833_v12 = vadd.f32 1e-05, %v9829_v57  ;;  %11540 = vmatpush1.bf16.msra.mxu0 %v15765_v39  ;;  %v15827_v30 = vld [vmem:[%s18522_s13 + $0x1364] ss:$16 sps:$4 sm:$0xff]  }
0x1ebb   :  { %11541 = vmatprep.subr.bf16.mxu0 %v15773_v32 }
0x1ebc   :  { %15962 = vrsqrt.f32 %v9833_v12 }
0x1ebe   :  { %11542 = vmatpush1.bf16.msra.mxu0 %v15771_v14 }
0x1ebf   :  { %11543 = vmatprep.subr.bf16.mxu0 %v15779_v23 }
0x1ec2   :  { %11544 = vmatpush1.bf16.msra.mxu0 %v15777_v35 }
0x1ec3   :  { %11545 = vmatprep.subr.bf16.mxu0 %v15785_v53 }
0x1ec6   :  { %11546 = vmatpush1.bf16.msra.mxu0 %v15783_v25 }
0x1ec7   :  { %v15961_v31 = vpop.eup %15960  ;;  %11547 = vmatprep.subr.bf16.mxu0 %v15791_v42 }
0x1ec8   :  { %v9840_v4 = vmul.f32 %v15961_v31, %v9824_v9 }
0x1ec9   :  { %v15963_v43 = vpop.eup %15962 }
0x1eca   :  { %v9881_v45 = vmul.f32 %v9874_v16, %v9840_v4  ;;  %v9841_v44 = vmul.f32 %v15963_v43, %v9825_v18  ;;  %11548 = vmatpush1.bf16.msra.mxu0 %v15789_v40 }
0x1ecb   :  { %11549 = vmatprep.subr.bf16.mxu0 %v15797_v55 }
0x1ecc   :  { %v18171_v41 = vadd.f32 %v9914_v2, %v9881_v45  ;;  %v9882_v6 = vmul.f32 %v9878_v34, %v9841_v44 }
0x1ece   :  { %v18174_v17 = vadd.f32 %v9918_v63, %v9882_v6  ;;  %11550 = vmatpush1.bf16.msra.mxu0 %v15795_v48 }
0x1ecf   :  { %11551 = vmatprep.subr.bf16.mxu0 %v15803_v36 }
0x1ed2   :  { %11552 = vmatpush2.bf16.msra.mxu0 %v15801_v24 }
0x1ed3   :  { %11553 = vmatprep.subr.bf16.mxu0 %v15809_v49 }
0x1ed6   :  { %11554 = vmatpush2.bf16.msra.mxu0 %v15807_v58 }
0x1ed7   :  { %11555 = vmatprep.subr.bf16.mxu0 %v15815_v22 }
0x1eda   :  { %11556 = vmatpush2.bf16.msra.mxu0 %v15813_v54 }
0x1edb   :  { %11557 = vmatprep.subr.bf16.mxu0 %v15821_v26 }
0x1ede   :  { %11558 = vmatpush2.bf16.msra.mxu0 %v15819_v33 }
0x1edf   :  { %11559 = vmatprep.subr.bf16.mxu0 %v15827_v30 }
0x1ee2   :  { %11560 = vmatpush2.bf16.msra.mxu0 %v15825_v60 }
0x1f70   :  { %v18202_v0 = vpop.f32.mrf.mxu1  ;;  %v18204_v20 = vpop.f32.mrf.mxu0 }
0x1f71   :  { %v10438_v56 = vsel %vm722_vm1, %v18202_v0, 0.0  ;;  %v10470_v1 = vmul.f32 %v18202_v0, %v18202_v0  ;;  %v10452_v7 = vsel %vm722_vm1, %v18204_v20, 0.0  ;;  %v10472_v57 = vmul.f32 %v18204_v20, %v18204_v20 }
0x1f72   :  { %v10439_v12 = vrot.slane %v10438_v56, 4  ;;  %v10453_v52 = vrot.slane %v10452_v7, 4  ;;  %v18214_v27 = vpop.f32.mrf.mxu1  ;;  %v18216_v3 = vpop.f32.mrf.mxu0 }
0x1f73   :  { %v10474_v9 = vsel %vm722_vm1, %v10470_v1, 0.0  ;;  %v10488_v16 = vsel %vm722_vm1, %v10472_v57, 0.0  ;;  %v10445_v31 = vsel %vm722_vm1, %v18214_v27, 0.0  ;;  %v10471_v13 = vmul.f32 %v18214_v27, %v18214_v27 }
0x1f74   :  { %v10440_v4 = vadd.f32 %v10439_v12, %v10438_v56  ;;  %v10475_v2 = vrot.slane %v10474_v9, 4  ;;  %v10454_v37 = vadd.f32 %v10453_v52, %v10452_v7  ;;  %v10489_v45 = vrot.slane %v10488_v16, 4  ;;  %v10393_v18 = vpop.f32.mrf.mxu1  ;;  %v10434_v34 = vpop.f32.mrf.mxu0 }
0x1f75   :  { %v10446_v43 = vrot.slane %v10445_v31, 4  ;;  %v10481_v44 = vsel %vm722_vm1, %v10471_v13, 0.0  ;;  %v10459_v63 = vsel %vm722_vm1, %v18216_v3, 0.0  ;;  %v10473_v6 = vmul.f32 %v18216_v3, %v18216_v3 }
0x1f76   :  { %v10441_v5 = vrot.slane %v10440_v4, 2  ;;  %v10476_v28 = vadd.f32 %v10475_v2, %v10474_v9  ;;  %v10455_v46 = vrot.slane %v10454_v37, 2  ;;  %v10490_v47 = vadd.f32 %v10489_v45, %v10488_v16  ;;  %v10394_v39 = vpop.f32.mrf.mxu1  ;;  %v10435_v50 = vpop.f32.mrf.mxu0 }
0x1f77   :  { %v10447_v14 = vadd.f32 %v10446_v43, %v10445_v31  ;;  %v10482_v32 = vrot.slane %v10481_v44, 4  ;;  %v10460_v35 = vrot.slane %v10459_v63, 4  ;;  %v10495_v23 = vsel %vm722_vm1, %v10473_v6, 0.0 }
0x1f78   :  { %v10442_v25 = vadd.f32 %v10441_v5, %v10440_v4  ;;  %v10477_v53 = vrot.slane %v10476_v28, 2  ;;  %v10456_v40 = vadd.f32 %v10455_v46, %v10454_v37  ;;  %v10491_v42 = vrot.slane %v10490_v47, 2 }
0x1f79   :  { %v10448_v48 = vrot.slane %v10447_v14, 2  ;;  %v10483_v55 = vadd.f32 %v10482_v32, %v10481_v44  ;;  %v10461_v24 = vadd.f32 %v10460_v35, %v10459_v63  ;;  %v10496_v36 = vrot.slane %v10495_v23, 4 }
0x1f7a   :  { %v10443_v58 = vrot.slane %v10442_v25, 1  ;;  %v10478_v49 = vadd.f32 %v10477_v53, %v10476_v28  ;;  %v10457_v54 = vrot.slane %v10456_v40, 1  ;;  %v10492_v22 = vadd.f32 %v10491_v42, %v10490_v47 }
0x1f7b   :  { %v10449_v33 = vadd.f32 %v10448_v48, %v10447_v14  ;;  %v10484_v26 = vrot.slane %v10483_v55, 2  ;;  %v10462_v60 = vrot.slane %v10461_v24, 2  ;;  %v10497_v30 = vadd.f32 %v10496_v36, %v10495_v23 }
0x1f7c   :  { %v10444_v56 = vadd.f32 %v10443_v58, %v10442_v25  ;;  %v10479_v1 = vrot.slane %v10478_v49, 1  ;;  %v10458_v7 = vadd.f32 %v10457_v54, %v10456_v40  ;;  %v10493_v57 = vrot.slane %v10492_v22, 1 }
0x1f7d   :  { %v10450_v12 = vrot.slane %v10449_v33, 1  ;;  %v10485_v52 = vadd.f32 %v10484_v26, %v10483_v55  ;;  %v10463_v9 = vadd.f32 %v10462_v60, %v10461_v24  ;;  %v10498_v16 = vrot.slane %v10497_v30, 2 }
0x1f7e   :  { %v10466_v31 = vmul.f32 0.5, %v10444_v56  ;;  %v10480_v13 = vadd.f32 %v10479_v1, %v10478_v49  ;;  %v10468_v4 = vmul.f32 0.5, %v10458_v7  ;;  %v10494_v2 = vadd.f32 %v10493_v57, %v10492_v22 }
0x1f7f   :  { %v10451_v37 = vadd.f32 %v10450_v12, %v10449_v33  ;;  %v10486_v45 = vrot.slane %v10485_v52, 1  ;;  %v10464_v18 = vrot.slane %v10463_v9, 1  ;;  %v10499_v34 = vadd.f32 %v10498_v16, %v10497_v30  ;;  %v10437_v33 = vld [vmem:[#allocation34] sm:$0xff] }
0x1f80   :  { %v10502_v43 = vmul.f32 0.5, %v10480_v13  ;;  %v10506_v44 = vmul.f32 %v10466_v31, %v10466_v31  ;;  %v10504_v63 = vmul.f32 0.5, %v10494_v2  ;;  %v10508_v6 = vmul.f32 %v10468_v4, %v10468_v4 }
0x1f81   :  { %v10467_v5 = vmul.f32 0.5, %v10451_v37  ;;  %v10487_v28 = vadd.f32 %v10486_v45, %v10485_v52  ;;  %v10465_v47 = vadd.f32 %v10464_v18, %v10463_v9  ;;  %v10500_v39 = vrot.slane %v10499_v34, 1 }
0x1f82   :  { %v10510_v46 = vsub.f32 %v10502_v43, %v10506_v44  ;;  %v10512_v50 = vsub.f32 %v10504_v63, %v10508_v6  ;;  %v10538_v26 = vrot.slane %v10437_v33, %v17345_v19  ;;  %v10546_v60 = vrot.slane %v10437_v33, %v18151_v51 }
0x1f83   :  { %v10503_v14 = vmul.f32 0.5, %v10487_v28  ;;  %v10507_v32 = vmul.f32 %v10467_v5, %v10467_v5  ;;  %v10469_v23 = vmul.f32 0.5, %v10465_v47  ;;  %v10501_v25 = vadd.f32 %v10500_v39, %v10499_v34 }
0x1f84   :  { %v10518_v35 = vmax.f32 %v10510_v46, 0.0  ;;  %v10520_v53 = vmax.f32 %v10512_v50, 0.0  ;;  %v10578_v30 = vrot.slane %v10437_v33, %v17348_v62  ;;  %v10542_v56 = vrot.slane %v10437_v33, %v18004_v29 }
0x1f85   :  { %v10511_v40 = vsub.f32 %v10503_v14, %v10507_v32  ;;  %v10505_v48 = vmul.f32 0.5, %v10501_v25  ;;  %v10509_v55 = vmul.f32 %v10469_v23, %v10469_v23  ;;  %v10586_v1 = vrot.slane %v10437_v33, %v18154_v8 }
0x1f86   :  { %v10522_v42 = vadd.f32 1e-05, %v10518_v35  ;;  %v10524_v24 = vadd.f32 1e-05, %v10520_v53  ;;  %v10514_v7 = vsub.f32 %v18202_v0, %v10466_v31  ;;  %v10558_v57 = vrot.slane %v10538_v26, %v17345_v19  ;;  %v15747_v26 = vld [vmem:[%s18522_s13 + $0x10c0] ss:$16 sps:$4 sm:$0xff]  }
0x1f87   :  { %v10519_v36 = vmax.f32 %v10511_v40, 0.0  ;;  %v10513_v58 = vsub.f32 %v10505_v48, %v10509_v55  ;;  %v10516_v52 = vsub.f32 %v18204_v20, %v10468_v4  ;;  %v10566_v9 = vrot.slane %v10546_v60, %v17345_v19  ;;  %v15752_v60 = vld [vmem:[%s18522_s13 + $0x10a4] ss:$16 sps:$4 sm:$0xff]  }
0x1f88   :  { %15964 = vrsqrt.f32 %v10522_v42  ;;  %v10582_v16 = vrot.slane %v10437_v33, %v18008_v21  ;;  %v10550_v37 = vrot.slane %v10437_v33, %v18158_v11  ;;  %v10598_v45 = vrot.slane %v10578_v30, %v17348_v62  ;;  %v15750_v30 = vld [vmem:[%s18522_s13 + $0x10a0] ss:$16 sps:$4 sm:$0xff]  }
0x1f89   :  { %15966 = vrsqrt.f32 %v10524_v24  ;;  %v10523_v49 = vadd.f32 1e-05, %v10519_v36  ;;  %v10521_v54 = vmax.f32 %v10513_v58, 0.0  ;;  %v10515_v34 = vsub.f32 %v18214_v27, %v10467_v5  ;;  %v10623_v58 = vld [vmem:[%s18523_s16] sm:$0x1] }
0x1f8a   :  { %v10562_v0 = vrot.slane %v10542_v56, %v17345_v19  ;;  %v10606_v31 = vrot.slane %v10586_v1, %v17348_v62  ;;  %v10590_v20 = vrot.slane %v10437_v33, %v18162_v38  ;;  %v10602_v6 = vrot.slane %v10582_v16, %v17348_v62  ;;  %v15749_v33 = vld [vmem:[%s18522_s13 + $0x10c4] ss:$16 sps:$4 sm:$0xff]  }
0x1f8b   :  { %15968 = vrsqrt.f32 %v10523_v49  ;;  %v10525_v22 = vadd.f32 1e-05, %v10521_v54  ;;  %v10517_v28 = vsub.f32 %v18216_v3, %v10469_v23  ;;  %v10570_v46 = vrot.slane %v10550_v37, %v17345_v19  ;;  %v15746_v49 = vld [vmem:[%s18522_s13 + $0x10e4] ss:$16 sps:$4 sm:$0xff]   ;;  %v15786_v37 = vld [vmem:[%s18522_s13 + $0x11e0] ss:$16 sps:$4 sm:$0xff]  }
0x1f8c   :  { %v10610_v32 = vrot.slane %v10590_v20, %v17348_v62  ;;  %v15758_v56 = vld [vmem:[%s18522_s13 + $0x1084] ss:$16 sps:$4 sm:$0xff]   ;;  %v15810_v20 = vld [vmem:[%s18522_s13 + $0x1160] ss:$16 sps:$4 sm:$0xff]  }
0x1f8d   :  { %15970 = vrsqrt.f32 %v10525_v22  ;;  %v15744_v22 = vld [vmem:[%s18522_s13 + $0x10e0] ss:$16 sps:$4 sm:$0xff]   ;;  %v15764_v1 = vld [vmem:[%s18522_s13 + $0x1064] ss:$16 sps:$4 sm:$0xff]  }
0x1f8e   :  { %v15782_v16 = vld [vmem:[%s18522_s13 + $0x1004] ss:$16 sps:$4 sm:$0xff]  }
0x1f95   :  { %v15965_v12 = vpop.eup %15964 }
0x1f96   :  { %v15967_v13 = vpop.eup %15966  ;;  %v10530_v2 = vmul.f32 %v15965_v12, %v10514_v7  ;;  %v15762_v7 = vld [vmem:[%s18522_s13 + $0x1060] ss:$16 sps:$4 sm:$0xff]  }
0x1f97   :  { %v10532_v18 = vmul.f32 %v15967_v13, %v10516_v52  ;;  %v15768_v12 = vld [vmem:[%s18522_s13 + $0x1040] ss:$16 sps:$4 sm:$0xff]   ;;  %v15776_v52 = vld [vmem:[%s18522_s13 + $0x1024] ss:$16 sps:$4 sm:$0xff]  }
0x1f98   :  { %v15969_v43 = vpop.eup %15968  ;;  %v10571_v44 = vmul.f32 %v10558_v57, %v10530_v2  ;;  %v15770_v57 = vld [vmem:[%s18522_s13 + $0x1044] ss:$16 sps:$4 sm:$0xff]   ;;  %v15780_v13 = vld [vmem:[%s18522_s13 + $0x1000] ss:$16 sps:$4 sm:$0xff]  }
0x1f99   :  { %v10573_v4 = vmul.f32 %v10566_v9, %v10532_v18  ;;  %v10531_v63 = vmul.f32 %v15969_v43, %v10515_v34  ;;  %v15774_v9 = vld [vmem:[%s18522_s13 + $0x1020] ss:$16 sps:$4 sm:$0xff]   ;;  %v15788_v2 = vld [vmem:[%s18522_s13 + $0x11e4] ss:$16 sps:$4 sm:$0xff]  }
0x1f9a   :  { %v10611_v47 = vadd.f32 %v10598_v45, %v10571_v44  ;;  %v15971_v39 = vpop.eup %15970  ;;  %v15794_v45 = vld [vmem:[%s18522_s13 + $0x11c4] ss:$16 sps:$4 sm:$0xff]   ;;  %v15792_v18 = vld [vmem:[%s18522_s13 + $0x11c0] ss:$16 sps:$4 sm:$0xff]  }
0x1f9b   :  { %v10572_v50 = vmul.f32 %v10562_v0, %v10531_v63  ;;  %v10613_v27 = vadd.f32 %v10606_v31, %v10573_v4  ;;  %v10533_v5 = vmul.f32 %v15971_v39, %v10517_v28  ;;  %v15800_v34 = vld [vmem:[%s18522_s13 + $0x11a4] ss:$16 sps:$4 sm:$0xff]   ;;  %v15798_v0 = vld [vmem:[%s18522_s13 + $0x11a0] ss:$16 sps:$4 sm:$0xff]  }
0x1f9c   :  { %v10615_v14 = vmax.f32 %v10611_v47, 0.0  ;;  %v15806_v31 = vld [vmem:[%s18522_s13 + $0x1184] ss:$16 sps:$4 sm:$0xff]   ;;  %v15804_v43 = vld [vmem:[%s18522_s13 + $0x1180] ss:$16 sps:$4 sm:$0xff]  }
0x1f9d   :  { %v10612_v35 = vadd.f32 %v10602_v6, %v10572_v50  ;;  %v10574_v25 = vmul.f32 %v10570_v46, %v10533_v5  ;;  %v10617_v42 = vmax.f32 %v10613_v27, 0.0  ;;  %v15812_v44 = vld [vmem:[%s18522_s13 + $0x1164] ss:$16 sps:$4 sm:$0xff]   ;;  %v15816_v63 = vld [vmem:[%s18522_s13 + $0x1140] ss:$16 sps:$4 sm:$0xff]  }
0x1f9e   :  { %v10619_v40 = vpack.c.bf16 %v10615_v14, %v10615_v14  ;;  %v15818_v4 = vld [vmem:[%s18522_s13 + $0x1144] ss:$16 sps:$4 sm:$0xff]   ;;  %v15822_v28 = vld [vmem:[%s18522_s13 + $0x1120] ss:$16 sps:$4 sm:$0xff]   ;;  %v15839_v14 = vld [vmem:[%s18522_s13 + $0x10ec] ss:$16 sps:$4 sm:$0xff]  }
0x1f9f   :  { %v10616_v53 = vmax.f32 %v10612_v35, 0.0  ;;  %v10614_v48 = vadd.f32 %v10610_v32, %v10574_v25  ;;  %v10621_v24 = vpack.c.bf16 %v10617_v42, %v10617_v42  ;;  %v15824_v6 = vld [vmem:[%s18522_s13 + $0x1124] ss:$16 sps:$4 sm:$0xff]   ;;  %v15828_v46 = vld [vmem:[%s18522_s13 + $0x1100] ss:$16 sps:$4 sm:$0xff]  }
0x1fa0   :  { %v10628_v55 = vsel %vm8844_vm7, %v10619_v40, 0  ;;  %v15830_v47 = vld [vmem:[%s18522_s13 + $0x1104] ss:$16 sps:$4 sm:$0xff]   ;;  %v15831_v39 = vld [vmem:[%s18522_s13 + $0x1340] ss:$16 sps:$4 sm:$0xff]  }
0x1fa1   :  { %v10620_v3 = vpack.c.bf16 %v10616_v53, %v10616_v53  ;;  %v10618_v23 = vmax.f32 %v10614_v48, 0.0  ;;  %v10634_v54 = vsel %vm8844_vm7, %v10621_v24, 0  ;;  %v15833_v50 = vld [vmem:[%s18522_s13 + $0x1344] ss:$16 sps:$4 sm:$0xff]   ;;  %v15834_v27 = vld [vmem:[%s18522_s13 + $0x1320] ss:$16 sps:$4 sm:$0xff]  }
0x1fa2   :  { %11561 = vmatprep.subr.bf16.mxu0 %v15833_v50  ;;  %v15836_v5 = vld [vmem:[%s18522_s13 + $0x1324] ss:$16 sps:$4 sm:$0xff]   ;;  %v15840_v32 = vld [vmem:[%s18522_s13 + $0x1300] ss:$16 sps:$4 sm:$0xff]   ;;  %v15851_v25 = vld [vmem:[%s18522_s13 + $0x12ec] ss:$16 sps:$4 sm:$0xff]  }
0x1fa3   :  { %12995 = vmatprep.subr.msk.bf16.mxu1 %vm8844_vm7, %v10620_v3  ;;  %v10622_v36 = vpack.c.bf16 %v10618_v23, %v10618_v23  ;;  %11562 = vmatpush2.bf16.msra.mxu0 %v15831_v39  ;;  %v15842_v35 = vld [vmem:[%s18522_s13 + $0x1304] ss:$16 sps:$4 sm:$0xff]   ;;  %v15837_v48 = vld [vmem:[%s18522_s13 + $0x10e8] ss:$16 sps:$4 sm:$0xff]   ;;  %v15893_v39 = vld [vmem:[%s18522_s13 + $0x120c] ss:$16 sps:$4 sm:$0xff]  }
0x1fa4   :  { %10654 = vmatpush1.bf16.msra.mxu1 %v10628_v55  ;;  %11563 = vmatprep.subr.bf16.mxu0 %v15836_v5  ;;  %v15845_v55 = vld [vmem:[%s18522_s13 + $0x10cc] ss:$16 sps:$4 sm:$0xff]   ;;  %v15888_v50 = vld [vmem:[%s18522_s13 + $0x11c8] ss:$16 sps:$4 sm:$0xff]  }
0x1fa5   :  { %12997 = vmatprep.subr.msk.bf16.mxu1 %vm8844_vm7, %v10622_v36  ;;  %v15843_v36 = vld [vmem:[%s18522_s13 + $0x10c8] ss:$16 sps:$4 sm:$0xff]   ;;  %v15896_v5 = vld [vmem:[%s18522_s13 + $0x11ac] ss:$16 sps:$4 sm:$0xff]  }
0x1fa7   :  { %12996 = vmatmul.mubr.msk.bf16.vlgmr.msra.gmra.mxu1 %vm8840_vm8, %v10623_v58  ;;  %11564 = vmatpush2.bf16.msra.mxu0 %v15834_v27  ;;  %v15891_v27 = vld [vmem:[%s18522_s13 + $0x1208] ss:$16 sps:$4 sm:$0xff]  }
0x1fa8   :  { %10695 = vmatpush1.bf16.msra.mxu1 %v10634_v54  ;;  %10712 = vmatprep.mubr.bf16.mxu1 %v18518_v61  ;;  %v15756_v61 = vld [vmem:[%s18522_s13 + $0x1080] ss:$16 sps:$4 sm:$0xff]  }
0x1fa9   :  { %11494 = vmatprep.subr.bf16.mxu1 %v15746_v49  ;;  %11565 = vmatprep.subr.bf16.mxu0 %v15842_v35  ;;  %v15848_v49 = vld [vmem:[%s18522_s13 + $0x10ac] ss:$16 sps:$4 sm:$0xff]   ;;  %v15897_v35 = vld [vmem:[%s18522_s13 + $0x13e8] ss:$16 sps:$4 sm:$0xff]  }
0x1fab   :  { %11566 = vmatpush2.bf16.msra.mxu0 %v15840_v32  ;;  %v15894_v32 = vld [vmem:[%s18522_s13 + $0x11a8] ss:$16 sps:$4 sm:$0xff]  }
0x1fac   :  { %11617 = vmatprep.subr.bf16.mxu0 %v15851_v25  ;;  %v15902_v25 = vld [vmem:[%s18522_s13 + $0x118c] ss:$16 sps:$4 sm:$0xff]  }
0x1faf   :  { %12998 = vmatmul.mubr.msk.bf16.vlgmr.msra.gmra.mxu1 %vm8840_vm8, %v10623_v58 }
0x1fb0   :  { %11495 = vmatpush1.bf16.msra.mxu1 %v15744_v22 }
0x1fb1   :  { %11496 = vmatprep.subr.bf16.mxu1 %v15749_v33  ;;  %v15846_v33 = vld [vmem:[%s18522_s13 + $0x10a8] ss:$16 sps:$4 sm:$0xff]  }
0x1fb4   :  { %11497 = vmatpush1.bf16.msra.mxu1 %v15747_v26  ;;  %v15849_v26 = vld [vmem:[%s18522_s13 + $0x12e8] ss:$16 sps:$4 sm:$0xff]  }
0x1fb5   :  { %11498 = vmatprep.subr.bf16.mxu1 %v15752_v60 }
0x1fb8   :  { %11499 = vmatpush1.bf16.msra.mxu1 %v15750_v30 }
0x1fb9   :  { %11500 = vmatprep.subr.bf16.mxu1 %v15758_v56  ;;  %v15854_v56 = vld [vmem:[%s18522_s13 + $0x108c] ss:$16 sps:$4 sm:$0xff]  }
0x1fbc   :  { %11501 = vmatpush1.bf16.msra.mxu1 %v15756_v61  ;;  %v15857_v61 = vld [vmem:[%s18522_s13 + $0x12cc] ss:$16 sps:$4 sm:$0xff]  }
0x1fbd   :  { %11502 = vmatprep.subr.bf16.mxu1 %v15764_v1 }
0x1fc0   :  { %11503 = vmatpush1.bf16.msra.mxu1 %v15762_v7  ;;  %v15852_v7 = vld [vmem:[%s18522_s13 + $0x1088] ss:$16 sps:$4 sm:$0xff]  }
0x1fc1   :  { %11504 = vmatprep.subr.bf16.mxu1 %v15770_v57  ;;  %v15855_v57 = vld [vmem:[%s18522_s13 + $0x12c8] ss:$16 sps:$4 sm:$0xff]  }
0x1fc4   :  { %11505 = vmatpush1.bf16.msra.mxu1 %v15768_v12  ;;  %v15860_v12 = vld [vmem:[%s18522_s13 + $0x106c] ss:$16 sps:$4 sm:$0xff]  }
0x1fc5   :  { %11506 = vmatprep.subr.bf16.mxu1 %v15776_v52  ;;  %v15863_v52 = vld [vmem:[%s18522_s13 + $0x12ac] ss:$16 sps:$4 sm:$0xff]  }
0x1fc8   :  { %11507 = vmatpush1.bf16.msra.mxu1 %v15774_v9  ;;  %v15858_v9 = vld [vmem:[%s18522_s13 + $0x1068] ss:$16 sps:$4 sm:$0xff]  }
0x1fc9   :  { %11508 = vmatprep.subr.bf16.mxu1 %v15782_v16  ;;  %v15861_v16 = vld [vmem:[%s18522_s13 + $0x12a8] ss:$16 sps:$4 sm:$0xff]  }
0x1fcc   :  { %11509 = vmatpush1.bf16.msra.mxu1 %v15780_v13  ;;  %v15866_v13 = vld [vmem:[%s18522_s13 + $0x104c] ss:$16 sps:$4 sm:$0xff]  }
0x1fcd   :  { %11510 = vmatprep.subr.bf16.mxu1 %v15788_v2  ;;  %v15869_v2 = vld [vmem:[%s18522_s13 + $0x128c] ss:$16 sps:$4 sm:$0xff]  }
0x1fd0   :  { %11511 = vmatpush2.bf16.msra.mxu1 %v15786_v37  ;;  %v15864_v37 = vld [vmem:[%s18522_s13 + $0x1048] ss:$16 sps:$4 sm:$0xff]  }
0x1fd1   :  { %11512 = vmatprep.subr.bf16.mxu1 %v15794_v45  ;;  %v15867_v45 = vld [vmem:[%s18522_s13 + $0x1288] ss:$16 sps:$4 sm:$0xff]  }
0x1fd4   :  { %11513 = vmatpush2.bf16.msra.mxu1 %v15792_v18  ;;  %v15872_v18 = vld [vmem:[%s18522_s13 + $0x102c] ss:$16 sps:$4 sm:$0xff]  }
0x1fd5   :  { %11514 = vmatprep.subr.bf16.mxu1 %v15800_v34  ;;  %v15875_v34 = vld [vmem:[%s18522_s13 + $0x126c] ss:$16 sps:$4 sm:$0xff]  }
0x1fd8   :  { %11515 = vmatpush2.bf16.msra.mxu1 %v15798_v0  ;;  %v15870_v0 = vld [vmem:[%s18522_s13 + $0x1028] ss:$16 sps:$4 sm:$0xff]  }
0x1fd9   :  { %11516 = vmatprep.subr.bf16.mxu1 %v15806_v31  ;;  %v15873_v31 = vld [vmem:[%s18522_s13 + $0x1268] ss:$16 sps:$4 sm:$0xff]  }
0x1fdc   :  { %11517 = vmatpush2.bf16.msra.mxu1 %v15804_v43  ;;  %v15878_v43 = vld [vmem:[%s18522_s13 + $0x100c] ss:$16 sps:$4 sm:$0xff]  }
0x1fdd   :  { %11518 = vmatprep.subr.bf16.mxu1 %v15812_v44  ;;  %v15881_v44 = vld [vmem:[%s18522_s13 + $0x124c] ss:$16 sps:$4 sm:$0xff]  }
0x1fe0   :  { %11519 = vmatpush2.bf16.msra.mxu1 %v15810_v20  ;;  %v15876_v20 = vld [vmem:[%s18522_s13 + $0x1008] ss:$16 sps:$4 sm:$0xff]  }
0x1fe1   :  { %11520 = vmatprep.subr.bf16.mxu1 %v15818_v4  ;;  %v15879_v4 = vld [vmem:[%s18522_s13 + $0x1248] ss:$16 sps:$4 sm:$0xff]  }
0x1fe4   :  { %11521 = vmatpush2.bf16.msra.mxu1 %v15816_v63  ;;  %v15884_v63 = vld [vmem:[%s18522_s13 + $0x11ec] ss:$16 sps:$4 sm:$0xff]  }
0x1fe5   :  { %11522 = vmatprep.subr.bf16.mxu1 %v15824_v6  ;;  %v15887_v6 = vld [vmem:[%s18522_s13 + $0x122c] ss:$16 sps:$4 sm:$0xff]  }
0x1fe8   :  { %11523 = vmatpush2.bf16.msra.mxu1 %v15822_v28  ;;  %v15882_v28 = vld [vmem:[%s18522_s13 + $0x11e8] ss:$16 sps:$4 sm:$0xff]  }
0x1fe9   :  { %11524 = vmatprep.subr.bf16.mxu1 %v15830_v47  ;;  %v15890_v47 = vld [vmem:[%s18522_s13 + $0x11cc] ss:$16 sps:$4 sm:$0xff]  }
0x1fec   :  { %11525 = vmatpush2.bf16.msra.mxu1 %v15828_v46  ;;  %v15885_v46 = vld [vmem:[%s18522_s13 + $0x1228] ss:$16 sps:$4 sm:$0xff]  }
0x1fed   :  { %11576 = vmatprep.subr.bf16.mxu1 %v15839_v14  ;;  %v15899_v14 = vld [vmem:[%s18522_s13 + $0x13ec] ss:$16 sps:$4 sm:$0xff]  }
0x2067   :  { %v10673_v53 = vpop.f32.mrf.mxu1 }
0x2068   :  { %v18299_v3 = vpack.c.bf16 %v10673_v53, %v10673_v53  ;;  %v15905_v53 = vld [vmem:[%s18522_s13 + $0x13cc] ss:$16 sps:$4 sm:$0xff]  }
0x2069   :  { %v10675_v40 = vpop.f32.mrf.mxu1 }
0x206a   :  { %v10722_v42 = vpack.c.bf16 %v10675_v40, %v10675_v40  ;;  %v15900_v40 = vld [vmem:[%s18522_s13 + $0x1188] ss:$16 sps:$4 sm:$0xff]  }
0x206b   :  { %v10677_v23 = vpop.f32.mrf.mxu1 }
0x206c   :  { %11526 = vmatprep.mubr.bf16.mxu1 %v10722_v42  ;;  %v15911_v23 = vld [vmem:[%s18522_s13 + $0x13ac] ss:$16 sps:$4 sm:$0xff]  }
0x206d   :  { %v10678_v24 = vpop.f32.mrf.mxu1  ;;  %11527 = vmatmul.mubr.bf16.vlgmr.msra.gmra.mxu1 %v18299_v3 }
0x206e   :  { %11577 = vmatpush1.bf16.msra.mxu1 %v15837_v48  ;;  %11608 = vmatprep.mubr.bf16.mxu1 %v10722_v42  ;;  %v15903_v42 = vld [vmem:[%s18522_s13 + $0x13c8] ss:$16 sps:$4 sm:$0xff]   ;;  %v15908_v48 = vld [vmem:[%s18522_s13 + $0x116c] ss:$16 sps:$4 sm:$0xff]  }
0x206f   :  { %v10714_v58 = vpop.f32.mrf.mxu1  ;;  %11578 = vmatprep.subr.bf16.mxu1 %v15845_v55  ;;  %v15906_v55 = vld [vmem:[%s18522_s13 + $0x1168] ss:$16 sps:$4 sm:$0xff]  }
0x2070   :  { %v18307_v60 = vpack.c.bf16 %v10714_v58, %v10714_v58  ;;  %v15909_v24 = vld [vmem:[%s18522_s13 + $0x13a8] ss:$16 sps:$4 sm:$0xff]   ;;  %v15917_v58 = vld [vmem:[%s18522_s13 + $0x138c] ss:$16 sps:$4 sm:$0xff]  }
0x2071   :  { %v10716_v54 = vpop.f32.mrf.mxu1 }
0x2072   :  { %v10724_v22 = vpack.c.bf16 %v10716_v54, %v10716_v54  ;;  %11579 = vmatpush1.bf16.msra.mxu1 %v15843_v36  ;;  %v15914_v36 = vld [vmem:[%s18522_s13 + $0x114c] ss:$16 sps:$4 sm:$0xff]   ;;  %v15915_v54 = vld [vmem:[%s18522_s13 + $0x1388] ss:$16 sps:$4 sm:$0xff]  }
0x2073   :  { %v10718_v30 = vpop.f32.mrf.mxu1  ;;  %11580 = vmatprep.subr.bf16.mxu1 %v15848_v49  ;;  %v15912_v49 = vld [vmem:[%s18522_s13 + $0x1148] ss:$16 sps:$4 sm:$0xff]  }
0x2074   :  { %11567 = vmatprep.mubr.bf16.mxu0 %v10724_v22  ;;  %v15921_v30 = vld [vmem:[%s18522_s13 + $0x1368] ss:$16 sps:$4 sm:$0xff]  }
0x2075   :  { %v10719_v1 = vpop.f32.mrf.mxu1  ;;  %11568 = vmatmul.mubr.bf16.vlgmr.msra.gmra.mxu0 %v18307_v60 }
0x2076   :  { %11581 = vmatpush1.bf16.msra.mxu1 %v15846_v33  ;;  %11618 = vmatpush1.bf16.msra.mxu0 %v15849_v26  ;;  %v15923_v33 = vld [vmem:[%s18522_s13 + $0x136c] ss:$16 sps:$4 sm:$0xff]   ;;  %v15918_v26 = vld [vmem:[%s18522_s13 + $0x1128] ss:$16 sps:$4 sm:$0xff]  }
0x2077   :  { %11649 = vmatprep.mubr.bf16.mxu0 %v10724_v22  ;;  %11582 = vmatprep.subr.bf16.mxu1 %v15854_v56  ;;  %v15920_v22 = vld [vmem:[%s18522_s13 + $0x112c] ss:$16 sps:$4 sm:$0xff]   ;;  %v15924_v1 = vld [vmem:[%s18522_s13 + $0x1108] ss:$16 sps:$4 sm:$0xff]  }
0x2078   :  { %11619 = vmatprep.subr.bf16.mxu0 %v15857_v61  ;;  %v15926_v56 = vld [vmem:[%s18522_s13 + $0x110c] ss:$16 sps:$4 sm:$0xff]  }
0x2079   :  { %v15929_v61 = vld [vmem:[%s18522_s13 + $0x134c] ss:$16 sps:$4 sm:$0xff]  }
0x207a   :  { %11583 = vmatpush1.bf16.msra.mxu1 %v15852_v7  ;;  %11620 = vmatpush1.bf16.msra.mxu0 %v15855_v57  ;;  %v15927_v7 = vld [vmem:[%s18522_s13 + $0x1348] ss:$16 sps:$4 sm:$0xff]   ;;  %v15932_v57 = vld [vmem:[%s18522_s13 + $0x132c] ss:$16 sps:$4 sm:$0xff]  }
0x207b   :  { %11584 = vmatprep.subr.bf16.mxu1 %v15860_v12  ;;  %11621 = vmatprep.subr.bf16.mxu0 %v15863_v52  ;;  %v15930_v12 = vld [vmem:[%s18522_s13 + $0x1328] ss:$16 sps:$4 sm:$0xff]   ;;  %v15935_v52 = vld [vmem:[%s18522_s13 + $0x130c] ss:$16 sps:$4 sm:$0xff]  }
0x207e   :  { %11585 = vmatpush1.bf16.msra.mxu1 %v15858_v9  ;;  %11622 = vmatpush1.bf16.msra.mxu0 %v15861_v16  ;;  %v15933_v9 = vld [vmem:[%s18522_s13 + $0x1308] ss:$16 sps:$4 sm:$0xff]   ;;  %v9746_v16 = vsel %vm722_vm1, %v18131_v59, 0.0 }
0x207f   :  { %11586 = vmatprep.subr.bf16.mxu1 %v15866_v13  ;;  %11623 = vmatprep.subr.bf16.mxu0 %v15869_v2  ;;  %v9778_v13 = vmul.f32 %v18131_v59, %v18131_v59  ;;  %v9753_v2 = vsel %vm722_vm1, %v18139_v10, 0.0 }
0x2082   :  { %11587 = vmatpush1.bf16.msra.mxu1 %v15864_v37  ;;  %11624 = vmatpush1.bf16.msra.mxu0 %v15867_v45  ;;  %v9747_v37 = vrot.slane %v9746_v16, 4  ;;  %v9782_v45 = vsel %vm722_vm1, %v9778_v13, 0.0 }
0x2083   :  { %11588 = vmatprep.subr.bf16.mxu1 %v15872_v18  ;;  %11625 = vmatprep.subr.bf16.mxu0 %v15875_v34  ;;  %v9754_v18 = vrot.slane %v9753_v2, 4 }
0x2084   :  { %v9748_v34 = vadd.f32 %v9747_v37, %v9746_v16 }
0x2086   :  { %11589 = vmatpush1.bf16.msra.mxu1 %v15870_v0  ;;  %11626 = vmatpush1.bf16.msra.mxu0 %v15873_v31  ;;  %v9755_v31 = vadd.f32 %v9754_v18, %v9753_v2 }
0x2087   :  { %11590 = vmatprep.subr.bf16.mxu1 %v15878_v43  ;;  %11627 = vmatprep.subr.bf16.mxu0 %v15881_v44  ;;  %v9749_v44 = vrot.slane %v9748_v34, 2 }
0x208a   :  { %11591 = vmatpush1.bf16.msra.mxu1 %v15876_v20  ;;  %11628 = vmatpush1.bf16.msra.mxu0 %v15879_v4  ;;  %v9756_v4 = vrot.slane %v9755_v31, 2 }
0x208b   :  { %11592 = vmatprep.subr.bf16.mxu1 %v15884_v63  ;;  %11629 = vmatprep.subr.bf16.mxu0 %v15887_v6  ;;  %v9750_v6 = vadd.f32 %v9749_v44, %v9748_v34 }
0x208e   :  { %11593 = vmatpush2.bf16.msra.mxu1 %v15882_v28  ;;  %11630 = vmatpush1.bf16.msra.mxu0 %v15885_v46  ;;  %v9757_v46 = vadd.f32 %v9756_v4, %v9755_v31 }
0x208f   :  { %11594 = vmatprep.subr.bf16.mxu1 %v15890_v47  ;;  %11631 = vmatprep.subr.bf16.mxu0 %v15893_v39 }
0x2092   :  { %11595 = vmatpush2.bf16.msra.mxu1 %v15888_v50  ;;  %11632 = vmatpush1.bf16.msra.mxu0 %v15891_v27  ;;  %v9751_v50 = vrot.slane %v9750_v6, 1 }
0x2093   :  { %11596 = vmatprep.subr.bf16.mxu1 %v15896_v5  ;;  %11633 = vmatprep.subr.bf16.mxu0 %v15899_v14  ;;  %v9758_v14 = vrot.slane %v9757_v46, 1 }
0x2096   :  { %11597 = vmatpush2.bf16.msra.mxu1 %v15894_v32  ;;  %11634 = vmatpush2.bf16.msra.mxu0 %v15897_v35 }
0x2097   :  { %11598 = vmatprep.subr.bf16.mxu1 %v15902_v25  ;;  %11635 = vmatprep.subr.bf16.mxu0 %v15905_v53  ;;  %v12069_v25 = vld [vmem:[#allocation41 + $0x1f8] sm:$0xff]  ;;  %v9752_v53 = vadd.f32 %v9751_v50, %v9750_v6  ;;  %v12063_v50 = vld [vmem:[#allocation41 + $0x1c8] sm:$0xff] }
0x209a   :  { %11599 = vmatpush2.bf16.msra.mxu1 %v15900_v40  ;;  %11636 = vmatpush2.bf16.msra.mxu0 %v15903_v42  ;;  %v12053_v42 = vld [vmem:[#allocation41 + $0x178] sm:$0xff] }
0x209b   :  { %11600 = vmatprep.subr.bf16.mxu1 %v15908_v48  ;;  %11637 = vmatprep.subr.bf16.mxu0 %v15911_v23  ;;  %v12068_v23 = vld [vmem:[#allocation41 + $0x1f0] sm:$0xff] }
0x209e   :  { %11601 = vmatpush2.bf16.msra.mxu1 %v15906_v55  ;;  %11638 = vmatpush2.bf16.msra.mxu0 %v15909_v24  ;;  %v9759_v55 = vadd.f32 %v9758_v14, %v9757_v46  ;;  %v12048_v46 = vld [vmem:[#allocation41 + $0x150] sm:$0xff] }
0x209f   :  { %11602 = vmatprep.subr.bf16.mxu1 %v15914_v36  ;;  %11639 = vmatprep.subr.bf16.mxu0 %v15917_v58  ;;  %v12052_v36 = vld [vmem:[#allocation41 + $0x170] sm:$0xff] }
0x20a2   :  { %11603 = vmatpush2.bf16.msra.mxu1 %v15912_v49  ;;  %11640 = vmatpush2.bf16.msra.mxu0 %v15915_v54  ;;  %v12067_v54 = vld [vmem:[#allocation41 + $0x1e8] sm:$0xff] }
0x20a3   :  { %11604 = vmatprep.subr.bf16.mxu1 %v15920_v22  ;;  %11641 = vmatprep.subr.bf16.mxu0 %v15923_v33  ;;  %v18381_v22 = vmul.f32 0.5, %v9752_v53  ;;  %v12062_v53 = vld [vmem:[#allocation41 + $0x1c0] sm:$0xff] }
0x20a6   :  { %11605 = vmatpush2.bf16.msra.mxu1 %v15918_v26  ;;  %11642 = vmatpush2.bf16.msra.mxu0 %v15921_v30  ;;  %v12051_v26 = vld [vmem:[#allocation41 + $0x168] sm:$0xff] }
0x20a7   :  { %11606 = vmatprep.subr.bf16.mxu1 %v15926_v56  ;;  %11643 = vmatprep.subr.bf16.mxu0 %v15929_v61 }
0x20aa   :  { %11607 = vmatpush2.bf16.msra.mxu1 %v15924_v1  ;;  %11644 = vmatpush2.bf16.msra.mxu0 %v15927_v7  ;;  %v12066_v7 = vld [vmem:[#allocation41 + $0x1e0] sm:$0xff] }
0x20ab   :  { %11645 = vmatprep.subr.bf16.mxu0 %v15932_v57  ;;  %v18389_v57 = vmul.f32 0.5, %v9759_v55  ;;  %v12046_v55 = vld [vmem:[#allocation41 + $0x140] sm:$0xff] }
0x20ad   :  { %11609 = vmatmul.mubr.bf16.vlgmr.msra.gmra.mxu1 %v18299_v3  ;;  %v9779_v3 = vmul.f32 %v18139_v10, %v18139_v10 }
0x20ae   :  { %11646 = vmatpush2.bf16.msra.mxu0 %v15930_v12  ;;  %11928 = vmatprep.mubr.f32.mxu1 %v16650_v15 }
0x20af   :  { %11647 = vmatprep.subr.bf16.mxu0 %v15935_v52  ;;  %v9789_v0 = vsel %vm722_vm1, %v9779_v3, 0.0  ;;  %v12065_v3 = vld [vmem:[#allocation41 + $0x1d8] sm:$0xff] }
0x20b0   :  { %v9790_v43 = vrot.slane %v9789_v0, 4 }
0x20b2   :  { %11648 = vmatpush2.bf16.msra.mxu0 %v15933_v9  ;;  %v9791_v63 = vadd.f32 %v9790_v43, %v9789_v0  ;;  %v12050_v9 = vld [vmem:[#allocation41 + $0x160] sm:$0xff]  ;;  %v9814_v43 = vmul.f32 %v18381_v22, %v18381_v22 }
0x20b3   :  { %13846 = vmatprep.subr.mxu0 %v12069_v25 }
0x20b4   :  { %v9792_v39 = vrot.slane %v9791_v63, 2 }
0x20b5   :  { %11650 = vmatmul.mubr.bf16.vlgmr.msra.gmra.mxu0 %v18307_v60  ;;  %v9783_v60 = vrot.slane %v9782_v45, 4 }
0x20b6   :  { %v9793_v35 = vadd.f32 %v9792_v39, %v9791_v63  ;;  %13847 = vmatpush3.msra.mxu0 %v12053_v42  ;;  %v9815_v39 = vmul.f32 %v18389_v57, %v18389_v57 }
0x20b7   :  { %v9784_v20 = vadd.f32 %v9783_v60, %v9782_v45  ;;  %13848 = vmatprep.subr.mxu0 %v12068_v23  ;;  %v12049_v60 = vld [vmem:[#allocation41 + $0x158] sm:$0xff] }
0x20b8   :  { %v9794_v58 = vrot.slane %v9793_v35, 1  ;;  %13849 = vmatpush3.msra.mxu0 %v12052_v36  ;;  %v12061_v36 = vld [vmem:[#allocation41 + $0x1b8] sm:$0xff] }
0x20b9   :  { %v9785_v28 = vrot.slane %v9784_v20, 2  ;;  %13850 = vmatprep.subr.mxu0 %v12067_v54 }
0x20ba   :  { %13851 = vmatpush3.msra.mxu0 %v12051_v26  ;;  %v9795_v16 = vadd.f32 %v9794_v58, %v9793_v35  ;;  %v12047_v35 = vld [vmem:[#allocation41 + $0x148] sm:$0xff] }
0x20bb   :  { %v9786_v5 = vadd.f32 %v9785_v28, %v9784_v20  ;;  %13852 = vmatprep.subr.mxu0 %v12066_v7  ;;  %v12064_v20 = vld [vmem:[#allocation41 + $0x1d0] sm:$0xff] }
0x20bc   :  { %13853 = vmatpush3.msra.mxu0 %v12050_v9 }
0x20bd   :  { %v9787_v48 = vrot.slane %v9786_v5, 1  ;;  %13854 = vmatprep.subr.mxu0 %v12065_v3 }
0x20be   :  { %13855 = vmatpush3.msra.mxu0 %v12049_v60 }
0x20bf   :  { %v9788_v30 = vadd.f32 %v9787_v48, %v9786_v5  ;;  %13856 = vmatprep.subr.mxu0 %v12064_v20 }
0x20c0   :  { %13857 = vmatpush3.msra.mxu0 %v12048_v46 }
0x20c1   :  { %v9810_v31 = vmul.f32 0.5, %v9788_v30  ;;  %13858 = vmatprep.subr.mxu0 %v12063_v50  ;;  %v12045_v30 = vld [vmem:[#allocation41 + $0x138] sm:$0xff] }
0x20c2   :  { %13859 = vmatpush3.msra.mxu0 %v12047_v35 }
0x20c3   :  { %v9818_v25 = vsub.f32 %v9810_v31, %v9814_v43  ;;  %13860 = vmatprep.subr.mxu0 %v12062_v53 }
0x20c4   :  { %13861 = vmatpush3.msra.mxu0 %v12046_v55 }
0x20c5   :  { %13862 = vmatprep.subr.mxu0 %v12061_v36  ;;  %v9823_v36 = vsub.f32 %v18139_v10, %v18389_v57 }
0x20c6   :  { %13863 = vmatpush3.msra.mxu0 %v12045_v30 }
0x212d   :  { %v11528_v47 = vpop.f32.mrf.mxu1 }
0x212f   :  { %v11530_v27 = vpop.f32.mrf.mxu1 }
0x2131   :  { %v11532_v32 = vpop.f32.mrf.mxu1 }
0x2133   :  { %v11533_v40 = vpop.f32.mrf.mxu1 }
0x2135   :  { %v11569_v24 = vpop.f32.mrf.mxu0 }
0x2136   :  { %v18379_v49 = vadd.f32 %v11569_v24, %v11528_v47  ;;  %v9811_v47 = vmul.f32 0.5, %v9795_v16  ;;  %v12044_v16 = vld [vmem:[#allocation41 + $0x130] sm:$0xff] }
0x2137   :  { %v11571_v33 = vpop.f32.mrf.mxu0 }
0x2138   :  { %v11659_v56 = vsel %vm722_vm1, %v18379_v49, 0.0  ;;  %v11691_v61 = vmul.f32 %v18379_v49, %v18379_v49  ;;  %v18387_v1 = vadd.f32 %v11571_v33, %v11530_v27  ;;  %v9819_v24 = vsub.f32 %v9811_v47, %v9815_v39  ;;  %v18401_v39 = vld [vmem:[#allocation35] sm:$0xff] }
0x2139   :  { %v11660_v12 = vrot.slane %v11659_v56, 4  ;;  %v11573_v52 = vpop.f32.mrf.mxu0  ;;  %v11759_v50 = vrot.slane %v18401_v39, %v17345_v19 }
0x213a   :  { %v11695_v13 = vsel %vm722_vm1, %v11691_v61, 0.0  ;;  %v11666_v2 = vsel %vm722_vm1, %v18387_v1, 0.0  ;;  %v11692_v37 = vmul.f32 %v18387_v1, %v18387_v1  ;;  %v12060_v61 = vld [vmem:[#allocation41 + $0x1b0] sm:$0xff] }
0x213b   :  { %v11661_v45 = vadd.f32 %v11660_v12, %v11659_v56  ;;  %v11696_v18 = vrot.slane %v11695_v13, 4  ;;  %v11667_v34 = vrot.slane %v11666_v2, 4  ;;  %v11574_v0 = vpop.f32.mrf.mxu0  ;;  %v9826_v56 = vmax.f32 %v9818_v25, 0.0  ;;  %13864 = vmatprep.subr.mxu0 %v12060_v61 }
0x213c   :  { %v11702_v44 = vsel %vm722_vm1, %v11692_v37, 0.0  ;;  %13865 = vmatpush3.msra.mxu0 %v12044_v16  ;;  %v12058_v0 = vld [vmem:[#allocation41 + $0x1a0] sm:$0xff]  ;;  %v11763_v25 = vrot.slane %v18401_v39, %v18004_v29 }
0x213d   :  { %v11662_v4 = vrot.slane %v11661_v45, 2  ;;  %v11697_v63 = vadd.f32 %v11696_v18, %v11695_v13  ;;  %v11668_v6 = vadd.f32 %v11667_v34, %v11666_v2  ;;  %v11703_v28 = vrot.slane %v11702_v44, 4  ;;  %v12059_v2 = vld [vmem:[#allocation41 + $0x1a8] sm:$0xff] }
0x213e   :  { %v9827_v13 = vmax.f32 %v9819_v24, 0.0  ;;  %13866 = vmatprep.subr.mxu0 %v12059_v2  ;;  %v12043_v18 = vld [vmem:[#allocation41 + $0x128] sm:$0xff]  ;;  %v9830_v60 = vadd.f32 1e-05, %v9826_v56  ;;  %v11783_v30 = vrot.slane %v11763_v25, %v17345_v19 }
0x213f   :  { %v11663_v27 = vadd.f32 %v11662_v4, %v11661_v45  ;;  %v11698_v5 = vrot.slane %v11697_v63, 2  ;;  %v11669_v14 = vrot.slane %v11668_v6, 2  ;;  %v11704_v32 = vadd.f32 %v11703_v28, %v11702_v44  ;;  %13867 = vmatpush3.msra.mxu0 %v12043_v18  ;;  %v12042_v44 = vld [vmem:[#allocation41 + $0x120] sm:$0xff] }
0x2140   :  { %13868 = vmatprep.subr.mxu0 %v12058_v0  ;;  %v9831_v20 = vadd.f32 1e-05, %v9827_v13  ;;  %15972 = vrsqrt.f32 %v9830_v60  ;;  %v18430_v60 = vld [vmem:[%s16851_s19] sm:$0x3]  ;;  %s16652_s19 = smov [#allocation44]  }
0x2141   :  { %v11664_v40 = vrot.slane %v11663_v27, 1  ;;  %v11699_v42 = vadd.f32 %v11698_v5, %v11697_v63  ;;  %v11670_v48 = vadd.f32 %v11669_v14, %v11668_v6  ;;  %v11705_v23 = vrot.slane %v11704_v32, 2  ;;  %13869 = vmatpush3.msra.mxu0 %v12042_v44  ;;  %s12224_s18 = sshll.u32 %s16652_s19, 4  ;;  %s12225_s18 = int_to_ptr.vmem [resolvable:$true] %s12224_s18 }
0x2142   :  { %15974 = vrsqrt.f32 %v9831_v20  ;;  %v11799_v14 = vrot.slane %v18401_v39, %v17348_v62  ;;  %s16525_s11 = scalar_lea.vmem %s12225_s18, 32  ;;  %p16530_p10 = scmp.lt.s32.totalorder %s12225_s18, %s12225_s18 }
0x2143   :  { %v11665_v58 = vadd.f32 %v11664_v40, %v11663_v27  ;;  %v11700_v54 = vrot.slane %v11699_v42, 1  ;;  %v11671_v33 = vrot.slane %v11670_v48, 1  ;;  %v11706_v26 = vadd.f32 %v11705_v23, %v11704_v32  ;;  %v15984_v27 = vld [vmem:[#allocation40] sm:$0xff]  ;;  %p16526_p9 = scmp.ne.s32.totalorder %s12225_s18, %s16525_s11  ;;  %p16531_p11 = scmp.lt.s32.totalorder %s16525_s11, %s16525_s11 }
0x2144   :  { %v9846_v5 = vrot.slane %v15984_v27, %v17345_v19  ;;  %v9850_v35 = vrot.slane %v15984_v27, %v18004_v29  ;;  %v9822_v40 = vsub.f32 %v18131_v59, %v18381_v22  ;;  %v9886_v24 = vrot.slane %v15984_v27, %v17348_v62 }
0x2145   :  { %v11687_v7 = vmul.f32 0.5, %v11665_v58  ;;  %v11701_v12 = vadd.f32 %v11700_v54, %v11699_v42  ;;  %v11672_v52 = vadd.f32 %v11671_v33, %v11670_v48  ;;  %v11707_v9 = vrot.slane %v11706_v26, 1  ;;  %p16532_p12 = por %p16531_p11, %p16530_p10 }
0x2146   :  { %v11779_v48 = vrot.slane %v11759_v50, %v17345_v19  ;;  %v9866_v55 = vrot.slane %v9846_v5, %v17345_v19  ;;  %v11803_v58 = vrot.slane %v18401_v39, %v18008_v21  ;;  %v9890_v54 = vrot.slane %v15984_v27, %v18008_v21 }
0x2147   :  { %v11723_v37 = vmul.f32 0.5, %v11701_v12  ;;  %v11727_v3 = vmul.f32 %v11687_v7, %v11687_v7  ;;  %v11688_v45 = vmul.f32 0.5, %v11672_v52  ;;  %v11708_v34 = vadd.f32 %v11707_v9, %v11706_v26  ;;  %p16533_p13 = pnand %p16532_p12, %p16526_p9 }
0x2148   :  { %v11735_v42 = vsub.f32 %v18379_v49, %v11687_v7  ;;  %v11819_v59 = vrot.slane %v11799_v14, %v17348_v62  ;;  %v9870_v22 = vrot.slane %v9850_v35, %v17345_v19  ;;  %v11823_v10 = vrot.slane %v11803_v58, %v17348_v62 }
0x2149   :  { %v11731_v31 = vsub.f32 %v11723_v37, %v11727_v3  ;;  %v11728_v43 = vmul.f32 %v11688_v45, %v11688_v45  ;;  %v11724_v4 = vmul.f32 0.5, %v11708_v34  ;;  %v11736_v26 = vsub.f32 %v18387_v1, %v11688_v45 }
0x214a   :  { %v9906_v12 = vrot.slane %v9886_v24, %v17348_v62  ;;  %v9910_v9 = vrot.slane %v9890_v54, %v17348_v62 }
0x214b   :  { %v11739_v63 = vmax.f32 %v11731_v31, 0.0  ;;  %v11732_v6 = vsub.f32 %v11724_v4, %v11728_v43 }
0x214d   :  { %v11743_v28 = vadd.f32 1e-05, %v11739_v63  ;;  %v11740_v46 = vmax.f32 %v11732_v6, 0.0  ;;  %v15973_v32 = vpop.eup %15972 }
0x214e   :  { %v9838_v29 = vmul.f32 %v15973_v32, %v9822_v40 }
0x214f   :  { %15976 = vrsqrt.f32 %v11743_v28  ;;  %v11744_v47 = vadd.f32 1e-05, %v11740_v46  ;;  %v15975_v53 = vpop.eup %15974 }
0x2150   :  { %v9839_v49 = vmul.f32 %v15975_v53, %v9823_v36  ;;  %v9879_v57 = vmul.f32 %v9866_v55, %v9838_v29 }
0x2151   :  { %15978 = vrsqrt.f32 %v11744_v47 }
0x2152   :  { %v9880_v52 = vmul.f32 %v9870_v22, %v9839_v49  ;;  %v9919_v37 = vadd.f32 %v9906_v12, %v9879_v57 }
0x2154   :  { %v9920_v1 = vadd.f32 %v9910_v9, %v9880_v52 }
0x215c   :  { %v15977_v23 = vpop.eup %15976 }
0x215d   :  { %v11751_v33 = vmul.f32 %v15977_v23, %v11735_v42 }
0x215e   :  { %v15979_v56 = vpop.eup %15978 }
0x215f   :  { %v11792_v61 = vmul.f32 %v11779_v48, %v11751_v33  ;;  %v11752_v7 = vmul.f32 %v15979_v56, %v11736_v26 }
0x2161   :  { %v11832_v21 = vadd.f32 %v11819_v59, %v11792_v61  ;;  %v11793_v16 = vmul.f32 %v11783_v30, %v11752_v7 }
0x2163   :  { %v11836_v13 = vmax.f32 %v11832_v21, 0.0  ;;  %v11833_v2 = vadd.f32 %v11823_v10, %v11793_v16 }
0x2165   :  { %v11837_v3 = vmax.f32 %v11833_v2, 0.0  ;;  %v11840_v45 = vadd.f32 %v11836_v13, %v9919_v37 }
0x2167   :  { %v11841_v18 = vadd.f32 %v11837_v3, %v9920_v1  ;;  %v11844_v0 = vmax.f32 %v11840_v45, 0.0 }
0x2169   :  { %v11845_v34 = vmax.f32 %v11841_v18, 0.0 }
0x216b   :  { %13255 = vmatprep.subr.msk.mxu1 %vm722_vm1, %v11845_v34  ;;  %v11767_v34 = vrot.slane %v18401_v39, %v18151_v51 }
0x216c   :  { %13256 = vmatpush1.msk.msra.mxu1 %vm722_vm1, %v11844_v0  ;;  %v11807_v0 = vrot.slane %v18401_v39, %v18154_v8 }
0x216d   :  { %v11610_v31 = vpop.f32.mrf.mxu1  ;;  %13257 = vmatmul.mubr.msk.f32.vlgmr.msra.gmra.mxu1 %vm8840_vm8, %v18430_v60 }
0x216e   :  { %11999 = vmatprep.mubr.f32.mxu1 %v16650_v15 }
0x216f   :  { %v11612_v43 = vpop.f32.mrf.mxu1 }
0x2171   :  { %v11614_v44 = vpop.f32.mrf.mxu1 }
0x2172   :  { %v11787_v44 = vrot.slane %v11767_v34, %v17345_v19 }
0x2173   :  { %v11615_v20 = vpop.f32.mrf.mxu1 }
0x2175   :  { %v11651_v4 = vpop.f32.mrf.mxu0 }
0x2176   :  { %v11652_v63 = vadd.f32 %v11651_v4, %v11610_v31  ;;  %v11771_v31 = vrot.slane %v18401_v39, %v18158_v11  ;;  %v11811_v4 = vrot.slane %v18401_v39, %v18162_v38 }
0x2177   :  { %v11653_v6 = vpop.f32.mrf.mxu0 }
0x2178   :  { %v11673_v28 = vsel %vm722_vm1, %v11652_v63, 0.0  ;;  %v11693_v46 = vmul.f32 %v11652_v63, %v11652_v63  ;;  %v11654_v47 = vadd.f32 %v11653_v6, %v11612_v43  ;;  %v11831_v8 = vrot.slane %v11811_v4, %v17348_v62 }
0x2179   :  { %v11674_v50 = vrot.slane %v11673_v28, 4  ;;  %v11655_v27 = vpop.f32.mrf.mxu0 }
0x217a   :  { %v11709_v5 = vsel %vm722_vm1, %v11693_v46, 0.0  ;;  %v11680_v14 = vsel %vm722_vm1, %v11654_v47, 0.0  ;;  %v11694_v32 = vmul.f32 %v11654_v47, %v11654_v47 }
0x217b   :  { %v11675_v35 = vadd.f32 %v11674_v50, %v11673_v28  ;;  %v11710_v25 = vrot.slane %v11709_v5, 4  ;;  %v11681_v53 = vrot.slane %v11680_v14, 4  ;;  %v11656_v15 = vpop.f32.mrf.mxu0  ;;  %v11827_v28 = vrot.slane %v11807_v0, %v17348_v62  ;;  %v12020_v62 = vld [vmem:[#allocation41 + $0x70] sm:$0xff] }
0x217c   :  { %v11716_v40 = vsel %vm722_vm1, %v11694_v32, 0.0  ;;  %v11791_v50 = vrot.slane %v11771_v31, %v17345_v19  ;;  %v12037_v15 = vld [vmem:[#allocation41 + $0xf8] sm:$0xff] }
0x217d   :  { %v11676_v42 = vrot.slane %v11675_v35, 2  ;;  %v11711_v48 = vadd.f32 %v11710_v25, %v11709_v5  ;;  %v11682_v23 = vadd.f32 %v11681_v53, %v11680_v14  ;;  %v11717_v55 = vrot.slane %v11716_v40, 4  ;;  %v12021_v19 = vld [vmem:[#allocation41 + $0x78] sm:$0xff] }
0x217f   :  { %v11677_v24 = vadd.f32 %v11676_v42, %v11675_v35  ;;  %v11712_v36 = vrot.slane %v11711_v48, 2  ;;  %v11683_v58 = vrot.slane %v11682_v23, 2  ;;  %v11718_v29 = vadd.f32 %v11717_v55, %v11716_v40  ;;  %v12057_v40 = vld [vmem:[#allocation41 + $0x198] sm:$0xff]  ;;  %v12035_v42 = vld [vmem:[#allocation41 + $0xe8] sm:$0xff]  ;;  %v12040_v55 = vld [vmem:[#allocation41 + $0x110] sm:$0xff] }
0x2180   :  { %13870 = vmatprep.subr.mxu0 %v12057_v40 }
0x2181   :  { %v11678_v54 = vrot.slane %v11677_v24, 1  ;;  %v11713_v33 = vadd.f32 %v11712_v36, %v11711_v48  ;;  %v11684_v59 = vadd.f32 %v11683_v58, %v11682_v23  ;;  %v11719_v49 = vrot.slane %v11718_v29, 2  ;;  %v12056_v48 = vld [vmem:[#allocation41 + $0x190] sm:$0xff]  ;;  %v12034_v23 = vld [vmem:[#allocation41 + $0xe0] sm:$0xff]  ;;  %v12017_v36 = vld [vmem:[#allocation41 + $0x58] sm:$0xff] }
0x2182   :  { %v12032_v58 = vld [vmem:[#allocation41 + $0xd0] sm:$0xff] }
0x2183   :  { %v11679_v22 = vadd.f32 %v11678_v54, %v11677_v24  ;;  %v11714_v26 = vrot.slane %v11713_v33, 1  ;;  %v11685_v30 = vrot.slane %v11684_v59, 1  ;;  %v11720_v56 = vadd.f32 %v11719_v49, %v11718_v29  ;;  %v12018_v24 = vld [vmem:[#allocation41 + $0x60] sm:$0xff]  ;;  %v12016_v29 = vld [vmem:[#allocation41 + $0x50] sm:$0xff]  ;;  %v12031_v54 = vld [vmem:[#allocation41 + $0xc8] sm:$0xff] }
0x2184   :  { %v12014_v49 = vld [vmem:[#allocation41 + $0x40] sm:$0xff] }
0x2185   :  { %v11689_v61 = vmul.f32 0.5, %v11679_v22  ;;  %v11715_v7 = vadd.f32 %v11714_v26, %v11713_v33  ;;  %v11686_v10 = vadd.f32 %v11685_v30, %v11684_v59  ;;  %v11721_v57 = vrot.slane %v11720_v56, 1  ;;  %v12015_v33 = vld [vmem:[#allocation41 + $0x48] sm:$0xff]  ;;  %v12030_v59 = vld [vmem:[#allocation41 + $0xc0] sm:$0xff]  ;;  %v12029_v22 = vld [vmem:[#allocation41 + $0xb8] sm:$0xff] }
0x2186   :  { %v12013_v26 = vld [vmem:[#allocation41 + $0x38] sm:$0xff]  ;;  %v12028_v30 = vld [vmem:[#allocation41 + $0xb0] sm:$0xff] }
0x2187   :  { %v11725_v12 = vmul.f32 0.5, %v11715_v7  ;;  %v11729_v21 = vmul.f32 %v11689_v61, %v11689_v61  ;;  %v11690_v52 = vmul.f32 0.5, %v11686_v10  ;;  %v11722_v9 = vadd.f32 %v11721_v57, %v11720_v56  ;;  %v12012_v56 = vld [vmem:[#allocation41 + $0x30] sm:$0xff]  ;;  %v12011_v7 = vld [vmem:[#allocation41 + $0x28] sm:$0xff]  ;;  %v12026_v10 = vld [vmem:[#allocation41 + $0xa0] sm:$0xff] }
0x2188   :  { %v11737_v43 = vsub.f32 %v11652_v63, %v11689_v61  ;;  %v12027_v61 = vld [vmem:[#allocation41 + $0xa8] sm:$0xff]  ;;  %v12010_v57 = vld [vmem:[#allocation41 + $0x20] sm:$0xff] }
0x2189   :  { %v11733_v16 = vsub.f32 %v11725_v12, %v11729_v21  ;;  %v11730_v13 = vmul.f32 %v11690_v52, %v11690_v52  ;;  %v11726_v2 = vmul.f32 0.5, %v11722_v9  ;;  %v11738_v46 = vsub.f32 %v11654_v47, %v11690_v52  ;;  %v12036_v47 = vld [vmem:[#allocation41 + $0xf0] sm:$0xff]  ;;  %v12025_v12 = vld [vmem:[#allocation41 + $0x98] sm:$0xff] }
0x218a   :  { %v12009_v21 = vld [vmem:[#allocation41 + $0x18] sm:$0xff]  ;;  %v12024_v52 = vld [vmem:[#allocation41 + $0x90] sm:$0xff] }
0x218b   :  { %v11741_v37 = vmax.f32 %v11733_v16, 0.0  ;;  %v11734_v1 = vsub.f32 %v11726_v2, %v11730_v13  ;;  %v12008_v9 = vld [vmem:[#allocation41 + $0x10] sm:$0xff]  ;;  %v12023_v16 = vld [vmem:[#allocation41 + $0x88] sm:$0xff]  ;;  %v12022_v2 = vld [vmem:[#allocation41 + $0x80] sm:$0xff] }
0x218c   :  { %v12007_v13 = vld [vmem:[#allocation41 + $0x8] sm:$0xff] }
0x218d   :  { %v11745_v3 = vadd.f32 1e-05, %v11741_v37  ;;  %v11742_v45 = vmax.f32 %v11734_v1, 0.0  ;;  %v12006_v37 = vld [vmem:[#allocation41] sm:$0xff]  ;;  %v12055_v1 = vld [vmem:[#allocation41 + $0x188] sm:$0xff] }
0x218f   :  { %15980 = vrsqrt.f32 %v11745_v3  ;;  %v11746_v18 = vadd.f32 1e-05, %v11742_v45  ;;  %v12039_v3 = vld [vmem:[#allocation41 + $0x108] sm:$0xff]  ;;  %v12054_v45 = vld [vmem:[#allocation41 + $0x180] sm:$0xff] }
0x2191   :  { %15982 = vrsqrt.f32 %v11746_v18  ;;  %v12038_v18 = vld [vmem:[#allocation41 + $0x100] sm:$0xff] }
0x219c   :  { %v15981_v20 = vpop.eup %15980 }
0x219d   :  { %v11753_v6 = vmul.f32 %v15981_v20, %v11737_v43 }
0x219e   :  { %v15983_v51 = vpop.eup %15982 }
0x219f   :  { %v11794_v27 = vmul.f32 %v11787_v44, %v11753_v6  ;;  %v11754_v5 = vmul.f32 %v15983_v51, %v11738_v46  ;;  %v13261_v6 = vld [vmem:[#allocation43] ss:$0 sm:$0xff] }
0x21a1   :  { %v11834_v14 = vadd.f32 %v11827_v28, %v11794_v27  ;;  %v11795_v11 = vmul.f32 %v11791_v50, %v11754_v5 }
0x21a3   :  { %v11838_v63 = vmax.f32 %v11834_v14, 0.0  ;;  %v11835_v32 = vadd.f32 %v11831_v8, %v11795_v11 }
0x21a5   :  { %v11839_v35 = vmax.f32 %v11835_v32, 0.0  ;;  %v11842_v25 = vadd.f32 %v11838_v63, %v18171_v41  ;;  %v12041_v41 = vld [vmem:[#allocation41 + $0x118] sm:$0xff] }
0x21a6   :  { %13871 = vmatpush3.msra.mxu0 %v12041_v41 }
0x21a7   :  { %v11843_v38 = vadd.f32 %v11839_v35, %v18174_v17  ;;  %v11846_v53 = vmax.f32 %v11842_v25, 0.0  ;;  %v12019_v17 = vld [vmem:[#allocation41 + $0x68] sm:$0xff]  ;;  %13872 = vmatprep.subr.mxu0 %v12056_v48 }
0x21a8   :  { %13873 = vmatpush3.msra.mxu0 %v12040_v55 }
0x21a9   :  { %v11847_v39 = vmax.f32 %v11843_v38, 0.0  ;;  %13874 = vmatprep.subr.mxu0 %v12055_v1 }
0x21aa   :  { %13875 = vmatpush3.msra.mxu0 %v12039_v3 }
0x21ab   :  { %13258 = vmatprep.subr.msk.mxu1 %vm722_vm1, %v11847_v39  ;;  %13876 = vmatprep.subr.mxu0 %v12054_v45 }
0x21ac   :  { %13259 = vmatpush1.msk.msra.mxu1 %vm722_vm1, %v11846_v53  ;;  %13877 = vmatpush3.msra.mxu0 %v12038_v18 }
0x21ad   :  { %13260 = vmatmul.mubr.msk.f32.vlgmr.msra.gmra.mxu1 %vm8840_vm8, %v18430_v60  ;;  %13811 = vmatprep.subr.mxu1 %v12037_v15  ;;  %v12033_v60 = vld [vmem:[#allocation41 + $0xd8] sm:$0xff] }
0x21ae   :  { %13812 = vmatpush3.msra.mxu1 %v12021_v19 }
0x21af   :  { %13813 = vmatprep.subr.mxu1 %v12036_v47 }
0x21b0   :  { %13814 = vmatpush3.msra.mxu1 %v12020_v62 }
0x21b1   :  { %13815 = vmatprep.subr.mxu1 %v12035_v42 }
0x21b2   :  { %13816 = vmatpush3.msra.mxu1 %v12019_v17 }
0x21b3   :  { %13817 = vmatprep.subr.mxu1 %v12034_v23 }
0x21b4   :  { %13818 = vmatpush3.msra.mxu1 %v12018_v24 }
0x21b5   :  { %13819 = vmatprep.subr.mxu1 %v12033_v60 }
0x21b6   :  { %13820 = vmatpush3.msra.mxu1 %v12017_v36 }
0x21b7   :  { %13821 = vmatprep.subr.mxu1 %v12032_v58 }
0x21b8   :  { %13822 = vmatpush3.msra.mxu1 %v12016_v29 }
0x21b9   :  { %13823 = vmatprep.subr.mxu1 %v12031_v54 }
0x21ba   :  { %13824 = vmatpush3.msra.mxu1 %v12015_v33 }
0x21bb   :  { %13825 = vmatprep.subr.mxu1 %v12030_v59 }
0x21bc   :  { %13826 = vmatpush3.msra.mxu1 %v12014_v49 }
0x21bd   :  { %13827 = vmatprep.subr.mxu1 %v12029_v22 }
0x21be   :  { %13828 = vmatpush3.msra.mxu1 %v12013_v26 }
0x21bf   :  { %13829 = vmatprep.subr.mxu1 %v12028_v30 }
0x21c0   :  { %13830 = vmatpush3.msra.mxu1 %v12012_v56 }
0x21c1   :  { %13831 = vmatprep.subr.mxu1 %v12027_v61 }
0x21c2   :  { %13832 = vmatpush3.msra.mxu1 %v12011_v7 }
0x21c3   :  { %13833 = vmatprep.subr.mxu1 %v12026_v10 }
0x21c4   :  { %13834 = vmatpush3.msra.mxu1 %v12010_v57 }
0x21c5   :  { %13835 = vmatprep.subr.mxu1 %v12025_v12 }
0x21c6   :  { %13836 = vmatpush3.msra.mxu1 %v12009_v21 }
0x21c7   :  { %13837 = vmatprep.subr.mxu1 %v12024_v52 }
0x21c8   :  { %13838 = vmatpush3.msra.mxu1 %v12008_v9 }
0x21c9   :  { %13839 = vmatprep.subr.mxu1 %v12023_v16 }
0x21ca   :  { %13840 = vmatpush3.msra.mxu1 %v12007_v13 }
0x21cb   :  { %13841 = vmatprep.subr.mxu1 %v12022_v2 }
0x21cc   :  { %13842 = vmatpush3.msra.mxu1 %v12006_v37 }
0x222d   :  { %v11930_v34 = vpop.f32.mrf.mxu1 }
0x222f   :  { %v11932_v0 = vpop.f32.mrf.mxu1 }
0x2230   :  { %12141 = vmatprep.mubr.f32.mxu1 %v11932_v0 }
0x2231   :  { %12142 = vmatmul.mubr.f32.vlgmr.msra.gmra.mxu1 %v11930_v34 }
0x226d   :  { %v12001_v31 = vpop.f32.mrf.mxu1 }
0x226f   :  { %v12003_v43 = vpop.f32.mrf.mxu1 }
0x2270   :  { %12211 = vmatprep.mubr.f32.mxu0 %v12003_v43 }
0x2271   :  { %12212 = vmatmul.mubr.f32.vlgmr.msra.gmra.mxu0 %v12001_v31 }
0x22f1   :  { %v13843_v44 = vpop.f32.mrf.mxu1 }
0x22f3   :  { %v13844_v20 = vpop.f32.mrf.mxu1 }
0x22f4   :  { %v13845_v4 = vadd.f32 %v13844_v20, %v13843_v44 }
0x22f6   :  { %v12144_v50 = vadd.f32 %v13845_v4, %v13261_v6 }
0x2331   :  { %v13878_v28 = vpop.f32.mrf.mxu0 }
0x2333   :  { %v13879_v46 = vpop.f32.mrf.mxu0 }
0x2334   :  { %v13880_v51 = vadd.f32 %v13879_v46, %v13878_v28 }
0x2336   :  { %v12214_v27 = vadd.f32 %v13880_v51, %v12144_v50 }
0x2338   :  { %12217 = vst [vmem:[#allocation44] sm:$0x3] %v12214_v27 }
0x2339   :  { %16536 = shalt.err (!%p16533_p13)
}
0x233a   :  { %12227 = dma.vmem_to_hbm [thread:$0]  %s12225_s18, 32, %s16866_s12, [#allocation4]  }
0x233b   :  { %16573 = dma.done.wait [#allocation4], 32  }
0x233c   :  { %16574 = vsyncadd [#allocation4], 4294967264 }
0x233d   :  { %12231 = vsyncpa [#allocation3], 1 }
0x233e   :  { %12232 = vsyncpa [#allocation6], 1 }
0x233f   :  { %12233 = vsyncpa [#allocation9], 1 }
0x2340   :  { %12234 = vsyncpa [#allocation12], 1 }
0x2341   :  { %12235 = vsyncpa [#allocation15], 1 }
0x2342   :  { %12236 = vsyncpa [#allocation18], 1 }
0x2343   :  { %12237 = vsyncpa [#allocation21], 1 }
0x2344   :  { %12238 = vsyncpa [#allocation24], 1 }
0x2345   :  { %12239 = vsyncpa [#allocation27], 1 }
0x2346   :  { %12240 = vsyncpa [#allocation30], 1 }
0x2347   :  { %12241 = vsyncpa [#allocation33], 1 }
0x2348   :  { %12242 = vsyncpa [#allocation36], 1 }
0x2349   :  { %12243 = vsyncpa [#allocation39], 1 }
0x234a   :  { %12244 = vsyncpa [#allocation42], 1 }
0x234b   :  { %12245 = vsyncpa [#allocation4], 1 }

</bundles_post_ra>
